<compile_context>
chip_gen: v6e
topology: v6e:2x2x1
jax: 0.10.0
libtpu: 0.0.40
codegen_flags: <defaults>
</compile_context>

<pallas_src>
import functools
import math

import jax
import jax.numpy as jnp
from jax import lax
from jax.experimental import pallas as pl
from jax.experimental.pallas import tpu as pltpu

VMEM = pltpu.MemorySpace.VMEM
SMEM = pltpu.MemorySpace.SMEM
BF16 = jnp.bfloat16
VMEM_LIMIT = 32 * 1024 * 1024  # safe on v5e/v6e/v7x


# ----------------------------------------------------------------------------
# Kernel 1: tiled matmul + bias + activation (used for the two conv im2col GEMMs)
# ----------------------------------------------------------------------------
def _matmul_bias_act_kernel(x_ref, w_ref, b_ref, o_ref, *, act):
    x = x_ref[...].astype(BF16)
    w = w_ref[...].astype(BF16)
    y = jnp.dot(x, w, preferred_element_type=jnp.float32) + b_ref[...]
    if act == "relu":
        y = jnp.maximum(y, 0.0)
    elif act == "gelu":
        y = jax.nn.gelu(y, approximate=True)
    o_ref[...] = y.astype(o_ref.dtype)


def pallas_linear(x, w, b, act="none", out_dtype=jnp.float32, tm=256):
    M, K = x.shape
    K2, N = w.shape
    assert K == K2
    tm = M if M <= 512 else tm           # small problems: one full block
    grid = (pl.cdiv(M, tm),)
    return pl.pallas_call(
        functools.partial(_matmul_bias_act_kernel, act=act),
        grid=grid,
        out_shape=jax.ShapeDtypeStruct((M, N), out_dtype),
        in_specs=[
            pl.BlockSpec((tm, K), lambda i: (i, 0)),
            pl.BlockSpec((K, N), lambda i: (0, 0)),
            pl.BlockSpec((1, N), lambda i: (0, 0)),
        ],
        out_specs=pl.BlockSpec((tm, N), lambda i: (i, 0)),
        compiler_params=pltpu.CompilerParams(
            dimension_semantics=("parallel",),
            vmem_limit_bytes=VMEM_LIMIT),
    )(x, w, b.reshape(1, N))


# ----------------------------------------------------------------------------
# Kernel 2: fused 2-layer transformer text encoder + masked mean pool
# ----------------------------------------------------------------------------
def _text_encoder_kernel(x_ref, mask_ref,
                         wqkv_ref, bqkv_ref, wo_ref, bo_ref,
                         ln1g_ref, ln1b_ref, w1_ref, b1_ref, w2_ref, b2_ref,
                         ln2g_ref, ln2b_ref, o_ref, *, num_heads, num_layers):
    x = x_ref[0]                      # [S, D] f32 (embeddings + positions)
    mask = mask_ref[0]                # [1, S], 1.0 => padded key position
    S, D = x.shape
    hd = D // num_heads
    scale = 1.0 / math.sqrt(hd)
    neg = mask * 1e9

    for l in range(num_layers):       # static unroll over both layers
        # fused qkv projection: one [S,D]@[D,3D] bf16 matmul (f32 accumulate)
        qkv = jnp.dot(x.astype(BF16), wqkv_ref[l],
                      preferred_element_type=jnp.float32) + bqkv_ref[l]
        q, k, v = qkv[:, :D], qkv[:, D:2 * D], qkv[:, 2 * D:]

        heads = []
        for h in range(num_heads):    # tiny per-head score/context dots
            lo = h * hd
            qh = (q[:, lo:lo + hd] * scale).astype(BF16)
            kh = k[:, lo:lo + hd].astype(BF16)
            vh = v[:, lo:lo + hd].astype(BF16)
            s = jnp.dot(qh, kh.T, preferred_element_type=jnp.float32) - neg
            s = s - jnp.max(s, axis=-1, keepdims=True)
            p = jnp.exp(s)
            p = p * pl.reciprocal(jnp.sum(p, axis=-1, keepdims=True), approx=True)
            heads.append(jnp.dot(p.astype(BF16), vh,
                                 preferred_element_type=jnp.float32))
        # concatenate heads -> single D-wide output projection matmul
        attn = jnp.concatenate(heads, axis=-1)                       # [S, D]
        attn = jnp.dot(attn.astype(BF16), wo_ref[l],
                       preferred_element_type=jnp.float32) + bo_ref[l]

        # residual + layernorm 1 (post-norm, f32 stats)
        h1 = x + attn
        mu = jnp.mean(h1, axis=-1, keepdims=True)
        var = jnp.mean((h1 - mu) ** 2, axis=-1, keepdims=True)
        h1n = (h1 - mu) * lax.rsqrt(var + 1e-5) * ln1g_ref[l] + ln1b_ref[l]

        # feed-forward
        ff = jnp.dot(h1n.astype(BF16), w1_ref[l],
                     preferred_element_type=jnp.float32) + b1_ref[l]
        ff = jax.nn.gelu(ff, approximate=True)   # TODO(synk): PyTorch GELU is erf
        ff = jnp.dot(ff.astype(BF16), w2_ref[l],
                     preferred_element_type=jnp.float32) + b2_ref[l]

        # residual + layernorm 2
        h2 = h1n + ff
        mu2 = jnp.mean(h2, axis=-1, keepdims=True)
        var2 = jnp.mean((h2 - mu2) ** 2, axis=-1, keepdims=True)
        x = (h2 - mu2) * lax.rsqrt(var2 + 1e-5) * ln2g_ref[l] + ln2b_ref[l]

    # masked mean pool over the sequence (sum via matmul, EUP reciprocal)
    keep = 1.0 - mask                                                # [1, S]
    cnt = jnp.maximum(jnp.sum(keep, axis=-1, keepdims=True), 1.0)    # [1, 1]
    pooled = jnp.dot(keep, x, preferred_element_type=jnp.float32)    # [1, D]
    o_ref[0] = pooled * pl.reciprocal(cnt, approx=True)


def pallas_text_encoder(h, mask3, enc, num_heads=4):
    B, S, D = h.shape
    L = enc["w_qkv"].shape[0]
    F = enc["w1"].shape[2]
    assert D % num_heads == 0

    def const(shape):
        return pl.BlockSpec(shape, lambda b: (0,) * len(shape))

    in_specs = [
        pl.BlockSpec((1, S, D), lambda b: (b, 0, 0)),
        pl.BlockSpec((1, 1, S), lambda b: (b, 0, 0)),
        const((L, D, 3 * D)), const((L, 1, 3 * D)),     # w_qkv, b_qkv
        const((L, D, D)), const((L, 1, D)),             # wo, bo
        const((L, 1, D)), const((L, 1, D)),             # ln1 gamma, beta
        const((L, D, F)), const((L, 1, F)),             # ffn w1, b1
        const((L, F, D)), const((L, 1, D)),             # ffn w2, b2
        const((L, 1, D)), const((L, 1, D)),             # ln2 gamma, beta
    ]
    out = pl.pallas_call(
        functools.partial(_text_encoder_kernel, num_heads=num_heads, num_layers=L),
        grid=(B,),
        out_shape=jax.ShapeDtypeStruct((B, 1, D), jnp.float32),
        in_specs=in_specs,
        out_specs=pl.BlockSpec((1, 1, D), lambda b: (b, 0, 0)),
        compiler_params=pltpu.CompilerParams(
            dimension_semantics=("parallel",),      # batch axis -> 2 TCs on v7x
            vmem_limit_bytes=VMEM_LIMIT),
    )(h, mask3,
      enc["w_qkv"], enc["b_qkv"], enc["wo"], enc["bo"],
      enc["ln1_g"], enc["ln1_b"], enc["w1"], enc["b1"],
      enc["w2"], enc["b2"], enc["ln2_g"], enc["ln2_b"])
    return out.reshape(B, D)


# ----------------------------------------------------------------------------
# Kernel 3: fused tail — projections + fusion + routing + both heads + mix
# ----------------------------------------------------------------------------
def _tail_kernel(img_ref, txt_ref,
                 wip_ref, bip_ref, wtp_ref, btp_ref,
                 gwi_ref, gwt_ref, gb_ref, fow_ref, fob_ref,
                 q1w_ref, q1b_ref, q2w_ref, q2b_ref,
                 f1w_ref, f1b_ref, f2w_ref, f2b_ref,
                 mix_ref, o_ref):
    img = img_ref[...].astype(BF16)                 # [B, 3136]
    txt = txt_ref[...].astype(BF16)                 # [B, 128]

    img_p = jnp.dot(img, wip_ref[...], preferred_element_type=jnp.float32) + bip_ref[...]
    txt_p = jnp.dot(txt, wtp_ref[...], preferred_element_type=jnp.float32) + btp_ref[...]

    # TODO(synk): MultimodalFusion('cross_attention') internals are not in the
    # provided source; reconstructed as learned gated fusion + GELU projection.
    gate = jax.nn.sigmoid(
        jnp.dot(img_p.astype(BF16), gwi_ref[...], preferred_element_type=jnp.float32)
        + jnp.dot(txt_p.astype(BF16), gwt_ref[...], preferred_element_type=jnp.float32)
        + gb_ref[...])
    fused_in = gate * img_p + (1.0 - gate) * txt_p
    fused = jax.nn.gelu(
        jnp.dot(fused_in.astype(BF16), fow_ref[...],
                preferred_element_type=jnp.float32) + fob_ref[...],
        approximate=True)

    # apply_selective_routing(fused, threshold=0.01)
    routed = jnp.where(jnp.abs(fused) > 0.01, fused, 0.0)

    # TODO(synk): ResidualPrecisionBoostLinear quantization internals unknown;
    # quantized head computed as a dense linear.  Dropout(0.2) -> identity (eval).
    q = jax.nn.gelu(
        jnp.dot(routed.astype(BF16), q1w_ref[...],
                preferred_element_type=jnp.float32) + q1b_ref[...],
        approximate=True)
    q_logits = jnp.dot(q.astype(BF16), q2w_ref[...],
                       preferred_element_type=jnp.float32) + q2b_ref[...]

    f = jax.nn.gelu(
        jnp.dot(fused.astype(BF16), f1w_ref[...],
                preferred_element_type=jnp.float32) + f1b_ref[...],
        approximate=True)
    full_logits = jnp.dot(f.astype(BF16), f2w_ref[...],
                          preferred_element_type=jnp.float32) + f2b_ref[...]

    mix = jax.nn.sigmoid(mix_ref[0, 0])
    o_ref[...] = mix * q_logits + (1.0 - mix) * full_logits


def pallas_tail(img_feat, txt_feat, p):
    B = img_feat.shape[0]
    H = p["gate_b"].shape[0]
    H2 = p["q1_w"].shape[1]
    C = p["q2_w"].shape[1]
    return pl.pallas_call(
        _tail_kernel,
        out_shape=jax.ShapeDtypeStruct((B, C), jnp.float32),
        in_specs=[pl.BlockSpec(memory_space=VMEM)] * 19
        + [pl.BlockSpec(memory_space=SMEM)],
        out_specs=pl.BlockSpec(memory_space=VMEM),
        compiler_params=pltpu.CompilerParams(vmem_limit_bytes=VMEM_LIMIT),
    )(img_feat, txt_feat,
      p["img_proj_w"], p["img_proj_b"].reshape(1, H),
      p["txt_proj_w"], p["txt_proj_b"].reshape(1, H),
      p["gate_wi"], p["gate_wt"], p["gate_b"].reshape(1, H),
      p["fuse_out_w"], p["fuse_out_b"].reshape(1, H),
      p["q1_w"], p["q1_b"].reshape(1, H2), p["q2_w"], p["q2_b"].reshape(1, C),
      p["f1_w"], p["f1_b"].reshape(1, H2), p["f2_w"], p["f2_b"].reshape(1, C),
      p["mix_ratio"])


# ----------------------------------------------------------------------------
# XLA-side glue (layout-only ops: im2col, pooling, embedding lookup)
# ----------------------------------------------------------------------------
def im2col3x3(x_nhwc):
    B, H, W, C = x_nhwc.shape
    xp = jnp.pad(x_nhwc, ((0, 0), (1, 1), (1, 1), (0, 0)))
    cols = [xp[:, i:i + H, j:j + W, :] for i in range(3) for j in range(3)]
    return jnp.concatenate(cols, axis=-1).reshape(B * H * W, 9 * C)


def maxpool2(x_nhwc):
    B, H, W, C = x_nhwc.shape
    return x_nhwc.reshape(B, H // 2, 2, W // 2, 2, C).max(axis=(2, 4))


# ----------------------------------------------------------------------------
# Full forward
# ----------------------------------------------------------------------------
def forward(params, image, tokens, text_padding_mask=None):
    B = image.shape[0]

    # --- image encoder (ATQImageClassifier.extract_features, reconstructed) ---
    # TODO(synk): ATQImageClassifier internals not provided; reconstructed as
    # conv(1->32)+relu+pool -> conv(32->64)+relu+pool -> 64*7*7 flat features.
    x = jnp.transpose(image, (0, 2, 3, 1)).astype(BF16)            # NCHW -> NHWC
    p1 = im2col3x3(x)                                              # [B*784, 9]
    y1 = pallas_linear(p1, params["conv1_w"], params["conv1_b"],
                       act="relu", out_dtype=BF16)                 # [B*784, 32]
    y1 = maxpool2(y1.reshape(B, 28, 28, 32))                       # [B,14,14,32]
    p2 = im2col3x3(y1)                                             # [B*196, 288]
    y2 = pallas_linear(p2, params["conv2_w"], params["conv2_b"],
                       act="relu", out_dtype=BF16)                 # [B*196, 64]
    y2 = maxpool2(y2.reshape(B, 14, 14, 64))                       # [B,7,7,64]
    # NHWC flatten; the NCHW flatten permutation is folded into img_proj_w rows.
    img_feat = y2.reshape(B, 7 * 7 * 64)                           # [B,3136] bf16

    # --- text encoder (ATQTextEncoder, reconstructed): fused 2-layer kernel ---
    S = tokens.shape[1]
    h = params["emb"][tokens] + params["pos"][:S][None]            # [B,S,128] f32
    if text_padding_mask is None:
        mask = jnp.zeros((B, S), jnp.float32)
    else:
        mask = text_padding_mask.astype(jnp.float32)
    txt_feat = pallas_text_encoder(h, mask.reshape(B, 1, S),
                                   params["enc"], num_heads=4)     # [B,128]

    # --- fusion + selective routing + quant/full heads + sigmoid mix (fused) ---
    return pallas_tail(img_feat, txt_feat, params)                 # [B,num_classes]


# ----------------------------------------------------------------------------
# Deterministic parameter init (synthetic; mirrors __init__ shapes).
# Matmul weights stored bf16; biases / LN params / scalars in f32.
# ----------------------------------------------------------------------------
def init_params(key, num_classes=10, vocab_size=1000, embed_dim=128,
                hidden_dim=256, num_layers=2, max_seq=64):
    keys = iter(jax.random.split(key, 64))

    def dense(shape, scale=None, dtype=BF16):
        if scale is None:
            scale = 1.0 / math.sqrt(shape[-2])
        return (jax.random.normal(next(keys), shape, jnp.float32) * scale).astype(dtype)

    def zeros(shape):
        return jnp.zeros(shape, jnp.float32)

    def ones(shape):
        return jnp.ones(shape, jnp.float32)

    D, F, H, L = embed_dim, hidden_dim, hidden_dim, num_layers
    p = {}
    # image encoder (im2col conv weights, [9*Cin, Cout])
    p["conv1_w"] = dense((9 * 1, 32), 0.2)
    p["conv1_b"] = zeros((32,))
    p["conv2_w"] = dense((9 * 32, 64))
    p["conv2_b"] = zeros((64,))
    # text encoder (layer-stacked weights)
    p["emb"] = dense((vocab_size, D), 0.02, jnp.float32)
    p["pos"] = dense((max_seq, D), 0.02, jnp.float32)
    p["enc"] = dict(
        w_qkv=dense((L, D, 3 * D)), b_qkv=zeros((L, 1, 3 * D)),
        wo=dense((L, D, D)), bo=zeros((L, 1, D)),
        ln1_g=ones((L, 1, D)), ln1_b=zeros((L, 1, D)),
        w1=dense((L, D, F)), b1=zeros((L, 1, F)),
        w2=dense((L, F, D)), b2=zeros((L, 1, D)),
        ln2_g=ones((L, 1, D)), ln2_b=zeros((L, 1, D)),
    )
    # fusion
    # TODO(synk): img_proj_w rows are in NHWC-flatten (h,w,c) order; loading real
    # PyTorch weights (which see a NCHW flatten) would require permuting rows.
    p["img_proj_w"] = dense((64 * 7 * 7, H)); p["img_proj_b"] = zeros((H,))
    p["txt_proj_w"] = dense((D, H)); p["txt_proj_b"] = zeros((H,))
    p["gate_wi"] = dense((H, H)); p["gate_wt"] = dense((H, H)); p["gate_b"] = zeros((H,))
    p["fuse_out_w"] = dense((H, H)); p["fuse_out_b"] = zeros((H,))
    # classifier heads
    p["q1_w"] = dense((H, H // 2)); p["q1_b"] = zeros((H // 2,))
    p["q2_w"] = dense((H // 2, num_classes)); p["q2_b"] = zeros((num_classes,))
    p["f1_w"] = dense((H, H // 2)); p["f1_b"] = zeros((H // 2,))
    p["f2_w"] = dense((H // 2, num_classes)); p["f2_b"] = zeros((num_classes,))
    p["mix_ratio"] = jnp.full((1, 1), 0.8, jnp.float32)
    return p


if __name__ == "__main__":
    key = jax.random.PRNGKey(0)
    k_img, k_tok, k_param = jax.random.split(key, 3)

    B, S = 2, 8
    num_classes, vocab = 10, 1000
    image = jax.random.normal(k_img, (B, 1, 28, 28), jnp.float32)   # NCHW
    tokens = jax.random.randint(k_tok, (B, S), 0, vocab, dtype=jnp.int32)

    params = init_params(k_param, num_classes=num_classes, vocab_size=vocab)

    logits = jax.jit(forward)(params, image, tokens)
    logits = jax.block_until_ready(logits)

    assert logits.shape == (B, num_classes), logits.shape
    assert bool(jnp.all(jnp.isfinite(logits)))
    print("KERNEL_OK")
</pallas_src>

<mosaic_0001>
module attributes {stable_mosaic.version = 11 : i64} {
  func.func @_matmul_bias_act_kernel(%arg0: i32, %arg1: memref<256x9xbf16, #tpu.memory_space<vmem>>, %arg2: memref<9x32xbf16, #tpu.memory_space<vmem>>, %arg3: memref<1x32xf32, #tpu.memory_space<vmem>>, %arg4: memref<256x32xbf16, #tpu.memory_space<vmem>>) attributes {dimension_semantics = [#tpu.dimension_semantics<parallel>], iteration_bounds = array<i64: 7>, scalar_prefetch = 0 : i64, scratch_operands = 0 : i64, tpu.core_type = #tpu.core_type<tc>, window_params = [{transform_indices = @transform_0, window_bounds = array<i64: 256, 9>}, {pipeline_mode = #tpu.pipeline_mode<synchronous>, transform_indices = @transform_1, window_bounds = array<i64: 9, 32>}, {pipeline_mode = #tpu.pipeline_mode<synchronous>, transform_indices = @transform_2, window_bounds = array<i64: 1, 32>}, {transform_indices = @transform_3, window_bounds = array<i64: 256, 32>}]} {
    %c0 = arith.constant 0 : index
    %c0_0 = arith.constant 0 : index
    %0 = vector.load %arg1[%c0, %c0_0] : memref<256x9xbf16, #tpu.memory_space<vmem>>, vector<256x9xbf16>
    %c0_1 = arith.constant 0 : index
    %c0_2 = arith.constant 0 : index
    %1 = vector.load %arg2[%c0_1, %c0_2] : memref<9x32xbf16, #tpu.memory_space<vmem>>, vector<9x32xbf16>
    %cst = arith.constant dense<0.000000e+00> : vector<256x32xf32>
    %2 = tpu.matmul %0, %1, %cst {dimension_numbers = #tpu.dot_dimension_numbers<[1], [0], [0], [1], [0, 0, 1, 1], [], []>} : vector<256x9xbf16>, vector<9x32xbf16>, vector<256x32xf32> -> vector<256x32xf32>
    %c0_3 = arith.constant 0 : index
    %c0_4 = arith.constant 0 : index
    %3 = vector.load %arg3[%c0_3, %c0_4] : memref<1x32xf32, #tpu.memory_space<vmem>>, vector<1x32xf32>
    %4 = vector.broadcast %3 : vector<1x32xf32> to vector<256x32xf32>
    %5 = arith.addf %2, %4 : vector<256x32xf32>
    %cst_5 = arith.constant 0.000000e+00 : f32
    %6 = vector.broadcast %cst_5 : f32 to vector<256x32xf32>
    %7 = arith.maximumf %5, %6 : vector<256x32xf32>
    %8 = arith.truncf %7 : vector<256x32xf32> to vector<256x32xbf16>
    %c0_6 = arith.constant 0 : index
    %c0_7 = arith.constant 0 : index
    %9 = vector.load %arg4[%c0_6, %c0_7] : memref<256x32xbf16, #tpu.memory_space<vmem>>, vector<256x32xbf16>
    tpu.vector_store %arg4[%c0_6, %c0_7], %8 {strides = array<i32>} : memref<256x32xbf16, #tpu.memory_space<vmem>>, vector<256x32xbf16>,
    return
  }
  func.func @transform_0(%arg0: i32) -> (i32, i32) {
    %c0_i32 = arith.constant 0 : i32
    %c0_i32_0 = arith.constant 0 : i32
    return %arg0, %c0_i32 : i32, i32
  }
  func.func @transform_1(%arg0: i32) -> (i32, i32) {
    %c0_i32 = arith.constant 0 : i32
    %c0_i32_0 = arith.constant 0 : i32
    %c0_i32_1 = arith.constant 0 : i32
    return %c0_i32, %c0_i32_0 : i32, i32
  }
  func.func @transform_2(%arg0: i32) -> (i32, i32) {
    %c0_i32 = arith.constant 0 : i32
    %c0_i32_0 = arith.constant 0 : i32
    %c0_i32_1 = arith.constant 0 : i32
    return %c0_i32, %c0_i32_0 : i32, i32
  }
  func.func @transform_3(%arg0: i32) -> (i32, i32) {
    %c0_i32 = arith.constant 0 : i32
    %c0_i32_0 = arith.constant 0 : i32
    return %arg0, %c0_i32 : i32, i32
  }
}

module attributes {stable_mosaic.version = 11 : i64} {
  func.func @_matmul_bias_act_kernel(%arg0: i32, %arg1: memref<392x288xbf16, #tpu.memory_space<vmem>>, %arg2: memref<288x64xbf16, #tpu.memory_space<vmem>>, %arg3: memref<1x64xf32, #tpu.memory_space<vmem>>, %arg4: memref<392x64xbf16, #tpu.memory_space<vmem>>) attributes {dimension_semantics = [#tpu.dimension_semantics<parallel>], iteration_bounds = array<i64: 1>, scalar_prefetch = 0 : i64, scratch_operands = 0 : i64, tpu.core_type = #tpu.core_type<tc>, window_params = [{transform_indices = @transform_0, window_bounds = array<i64: 392, 288>}, {pipeline_mode = #tpu.pipeline_mode<synchronous>, transform_indices = @transform_1, window_bounds = array<i64: 288, 64>}, {pipeline_mode = #tpu.pipeline_mode<synchronous>, transform_indices = @transform_2, window_bounds = array<i64: 1, 64>}, {transform_indices = @transform_3, window_bounds = array<i64: 392, 64>}]} {
    %c0 = arith.constant 0 : index
    %c0_0 = arith.constant 0 : index
    %0 = vector.load %arg1[%c0, %c0_0] : memref<392x288xbf16, #tpu.memory_space<vmem>>, vector<392x288xbf16>
    %c0_1 = arith.constant 0 : index
    %c0_2 = arith.constant 0 : index
    %1 = vector.load %arg2[%c0_1, %c0_2] : memref<288x64xbf16, #tpu.memory_space<vmem>>, vector<288x64xbf16>
    %cst = arith.constant dense<0.000000e+00> : vector<392x64xf32>
    %2 = tpu.matmul %0, %1, %cst {dimension_numbers = #tpu.dot_dimension_numbers<[1], [0], [0], [1], [0, 0, 1, 1], [], []>} : vector<392x288xbf16>, vector<288x64xbf16>, vector<392x64xf32> -> vector<392x64xf32>
    %c0_3 = arith.constant 0 : index
    %c0_4 = arith.constant 0 : index
    %3 = vector.load %arg3[%c0_3, %c0_4] : memref<1x64xf32, #tpu.memory_space<vmem>>, vector<1x64xf32>
    %4 = vector.broadcast %3 : vector<1x64xf32> to vector<392x64xf32>
    %5 = arith.addf %2, %4 : vector<392x64xf32>
    %cst_5 = arith.constant 0.000000e+00 : f32
    %6 = vector.broadcast %cst_5 : f32 to vector<392x64xf32>
    %7 = arith.maximumf %5, %6 : vector<392x64xf32>
    %8 = arith.truncf %7 : vector<392x64xf32> to vector<392x64xbf16>
    %c0_6 = arith.constant 0 : index
    %c0_7 = arith.constant 0 : index
    %9 = vector.load %arg4[%c0_6, %c0_7] : memref<392x64xbf16, #tpu.memory_space<vmem>>, vector<392x64xbf16>
    tpu.vector_store %arg4[%c0_6, %c0_7], %8 {strides = array<i32>} : memref<392x64xbf16, #tpu.memory_space<vmem>>, vector<392x64xbf16>,
    return
  }
  func.func @transform_0(%arg0: i32) -> (i32, i32) {
    %c0_i32 = arith.constant 0 : i32
    %c0_i32_0 = arith.constant 0 : i32
    return %arg0, %c0_i32 : i32, i32
  }
  func.func @transform_1(%arg0: i32) -> (i32, i32) {
    %c0_i32 = arith.constant 0 : i32
    %c0_i32_0 = arith.constant 0 : i32
    %c0_i32_1 = arith.constant 0 : i32
    return %c0_i32, %c0_i32_0 : i32, i32
  }
  func.func @transform_2(%arg0: i32) -> (i32, i32) {
    %c0_i32 = arith.constant 0 : i32
    %c0_i32_0 = arith.constant 0 : i32
    %c0_i32_1 = arith.constant 0 : i32
    return %c0_i32, %c0_i32_0 : i32, i32
  }
  func.func @transform_3(%arg0: i32) -> (i32, i32) {
    %c0_i32 = arith.constant 0 : i32
    %c0_i32_0 = arith.constant 0 : i32
    return %arg0, %c0_i32 : i32, i32
  }
}

module attributes {stable_mosaic.version = 11 : i64} {
  func.func @_text_encoder_kernel(%arg0: i32, %arg1: memref<1x8x128xf32, #tpu.memory_space<vmem>>, %arg2: memref<1x1x8xf32, #tpu.memory_space<vmem>>, %arg3: memref<2x128x384xbf16, #tpu.memory_space<vmem>>, %arg4: memref<2x1x384xf32, #tpu.memory_space<vmem>>, %arg5: memref<2x128x128xbf16, #tpu.memory_space<vmem>>, %arg6: memref<2x1x128xf32, #tpu.memory_space<vmem>>, %arg7: memref<2x1x128xf32, #tpu.memory_space<vmem>>, %arg8: memref<2x1x128xf32, #tpu.memory_space<vmem>>, %arg9: memref<2x128x256xbf16, #tpu.memory_space<vmem>>, %arg10: memref<2x1x256xf32, #tpu.memory_space<vmem>>, %arg11: memref<2x256x128xbf16, #tpu.memory_space<vmem>>, %arg12: memref<2x1x128xf32, #tpu.memory_space<vmem>>, %arg13: memref<2x1x128xf32, #tpu.memory_space<vmem>>, %arg14: memref<2x1x128xf32, #tpu.memory_space<vmem>>, %arg15: memref<1x1x128xf32, #tpu.memory_space<vmem>>) attributes {dimension_semantics = [#tpu.dimension_semantics<parallel>], iteration_bounds = array<i64: 2>, scalar_prefetch = 0 : i64, scratch_operands = 0 : i64, tpu.core_type = #tpu.core_type<tc>, window_params = [{transform_indices = @transform_0, window_bounds = array<i64: 1, 8, 128>}, {transform_indices = @transform_1, window_bounds = array<i64: 1, 1, 8>}, {pipeline_mode = #tpu.pipeline_mode<synchronous>, transform_indices = @transform_2, window_bounds = array<i64: 2, 128, 384>}, {pipeline_mode = #tpu.pipeline_mode<synchronous>, transform_indices = @transform_3, window_bounds = array<i64: 2, 1, 384>}, {pipeline_mode = #tpu.pipeline_mode<synchronous>, transform_indices = @transform_4, window_bounds = array<i64: 2, 128, 128>}, {pipeline_mode = #tpu.pipeline_mode<synchronous>, transform_indices = @transform_5, window_bounds = array<i64: 2, 1, 128>}, {pipeline_mode = #tpu.pipeline_mode<synchronous>, transform_indices = @transform_6, window_bounds = array<i64: 2, 1, 128>}, {pipeline_mode = #tpu.pipeline_mode<synchronous>, transform_indices = @transform_7, window_bounds = array<i64: 2, 1, 128>}, {pipeline_mode = #tpu.pipeline_mode<synchronous>, transform_indices = @transform_8, window_bounds = array<i64: 2, 128, 256>}, {pipeline_mode = #tpu.pipeline_mode<synchronous>, transform_indices = @transform_9, window_bounds = array<i64: 2, 1, 256>}, {pipeline_mode = #tpu.pipeline_mode<synchronous>, transform_indices = @transform_10, window_bounds = array<i64: 2, 256, 128>}, {pipeline_mode = #tpu.pipeline_mode<synchronous>, transform_indices = @transform_11, window_bounds = array<i64: 2, 1, 128>}, {pipeline_mode = #tpu.pipeline_mode<synchronous>, transform_indices = @transform_12, window_bounds = array<i64: 2, 1, 128>}, {pipeline_mode = #tpu.pipeline_mode<synchronous>, transform_indices = @transform_13, window_bounds = array<i64: 2, 1, 128>}, {transform_indices = @transform_14, window_bounds = array<i64: 1, 1, 128>}]} {
    %c0 = arith.constant 0 : index
    %c0_0 = arith.constant 0 : index
    %c0_1 = arith.constant 0 : index
    %0 = vector.load %arg1[%c0, %c0_0, %c0_1] : memref<1x8x128xf32, #tpu.memory_space<vmem>>, vector<1x8x128xf32>
    %1 = vector.shape_cast %0 : vector<1x8x128xf32> to vector<8x128xf32>
    %c0_2 = arith.constant 0 : index
    %c0_3 = arith.constant 0 : index
    %c0_4 = arith.constant 0 : index
    %2 = vector.load %arg2[%c0_2, %c0_3, %c0_4] : memref<1x1x8xf32, #tpu.memory_space<vmem>>, vector<1x1x8xf32>
    %3 = vector.shape_cast %2 : vector<1x1x8xf32> to vector<1x8xf32>
    %cst = arith.constant 1.000000e+09 : f32
    %4 = vector.broadcast %cst : f32 to vector<1x8xf32>
    %5 = arith.mulf %3, %4 : vector<1x8xf32>
    %6 = arith.truncf %1 : vector<8x128xf32> to vector<8x128xbf16>
    %c0_5 = arith.constant 0 : index
    %c0_6 = arith.constant 0 : index
    %c0_7 = arith.constant 0 : index
    %7 = vector.load %arg3[%c0_5, %c0_6, %c0_7] : memref<2x128x384xbf16, #tpu.memory_space<vmem>>, vector<1x128x384xbf16>
    %8 = vector.shape_cast %7 : vector<1x128x384xbf16> to vector<128x384xbf16>
    %cst_8 = arith.constant dense<0.000000e+00> : vector<8x384xf32>
    %9 = tpu.matmul %6, %8, %cst_8 {dimension_numbers = #tpu.dot_dimension_numbers<[1], [0], [0], [1], [0, 0, 1, 1], [], []>} : vector<8x128xbf16>, vector<128x384xbf16>, vector<8x384xf32> -> vector<8x384xf32>
    %c0_9 = arith.constant 0 : index
    %c0_10 = arith.constant 0 : index
    %c0_11 = arith.constant 0 : index
    %10 = vector.load %arg4[%c0_9, %c0_10, %c0_11] : memref<2x1x384xf32, #tpu.memory_space<vmem>>, vector<1x1x384xf32>
    %11 = vector.shape_cast %10 : vector<1x1x384xf32> to vector<1x384xf32>
    %12 = vector.broadcast %11 : vector<1x384xf32> to vector<8x384xf32>
    %13 = arith.addf %9, %12 : vector<8x384xf32>
    %14 = vector.extract_strided_slice %13 {offsets = [0, 0], sizes = [8, 128], strides = [1, 1]} : vector<8x384xf32> to vector<8x128xf32>
    %15 = vector.extract_strided_slice %13 {offsets = [0, 128], sizes = [8, 128], strides = [1, 1]} : vector<8x384xf32> to vector<8x128xf32>
    %16 = vector.extract_strided_slice %13 {offsets = [0, 256], sizes = [8, 128], strides = [1, 1]} : vector<8x384xf32> to vector<8x128xf32>
    %17 = vector.extract_strided_slice %14 {offsets = [0, 0], sizes = [8, 32], strides = [1, 1]} : vector<8x128xf32> to vector<8x32xf32>
    %cst_12 = arith.constant 0.176776692 : f32
    %18 = vector.broadcast %cst_12 : f32 to vector<8x32xf32>
    %19 = arith.mulf %17, %18 : vector<8x32xf32>
    %20 = arith.truncf %19 : vector<8x32xf32> to vector<8x32xbf16>
    %21 = vector.extract_strided_slice %15 {offsets = [0, 0], sizes = [8, 32], strides = [1, 1]} : vector<8x128xf32> to vector<8x32xf32>
    %22 = arith.truncf %21 : vector<8x32xf32> to vector<8x32xbf16>
    %23 = vector.extract_strided_slice %16 {offsets = [0, 0], sizes = [8, 32], strides = [1, 1]} : vector<8x128xf32> to vector<8x32xf32>
    %24 = arith.truncf %23 : vector<8x32xf32> to vector<8x32xbf16>
    %25 = tpu.transpose %22, [1, 0] : vector<8x32xbf16> -> vector<32x8xbf16>
    %cst_13 = arith.constant dense<0.000000e+00> : vector<8x8xf32>
    %26 = tpu.matmul %20, %25, %cst_13 {dimension_numbers = #tpu.dot_dimension_numbers<[1], [0], [0], [1], [0, 0, 1, 1], [], []>} : vector<8x32xbf16>, vector<32x8xbf16>, vector<8x8xf32> -> vector<8x8xf32>
    %27 = vector.broadcast %5 : vector<1x8xf32> to vector<8x8xf32>
    %28 = arith.subf %26, %27 : vector<8x8xf32>
    %cst_14 = arith.constant dense<0xFF800000> : vector<8xf32>
    %29 = vector.multi_reduction <maximumf>, %28, %cst_14 [1] : vector<8x8xf32> to vector<8xf32>
    %30 = vector.shape_cast %29 : vector<8xf32> to vector<8x1xf32>
    %31 = vector.broadcast %30 : vector<8x1xf32> to vector<8x8xf32>
    %32 = arith.subf %28, %31 : vector<8x8xf32>
    %33 = math.exp %32 : vector<8x8xf32>
    %cst_15 = arith.constant dense<0.000000e+00> : vector<8xf32>
    %34 = vector.multi_reduction <add>, %33, %cst_15 [1] : vector<8x8xf32> to vector<8xf32>
    %35 = vector.shape_cast %34 : vector<8xf32> to vector<8x1xf32>
    %36 = tpu.reciprocal %35 {approx = true} : vector<8x1xf32> -> vector<8x1xf32>
    %37 = vector.broadcast %36 : vector<8x1xf32> to vector<8x8xf32>
    %38 = arith.mulf %33, %37 : vector<8x8xf32>
    %39 = arith.truncf %38 : vector<8x8xf32> to vector<8x8xbf16>
    %cst_16 = arith.constant dense<0.000000e+00> : vector<8x32xf32>
    %40 = tpu.matmul %39, %24, %cst_16 {dimension_numbers = #tpu.dot_dimension_numbers<[1], [0], [0], [1], [0, 0, 1, 1], [], []>} : vector<8x8xbf16>, vector<8x32xbf16>, vector<8x32xf32> -> vector<8x32xf32>
    %41 = vector.extract_strided_slice %14 {offsets = [0, 32], sizes = [8, 32], strides = [1, 1]} : vector<8x128xf32> to vector<8x32xf32>
    %cst_17 = arith.constant 0.176776692 : f32
    %42 = vector.broadcast %cst_17 : f32 to vector<8x32xf32>
    %43 = arith.mulf %41, %42 : vector<8x32xf32>
    %44 = arith.truncf %43 : vector<8x32xf32> to vector<8x32xbf16>
    %45 = vector.extract_strided_slice %15 {offsets = [0, 32], sizes = [8, 32], strides = [1, 1]} : vector<8x128xf32> to vector<8x32xf32>
    %46 = arith.truncf %45 : vector<8x32xf32> to vector<8x32xbf16>
    %47 = vector.extract_strided_slice %16 {offsets = [0, 32], sizes = [8, 32], strides = [1, 1]} : vector<8x128xf32> to vector<8x32xf32>
    %48 = arith.truncf %47 : vector<8x32xf32> to vector<8x32xbf16>
    %49 = tpu.transpose %46, [1, 0] : vector<8x32xbf16> -> vector<32x8xbf16>
    %cst_18 = arith.constant dense<0.000000e+00> : vector<8x8xf32>
    %50 = tpu.matmul %44, %49, %cst_18 {dimension_numbers = #tpu.dot_dimension_numbers<[1], [0], [0], [1], [0, 0, 1, 1], [], []>} : vector<8x32xbf16>, vector<32x8xbf16>, vector<8x8xf32> -> vector<8x8xf32>
    %51 = vector.broadcast %5 : vector<1x8xf32> to vector<8x8xf32>
    %52 = arith.subf %50, %51 : vector<8x8xf32>
    %cst_19 = arith.constant dense<0xFF800000> : vector<8xf32>
    %53 = vector.multi_reduction <maximumf>, %52, %cst_19 [1] : vector<8x8xf32> to vector<8xf32>
    %54 = vector.shape_cast %53 : vector<8xf32> to vector<8x1xf32>
    %55 = vector.broadcast %54 : vector<8x1xf32> to vector<8x8xf32>
    %56 = arith.subf %52, %55 : vector<8x8xf32>
    %57 = math.exp %56 : vector<8x8xf32>
    %cst_20 = arith.constant dense<0.000000e+00> : vector<8xf32>
    %58 = vector.multi_reduction <add>, %57, %cst_20 [1] : vector<8x8xf32> to vector<8xf32>
    %59 = vector.shape_cast %58 : vector<8xf32> to vector<8x1xf32>
    %60 = tpu.reciprocal %59 {approx = true} : vector<8x1xf32> -> vector<8x1xf32>
    %61 = vector.broadcast %60 : vector<8x1xf32> to vector<8x8xf32>
    %62 = arith.mulf %57, %61 : vector<8x8xf32>
    %63 = arith.truncf %62 : vector<8x8xf32> to vector<8x8xbf16>
    %cst_21 = arith.constant dense<0.000000e+00> : vector<8x32xf32>
    %64 = tpu.matmul %63, %48, %cst_21 {dimension_numbers = #tpu.dot_dimension_numbers<[1], [0], [0], [1], [0, 0, 1, 1], [], []>} : vector<8x8xbf16>, vector<8x32xbf16>, vector<8x32xf32> -> vector<8x32xf32>
    %65 = vector.extract_strided_slice %14 {offsets = [0, 64], sizes = [8, 32], strides = [1, 1]} : vector<8x128xf32> to vector<8x32xf32>
    %cst_22 = arith.constant 0.176776692 : f32
    %66 = vector.broadcast %cst_22 : f32 to vector<8x32xf32>
    %67 = arith.mulf %65, %66 : vector<8x32xf32>
    %68 = arith.truncf %67 : vector<8x32xf32> to vector<8x32xbf16>
    %69 = vector.extract_strided_slice %15 {offsets = [0, 64], sizes = [8, 32], strides = [1, 1]} : vector<8x128xf32> to vector<8x32xf32>
    %70 = arith.truncf %69 : vector<8x32xf32> to vector<8x32xbf16>
    %71 = vector.extract_strided_slice %16 {offsets = [0, 64], sizes = [8, 32], strides = [1, 1]} : vector<8x128xf32> to vector<8x32xf32>
    %72 = arith.truncf %71 : vector<8x32xf32> to vector<8x32xbf16>
    %73 = tpu.transpose %70, [1, 0] : vector<8x32xbf16> -> vector<32x8xbf16>
    %cst_23 = arith.constant dense<0.000000e+00> : vector<8x8xf32>
    %74 = tpu.matmul %68, %73, %cst_23 {dimension_numbers = #tpu.dot_dimension_numbers<[1], [0], [0], [1], [0, 0, 1, 1], [], []>} : vector<8x32xbf16>, vector<32x8xbf16>, vector<8x8xf32> -> vector<8x8xf32>
    %75 = vector.broadcast %5 : vector<1x8xf32> to vector<8x8xf32>
    %76 = arith.subf %74, %75 : vector<8x8xf32>
    %cst_24 = arith.constant dense<0xFF800000> : vector<8xf32>
    %77 = vector.multi_reduction <maximumf>, %76, %cst_24 [1] : vector<8x8xf32> to vector<8xf32>
    %78 = vector.shape_cast %77 : vector<8xf32> to vector<8x1xf32>
    %79 = vector.broadcast %78 : vector<8x1xf32> to vector<8x8xf32>
    %80 = arith.subf %76, %79 : vector<8x8xf32>
    %81 = math.exp %80 : vector<8x8xf32>
    %cst_25 = arith.constant dense<0.000000e+00> : vector<8xf32>
    %82 = vector.multi_reduction <add>, %81, %cst_25 [1] : vector<8x8xf32> to vector<8xf32>
    %83 = vector.shape_cast %82 : vector<8xf32> to vector<8x1xf32>
    %84 = tpu.reciprocal %83 {approx = true} : vector<8x1xf32> -> vector<8x1xf32>
    %85 = vector.broadcast %84 : vector<8x1xf32> to vector<8x8xf32>
    %86 = arith.mulf %81, %85 : vector<8x8xf32>
    %87 = arith.truncf %86 : vector<8x8xf32> to vector<8x8xbf16>
    %cst_26 = arith.constant dense<0.000000e+00> : vector<8x32xf32>
    %88 = tpu.matmul %87, %72, %cst_26 {dimension_numbers = #tpu.dot_dimension_numbers<[1], [0], [0], [1], [0, 0, 1, 1], [], []>} : vector<8x8xbf16>, vector<8x32xbf16>, vector<8x32xf32> -> vector<8x32xf32>
    %89 = vector.extract_strided_slice %14 {offsets = [0, 96], sizes = [8, 32], strides = [1, 1]} : vector<8x128xf32> to vector<8x32xf32>
    %cst_27 = arith.constant 0.176776692 : f32
    %90 = vector.broadcast %cst_27 : f32 to vector<8x32xf32>
    %91 = arith.mulf %89, %90 : vector<8x32xf32>
    %92 = arith.truncf %91 : vector<8x32xf32> to vector<8x32xbf16>
    %93 = vector.extract_strided_slice %15 {offsets = [0, 96], sizes = [8, 32], strides = [1, 1]} : vector<8x128xf32> to vector<8x32xf32>
    %94 = arith.truncf %93 : vector<8x32xf32> to vector<8x32xbf16>
    %95 = vector.extract_strided_slice %16 {offsets = [0, 96], sizes = [8, 32], strides = [1, 1]} : vector<8x128xf32> to vector<8x32xf32>
    %96 = arith.truncf %95 : vector<8x32xf32> to vector<8x32xbf16>
    %97 = tpu.transpose %94, [1, 0] : vector<8x32xbf16> -> vector<32x8xbf16>
    %cst_28 = arith.constant dense<0.000000e+00> : vector<8x8xf32>
    %98 = tpu.matmul %92, %97, %cst_28 {dimension_numbers = #tpu.dot_dimension_numbers<[1], [0], [0], [1], [0, 0, 1, 1], [], []>} : vector<8x32xbf16>, vector<32x8xbf16>, vector<8x8xf32> -> vector<8x8xf32>
    %99 = vector.broadcast %5 : vector<1x8xf32> to vector<8x8xf32>
    %100 = arith.subf %98, %99 : vector<8x8xf32>
    %cst_29 = arith.constant dense<0xFF800000> : vector<8xf32>
    %101 = vector.multi_reduction <maximumf>, %100, %cst_29 [1] : vector<8x8xf32> to vector<8xf32>
    %102 = vector.shape_cast %101 : vector<8xf32> to vector<8x1xf32>
    %103 = vector.broadcast %102 : vector<8x1xf32> to vector<8x8xf32>
    %104 = arith.subf %100, %103 : vector<8x8xf32>
    %105 = math.exp %104 : vector<8x8xf32>
    %cst_30 = arith.constant dense<0.000000e+00> : vector<8xf32>
    %106 = vector.multi_reduction <add>, %105, %cst_30 [1] : vector<8x8xf32> to vector<8xf32>
    %107 = vector.shape_cast %106 : vector<8xf32> to vector<8x1xf32>
    %108 = tpu.reciprocal %107 {approx = true} : vector<8x1xf32> -> vector<8x1xf32>
    %109 = vector.broadcast %108 : vector<8x1xf32> to vector<8x8xf32>
    %110 = arith.mulf %105, %109 : vector<8x8xf32>
    %111 = arith.truncf %110 : vector<8x8xf32> to vector<8x8xbf16>
    %cst_31 = arith.constant dense<0.000000e+00> : vector<8x32xf32>
    %112 = tpu.matmul %111, %96, %cst_31 {dimension_numbers = #tpu.dot_dimension_numbers<[1], [0], [0], [1], [0, 0, 1, 1], [], []>} : vector<8x8xbf16>, vector<8x32xbf16>, vector<8x32xf32> -> vector<8x32xf32>
    %113 = tpu.concatenate %40, %64, %88, %112 in 1 : vector<8x32xf32>, vector<8x32xf32>, vector<8x32xf32>, vector<8x32xf32> -> vector<8x128xf32>
    %114 = arith.truncf %113 : vector<8x128xf32> to vector<8x128xbf16>
    %c0_32 = arith.constant 0 : index
    %c0_33 = arith.constant 0 : index
    %c0_34 = arith.constant 0 : index
    %115 = vector.load %arg5[%c0_32, %c0_33, %c0_34] : memref<2x128x128xbf16, #tpu.memory_space<vmem>>, vector<1x128x128xbf16>
    %116 = vector.shape_cast %115 : vector<1x128x128xbf16> to vector<128x128xbf16>
    %cst_35 = arith.constant dense<0.000000e+00> : vector<8x128xf32>
    %117 = tpu.matmul %114, %116, %cst_35 {dimension_numbers = #tpu.dot_dimension_numbers<[1], [0], [0], [1], [0, 0, 1, 1], [], []>} : vector<8x128xbf16>, vector<128x128xbf16>, vector<8x128xf32> -> vector<8x128xf32>
    %c0_36 = arith.constant 0 : index
    %c0_37 = arith.constant 0 : index
    %c0_38 = arith.constant 0 : index
    %118 = vector.load %arg6[%c0_36, %c0_37, %c0_38] : memref<2x1x128xf32, #tpu.memory_space<vmem>>, vector<1x1x128xf32>
    %119 = vector.shape_cast %118 : vector<1x1x128xf32> to vector<1x128xf32>
    %120 = vector.broadcast %119 : vector<1x128xf32> to vector<8x128xf32>
    %121 = arith.addf %117, %120 : vector<8x128xf32>
    %122 = arith.addf %1, %121 : vector<8x128xf32>
    %cst_39 = arith.constant dense<0.000000e+00> : vector<8xf32>
    %123 = vector.multi_reduction <add>, %122, %cst_39 [1] : vector<8x128xf32> to vector<8xf32>
    %124 = vector.shape_cast %123 : vector<8xf32> to vector<8x1xf32>
    %cst_40 = arith.constant 1.280000e+02 : f32
    %125 = vector.broadcast %cst_40 : f32 to vector<8x1xf32>
    %126 = arith.divf %124, %125 : vector<8x1xf32>
    %127 = vector.broadcast %126 : vector<8x1xf32> to vector<8x128xf32>
    %128 = arith.subf %122, %127 : vector<8x128xf32>
    %129 = arith.mulf %128, %128 : vector<8x128xf32>
    %cst_41 = arith.constant dense<0.000000e+00> : vector<8xf32>
    %130 = vector.multi_reduction <add>, %129, %cst_41 [1] : vector<8x128xf32> to vector<8xf32>
    %131 = vector.shape_cast %130 : vector<8xf32> to vector<8x1xf32>
    %cst_42 = arith.constant 1.280000e+02 : f32
    %132 = vector.broadcast %cst_42 : f32 to vector<8x1xf32>
    %133 = arith.divf %131, %132 : vector<8x1xf32>
    %134 = vector.broadcast %126 : vector<8x1xf32> to vector<8x128xf32>
    %135 = arith.subf %122, %134 : vector<8x128xf32>
    %cst_43 = arith.constant 9.99999974E-6 : f32
    %136 = vector.broadcast %cst_43 : f32 to vector<8x1xf32>
    %137 = arith.addf %133, %136 : vector<8x1xf32>
    %138 = math.rsqrt %137 : vector<8x1xf32>
    %139 = vector.broadcast %138 : vector<8x1xf32> to vector<8x128xf32>
    %140 = arith.mulf %135, %139 : vector<8x128xf32>
    %c0_44 = arith.constant 0 : index
    %c0_45 = arith.constant 0 : index
    %c0_46 = arith.constant 0 : index
    %141 = vector.load %arg7[%c0_44, %c0_45, %c0_46] : memref<2x1x128xf32, #tpu.memory_space<vmem>>, vector<1x1x128xf32>
    %142 = vector.shape_cast %141 : vector<1x1x128xf32> to vector<1x128xf32>
    %143 = vector.broadcast %142 : vector<1x128xf32> to vector<8x128xf32>
    %144 = arith.mulf %140, %143 : vector<8x128xf32>
    %c0_47 = arith.constant 0 : index
    %c0_48 = arith.constant 0 : index
    %c0_49 = arith.constant 0 : index
    %145 = vector.load %arg8[%c0_47, %c0_48, %c0_49] : memref<2x1x128xf32, #tpu.memory_space<vmem>>, vector<1x1x128xf32>
    %146 = vector.shape_cast %145 : vector<1x1x128xf32> to vector<1x128xf32>
    %147 = vector.broadcast %146 : vector<1x128xf32> to vector<8x128xf32>
    %148 = arith.addf %144, %147 : vector<8x128xf32>
    %149 = arith.truncf %148 : vector<8x128xf32> to vector<8x128xbf16>
    %c0_50 = arith.constant 0 : index
    %c0_51 = arith.constant 0 : index
    %c0_52 = arith.constant 0 : index
    %150 = vector.load %arg9[%c0_50, %c0_51, %c0_52] : memref<2x128x256xbf16, #tpu.memory_space<vmem>>, vector<1x128x256xbf16>
    %151 = vector.shape_cast %150 : vector<1x128x256xbf16> to vector<128x256xbf16>
    %cst_53 = arith.constant dense<0.000000e+00> : vector<8x256xf32>
    %152 = tpu.matmul %149, %151, %cst_53 {dimension_numbers = #tpu.dot_dimension_numbers<[1], [0], [0], [1], [0, 0, 1, 1], [], []>} : vector<8x128xbf16>, vector<128x256xbf16>, vector<8x256xf32> -> vector<8x256xf32>
    %c0_54 = arith.constant 0 : index
    %c0_55 = arith.constant 0 : index
    %c0_56 = arith.constant 0 : index
    %153 = vector.load %arg10[%c0_54, %c0_55, %c0_56] : memref<2x1x256xf32, #tpu.memory_space<vmem>>, vector<1x1x256xf32>
    %154 = vector.shape_cast %153 : vector<1x1x256xf32> to vector<1x256xf32>
    %155 = vector.broadcast %154 : vector<1x256xf32> to vector<8x256xf32>
    %156 = arith.addf %152, %155 : vector<8x256xf32>
    %157 = arith.mulf %156, %156 : vector<8x256xf32>
    %158 = arith.mulf %156, %157 : vector<8x256xf32>
    %cst_57 = arith.constant 4.471500e-02 : f32
    %159 = vector.broadcast %cst_57 : f32 to vector<8x256xf32>
    %160 = arith.mulf %159, %158 : vector<8x256xf32>
    %161 = arith.addf %156, %160 : vector<8x256xf32>
    %cst_58 = arith.constant 0.797884583 : f32
    %162 = vector.broadcast %cst_58 : f32 to vector<8x256xf32>
    %163 = arith.mulf %162, %161 : vector<8x256xf32>
    %164 = math.tanh %163 : vector<8x256xf32>
    %cst_59 = arith.constant 1.000000e+00 : f32
    %165 = vector.broadcast %cst_59 : f32 to vector<8x256xf32>
    %166 = arith.addf %165, %164 : vector<8x256xf32>
    %cst_60 = arith.constant 5.000000e-01 : f32
    %167 = vector.broadcast %cst_60 : f32 to vector<8x256xf32>
    %168 = arith.mulf %167, %166 : vector<8x256xf32>
    %169 = arith.mulf %156, %168 : vector<8x256xf32>
    %170 = arith.truncf %169 : vector<8x256xf32> to vector<8x256xbf16>
    %c0_61 = arith.constant 0 : index
    %c0_62 = arith.constant 0 : index
    %c0_63 = arith.constant 0 : index
    %171 = vector.load %arg11[%c0_61, %c0_62, %c0_63] : memref<2x256x128xbf16, #tpu.memory_space<vmem>>, vector<1x256x128xbf16>
    %172 = vector.shape_cast %171 : vector<1x256x128xbf16> to vector<256x128xbf16>
    %cst_64 = arith.constant dense<0.000000e+00> : vector<8x128xf32>
    %173 = tpu.matmul %170, %172, %cst_64 {dimension_numbers = #tpu.dot_dimension_numbers<[1], [0], [0], [1], [0, 0, 1, 1], [], []>} : vector<8x256xbf16>, vector<256x128xbf16>, vector<8x128xf32> -> vector<8x128xf32>
    %c0_65 = arith.constant 0 : index
    %c0_66 = arith.constant 0 : index
    %c0_67 = arith.constant 0 : index
    %174 = vector.load %arg12[%c0_65, %c0_66, %c0_67] : memref<2x1x128xf32, #tpu.memory_space<vmem>>, vector<1x1x128xf32>
    %175 = vector.shape_cast %174 : vector<1x1x128xf32> to vector<1x128xf32>
    %176 = vector.broadcast %175 : vector<1x128xf32> to vector<8x128xf32>
    %177 = arith.addf %173, %176 : vector<8x128xf32>
    %178 = arith.addf %148, %177 : vector<8x128xf32>
    %cst_68 = arith.constant dense<0.000000e+00> : vector<8xf32>
    %179 = vector.multi_reduction <add>, %178, %cst_68 [1] : vector<8x128xf32> to vector<8xf32>
    %180 = vector.shape_cast %179 : vector<8xf32> to vector<8x1xf32>
    %cst_69 = arith.constant 1.280000e+02 : f32
    %181 = vector.broadcast %cst_69 : f32 to vector<8x1xf32>
    %182 = arith.divf %180, %181 : vector<8x1xf32>
    %183 = vector.broadcast %182 : vector<8x1xf32> to vector<8x128xf32>
    %184 = arith.subf %178, %183 : vector<8x128xf32>
    %185 = arith.mulf %184, %184 : vector<8x128xf32>
    %cst_70 = arith.constant dense<0.000000e+00> : vector<8xf32>
    %186 = vector.multi_reduction <add>, %185, %cst_70 [1] : vector<8x128xf32> to vector<8xf32>
    %187 = vector.shape_cast %186 : vector<8xf32> to vector<8x1xf32>
    %cst_71 = arith.constant 1.280000e+02 : f32
    %188 = vector.broadcast %cst_71 : f32 to vector<8x1xf32>
    %189 = arith.divf %187, %188 : vector<8x1xf32>
    %190 = vector.broadcast %182 : vector<8x1xf32> to vector<8x128xf32>
    %191 = arith.subf %178, %190 : vector<8x128xf32>
    %cst_72 = arith.constant 9.99999974E-6 : f32
    %192 = vector.broadcast %cst_72 : f32 to vector<8x1xf32>
    %193 = arith.addf %189, %192 : vector<8x1xf32>
    %194 = math.rsqrt %193 : vector<8x1xf32>
    %195 = vector.broadcast %194 : vector<8x1xf32> to vector<8x128xf32>
    %196 = arith.mulf %191, %195 : vector<8x128xf32>
    %c0_73 = arith.constant 0 : index
    %c0_74 = arith.constant 0 : index
    %c0_75 = arith.constant 0 : index
    %197 = vector.load %arg13[%c0_73, %c0_74, %c0_75] : memref<2x1x128xf32, #tpu.memory_space<vmem>>, vector<1x1x128xf32>
    %198 = vector.shape_cast %197 : vector<1x1x128xf32> to vector<1x128xf32>
    %199 = vector.broadcast %198 : vector<1x128xf32> to vector<8x128xf32>
    %200 = arith.mulf %196, %199 : vector<8x128xf32>
    %c0_76 = arith.constant 0 : index
    %c0_77 = arith.constant 0 : index
    %c0_78 = arith.constant 0 : index
    %201 = vector.load %arg14[%c0_76, %c0_77, %c0_78] : memref<2x1x128xf32, #tpu.memory_space<vmem>>, vector<1x1x128xf32>
    %202 = vector.shape_cast %201 : vector<1x1x128xf32> to vector<1x128xf32>
    %203 = vector.broadcast %202 : vector<1x128xf32> to vector<8x128xf32>
    %204 = arith.addf %200, %203 : vector<8x128xf32>
    %205 = arith.truncf %204 : vector<8x128xf32> to vector<8x128xbf16>
    %c1 = arith.constant 1 : index
    %c0_79 = arith.constant 0 : index
    %c0_80 = arith.constant 0 : index
    %206 = vector.load %arg3[%c1, %c0_79, %c0_80] : memref<2x128x384xbf16, #tpu.memory_space<vmem>>, vector<1x128x384xbf16>
    %207 = vector.shape_cast %206 : vector<1x128x384xbf16> to vector<128x384xbf16>
    %cst_81 = arith.constant dense<0.000000e+00> : vector<8x384xf32>
    %208 = tpu.matmul %205, %207, %cst_81 {dimension_numbers = #tpu.dot_dimension_numbers<[1], [0], [0], [1], [0, 0, 1, 1], [], []>} : vector<8x128xbf16>, vector<128x384xbf16>, vector<8x384xf32> -> vector<8x384xf32>
    %c1_82 = arith.constant 1 : index
    %c0_83 = arith.constant 0 : index
    %c0_84 = arith.constant 0 : index
    %209 = vector.load %arg4[%c1_82, %c0_83, %c0_84] : memref<2x1x384xf32, #tpu.memory_space<vmem>>, vector<1x1x384xf32>
    %210 = vector.shape_cast %209 : vector<1x1x384xf32> to vector<1x384xf32>
    %211 = vector.broadcast %210 : vector<1x384xf32> to vector<8x384xf32>
    %212 = arith.addf %208, %211 : vector<8x384xf32>
    %213 = vector.extract_strided_slice %212 {offsets = [0, 0], sizes = [8, 128], strides = [1, 1]} : vector<8x384xf32> to vector<8x128xf32>
    %214 = vector.extract_strided_slice %212 {offsets = [0, 128], sizes = [8, 128], strides = [1, 1]} : vector<8x384xf32> to vector<8x128xf32>
    %215 = vector.extract_strided_slice %212 {offsets = [0, 256], sizes = [8, 128], strides = [1, 1]} : vector<8x384xf32> to vector<8x128xf32>
    %216 = vector.extract_strided_slice %213 {offsets = [0, 0], sizes = [8, 32], strides = [1, 1]} : vector<8x128xf32> to vector<8x32xf32>
    %cst_85 = arith.constant 0.176776692 : f32
    %217 = vector.broadcast %cst_85 : f32 to vector<8x32xf32>
    %218 = arith.mulf %216, %217 : vector<8x32xf32>
    %219 = arith.truncf %218 : vector<8x32xf32> to vector<8x32xbf16>
    %220 = vector.extract_strided_slice %214 {offsets = [0, 0], sizes = [8, 32], strides = [1, 1]} : vector<8x128xf32> to vector<8x32xf32>
    %221 = arith.truncf %220 : vector<8x32xf32> to vector<8x32xbf16>
    %222 = vector.extract_strided_slice %215 {offsets = [0, 0], sizes = [8, 32], strides = [1, 1]} : vector<8x128xf32> to vector<8x32xf32>
    %223 = arith.truncf %222 : vector<8x32xf32> to vector<8x32xbf16>
    %224 = tpu.transpose %221, [1, 0] : vector<8x32xbf16> -> vector<32x8xbf16>
    %cst_86 = arith.constant dense<0.000000e+00> : vector<8x8xf32>
    %225 = tpu.matmul %219, %224, %cst_86 {dimension_numbers = #tpu.dot_dimension_numbers<[1], [0], [0], [1], [0, 0, 1, 1], [], []>} : vector<8x32xbf16>, vector<32x8xbf16>, vector<8x8xf32> -> vector<8x8xf32>
    %226 = vector.broadcast %5 : vector<1x8xf32> to vector<8x8xf32>
    %227 = arith.subf %225, %226 : vector<8x8xf32>
    %cst_87 = arith.constant dense<0xFF800000> : vector<8xf32>
    %228 = vector.multi_reduction <maximumf>, %227, %cst_87 [1] : vector<8x8xf32> to vector<8xf32>
    %229 = vector.shape_cast %228 : vector<8xf32> to vector<8x1xf32>
    %230 = vector.broadcast %229 : vector<8x1xf32> to vector<8x8xf32>
    %231 = arith.subf %227, %230 : vector<8x8xf32>
    %232 = math.exp %231 : vector<8x8xf32>
    %cst_88 = arith.constant dense<0.000000e+00> : vector<8xf32>
    %233 = vector.multi_reduction <add>, %232, %cst_88 [1] : vector<8x8xf32> to vector<8xf32>
    %234 = vector.shape_cast %233 : vector<8xf32> to vector<8x1xf32>
    %235 = tpu.reciprocal %234 {approx = true} : vector<8x1xf32> -> vector<8x1xf32>
    %236 = vector.broadcast %235 : vector<8x1xf32> to vector<8x8xf32>
    %237 = arith.mulf %232, %236 : vector<8x8xf32>
    %238 = arith.truncf %237 : vector<8x8xf32> to vector<8x8xbf16>
    %cst_89 = arith.constant dense<0.000000e+00> : vector<8x32xf32>
    %239 = tpu.matmul %238, %223, %cst_89 {dimension_numbers = #tpu.dot_dimension_numbers<[1], [0], [0], [1], [0, 0, 1, 1], [], []>} : vector<8x8xbf16>, vector<8x32xbf16>, vector<8x32xf32> -> vector<8x32xf32>
    %240 = vector.extract_strided_slice %213 {offsets = [0, 32], sizes = [8, 32], strides = [1, 1]} : vector<8x128xf32> to vector<8x32xf32>
    %cst_90 = arith.constant 0.176776692 : f32
    %241 = vector.broadcast %cst_90 : f32 to vector<8x32xf32>
    %242 = arith.mulf %240, %241 : vector<8x32xf32>
    %243 = arith.truncf %242 : vector<8x32xf32> to vector<8x32xbf16>
    %244 = vector.extract_strided_slice %214 {offsets = [0, 32], sizes = [8, 32], strides = [1, 1]} : vector<8x128xf32> to vector<8x32xf32>
    %245 = arith.truncf %244 : vector<8x32xf32> to vector<8x32xbf16>
    %246 = vector.extract_strided_slice %215 {offsets = [0, 32], sizes = [8, 32], strides = [1, 1]} : vector<8x128xf32> to vector<8x32xf32>
    %247 = arith.truncf %246 : vector<8x32xf32> to vector<8x32xbf16>
    %248 = tpu.transpose %245, [1, 0] : vector<8x32xbf16> -> vector<32x8xbf16>
    %cst_91 = arith.constant dense<0.000000e+00> : vector<8x8xf32>
    %249 = tpu.matmul %243, %248, %cst_91 {dimension_numbers = #tpu.dot_dimension_numbers<[1], [0], [0], [1], [0, 0, 1, 1], [], []>} : vector<8x32xbf16>, vector<32x8xbf16>, vector<8x8xf32> -> vector<8x8xf32>
    %250 = vector.broadcast %5 : vector<1x8xf32> to vector<8x8xf32>
    %251 = arith.subf %249, %250 : vector<8x8xf32>
    %cst_92 = arith.constant dense<0xFF800000> : vector<8xf32>
    %252 = vector.multi_reduction <maximumf>, %251, %cst_92 [1] : vector<8x8xf32> to vector<8xf32>
    %253 = vector.shape_cast %252 : vector<8xf32> to vector<8x1xf32>
    %254 = vector.broadcast %253 : vector<8x1xf32> to vector<8x8xf32>
    %255 = arith.subf %251, %254 : vector<8x8xf32>
    %256 = math.exp %255 : vector<8x8xf32>
    %cst_93 = arith.constant dense<0.000000e+00> : vector<8xf32>
    %257 = vector.multi_reduction <add>, %256, %cst_93 [1] : vector<8x8xf32> to vector<8xf32>
    %258 = vector.shape_cast %257 : vector<8xf32> to vector<8x1xf32>
    %259 = tpu.reciprocal %258 {approx = true} : vector<8x1xf32> -> vector<8x1xf32>
    %260 = vector.broadcast %259 : vector<8x1xf32> to vector<8x8xf32>
    %261 = arith.mulf %256, %260 : vector<8x8xf32>
    %262 = arith.truncf %261 : vector<8x8xf32> to vector<8x8xbf16>
    %cst_94 = arith.constant dense<0.000000e+00> : vector<8x32xf32>
    %263 = tpu.matmul %262, %247, %cst_94 {dimension_numbers = #tpu.dot_dimension_numbers<[1], [0], [0], [1], [0, 0, 1, 1], [], []>} : vector<8x8xbf16>, vector<8x32xbf16>, vector<8x32xf32> -> vector<8x32xf32>
    %264 = vector.extract_strided_slice %213 {offsets = [0, 64], sizes = [8, 32], strides = [1, 1]} : vector<8x128xf32> to vector<8x32xf32>
    %cst_95 = arith.constant 0.176776692 : f32
    %265 = vector.broadcast %cst_95 : f32 to vector<8x32xf32>
    %266 = arith.mulf %264, %265 : vector<8x32xf32>
    %267 = arith.truncf %266 : vector<8x32xf32> to vector<8x32xbf16>
    %268 = vector.extract_strided_slice %214 {offsets = [0, 64], sizes = [8, 32], strides = [1, 1]} : vector<8x128xf32> to vector<8x32xf32>
    %269 = arith.truncf %268 : vector<8x32xf32> to vector<8x32xbf16>
    %270 = vector.extract_strided_slice %215 {offsets = [0, 64], sizes = [8, 32], strides = [1, 1]} : vector<8x128xf32> to vector<8x32xf32>
    %271 = arith.truncf %270 : vector<8x32xf32> to vector<8x32xbf16>
    %272 = tpu.transpose %269, [1, 0] : vector<8x32xbf16> -> vector<32x8xbf16>
    %cst_96 = arith.constant dense<0.000000e+00> : vector<8x8xf32>
    %273 = tpu.matmul %267, %272, %cst_96 {dimension_numbers = #tpu.dot_dimension_numbers<[1], [0], [0], [1], [0, 0, 1, 1], [], []>} : vector<8x32xbf16>, vector<32x8xbf16>, vector<8x8xf32> -> vector<8x8xf32>
    %274 = vector.broadcast %5 : vector<1x8xf32> to vector<8x8xf32>
    %275 = arith.subf %273, %274 : vector<8x8xf32>
    %cst_97 = arith.constant dense<0xFF800000> : vector<8xf32>
    %276 = vector.multi_reduction <maximumf>, %275, %cst_97 [1] : vector<8x8xf32> to vector<8xf32>
    %277 = vector.shape_cast %276 : vector<8xf32> to vector<8x1xf32>
    %278 = vector.broadcast %277 : vector<8x1xf32> to vector<8x8xf32>
    %279 = arith.subf %275, %278 : vector<8x8xf32>
    %280 = math.exp %279 : vector<8x8xf32>
    %cst_98 = arith.constant dense<0.000000e+00> : vector<8xf32>
    %281 = vector.multi_reduction <add>, %280, %cst_98 [1] : vector<8x8xf32> to vector<8xf32>
    %282 = vector.shape_cast %281 : vector<8xf32> to vector<8x1xf32>
    %283 = tpu.reciprocal %282 {approx = true} : vector<8x1xf32> -> vector<8x1xf32>
    %284 = vector.broadcast %283 : vector<8x1xf32> to vector<8x8xf32>
    %285 = arith.mulf %280, %284 : vector<8x8xf32>
    %286 = arith.truncf %285 : vector<8x8xf32> to vector<8x8xbf16>
    %cst_99 = arith.constant dense<0.000000e+00> : vector<8x32xf32>
    %287 = tpu.matmul %286, %271, %cst_99 {dimension_numbers = #tpu.dot_dimension_numbers<[1], [0], [0], [1], [0, 0, 1, 1], [], []>} : vector<8x8xbf16>, vector<8x32xbf16>, vector<8x32xf32> -> vector<8x32xf32>
    %288 = vector.extract_strided_slice %213 {offsets = [0, 96], sizes = [8, 32], strides = [1, 1]} : vector<8x128xf32> to vector<8x32xf32>
    %cst_100 = arith.constant 0.176776692 : f32
    %289 = vector.broadcast %cst_100 : f32 to vector<8x32xf32>
    %290 = arith.mulf %288, %289 : vector<8x32xf32>
    %291 = arith.truncf %290 : vector<8x32xf32> to vector<8x32xbf16>
    %292 = vector.extract_strided_slice %214 {offsets = [0, 96], sizes = [8, 32], strides = [1, 1]} : vector<8x128xf32> to vector<8x32xf32>
    %293 = arith.truncf %292 : vector<8x32xf32> to vector<8x32xbf16>
    %294 = vector.extract_strided_slice %215 {offsets = [0, 96], sizes = [8, 32], strides = [1, 1]} : vector<8x128xf32> to vector<8x32xf32>
    %295 = arith.truncf %294 : vector<8x32xf32> to vector<8x32xbf16>
    %296 = tpu.transpose %293, [1, 0] : vector<8x32xbf16> -> vector<32x8xbf16>
    %cst_101 = arith.constant dense<0.000000e+00> : vector<8x8xf32>
    %297 = tpu.matmul %291, %296, %cst_101 {dimension_numbers = #tpu.dot_dimension_numbers<[1], [0], [0], [1], [0, 0, 1, 1], [], []>} : vector<8x32xbf16>, vector<32x8xbf16>, vector<8x8xf32> -> vector<8x8xf32>
    %298 = vector.broadcast %5 : vector<1x8xf32> to vector<8x8xf32>
    %299 = arith.subf %297, %298 : vector<8x8xf32>
    %cst_102 = arith.constant dense<0xFF800000> : vector<8xf32>
    %300 = vector.multi_reduction <maximumf>, %299, %cst_102 [1] : vector<8x8xf32> to vector<8xf32>
    %301 = vector.shape_cast %300 : vector<8xf32> to vector<8x1xf32>
    %302 = vector.broadcast %301 : vector<8x1xf32> to vector<8x8xf32>
    %303 = arith.subf %299, %302 : vector<8x8xf32>
    %304 = math.exp %303 : vector<8x8xf32>
    %cst_103 = arith.constant dense<0.000000e+00> : vector<8xf32>
    %305 = vector.multi_reduction <add>, %304, %cst_103 [1] : vector<8x8xf32> to vector<8xf32>
    %306 = vector.shape_cast %305 : vector<8xf32> to vector<8x1xf32>
    %307 = tpu.reciprocal %306 {approx = true} : vector<8x1xf32> -> vector<8x1xf32>
    %308 = vector.broadcast %307 : vector<8x1xf32> to vector<8x8xf32>
    %309 = arith.mulf %304, %308 : vector<8x8xf32>
    %310 = arith.truncf %309 : vector<8x8xf32> to vector<8x8xbf16>
    %cst_104 = arith.constant dense<0.000000e+00> : vector<8x32xf32>
    %311 = tpu.matmul %310, %295, %cst_104 {dimension_numbers = #tpu.dot_dimension_numbers<[1], [0], [0], [1], [0, 0, 1, 1], [], []>} : vector<8x8xbf16>, vector<8x32xbf16>, vector<8x32xf32> -> vector<8x32xf32>
    %312 = tpu.concatenate %239, %263, %287, %311 in 1 : vector<8x32xf32>, vector<8x32xf32>, vector<8x32xf32>, vector<8x32xf32> -> vector<8x128xf32>
    %313 = arith.truncf %312 : vector<8x128xf32> to vector<8x128xbf16>
    %c1_105 = arith.constant 1 : index
    %c0_106 = arith.constant 0 : index
    %c0_107 = arith.constant 0 : index
    %314 = vector.load %arg5[%c1_105, %c0_106, %c0_107] : memref<2x128x128xbf16, #tpu.memory_space<vmem>>, vector<1x128x128xbf16>
    %315 = vector.shape_cast %314 : vector<1x128x128xbf16> to vector<128x128xbf16>
    %cst_108 = arith.constant dense<0.000000e+00> : vector<8x128xf32>
    %316 = tpu.matmul %313, %315, %cst_108 {dimension_numbers = #tpu.dot_dimension_numbers<[1], [0], [0], [1], [0, 0, 1, 1], [], []>} : vector<8x128xbf16>, vector<128x128xbf16>, vector<8x128xf32> -> vector<8x128xf32>
    %c1_109 = arith.constant 1 : index
    %c0_110 = arith.constant 0 : index
    %c0_111 = arith.constant 0 : index
    %317 = vector.load %arg6[%c1_109, %c0_110, %c0_111] : memref<2x1x128xf32, #tpu.memory_space<vmem>>, vector<1x1x128xf32>
    %318 = vector.shape_cast %317 : vector<1x1x128xf32> to vector<1x128xf32>
    %319 = vector.broadcast %318 : vector<1x128xf32> to vector<8x128xf32>
    %320 = arith.addf %316, %319 : vector<8x128xf32>
    %321 = arith.addf %204, %320 : vector<8x128xf32>
    %cst_112 = arith.constant dense<0.000000e+00> : vector<8xf32>
    %322 = vector.multi_reduction <add>, %321, %cst_112 [1] : vector<8x128xf32> to vector<8xf32>
    %323 = vector.shape_cast %322 : vector<8xf32> to vector<8x1xf32>
    %cst_113 = arith.constant 1.280000e+02 : f32
    %324 = vector.broadcast %cst_113 : f32 to vector<8x1xf32>
    %325 = arith.divf %323, %324 : vector<8x1xf32>
    %326 = vector.broadcast %325 : vector<8x1xf32> to vector<8x128xf32>
    %327 = arith.subf %321, %326 : vector<8x128xf32>
    %328 = arith.mulf %327, %327 : vector<8x128xf32>
    %cst_114 = arith.constant dense<0.000000e+00> : vector<8xf32>
    %329 = vector.multi_reduction <add>, %328, %cst_114 [1] : vector<8x128xf32> to vector<8xf32>
    %330 = vector.shape_cast %329 : vector<8xf32> to vector<8x1xf32>
    %cst_115 = arith.constant 1.280000e+02 : f32
    %331 = vector.broadcast %cst_115 : f32 to vector<8x1xf32>
    %332 = arith.divf %330, %331 : vector<8x1xf32>
    %333 = vector.broadcast %325 : vector<8x1xf32> to vector<8x128xf32>
    %334 = arith.subf %321, %333 : vector<8x128xf32>
    %cst_116 = arith.constant 9.99999974E-6 : f32
    %335 = vector.broadcast %cst_116 : f32 to vector<8x1xf32>
    %336 = arith.addf %332, %335 : vector<8x1xf32>
    %337 = math.rsqrt %336 : vector<8x1xf32>
    %338 = vector.broadcast %337 : vector<8x1xf32> to vector<8x128xf32>
    %339 = arith.mulf %334, %338 : vector<8x128xf32>
    %c1_117 = arith.constant 1 : index
    %c0_118 = arith.constant 0 : index
    %c0_119 = arith.constant 0 : index
    %340 = vector.load %arg7[%c1_117, %c0_118, %c0_119] : memref<2x1x128xf32, #tpu.memory_space<vmem>>, vector<1x1x128xf32>
    %341 = vector.shape_cast %340 : vector<1x1x128xf32> to vector<1x128xf32>
    %342 = vector.broadcast %341 : vector<1x128xf32> to vector<8x128xf32>
    %343 = arith.mulf %339, %342 : vector<8x128xf32>
    %c1_120 = arith.constant 1 : index
    %c0_121 = arith.constant 0 : index
    %c0_122 = arith.constant 0 : index
    %344 = vector.load %arg8[%c1_120, %c0_121, %c0_122] : memref<2x1x128xf32, #tpu.memory_space<vmem>>, vector<1x1x128xf32>
    %345 = vector.shape_cast %344 : vector<1x1x128xf32> to vector<1x128xf32>
    %346 = vector.broadcast %345 : vector<1x128xf32> to vector<8x128xf32>
    %347 = arith.addf %343, %346 : vector<8x128xf32>
    %348 = arith.truncf %347 : vector<8x128xf32> to vector<8x128xbf16>
    %c1_123 = arith.constant 1 : index
    %c0_124 = arith.constant 0 : index
    %c0_125 = arith.constant 0 : index
    %349 = vector.load %arg9[%c1_123, %c0_124, %c0_125] : memref<2x128x256xbf16, #tpu.memory_space<vmem>>, vector<1x128x256xbf16>
    %350 = vector.shape_cast %349 : vector<1x128x256xbf16> to vector<128x256xbf16>
    %cst_126 = arith.constant dense<0.000000e+00> : vector<8x256xf32>
    %351 = tpu.matmul %348, %350, %cst_126 {dimension_numbers = #tpu.dot_dimension_numbers<[1], [0], [0], [1], [0, 0, 1, 1], [], []>} : vector<8x128xbf16>, vector<128x256xbf16>, vector<8x256xf32> -> vector<8x256xf32>
    %c1_127 = arith.constant 1 : index
    %c0_128 = arith.constant 0 : index
    %c0_129 = arith.constant 0 : index
    %352 = vector.load %arg10[%c1_127, %c0_128, %c0_129] : memref<2x1x256xf32, #tpu.memory_space<vmem>>, vector<1x1x256xf32>
    %353 = vector.shape_cast %352 : vector<1x1x256xf32> to vector<1x256xf32>
    %354 = vector.broadcast %353 : vector<1x256xf32> to vector<8x256xf32>
    %355 = arith.addf %351, %354 : vector<8x256xf32>
    %356 = arith.mulf %355, %355 : vector<8x256xf32>
    %357 = arith.mulf %355, %356 : vector<8x256xf32>
    %cst_130 = arith.constant 4.471500e-02 : f32
    %358 = vector.broadcast %cst_130 : f32 to vector<8x256xf32>
    %359 = arith.mulf %358, %357 : vector<8x256xf32>
    %360 = arith.addf %355, %359 : vector<8x256xf32>
    %cst_131 = arith.constant 0.797884583 : f32
    %361 = vector.broadcast %cst_131 : f32 to vector<8x256xf32>
    %362 = arith.mulf %361, %360 : vector<8x256xf32>
    %363 = math.tanh %362 : vector<8x256xf32>
    %cst_132 = arith.constant 1.000000e+00 : f32
    %364 = vector.broadcast %cst_132 : f32 to vector<8x256xf32>
    %365 = arith.addf %364, %363 : vector<8x256xf32>
    %cst_133 = arith.constant 5.000000e-01 : f32
    %366 = vector.broadcast %cst_133 : f32 to vector<8x256xf32>
    %367 = arith.mulf %366, %365 : vector<8x256xf32>
    %368 = arith.mulf %355, %367 : vector<8x256xf32>
    %369 = arith.truncf %368 : vector<8x256xf32> to vector<8x256xbf16>
    %c1_134 = arith.constant 1 : index
    %c0_135 = arith.constant 0 : index
    %c0_136 = arith.constant 0 : index
    %370 = vector.load %arg11[%c1_134, %c0_135, %c0_136] : memref<2x256x128xbf16, #tpu.memory_space<vmem>>, vector<1x256x128xbf16>
    %371 = vector.shape_cast %370 : vector<1x256x128xbf16> to vector<256x128xbf16>
    %cst_137 = arith.constant dense<0.000000e+00> : vector<8x128xf32>
    %372 = tpu.matmul %369, %371, %cst_137 {dimension_numbers = #tpu.dot_dimension_numbers<[1], [0], [0], [1], [0, 0, 1, 1], [], []>} : vector<8x256xbf16>, vector<256x128xbf16>, vector<8x128xf32> -> vector<8x128xf32>
    %c1_138 = arith.constant 1 : index
    %c0_139 = arith.constant 0 : index
    %c0_140 = arith.constant 0 : index
    %373 = vector.load %arg12[%c1_138, %c0_139, %c0_140] : memref<2x1x128xf32, #tpu.memory_space<vmem>>, vector<1x1x128xf32>
    %374 = vector.shape_cast %373 : vector<1x1x128xf32> to vector<1x128xf32>
    %375 = vector.broadcast %374 : vector<1x128xf32> to vector<8x128xf32>
    %376 = arith.addf %372, %375 : vector<8x128xf32>
    %377 = arith.addf %347, %376 : vector<8x128xf32>
    %cst_141 = arith.constant dense<0.000000e+00> : vector<8xf32>
    %378 = vector.multi_reduction <add>, %377, %cst_141 [1] : vector<8x128xf32> to vector<8xf32>
    %379 = vector.shape_cast %378 : vector<8xf32> to vector<8x1xf32>
    %cst_142 = arith.constant 1.280000e+02 : f32
    %380 = vector.broadcast %cst_142 : f32 to vector<8x1xf32>
    %381 = arith.divf %379, %380 : vector<8x1xf32>
    %382 = vector.broadcast %381 : vector<8x1xf32> to vector<8x128xf32>
    %383 = arith.subf %377, %382 : vector<8x128xf32>
    %384 = arith.mulf %383, %383 : vector<8x128xf32>
    %cst_143 = arith.constant dense<0.000000e+00> : vector<8xf32>
    %385 = vector.multi_reduction <add>, %384, %cst_143 [1] : vector<8x128xf32> to vector<8xf32>
    %386 = vector.shape_cast %385 : vector<8xf32> to vector<8x1xf32>
    %cst_144 = arith.constant 1.280000e+02 : f32
    %387 = vector.broadcast %cst_144 : f32 to vector<8x1xf32>
    %388 = arith.divf %386, %387 : vector<8x1xf32>
    %389 = vector.broadcast %381 : vector<8x1xf32> to vector<8x128xf32>
    %390 = arith.subf %377, %389 : vector<8x128xf32>
    %cst_145 = arith.constant 9.99999974E-6 : f32
    %391 = vector.broadcast %cst_145 : f32 to vector<8x1xf32>
    %392 = arith.addf %388, %391 : vector<8x1xf32>
    %393 = math.rsqrt %392 : vector<8x1xf32>
    %394 = vector.broadcast %393 : vector<8x1xf32> to vector<8x128xf32>
    %395 = arith.mulf %390, %394 : vector<8x128xf32>
    %c1_146 = arith.constant 1 : index
    %c0_147 = arith.constant 0 : index
    %c0_148 = arith.constant 0 : index
    %396 = vector.load %arg13[%c1_146, %c0_147, %c0_148] : memref<2x1x128xf32, #tpu.memory_space<vmem>>, vector<1x1x128xf32>
    %397 = vector.shape_cast %396 : vector<1x1x128xf32> to vector<1x128xf32>
    %398 = vector.broadcast %397 : vector<1x128xf32> to vector<8x128xf32>
    %399 = arith.mulf %395, %398 : vector<8x128xf32>
    %c1_149 = arith.constant 1 : index
    %c0_150 = arith.constant 0 : index
    %c0_151 = arith.constant 0 : index
    %400 = vector.load %arg14[%c1_149, %c0_150, %c0_151] : memref<2x1x128xf32, #tpu.memory_space<vmem>>, vector<1x1x128xf32>
    %401 = vector.shape_cast %400 : vector<1x1x128xf32> to vector<1x128xf32>
    %402 = vector.broadcast %401 : vector<1x128xf32> to vector<8x128xf32>
    %403 = arith.addf %399, %402 : vector<8x128xf32>
    %cst_152 = arith.constant 1.000000e+00 : f32
    %404 = vector.broadcast %cst_152 : f32 to vector<1x8xf32>
    %405 = arith.subf %404, %3 : vector<1x8xf32>
    %cst_153 = arith.constant dense<0.000000e+00> : vector<1xf32>
    %406 = vector.multi_reduction <add>, %405, %cst_153 [1] : vector<1x8xf32> to vector<1xf32>
    %407 = vector.shape_cast %406 : vector<1xf32> to vector<1x1xf32>
    %cst_154 = arith.constant 1.000000e+00 : f32
    %408 = vector.broadcast %cst_154 : f32 to vector<1x1xf32>
    %409 = arith.maximumf %407, %408 : vector<1x1xf32>
    %cst_155 = arith.constant dense<0.000000e+00> : vector<1x128xf32>
    %410 = tpu.matmul %405, %403, %cst_155 {dimension_numbers = #tpu.dot_dimension_numbers<[1], [0], [0], [1], [0, 0, 1, 1], [], []>} : vector<1x8xf32>, vector<8x128xf32>, vector<1x128xf32> -> vector<1x128xf32>
    %411 = tpu.reciprocal %409 {approx = true} : vector<1x1xf32> -> vector<1x1xf32>
    %412 = vector.broadcast %411 : vector<1x1xf32> to vector<1x128xf32>
    %413 = arith.mulf %410, %412 : vector<1x128xf32>
    %c0_156 = arith.constant 0 : index
    %c0_157 = arith.constant 0 : index
    %c0_158 = arith.constant 0 : index
    %414 = vector.load %arg15[%c0_156, %c0_157, %c0_158] : memref<1x1x128xf32, #tpu.memory_space<vmem>>, vector<1x1x128xf32>
    %415 = vector.shape_cast %414 : vector<1x1x128xf32> to vector<1x128xf32>
    %416 = vector.shape_cast %413 : vector<1x128xf32> to vector<1x1x128xf32>
    tpu.vector_store %arg15[%c0_156, %c0_157, %c0_158], %416 {strides = array<i32>} : memref<1x1x128xf32, #tpu.memory_space<vmem>>, vector<1x1x128xf32>,
    return
  }
  func.func @transform_0(%arg0: i32) -> (i32, i32, i32) {
    %c0_i32 = arith.constant 0 : i32
    %c0_i32_0 = arith.constant 0 : i32
    %c0_i32_1 = arith.constant 0 : i32
    return %arg0, %c0_i32, %c0_i32_0 : i32, i32, i32
  }
  func.func @transform_1(%arg0: i32) -> (i32, i32, i32) {
    %c0_i32 = arith.constant 0 : i32
    %c0_i32_0 = arith.constant 0 : i32
    %c0_i32_1 = arith.constant 0 : i32
    return %arg0, %c0_i32, %c0_i32_0 : i32, i32, i32
  }
  func.func @transform_2(%arg0: i32) -> (i32, i32, i32) {
    %c0_i32 = arith.constant 0 : i32
    %c0_i32_0 = arith.constant 0 : i32
    %c0_i32_1 = arith.constant 0 : i32
    %c0_i32_2 = arith.constant 0 : i32
    return %c0_i32, %c0_i32_0, %c0_i32_1 : i32, i32, i32
  }
  func.func @transform_3(%arg0: i32) -> (i32, i32, i32) {
    %c0_i32 = arith.constant 0 : i32
    %c0_i32_0 = arith.constant 0 : i32
    %c0_i32_1 = arith.constant 0 : i32
    %c0_i32_2 = arith.constant 0 : i32
    return %c0_i32, %c0_i32_0, %c0_i32_1 : i32, i32, i32
  }
  func.func @transform_4(%arg0: i32) -> (i32, i32, i32) {
    %c0_i32 = arith.constant 0 : i32
    %c0_i32_0 = arith.constant 0 : i32
    %c0_i32_1 = arith.constant 0 : i32
    %c0_i32_2 = arith.constant 0 : i32
    return %c0_i32, %c0_i32_0, %c0_i32_1 : i32, i32, i32
  }
  func.func @transform_5(%arg0: i32) -> (i32, i32, i32) {
    %c0_i32 = arith.constant 0 : i32
    %c0_i32_0 = arith.constant 0 : i32
    %c0_i32_1 = arith.constant 0 : i32
    %c0_i32_2 = arith.constant 0 : i32
    return %c0_i32, %c0_i32_0, %c0_i32_1 : i32, i32, i32
  }
  func.func @transform_6(%arg0: i32) -> (i32, i32, i32) {
    %c0_i32 = arith.constant 0 : i32
    %c0_i32_0 = arith.constant 0 : i32
    %c0_i32_1 = arith.constant 0 : i32
    %c0_i32_2 = arith.constant 0 : i32
    return %c0_i32, %c0_i32_0, %c0_i32_1 : i32, i32, i32
  }
  func.func @transform_7(%arg0: i32) -> (i32, i32, i32) {
    %c0_i32 = arith.constant 0 : i32
    %c0_i32_0 = arith.constant 0 : i32
    %c0_i32_1 = arith.constant 0 : i32
    %c0_i32_2 = arith.constant 0 : i32
    return %c0_i32, %c0_i32_0, %c0_i32_1 : i32, i32, i32
  }
  func.func @transform_8(%arg0: i32) -> (i32, i32, i32) {
    %c0_i32 = arith.constant 0 : i32
    %c0_i32_0 = arith.constant 0 : i32
    %c0_i32_1 = arith.constant 0 : i32
    %c0_i32_2 = arith.constant 0 : i32
    return %c0_i32, %c0_i32_0, %c0_i32_1 : i32, i32, i32
  }
  func.func @transform_9(%arg0: i32) -> (i32, i32, i32) {
    %c0_i32 = arith.constant 0 : i32
    %c0_i32_0 = arith.constant 0 : i32
    %c0_i32_1 = arith.constant 0 : i32
    %c0_i32_2 = arith.constant 0 : i32
    return %c0_i32, %c0_i32_0, %c0_i32_1 : i32, i32, i32
  }
  func.func @transform_10(%arg0: i32) -> (i32, i32, i32) {
    %c0_i32 = arith.constant 0 : i32
    %c0_i32_0 = arith.constant 0 : i32
    %c0_i32_1 = arith.constant 0 : i32
    %c0_i32_2 = arith.constant 0 : i32
    return %c0_i32, %c0_i32_0, %c0_i32_1 : i32, i32, i32
  }
  func.func @transform_11(%arg0: i32) -> (i32, i32, i32) {
    %c0_i32 = arith.constant 0 : i32
    %c0_i32_0 = arith.constant 0 : i32
    %c0_i32_1 = arith.constant 0 : i32
    %c0_i32_2 = arith.constant 0 : i32
    return %c0_i32, %c0_i32_0, %c0_i32_1 : i32, i32, i32
  }
  func.func @transform_12(%arg0: i32) -> (i32, i32, i32) {
    %c0_i32 = arith.constant 0 : i32
    %c0_i32_0 = arith.constant 0 : i32
    %c0_i32_1 = arith.constant 0 : i32
    %c0_i32_2 = arith.constant 0 : i32
    return %c0_i32, %c0_i32_0, %c0_i32_1 : i32, i32, i32
  }
  func.func @transform_13(%arg0: i32) -> (i32, i32, i32) {
    %c0_i32 = arith.constant 0 : i32
    %c0_i32_0 = arith.constant 0 : i32
    %c0_i32_1 = arith.constant 0 : i32
    %c0_i32_2 = arith.constant 0 : i32
    return %c0_i32, %c0_i32_0, %c0_i32_1 : i32, i32, i32
  }
  func.func @transform_14(%arg0: i32) -> (i32, i32, i32) {
    %c0_i32 = arith.constant 0 : i32
    %c0_i32_0 = arith.constant 0 : i32
    %c0_i32_1 = arith.constant 0 : i32
    return %arg0, %c0_i32, %c0_i32_0 : i32, i32, i32
  }
}

module attributes {stable_mosaic.version = 11 : i64} {
  func.func @_tail_kernel(%arg0: memref<2x3136xbf16, #tpu.memory_space<vmem>>, %arg1: memref<2x128xf32, #tpu.memory_space<vmem>>, %arg2: memref<3136x256xbf16, #tpu.memory_space<vmem>>, %arg3: memref<1x256xf32, #tpu.memory_space<vmem>>, %arg4: memref<128x256xbf16, #tpu.memory_space<vmem>>, %arg5: memref<1x256xf32, #tpu.memory_space<vmem>>, %arg6: memref<256x256xbf16, #tpu.memory_space<vmem>>, %arg7: memref<256x256xbf16, #tpu.memory_space<vmem>>, %arg8: memref<1x256xf32, #tpu.memory_space<vmem>>, %arg9: memref<256x256xbf16, #tpu.memory_space<vmem>>, %arg10: memref<1x256xf32, #tpu.memory_space<vmem>>, %arg11: memref<256x128xbf16, #tpu.memory_space<vmem>>, %arg12: memref<1x128xf32, #tpu.memory_space<vmem>>, %arg13: memref<128x10xbf16, #tpu.memory_space<vmem>>, %arg14: memref<1x10xf32, #tpu.memory_space<vmem>>, %arg15: memref<256x128xbf16, #tpu.memory_space<vmem>>, %arg16: memref<1x128xf32, #tpu.memory_space<vmem>>, %arg17: memref<128x10xbf16, #tpu.memory_space<vmem>>, %arg18: memref<1x10xf32, #tpu.memory_space<vmem>>, %arg19: memref<1x1xf32, #tpu.memory_space<smem>>, %arg20: memref<2x10xf32, #tpu.memory_space<vmem>>) attributes {dimension_semantics = [], scalar_prefetch = 0 : i64, scratch_operands = 0 : i64, tpu.core_type = #tpu.core_type<tc>} {
    %c0 = arith.constant 0 : index
    %c0_0 = arith.constant 0 : index
    %0 = vector.load %arg0[%c0, %c0_0] : memref<2x3136xbf16, #tpu.memory_space<vmem>>, vector<2x3136xbf16>
    %c0_1 = arith.constant 0 : index
    %c0_2 = arith.constant 0 : index
    %1 = vector.load %arg1[%c0_1, %c0_2] : memref<2x128xf32, #tpu.memory_space<vmem>>, vector<2x128xf32>
    %2 = arith.truncf %1 : vector<2x128xf32> to vector<2x128xbf16>
    %c0_3 = arith.constant 0 : index
    %c0_4 = arith.constant 0 : index
    %3 = vector.load %arg2[%c0_3, %c0_4] : memref<3136x256xbf16, #tpu.memory_space<vmem>>, vector<3136x256xbf16>
    %cst = arith.constant dense<0.000000e+00> : vector<2x256xf32>
    %4 = tpu.matmul %0, %3, %cst {dimension_numbers = #tpu.dot_dimension_numbers<[1], [0], [0], [1], [0, 0, 1, 1], [], []>} : vector<2x3136xbf16>, vector<3136x256xbf16>, vector<2x256xf32> -> vector<2x256xf32>
    %c0_5 = arith.constant 0 : index
    %c0_6 = arith.constant 0 : index
    %5 = vector.load %arg3[%c0_5, %c0_6] : memref<1x256xf32, #tpu.memory_space<vmem>>, vector<1x256xf32>
    %6 = vector.broadcast %5 : vector<1x256xf32> to vector<2x256xf32>
    %7 = arith.addf %4, %6 : vector<2x256xf32>
    %c0_7 = arith.constant 0 : index
    %c0_8 = arith.constant 0 : index
    %8 = vector.load %arg4[%c0_7, %c0_8] : memref<128x256xbf16, #tpu.memory_space<vmem>>, vector<128x256xbf16>
    %cst_9 = arith.constant dense<0.000000e+00> : vector<2x256xf32>
    %9 = tpu.matmul %2, %8, %cst_9 {dimension_numbers = #tpu.dot_dimension_numbers<[1], [0], [0], [1], [0, 0, 1, 1], [], []>} : vector<2x128xbf16>, vector<128x256xbf16>, vector<2x256xf32> -> vector<2x256xf32>
    %c0_10 = arith.constant 0 : index
    %c0_11 = arith.constant 0 : index
    %10 = vector.load %arg5[%c0_10, %c0_11] : memref<1x256xf32, #tpu.memory_space<vmem>>, vector<1x256xf32>
    %11 = vector.broadcast %10 : vector<1x256xf32> to vector<2x256xf32>
    %12 = arith.addf %9, %11 : vector<2x256xf32>
    %13 = arith.truncf %7 : vector<2x256xf32> to vector<2x256xbf16>
    %c0_12 = arith.constant 0 : index
    %c0_13 = arith.constant 0 : index
    %14 = vector.load %arg6[%c0_12, %c0_13] : memref<256x256xbf16, #tpu.memory_space<vmem>>, vector<256x256xbf16>
    %cst_14 = arith.constant dense<0.000000e+00> : vector<2x256xf32>
    %15 = tpu.matmul %13, %14, %cst_14 {dimension_numbers = #tpu.dot_dimension_numbers<[1], [0], [0], [1], [0, 0, 1, 1], [], []>} : vector<2x256xbf16>, vector<256x256xbf16>, vector<2x256xf32> -> vector<2x256xf32>
    %16 = arith.truncf %12 : vector<2x256xf32> to vector<2x256xbf16>
    %c0_15 = arith.constant 0 : index
    %c0_16 = arith.constant 0 : index
    %17 = vector.load %arg7[%c0_15, %c0_16] : memref<256x256xbf16, #tpu.memory_space<vmem>>, vector<256x256xbf16>
    %cst_17 = arith.constant dense<0.000000e+00> : vector<2x256xf32>
    %18 = tpu.matmul %16, %17, %cst_17 {dimension_numbers = #tpu.dot_dimension_numbers<[1], [0], [0], [1], [0, 0, 1, 1], [], []>} : vector<2x256xbf16>, vector<256x256xbf16>, vector<2x256xf32> -> vector<2x256xf32>
    %19 = arith.addf %15, %18 : vector<2x256xf32>
    %c0_18 = arith.constant 0 : index
    %c0_19 = arith.constant 0 : index
    %20 = vector.load %arg8[%c0_18, %c0_19] : memref<1x256xf32, #tpu.memory_space<vmem>>, vector<1x256xf32>
    %21 = vector.broadcast %20 : vector<1x256xf32> to vector<2x256xf32>
    %22 = arith.addf %19, %21 : vector<2x256xf32>
    %23 = arith.negf %22 : vector<2x256xf32>
    %24 = math.exp %23 : vector<2x256xf32>
    %cst_20 = arith.constant 1.000000e+00 : f32
    %25 = vector.broadcast %cst_20 : f32 to vector<2x256xf32>
    %26 = arith.addf %25, %24 : vector<2x256xf32>
    %27 = arith.divf %25, %26 : vector<2x256xf32>
    %28 = arith.mulf %27, %7 : vector<2x256xf32>
    %cst_21 = arith.constant 1.000000e+00 : f32
    %29 = vector.broadcast %cst_21 : f32 to vector<2x256xf32>
    %30 = arith.subf %29, %27 : vector<2x256xf32>
    %31 = arith.mulf %30, %12 : vector<2x256xf32>
    %32 = arith.addf %28, %31 : vector<2x256xf32>
    %33 = arith.truncf %32 : vector<2x256xf32> to vector<2x256xbf16>
    %c0_22 = arith.constant 0 : index
    %c0_23 = arith.constant 0 : index
    %34 = vector.load %arg9[%c0_22, %c0_23] : memref<256x256xbf16, #tpu.memory_space<vmem>>, vector<256x256xbf16>
    %cst_24 = arith.constant dense<0.000000e+00> : vector<2x256xf32>
    %35 = tpu.matmul %33, %34, %cst_24 {dimension_numbers = #tpu.dot_dimension_numbers<[1], [0], [0], [1], [0, 0, 1, 1], [], []>} : vector<2x256xbf16>, vector<256x256xbf16>, vector<2x256xf32> -> vector<2x256xf32>
    %c0_25 = arith.constant 0 : index
    %c0_26 = arith.constant 0 : index
    %36 = vector.load %arg10[%c0_25, %c0_26] : memref<1x256xf32, #tpu.memory_space<vmem>>, vector<1x256xf32>
    %37 = vector.broadcast %36 : vector<1x256xf32> to vector<2x256xf32>
    %38 = arith.addf %35, %37 : vector<2x256xf32>
    %39 = arith.mulf %38, %38 : vector<2x256xf32>
    %40 = arith.mulf %38, %39 : vector<2x256xf32>
    %cst_27 = arith.constant 4.471500e-02 : f32
    %41 = vector.broadcast %cst_27 : f32 to vector<2x256xf32>
    %42 = arith.mulf %41, %40 : vector<2x256xf32>
    %43 = arith.addf %38, %42 : vector<2x256xf32>
    %cst_28 = arith.constant 0.797884583 : f32
    %44 = vector.broadcast %cst_28 : f32 to vector<2x256xf32>
    %45 = arith.mulf %44, %43 : vector<2x256xf32>
    %46 = math.tanh %45 : vector<2x256xf32>
    %cst_29 = arith.constant 1.000000e+00 : f32
    %47 = vector.broadcast %cst_29 : f32 to vector<2x256xf32>
    %48 = arith.addf %47, %46 : vector<2x256xf32>
    %cst_30 = arith.constant 5.000000e-01 : f32
    %49 = vector.broadcast %cst_30 : f32 to vector<2x256xf32>
    %50 = arith.mulf %49, %48 : vector<2x256xf32>
    %51 = arith.mulf %38, %50 : vector<2x256xf32>
    %52 = math.absf %51 : vector<2x256xf32>
    %cst_31 = arith.constant 0.00999999977 : f32
    %53 = vector.broadcast %cst_31 : f32 to vector<2x256xf32>
    %54 = arith.cmpf ogt, %52, %53 : vector<2x256xf32>
    %cst_32 = arith.constant 0.000000e+00 : f32
    %55 = vector.broadcast %cst_32 : f32 to vector<2x256xf32>
    %56 = arith.select %54, %51, %55 : vector<2x256xi1>, vector<2x256xf32>
    %57 = arith.truncf %56 : vector<2x256xf32> to vector<2x256xbf16>
    %c0_33 = arith.constant 0 : index
    %c0_34 = arith.constant 0 : index
    %58 = vector.load %arg11[%c0_33, %c0_34] : memref<256x128xbf16, #tpu.memory_space<vmem>>, vector<256x128xbf16>
    %cst_35 = arith.constant dense<0.000000e+00> : vector<2x128xf32>
    %59 = tpu.matmul %57, %58, %cst_35 {dimension_numbers = #tpu.dot_dimension_numbers<[1], [0], [0], [1], [0, 0, 1, 1], [], []>} : vector<2x256xbf16>, vector<256x128xbf16>, vector<2x128xf32> -> vector<2x128xf32>
    %c0_36 = arith.constant 0 : index
    %c0_37 = arith.constant 0 : index
    %60 = vector.load %arg12[%c0_36, %c0_37] : memref<1x128xf32, #tpu.memory_space<vmem>>, vector<1x128xf32>
    %61 = vector.broadcast %60 : vector<1x128xf32> to vector<2x128xf32>
    %62 = arith.addf %59, %61 : vector<2x128xf32>
    %63 = arith.mulf %62, %62 : vector<2x128xf32>
    %64 = arith.mulf %62, %63 : vector<2x128xf32>
    %cst_38 = arith.constant 4.471500e-02 : f32
    %65 = vector.broadcast %cst_38 : f32 to vector<2x128xf32>
    %66 = arith.mulf %65, %64 : vector<2x128xf32>
    %67 = arith.addf %62, %66 : vector<2x128xf32>
    %cst_39 = arith.constant 0.797884583 : f32
    %68 = vector.broadcast %cst_39 : f32 to vector<2x128xf32>
    %69 = arith.mulf %68, %67 : vector<2x128xf32>
    %70 = math.tanh %69 : vector<2x128xf32>
    %cst_40 = arith.constant 1.000000e+00 : f32
    %71 = vector.broadcast %cst_40 : f32 to vector<2x128xf32>
    %72 = arith.addf %71, %70 : vector<2x128xf32>
    %cst_41 = arith.constant 5.000000e-01 : f32
    %73 = vector.broadcast %cst_41 : f32 to vector<2x128xf32>
    %74 = arith.mulf %73, %72 : vector<2x128xf32>
    %75 = arith.mulf %62, %74 : vector<2x128xf32>
    %76 = arith.truncf %75 : vector<2x128xf32> to vector<2x128xbf16>
    %c0_42 = arith.constant 0 : index
    %c0_43 = arith.constant 0 : index
    %77 = vector.load %arg13[%c0_42, %c0_43] : memref<128x10xbf16, #tpu.memory_space<vmem>>, vector<128x10xbf16>
    %cst_44 = arith.constant dense<0.000000e+00> : vector<2x10xf32>
    %78 = tpu.matmul %76, %77, %cst_44 {dimension_numbers = #tpu.dot_dimension_numbers<[1], [0], [0], [1], [0, 0, 1, 1], [], []>} : vector<2x128xbf16>, vector<128x10xbf16>, vector<2x10xf32> -> vector<2x10xf32>
    %c0_45 = arith.constant 0 : index
    %c0_46 = arith.constant 0 : index
    %79 = vector.load %arg14[%c0_45, %c0_46] : memref<1x10xf32, #tpu.memory_space<vmem>>, vector<1x10xf32>
    %80 = vector.broadcast %79 : vector<1x10xf32> to vector<2x10xf32>
    %81 = arith.addf %78, %80 : vector<2x10xf32>
    %82 = arith.truncf %51 : vector<2x256xf32> to vector<2x256xbf16>
    %c0_47 = arith.constant 0 : index
    %c0_48 = arith.constant 0 : index
    %83 = vector.load %arg15[%c0_47, %c0_48] : memref<256x128xbf16, #tpu.memory_space<vmem>>, vector<256x128xbf16>
    %cst_49 = arith.constant dense<0.000000e+00> : vector<2x128xf32>
    %84 = tpu.matmul %82, %83, %cst_49 {dimension_numbers = #tpu.dot_dimension_numbers<[1], [0], [0], [1], [0, 0, 1, 1], [], []>} : vector<2x256xbf16>, vector<256x128xbf16>, vector<2x128xf32> -> vector<2x128xf32>
    %c0_50 = arith.constant 0 : index
    %c0_51 = arith.constant 0 : index
    %85 = vector.load %arg16[%c0_50, %c0_51] : memref<1x128xf32, #tpu.memory_space<vmem>>, vector<1x128xf32>
    %86 = vector.broadcast %85 : vector<1x128xf32> to vector<2x128xf32>
    %87 = arith.addf %84, %86 : vector<2x128xf32>
    %88 = arith.mulf %87, %87 : vector<2x128xf32>
    %89 = arith.mulf %87, %88 : vector<2x128xf32>
    %cst_52 = arith.constant 4.471500e-02 : f32
    %90 = vector.broadcast %cst_52 : f32 to vector<2x128xf32>
    %91 = arith.mulf %90, %89 : vector<2x128xf32>
    %92 = arith.addf %87, %91 : vector<2x128xf32>
    %cst_53 = arith.constant 0.797884583 : f32
    %93 = vector.broadcast %cst_53 : f32 to vector<2x128xf32>
    %94 = arith.mulf %93, %92 : vector<2x128xf32>
    %95 = math.tanh %94 : vector<2x128xf32>
    %cst_54 = arith.constant 1.000000e+00 : f32
    %96 = vector.broadcast %cst_54 : f32 to vector<2x128xf32>
    %97 = arith.addf %96, %95 : vector<2x128xf32>
    %cst_55 = arith.constant 5.000000e-01 : f32
    %98 = vector.broadcast %cst_55 : f32 to vector<2x128xf32>
    %99 = arith.mulf %98, %97 : vector<2x128xf32>
    %100 = arith.mulf %87, %99 : vector<2x128xf32>
    %101 = arith.truncf %100 : vector<2x128xf32> to vector<2x128xbf16>
    %c0_56 = arith.constant 0 : index
    %c0_57 = arith.constant 0 : index
    %102 = vector.load %arg17[%c0_56, %c0_57] : memref<128x10xbf16, #tpu.memory_space<vmem>>, vector<128x10xbf16>
    %cst_58 = arith.constant dense<0.000000e+00> : vector<2x10xf32>
    %103 = tpu.matmul %101, %102, %cst_58 {dimension_numbers = #tpu.dot_dimension_numbers<[1], [0], [0], [1], [0, 0, 1, 1], [], []>} : vector<2x128xbf16>, vector<128x10xbf16>, vector<2x10xf32> -> vector<2x10xf32>
    %c0_59 = arith.constant 0 : index
    %c0_60 = arith.constant 0 : index
    %104 = vector.load %arg18[%c0_59, %c0_60] : memref<1x10xf32, #tpu.memory_space<vmem>>, vector<1x10xf32>
    %105 = vector.broadcast %104 : vector<1x10xf32> to vector<2x10xf32>
    %106 = arith.addf %103, %105 : vector<2x10xf32>
    %c0_61 = arith.constant 0 : index
    %c0_62 = arith.constant 0 : index
    %107 = memref.load %arg19[%c0_61, %c0_62] : memref<1x1xf32, #tpu.memory_space<smem>>
    %108 = arith.negf %107 : f32
    %109 = math.exp %108 : f32
    %cst_63 = arith.constant 1.000000e+00 : f32
    %110 = arith.addf %cst_63, %109 : f32
    %111 = arith.divf %cst_63, %110 : f32
    %112 = vector.broadcast %111 : f32 to vector<2x10xf32>
    %113 = arith.mulf %112, %81 : vector<2x10xf32>
    %cst_64 = arith.constant 1.000000e+00 : f32
    %114 = arith.subf %cst_64, %111 : f32
    %115 = vector.broadcast %114 : f32 to vector<2x10xf32>
    %116 = arith.mulf %115, %106 : vector<2x10xf32>
    %117 = arith.addf %113, %116 : vector<2x10xf32>
    %c0_65 = arith.constant 0 : index
    %c0_66 = arith.constant 0 : index
    %118 = vector.load %arg20[%c0_65, %c0_66] : memref<2x10xf32, #tpu.memory_space<vmem>>, vector<2x10xf32>
    tpu.vector_store %arg20[%c0_65, %c0_66], %117 {strides = array<i32>} : memref<2x10xf32, #tpu.memory_space<vmem>>, vector<2x10xf32>,
    return
  }
}

</mosaic_0001>

<bundles_post_ra>
// kernel: forward.4
= control target key start
LH: loop header
LB: loop body
LE: loop exit
PB: predicated region body
PF: predicated region fallthrough
CT: control target
= control target key end

     0   :  { %8 = vsyncpa [#allocation3], 0  ;;  %s1951_s0 = inlined_call_operand.vmem [shape: bf16[1568,9], index: 0, kind: input, shape index: {}]   ;;  %s1952_s1 = inlined_call_operand.hbm [shape: bf16[9,32], index: 1, kind: input, shape index: {}]   ;;  %s1953_s2 = inlined_call_operand.hbm [shape: f32[1,32], index: 2, kind: input, shape index: {}]   ;;  %s1954_s3 = inlined_call_operand.vmem [shape: bf16[1568,32], index: 3, kind: output, shape index: {}]  }
   0x1   :  { %9 = vsyncpa [#allocation5], 0  ;;  %s1603_s12 = smov 0   ;;  %s1605_s13 = smov 0  }
   0x2   :  { %s1607_s14 = smov 0  }
   0x3 LB: > { %s1616_s15 = sadd.s32 4294967295, %s1544_s14   ;;  %s1618_s16 = sadd.s32 1, %s1544_s14   ;;  %s1544_s14 = sphi %s1607_s14, %s1963_s14   ;;  %s1540_s13 = sphi %s1605_s13, %s1962_s13   ;;  %s1536_s12 = sphi %s1603_s12, %s1961_s12  }
   0x4   : > { %s87_s17 = ssub.s32 %s1544_s14, %s1618_s16  ;;  %s90_s18 = sadd.s32 1, %s1540_s13 }
   0x5   : > { %p88_p0 = scmp.eq.s32.totalorder %s87_s17, 0  ;;  %p100_p1 = scmp.ne.s32.totalorder %s1540_s13, %s1536_s12 }
   0x6   : > { %p101_p2 = scmp.eq.s32.totalorder %s1616_s15, 6  ;;  %p1120_p3 = scmp.ge.s32.totalorder %s1544_s14, 1 }
   0x7   : > { %s1626_s19 = scalar_select %p88_p0, %s1540_s13, %s90_s18  }
   0x8   : > { %p1628_p4 = por %p101_p2, %p100_p1  ;;  %p114_p5 = scmp.lt.s32.totalorder %s1544_s14, 8 }
   0x9   : > { %p1316_p6 = scmp.eq.s32.totalorder %s1616_s15, 0  ;;  %s1578_s22 = smov [#allocation2]  }
   0xa   : > { %p1633_p7 = pnand %p1120_p3, %p114_p5  ;;  %s126_s23 = sshll.u32 %s1578_s22, 4  ;;  %s127_s23 = int_to_ptr.vmem [resolvable:$true] %s126_s23 }
   0xb   : > { %s1579_s25 = smov [#allocation4]   ;;  %s1441_s27 = scalar_lea.vmem %s127_s23, 128 }
   0xc   : > { %p1309_p8 = pneg %p1633_p7  ;;  %s140_s26 = sshll.u32 %s1579_s25, 4  ;;  %s141_s26 = int_to_ptr.vmem [resolvable:$true] %s140_s26 }
   0xd   : > { %p1442_p11 = scmp.ne.s32.totalorder %s127_s23, %s1441_s27  ;;  %p1449_p0 = scmp.lt.s32.totalorder %s127_s23, %s127_s23 }
   0xe   : > { %p1641_p9 = pnand %p1316_p6, %p1309_p8  ;;  %p1450_p1 = scmp.lt.s32.totalorder %s1441_s27, %s1441_s27 }
  0x10   : > { %p1432_p10 = pneg %p1641_p9  ;;  %p1451_p2 = por %p1450_p1, %p1449_p0 }
  0x12   : > { %p1444_p12 = pnand %p1442_p11, %p1432_p10 }
  0x14   : > { %p1445_p13 = pneg %p1444_p12 }
  0x16   : > { %p1452_p3 = pnand %p1451_p2, %p1445_p13 }
  0x18   : > { %1455 = shalt.err (!%p1452_p3)
}
  0x19   : > { %s1580_s28 = smov 64   ;;  %s1581_s29 = smov 4  }
  0x1a   : > { %1312 = dma.hbm_to_vmem [thread:$0]  (!%p1641_p9), %s1952_s1, 128, %s127_s23, [#allocation3], %s1580_s28, %s1580_s28, %s1581_s29  }
  0x1b   : > { %s1467_s5 = scalar_lea.vmem %s141_s26, 16  ;;  %s1474_s6 = scalar_lea.vmem %s141_s26, 32 }
  0x1c   : > { %p1468_p5 = scmp.ne.s32.totalorder %s141_s26, %s1467_s5  ;;  %p1475_p12 = scmp.lt.s32.totalorder %s141_s26, %s141_s26 }
  0x1d   : > { %p1476_p0 = scmp.lt.s32.totalorder %s1474_s6, %s1467_s5 }
  0x1e   : > { %p1470_p8 = pnand %p1468_p5, %p1432_p10 }
  0x1f   : > { %p1477_p13 = por %p1476_p0, %p1475_p12 }
  0x20   : > { %p1471_p11 = pneg %p1470_p8 }
  0x22   : > { %p1478_p1 = pnand %p1477_p13, %p1471_p11 }
  0x24   : > { %1481 = shalt.err (!%p1478_p1)
}
  0x25   : > { %1315 = dma.hbm_to_vmem [thread:$0]  (!%p1641_p9), %s1953_s2, 16, %s141_s26, [#allocation5]  }
  0x26   : > { %170 = sbr.rel (%p1633_p7) target bundleno = 346 (0x15a), region = 32 }
  0x2b   : > { %1527 = dma.done.wait (%p1316_p6), [#allocation3], 128  }
  0x2c   : > { %1529 = vsyncadd (%p1316_p6), [#allocation3], 4294967168 }
  0x2d   : > { %1531 = dma.done.wait (%p1316_p6), [#allocation5], 16  }
  0x2e   : > { %1533 = vsyncadd (%p1316_p6), [#allocation5], 4294967280  ;;  %vm396_vm0 = vcmask 1043456   ;;  %s1674_s9 = sshll.u32 %s1616_s15, 5  ;;  %vm397_vm1 = vcmask 1044480   ;;  %v1582_v0 = vmov 65535  }
  0x2f   : > { %p206_p9 = scmp.lt.s32.totalorder %s1674_s9, 195  ;;  %v398_v1 = vsel %vm396_vm0, 4294967295, %v1582_v0  ;;  %vm347_vm2 = vcmask 72704   ;;  %v1413_v3 = vld [vmem:[#allocation2] sm:$0x1f]   ;;  %s198_s21 = sand.u32 1, %s1536_s12  }
  0x30   : > { %v399_v2 = vsel %vm397_vm1, %v398_v1, 0  ;;  %v1716_v21 = vld [vmem:[#allocation4] ss:$0 sm:$0xff]  ;;  %s1127_s22 = sshll.u32 %s198_s21, 7  ;;  %vm724_vm3 = vcmask 257024   ;;  %s765_s23 = ssub.s32 (%p1628_p4), 196, %s1674_s9 }
  0x31   : > { %s207_s10 = scalar_select %p206_p9, %s1674_s9, 195  ;;  %v401_v5 = vand.u32 %v1413_v3, %v399_v2 }
  0x32   : > { %s1724_s12 = scalar_lea.vmem [#allocation6], %s1127_s22   ;;  %s1245_s24 = sshll.u32 (%p1628_p4), %s1616_s15, 7 }
  0x33   : > { %s1129_s11 = sshll.u32 %s207_s10, 2  ;;  %1265 = vmatprep.subr.bf16.mxu0 %v401_v5  ;;  %1299 = vmatprep.subr.bf16.mxu1 %v401_v5  ;;  %p766_p6 = scmp.lt.s32.totalorder (%p1628_p4), %s765_s23, 32 }
  0x34   : > { %s1681_s18 = scalar_lea.vmem %s1951_s0, %s1129_s11  ;;  %1266 = vmatpush3.bf16.msra.mxu0 %v401_v5  ;;  %1300 = vmatpush3.bf16.msra.mxu1 %v401_v5  ;;  %s1823_s27 = scalar_lea.vmem (%p1628_p4), %s1954_s3, %s1245_s24  }
  0x35   : > { %v1414_v4 = vld [vmem:[%s1681_s18] sm:$0xff]   ;;  %v1416_v7 = vld [vmem:[%s1681_s18 + $0x8] sm:$0xff]   ;;  %v1418_v9 = vld [vmem:[%s1681_s18 + $0x10] sm:$0xff]  }
  0x36   : > { %v1415_v6 = vld [vmem:[%s1681_s18 + $0x40] sm:$0xff]   ;;  %1267 = vmatprep.mubr.msk.bf16.mxu0 %vm347_vm2, %v1414_v4  ;;  %v1417_v8 = vld [vmem:[%s1681_s18 + $0x48] sm:$0xff]   ;;  %v1419_v10 = vld [vmem:[%s1681_s18 + $0x50] sm:$0xff]  }
  0x37   : > { %1283 = vmatprep.mubr.msk.bf16.mxu1 %vm347_vm2, %v1415_v6  ;;  %1268 = vmatmul.mubr.msk.bf16.vlgmr.msra.gmra.mxu0 %vm347_vm2, %v1416_v7  ;;  %v1420_v11 = vld [vmem:[%s1681_s18 + $0x18] sm:$0xff]   ;;  %v1422_v13 = vld [vmem:[%s1681_s18 + $0x20] sm:$0xff]   ;;  %v1424_v15 = vld [vmem:[%s1681_s18 + $0x28] sm:$0xff]  }
  0x38   : > { %1284 = vmatmul.mubr.msk.bf16.vlgmr.msra.gmra.mxu1 %vm347_vm2, %v1417_v8  ;;  %1271 = vmatprep.mubr.msk.bf16.mxu0 %vm347_vm2, %v1418_v9  ;;  %v1421_v12 = vld [vmem:[%s1681_s18 + $0x58] sm:$0xff]   ;;  %v1423_v14 = vld [vmem:[%s1681_s18 + $0x60] sm:$0xff]   ;;  %v1425_v16 = vld [vmem:[%s1681_s18 + $0x68] sm:$0xff]  }
  0x39   : > { %1287 = vmatprep.mubr.msk.bf16.mxu1 %vm347_vm2, %v1419_v10  ;;  %v1426_v17 = vld [vmem:[%s1681_s18 + $0x30] sm:$0xff]   ;;  %v1428_v19 = vld [vmem:[%s1681_s18 + $0x38] sm:$0xff]  }
  0x3a   : > { %v1427_v18 = vld [vmem:[%s1681_s18 + $0x70] sm:$0xff]   ;;  %v1429_v20 = vld [vmem:[%s1681_s18 + $0x78] sm:$0xff]  }
  0x3f   : > { %1272 = vmatmul.mubr.msk.bf16.gmra.mxu0 %vm347_vm2, %v1420_v11 }
  0x40   : > { %1288 = vmatmul.mubr.msk.bf16.gmra.mxu1 %vm347_vm2, %v1421_v12  ;;  %1275 = vmatprep.mubr.msk.bf16.mxu0 %vm347_vm2, %v1422_v13 }
  0x41   : > { %1291 = vmatprep.mubr.msk.bf16.mxu1 %vm347_vm2, %v1423_v14 }
  0x47   : > { %1276 = vmatmul.mubr.msk.bf16.gmra.mxu0 %vm347_vm2, %v1424_v15 }
  0x48   : > { %1292 = vmatmul.mubr.msk.bf16.gmra.mxu1 %vm347_vm2, %v1425_v16  ;;  %1279 = vmatprep.mubr.msk.bf16.mxu0 %vm347_vm2, %v1426_v17 }
  0x49   : > { %1295 = vmatprep.mubr.msk.bf16.mxu1 %vm347_vm2, %v1427_v18 }
  0x4f   : > { %1280 = vmatmul.mubr.msk.bf16.gmra.mxu0 %vm347_vm2, %v1428_v19 }
  0x50   : > { %1296 = vmatmul.mubr.msk.bf16.gmra.mxu1 %vm347_vm2, %v1429_v20 }
  0xf7   : > { %v1269_v22 = vpop.f32.mrf.mxu0 }
  0xf8   : > { %v1285_v23 = vpop.f32.mrf.mxu1  ;;  %v446_v24 = vadd.f32 %v1269_v22, %v1716_v21 }
  0xf9   : > { %v510_v25 = vadd.f32 %v1285_v23, %v1716_v21  ;;  %v437_v26 = vpop.f32.mrf.mxu0 }
  0xfa   : > { %v501_v27 = vpop.f32.mrf.mxu1  ;;  %v566_v28 = vmax.f32 %v446_v24, 0.0  ;;  %v438_v30 = vadd.f32 %v1716_v21, %v437_v26 }
  0xfb   : > { %v582_v29 = vmax.f32 %v510_v25, 0.0  ;;  %v502_v31 = vadd.f32 %v1716_v21, %v501_v27  ;;  %v1270_v32 = vpop.f32.mrf.mxu0 }
  0xfc   : > { %v1286_v33 = vpop.f32.mrf.mxu1  ;;  %v1215_v34 = vpack.c.bf16 %v566_v28, %v566_v28  ;;  %v564_v36 = vmax.f32 %v438_v30, 0.0  ;;  %v449_v38 = vadd.f32 %v1270_v32, %v1716_v21 }
  0xfd   : > { %v1231_v35 = vpack.c.bf16 %v582_v29, %v582_v29  ;;  %v580_v37 = vmax.f32 %v502_v31, 0.0  ;;  %v513_v39 = vadd.f32 %v1286_v33, %v1716_v21  ;;  %v440_v40 = vpop.f32.mrf.mxu0 }
  0xfe   : > { %v504_v41 = vpop.f32.mrf.mxu1  ;;  %727 = vst.msk [vmem:[%s1724_s12 + $0x8] sm:$0xf] %vm724_vm3, %v1215_v34  ;;  %v1213_v42 = vpack.c.bf16 %v564_v36, %v564_v36  ;;  %v441_v44 = vadd.f32 %v1716_v21, %v440_v40  ;;  %v567_v46 = vmax.f32 %v449_v38, 0.0 }
  0xff   : > { %743 = vst.msk [vmem:[%s1724_s12 + $0x48] sm:$0xf] %vm724_vm3, %v1231_v35  ;;  %v1229_v43 = vpack.c.bf16 %v580_v37, %v580_v37  ;;  %v505_v45 = vadd.f32 %v1716_v21, %v504_v41  ;;  %v583_v47 = vmax.f32 %v513_v39, 0.0  ;;  %v1273_v48 = vpop.f32.mrf.mxu0 }
 0x100   : > { %v1289_v49 = vpop.f32.mrf.mxu1  ;;  %725 = vst.msk [vmem:[%s1724_s12] sm:$0xf] %vm724_vm3, %v1213_v42  ;;  %v565_v50 = vmax.f32 %v441_v44, 0.0  ;;  %v462_v52 = vadd.f32 %v1273_v48, %v1716_v21  ;;  %v1216_v54 = vpack.c.bf16 %v567_v46, %v567_v46 }
 0x101   : > { %741 = vst.msk [vmem:[%s1724_s12 + $0x40] sm:$0xf] %vm724_vm3, %v1229_v43  ;;  %v581_v51 = vmax.f32 %v505_v45, 0.0  ;;  %v526_v53 = vadd.f32 %v1289_v49, %v1716_v21  ;;  %v1232_v55 = vpack.c.bf16 %v583_v47, %v583_v47  ;;  %v453_v56 = vpop.f32.mrf.mxu0 }
 0x102   : > { %v517_v57 = vpop.f32.mrf.mxu1  ;;  %v1214_v58 = vpack.c.bf16 %v565_v50, %v565_v50  ;;  %v570_v60 = vmax.f32 %v462_v52, 0.0  ;;  %728 = vst.msk [vmem:[%s1724_s12 + $0xc] sm:$0xf] %vm724_vm3, %v1216_v54  ;;  %v454_v62 = vadd.f32 %v1716_v21, %v453_v56 }
 0x103   : > { %v1230_v59 = vpack.c.bf16 %v581_v51, %v581_v51  ;;  %v586_v61 = vmax.f32 %v526_v53, 0.0  ;;  %744 = vst.msk [vmem:[%s1724_s12 + $0x4c] sm:$0xf] %vm724_vm3, %v1232_v55  ;;  %v518_v63 = vadd.f32 %v1716_v21, %v517_v57  ;;  %v1274_v0 = vpop.f32.mrf.mxu0 }
 0x104   : > { %v1290_v1 = vpop.f32.mrf.mxu1  ;;  %726 = vst.msk [vmem:[%s1724_s12 + $0x4] sm:$0xf] %vm724_vm3, %v1214_v58  ;;  %v1219_v2 = vpack.c.bf16 %v570_v60, %v570_v60  ;;  %v465_v4 = vadd.f32 %v1274_v0, %v1716_v21  ;;  %v568_v6 = vmax.f32 %v454_v62, 0.0 }
 0x105   : > { %742 = vst.msk [vmem:[%s1724_s12 + $0x44] sm:$0xf] %vm724_vm3, %v1230_v59  ;;  %v1235_v3 = vpack.c.bf16 %v586_v61, %v586_v61  ;;  %v529_v5 = vadd.f32 %v1290_v1, %v1716_v21  ;;  %v584_v7 = vmax.f32 %v518_v63, 0.0  ;;  %v456_v8 = vpop.f32.mrf.mxu0 }
 0x106   : > { %v520_v9 = vpop.f32.mrf.mxu1  ;;  %731 = vst.msk [vmem:[%s1724_s12 + $0x18] sm:$0xf] %vm724_vm3, %v1219_v2  ;;  %v571_v10 = vmax.f32 %v465_v4, 0.0  ;;  %v457_v12 = vadd.f32 %v1716_v21, %v456_v8  ;;  %v1217_v14 = vpack.c.bf16 %v568_v6, %v568_v6 }
 0x107   : > { %747 = vst.msk [vmem:[%s1724_s12 + $0x58] sm:$0xf] %vm724_vm3, %v1235_v3  ;;  %v587_v11 = vmax.f32 %v529_v5, 0.0  ;;  %v521_v13 = vadd.f32 %v1716_v21, %v520_v9  ;;  %v1233_v15 = vpack.c.bf16 %v584_v7, %v584_v7  ;;  %v1277_v16 = vpop.f32.mrf.mxu0 }
 0x108   : > { %v1293_v17 = vpop.f32.mrf.mxu1  ;;  %v1220_v18 = vpack.c.bf16 %v571_v10, %v571_v10  ;;  %v569_v20 = vmax.f32 %v457_v12, 0.0  ;;  %729 = vst.msk [vmem:[%s1724_s12 + $0x10] sm:$0xf] %vm724_vm3, %v1217_v14  ;;  %v478_v23 = vadd.f32 %v1277_v16, %v1716_v21 }
 0x109   : > { %v1236_v19 = vpack.c.bf16 %v587_v11, %v587_v11  ;;  %v585_v22 = vmax.f32 %v521_v13, 0.0  ;;  %745 = vst.msk [vmem:[%s1724_s12 + $0x50] sm:$0xf] %vm724_vm3, %v1233_v15  ;;  %v542_v24 = vadd.f32 %v1293_v17, %v1716_v21  ;;  %v469_v25 = vpop.f32.mrf.mxu0 }
 0x10a   : > { %v533_v26 = vpop.f32.mrf.mxu1  ;;  %732 = vst.msk [vmem:[%s1724_s12 + $0x1c] sm:$0xf] %vm724_vm3, %v1220_v18  ;;  %v1218_v27 = vpack.c.bf16 %v569_v20, %v569_v20  ;;  %v470_v29 = vadd.f32 %v1716_v21, %v469_v25  ;;  %v574_v31 = vmax.f32 %v478_v23, 0.0 }
 0x10b   : > { %748 = vst.msk [vmem:[%s1724_s12 + $0x5c] sm:$0xf] %vm724_vm3, %v1236_v19  ;;  %v1234_v28 = vpack.c.bf16 %v585_v22, %v585_v22  ;;  %v534_v30 = vadd.f32 %v1716_v21, %v533_v26  ;;  %v590_v32 = vmax.f32 %v542_v24, 0.0  ;;  %v1278_v33 = vpop.f32.mrf.mxu0 }
 0x10c   : > { %v1294_v34 = vpop.f32.mrf.mxu1  ;;  %730 = vst.msk [vmem:[%s1724_s12 + $0x14] sm:$0xf] %vm724_vm3, %v1218_v27  ;;  %v572_v35 = vmax.f32 %v470_v29, 0.0  ;;  %v481_v37 = vadd.f32 %v1278_v33, %v1716_v21  ;;  %v1223_v39 = vpack.c.bf16 %v574_v31, %v574_v31 }
 0x10d   : > { %746 = vst.msk [vmem:[%s1724_s12 + $0x54] sm:$0xf] %vm724_vm3, %v1234_v28  ;;  %v588_v36 = vmax.f32 %v534_v30, 0.0  ;;  %v545_v38 = vadd.f32 %v1294_v34, %v1716_v21  ;;  %v1239_v40 = vpack.c.bf16 %v590_v32, %v590_v32  ;;  %v472_v41 = vpop.f32.mrf.mxu0 }
 0x10e   : > { %v536_v42 = vpop.f32.mrf.mxu1  ;;  %v1221_v43 = vpack.c.bf16 %v572_v35, %v572_v35  ;;  %v575_v45 = vmax.f32 %v481_v37, 0.0  ;;  %735 = vst.msk [vmem:[%s1724_s12 + $0x28] sm:$0xf] %vm724_vm3, %v1223_v39  ;;  %v473_v47 = vadd.f32 %v1716_v21, %v472_v41 }
 0x10f   : > { %v1237_v44 = vpack.c.bf16 %v588_v36, %v588_v36  ;;  %v591_v46 = vmax.f32 %v545_v38, 0.0  ;;  %751 = vst.msk [vmem:[%s1724_s12 + $0x68] sm:$0xf] %vm724_vm3, %v1239_v40  ;;  %v537_v48 = vadd.f32 %v1716_v21, %v536_v42  ;;  %v1281_v49 = vpop.f32.mrf.mxu0 }
 0x110   : > { %v1297_v50 = vpop.f32.mrf.mxu1  ;;  %733 = vst.msk [vmem:[%s1724_s12 + $0x20] sm:$0xf] %vm724_vm3, %v1221_v43  ;;  %v1224_v51 = vpack.c.bf16 %v575_v45, %v575_v45  ;;  %v494_v53 = vadd.f32 %v1281_v49, %v1716_v21  ;;  %v573_v55 = vmax.f32 %v473_v47, 0.0 }
 0x111   : > { %749 = vst.msk [vmem:[%s1724_s12 + $0x60] sm:$0xf] %vm724_vm3, %v1237_v44  ;;  %v1240_v52 = vpack.c.bf16 %v591_v46, %v591_v46  ;;  %v558_v54 = vadd.f32 %v1297_v50, %v1716_v21  ;;  %v589_v56 = vmax.f32 %v537_v48, 0.0  ;;  %v485_v57 = vpop.f32.mrf.mxu0 }
 0x112   : > { %v549_v58 = vpop.f32.mrf.mxu1  ;;  %736 = vst.msk [vmem:[%s1724_s12 + $0x2c] sm:$0xf] %vm724_vm3, %v1224_v51  ;;  %v578_v59 = vmax.f32 %v494_v53, 0.0  ;;  %v486_v61 = vadd.f32 %v1716_v21, %v485_v57  ;;  %v1222_v63 = vpack.c.bf16 %v573_v55, %v573_v55 }
 0x113   : > { %752 = vst.msk [vmem:[%s1724_s12 + $0x6c] sm:$0xf] %vm724_vm3, %v1240_v52  ;;  %v594_v60 = vmax.f32 %v558_v54, 0.0  ;;  %v550_v62 = vadd.f32 %v1716_v21, %v549_v58  ;;  %v1238_v0 = vpack.c.bf16 %v589_v56, %v589_v56  ;;  %v1282_v1 = vpop.f32.mrf.mxu0 }
 0x114   : > { %v1298_v2 = vpop.f32.mrf.mxu1  ;;  %v1227_v3 = vpack.c.bf16 %v578_v59, %v578_v59  ;;  %v576_v5 = vmax.f32 %v486_v61, 0.0  ;;  %734 = vst.msk [vmem:[%s1724_s12 + $0x24] sm:$0xf] %vm724_vm3, %v1222_v63  ;;  %v497_v7 = vadd.f32 %v1282_v1, %v1716_v21 }
 0x115   : > { %v1243_v4 = vpack.c.bf16 %v594_v60, %v594_v60  ;;  %v592_v6 = vmax.f32 %v550_v62, 0.0  ;;  %750 = vst.msk [vmem:[%s1724_s12 + $0x64] sm:$0xf] %vm724_vm3, %v1238_v0  ;;  %v561_v8 = vadd.f32 %v1298_v2, %v1716_v21  ;;  %v488_v9 = vpop.f32.mrf.mxu0 }
 0x116   : > { %v552_v10 = vpop.f32.mrf.mxu1  ;;  %739 = vst.msk [vmem:[%s1724_s12 + $0x38] sm:$0xf] %vm724_vm3, %v1227_v3  ;;  %v1225_v11 = vpack.c.bf16 %v576_v5, %v576_v5  ;;  %v489_v13 = vadd.f32 %v1716_v21, %v488_v9  ;;  %v579_v15 = vmax.f32 %v497_v7, 0.0 }
 0x117   : > { %755 = vst.msk [vmem:[%s1724_s12 + $0x78] sm:$0xf] %vm724_vm3, %v1243_v4  ;;  %v1241_v12 = vpack.c.bf16 %v592_v6, %v592_v6  ;;  %v553_v14 = vadd.f32 %v1716_v21, %v552_v10  ;;  %v595_v16 = vmax.f32 %v561_v8, 0.0 }
 0x118   : > { %737 = vst.msk [vmem:[%s1724_s12 + $0x30] sm:$0xf] %vm724_vm3, %v1225_v11  ;;  %v577_v17 = vmax.f32 %v489_v13, 0.0  ;;  %v1228_v19 = vpack.c.bf16 %v579_v15, %v579_v15 }
 0x119   : > { %753 = vst.msk [vmem:[%s1724_s12 + $0x70] sm:$0xf] %vm724_vm3, %v1241_v12  ;;  %v593_v18 = vmax.f32 %v553_v14, 0.0  ;;  %v1244_v20 = vpack.c.bf16 %v595_v16, %v595_v16  ;;  %763 = sbr.rel (!%p1628_p4) target bundleno = 346 (0x15a), region = 44 }
 0x11a   : > { %v1226_v22 = vpack.c.bf16 %v577_v17, %v577_v17  ;;  %740 = vst.msk [vmem:[%s1724_s12 + $0x3c] sm:$0xf] %vm724_vm3, %v1228_v19 }
 0x11b   : > { %v1242_v23 = vpack.c.bf16 %v593_v18, %v593_v18  ;;  %756 = vst.msk [vmem:[%s1724_s12 + $0x7c] sm:$0xf] %vm724_vm3, %v1244_v20 }
 0x11c   : > { %738 = vst.msk [vmem:[%s1724_s12 + $0x34] sm:$0xf] %vm724_vm3, %v1226_v22 }
 0x11d   : > { %754 = vst.msk [vmem:[%s1724_s12 + $0x74] sm:$0xf] %vm724_vm3, %v1242_v23 }
 0x11e   : > { %s1965_s23 = smov (!%p766_p6, %s765_s23), 32 }
 0x11f   : > { %s1198_s28 = sshll.u32 %s1965_s23, 6 }
 0x120   : > { %p1201_p7 = scmp.eq.s32.totalorder %s1198_s28, 0 }
 0x121   : > { %s1829_s29 = sshrl.u32 (!%p1201_p7), %s1965_s23, 5 }
 0x122   : > { %774 = sbr.rel (%p1201_p7) target bundleno = 346 (0x15a), region = 48  ;;  %p1202_p4 = scmp.le.s32.totalorder (!%p1201_p7), %s1829_s29, 0 }
 0x127   : > { %1057 = sbr.rel (%p1202_p4) target bundleno = 329 (0x149), region = 121  ;;  %s1958_s15 = smov (!%p1202_p4), %s1823_s27 }
 0x128   : > { %s1959_s20 = smov (!%p1202_p4), %s1724_s12  ;;  %s1838_s30 = smov (!%p1202_p4), 0  }
 0x129   : > { %s1840_s4 = smov (!%p1202_p4), 0  }
 0x12c LB: >> { %v791_v21 = vld [vmem:[%s1552_s20] sm:$0xf]  ;;  %v793_v24 = vld [vmem:[%s1552_s20 + $0x4] sm:$0xf]  ;;  %v795_v25 = vld [vmem:[%s1552_s20 + $0x8] sm:$0xf]  ;;  %s1560_s4 = sphi %s1840_s4, %s785_s4   ;;  %s1556_s30 = sphi %s1838_s30, %s1960_s30   ;;  %s1552_s20 = sphi %s1959_s20, %s860_s20   ;;  %s1548_s15 = sphi %s1958_s15, %s861_s15  }
 0x12d   : >> { %792 = vst [vmem:[%s1548_s15] sm:$0xf] %v791_v21  ;;  %794 = vst [vmem:[%s1548_s15 + $0x4] sm:$0xf] %v793_v24  ;;  %v797_v26 = vld [vmem:[%s1552_s20 + $0xc] sm:$0xf]  ;;  %s855_s5 = sadd.s32 1, %s1556_s30 }
 0x12e   : >> { %796 = vst [vmem:[%s1548_s15 + $0x8] sm:$0xf] %v795_v25  ;;  %v799_v27 = vld [vmem:[%s1552_s20 + $0x10] sm:$0xf]  ;;  %v801_v28 = vld [vmem:[%s1552_s20 + $0x14] sm:$0xf]  ;;  %p856_p10 = scmp.ge.s32.totalorder %s855_s5, %s1829_s29 }
 0x12f   : >> { %798 = vst [vmem:[%s1548_s15 + $0xc] sm:$0xf] %v797_v26  ;;  %800 = vst [vmem:[%s1548_s15 + $0x10] sm:$0xf] %v799_v27  ;;  %v803_v29 = vld [vmem:[%s1552_s20 + $0x18] sm:$0xf] }
 0x130   : >> { %802 = vst [vmem:[%s1548_s15 + $0x14] sm:$0xf] %v801_v28  ;;  %v805_v30 = vld [vmem:[%s1552_s20 + $0x1c] sm:$0xf]  ;;  %v807_v31 = vld [vmem:[%s1552_s20 + $0x20] sm:$0xf] }
 0x131   : >> { %804 = vst [vmem:[%s1548_s15 + $0x18] sm:$0xf] %v803_v29  ;;  %806 = vst [vmem:[%s1548_s15 + $0x1c] sm:$0xf] %v805_v30  ;;  %v809_v32 = vld [vmem:[%s1552_s20 + $0x24] sm:$0xf] }
 0x132   : >> { %808 = vst [vmem:[%s1548_s15 + $0x20] sm:$0xf] %v807_v31  ;;  %v811_v33 = vld [vmem:[%s1552_s20 + $0x28] sm:$0xf]  ;;  %v813_v34 = vld [vmem:[%s1552_s20 + $0x2c] sm:$0xf] }
 0x133   : >> { %810 = vst [vmem:[%s1548_s15 + $0x24] sm:$0xf] %v809_v32  ;;  %812 = vst [vmem:[%s1548_s15 + $0x28] sm:$0xf] %v811_v33  ;;  %v815_v35 = vld [vmem:[%s1552_s20 + $0x30] sm:$0xf] }
 0x134   : >> { %814 = vst [vmem:[%s1548_s15 + $0x2c] sm:$0xf] %v813_v34  ;;  %v817_v36 = vld [vmem:[%s1552_s20 + $0x34] sm:$0xf]  ;;  %v819_v37 = vld [vmem:[%s1552_s20 + $0x38] sm:$0xf] }
 0x135   : >> { %816 = vst [vmem:[%s1548_s15 + $0x30] sm:$0xf] %v815_v35  ;;  %818 = vst [vmem:[%s1548_s15 + $0x34] sm:$0xf] %v817_v36  ;;  %v821_v38 = vld [vmem:[%s1552_s20 + $0x3c] sm:$0xf] }
 0x136   : >> { %820 = vst [vmem:[%s1548_s15 + $0x38] sm:$0xf] %v819_v37  ;;  %v823_v39 = vld [vmem:[%s1552_s20 + $0x40] sm:$0xf]  ;;  %v825_v40 = vld [vmem:[%s1552_s20 + $0x44] sm:$0xf] }
 0x137   : >> { %822 = vst [vmem:[%s1548_s15 + $0x3c] sm:$0xf] %v821_v38  ;;  %824 = vst [vmem:[%s1548_s15 + $0x40] sm:$0xf] %v823_v39  ;;  %v827_v41 = vld [vmem:[%s1552_s20 + $0x48] sm:$0xf] }
 0x138   : >> { %826 = vst [vmem:[%s1548_s15 + $0x44] sm:$0xf] %v825_v40  ;;  %v829_v42 = vld [vmem:[%s1552_s20 + $0x4c] sm:$0xf]  ;;  %v831_v43 = vld [vmem:[%s1552_s20 + $0x50] sm:$0xf] }
 0x139   : >> { %828 = vst [vmem:[%s1548_s15 + $0x48] sm:$0xf] %v827_v41  ;;  %830 = vst [vmem:[%s1548_s15 + $0x4c] sm:$0xf] %v829_v42  ;;  %v833_v44 = vld [vmem:[%s1552_s20 + $0x54] sm:$0xf] }
 0x13a   : >> { %832 = vst [vmem:[%s1548_s15 + $0x50] sm:$0xf] %v831_v43  ;;  %v835_v45 = vld [vmem:[%s1552_s20 + $0x58] sm:$0xf]  ;;  %v837_v46 = vld [vmem:[%s1552_s20 + $0x5c] sm:$0xf] }
 0x13b   : >> { %834 = vst [vmem:[%s1548_s15 + $0x54] sm:$0xf] %v833_v44  ;;  %836 = vst [vmem:[%s1548_s15 + $0x58] sm:$0xf] %v835_v45  ;;  %v839_v47 = vld [vmem:[%s1552_s20 + $0x60] sm:$0xf] }
 0x13c   : >> { %838 = vst [vmem:[%s1548_s15 + $0x5c] sm:$0xf] %v837_v46  ;;  %v841_v48 = vld [vmem:[%s1552_s20 + $0x64] sm:$0xf]  ;;  %v843_v49 = vld [vmem:[%s1552_s20 + $0x68] sm:$0xf] }
 0x13d   : >> { %840 = vst [vmem:[%s1548_s15 + $0x60] sm:$0xf] %v839_v47  ;;  %842 = vst [vmem:[%s1548_s15 + $0x64] sm:$0xf] %v841_v48  ;;  %v845_v50 = vld [vmem:[%s1552_s20 + $0x6c] sm:$0xf] }
 0x13e   : >> { %844 = vst [vmem:[%s1548_s15 + $0x68] sm:$0xf] %v843_v49  ;;  %v847_v51 = vld [vmem:[%s1552_s20 + $0x70] sm:$0xf]  ;;  %v849_v52 = vld [vmem:[%s1552_s20 + $0x74] sm:$0xf] }
 0x13f   : >> { %846 = vst [vmem:[%s1548_s15 + $0x6c] sm:$0xf] %v845_v50  ;;  %848 = vst [vmem:[%s1548_s15 + $0x70] sm:$0xf] %v847_v51  ;;  %v851_v53 = vld [vmem:[%s1552_s20 + $0x78] sm:$0xf] }
 0x140   : >> { %850 = vst [vmem:[%s1548_s15 + $0x74] sm:$0xf] %v849_v52  ;;  %v853_v54 = vld [vmem:[%s1552_s20 + $0x7c] sm:$0xf]  ;;  %852 = vst [vmem:[%s1548_s15 + $0x78] sm:$0xf] %v851_v53 }
 0x141   : >> { %854 = vst [vmem:[%s1548_s15 + $0x7c] sm:$0xf] %v853_v54  ;;  %s1967_s5 = smov (%p856_p10, %s855_s5), 0  ;;  %s785_s4 = sadd.s32 1, %s1560_s4  }
 0x142   : >> { %s1203_s6 = sshll.u32 %s1967_s5, 7  ;;  %p784_p2 = scmp.ge.s32.totalorder %s785_s4, %s1829_s29 }
 0x143   : >> { %s860_s20 = scalar_lea.vmem %s1724_s12, %s1203_s6 [#allocation6]   ;;  %s861_s15 = scalar_lea.vmem %s1823_s27, %s1203_s6  }
 0x144   : >> { %s1960_s30 = smov %s1967_s5  ;;  %787 = sbr.rel (!%p784_p2) target bundleno = 300 (0x12c), region = 127 }
 0x149 PF: > { %s1933_s7 = sand.u32 31, %s1965_s23   ;;  %s1246_s8 = sshll.u32 %s1829_s29, 7 }
 0x14a   : > { %s866_s9 = scalar_lea.vmem %s1724_s12, %s1246_s8 [#allocation6]   ;;  %s868_s10 = scalar_lea.vmem %s1823_s27, %s1246_s8  }
 0x14b   : > { %p1208_p3 = scmp.le.s32.totalorder %s1933_s7, 0 }
 0x14c   : > { %s1562_s11 = smov (!%p1208_p3), %s868_s10   ;;  %s1566_s14 = smov (!%p1208_p3), %s866_s9  }
 0x14d   : > { %1071 = sbr.rel (%p1208_p3) target bundleno = 346 (0x15a), region = 132  ;;  %s1570_s17 = smov (!%p1208_p3), 0  }
 0x14e   : > { %s1574_s18 = smov (!%p1208_p3), 0  }
 0x152 LB: >> { %v878_v55 = vld [vmem:[%s1568_s14] sm:$0xf]  ;;  %s880_s21 = sadd.s32 1, %s1572_s17  ;;  %s872_s18 = sadd.s32 1, %s1576_s18   ;;  %s1576_s18 = sphi %s1574_s18, %s872_s18   ;;  %s1572_s17 = sphi %s1570_s17, %s1571_s17   ;;  %s1568_s14 = sphi %s1566_s14, %s885_s14   ;;  %s1564_s11 = sphi %s1562_s11, %s886_s11  }
 0x153   : >> { %879 = vst [vmem:[%s1564_s11] sm:$0xf] %v878_v55  ;;  %p881_p5 = scmp.ge.s32.totalorder %s880_s21, %s1933_s7  ;;  %p871_p8 = scmp.ge.s32.totalorder %s872_s18, %s1933_s7 }
 0x155   : >> { %s1969_s21 = smov (%p881_p5, %s880_s21), 0  ;;  %874 = sbr.rel (!%p871_p8) target bundleno = 338 (0x152), region = 138 }
 0x156   : >> { %s1209_s22 = sshll.u32 %s1969_s21, 2  ;;  %s1571_s17 = smov %s1969_s21  }
 0x157   : >> { %s885_s14 = scalar_lea.vmem %s866_s9, %s1209_s22 [#allocation6]   ;;  %s886_s11 = scalar_lea.vmem %s868_s10, %s1209_s22  }
 0x15a PF: > { %p12_p11 = scmp.ge.s32.totalorder %s1618_s16, 9   ;;  %s1961_s12 = smov %s1540_s13 }
 0x15b   : > { %s1962_s13 = smov %s1626_s19  ;;  %s1963_s14 = smov %s1618_s16 }
 0x15c   :  { %14 = sbr.rel (!%p12_p11) target bundleno = 3 (0x3), region = 149 }
 0x161   :  { %1010 = vsyncpa [#allocation3], 1 }
 0x162   :  { %1012 = vsyncpa [#allocation3 + $0x1], 1 }
 0x163   :  { %1013 = vsyncpa [#allocation5], 1 }

// kernel: forward.5
= control target key start
LH: loop header
LB: loop body
LE: loop exit
PB: predicated region body
PF: predicated region fallthrough
CT: control target
= control target key end

     0   :  { %v1941_v0 = vmov 0   ;;  %v1942_v2 = vmov 0.0   ;;  %vm1943_vm0 = vmmov 0   ;;  %vm634_vm1 = vcmask 261120   ;;  %s2721_s1 = inlined_call_operand.vmem [shape: bf16[288,64], index: 1, kind: input, shape index: {}]   ;;  %s2722_s0 = inlined_call_operand.vmem [shape: bf16[392,288], index: 0, kind: input, shape index: {}]   ;;  %s2723_s2 = inlined_call_operand.vmem [shape: f32[1,64], index: 2, kind: input, shape index: {}]   ;;  %s2724_s3 = inlined_call_operand.vmem [shape: bf16[392,64], index: 3, kind: output, shape index: {}]  }
   0x1   :  { %710 = vmatprep.subr.bf16.mxu0 %v1941_v0  ;;  %v1825_v1 = vld [vmem:[%s2721_s1 + $0x38] sm:$0xff]   ;;  %1718 = vmatprep.subr.bf16.mxu1 %v1942_v2  ;;  %v1826_v3 = vld [vmem:[%s2721_s1 + $0x30] sm:$0xff]   ;;  %v1827_v4 = vld [vmem:[%s2721_s1 + $0x28] sm:$0xff]   ;;  %vm1420_vm2 = vcmask 519168  }
   0x2   :  { %1722 = vmatprep.mubr.msk.bf16.mxu1 %vm1943_vm0, %v1942_v2  ;;  %711 = vmatpush1.bf16.msra.mxu0 %v1825_v1  ;;  %v1828_v5 = vld [vmem:[%s2721_s1 + $0x20] sm:$0xff]   ;;  %v1829_v6 = vld [vmem:[%s2721_s1 + $0x18] sm:$0xff]   ;;  %v1839_v7 = vld [vmem:[%s2721_s1 + $0x88] sm:$0xff]  }
   0x3   :  { %712 = vmatprep.subr.bf16.mxu0 %v1941_v0  ;;  %1719 = vmatpush3.bf16.msra.mxu1 %v1839_v7  ;;  %v1841_v8 = vld [vmem:[%s2721_s1 + $0x80] sm:$0xff]   ;;  %v1830_v9 = vld [vmem:[%s2721_s1 + $0x10] sm:$0xff]   ;;  %v1831_v12 = vld [vmem:[%s2721_s1 + $0x8] sm:$0xff]  }
   0x4   :  { %1720 = vmatprep.subr.bf16.mxu1 %v1942_v2  ;;  %v1842_v10 = vld [vmem:[%s2722_s0 + $0x8] ss:$12 sps:$4 sm:$0xff]   ;;  %v1846_v11 = vld [vmem:[%s2722_s0 + $0x4] ss:$12 sps:$4 sm:$0xff]   ;;  %v1847_v14 = vld [vmem:[%s2722_s0 + $0x20] ss:$12 sps:$4 sm:$0xff]  }
   0x5   :  { %742 = vmatprep.mubr.bf16.mxu0 %v1846_v11  ;;  %v1832_v13 = vld [vmem:[%s2721_s1] sm:$0xff]   ;;  %v1833_v15 = vld [vmem:[%s2721_s1 + $0x78] sm:$0xff]   ;;  %v1834_v16 = vld [vmem:[%s2721_s1 + $0x70] sm:$0xff]  }
   0x6   :  { %713 = vmatpush1.bf16.msra.mxu0 %v1826_v3  ;;  %v1851_v17 = vld [vmem:[%s2722_s0 + $0x38] ss:$12 sps:$4 sm:$0xff]   ;;  %v1835_v18 = vld [vmem:[%s2721_s1 + $0x68] sm:$0xff]   ;;  %v1855_v20 = vld [vmem:[%s2722_s0 + $0x50] ss:$12 sps:$4 sm:$0xff]  }
   0x7   :  { %714 = vmatprep.subr.bf16.mxu0 %v1941_v0  ;;  %1721 = vmatpush3.bf16.msra.mxu1 %v1841_v8  ;;  %v1836_v19 = vld [vmem:[%s2721_s1 + $0x60] sm:$0xff]   ;;  %v1837_v21 = vld [vmem:[%s2721_s1 + $0x58] sm:$0xff]   ;;  %v1838_v22 = vld [vmem:[%s2721_s1 + $0x50] sm:$0xff]  }
   0x8   :  { %v1859_v23 = vld [vmem:[%s2722_s0 + $0x68] ss:$12 sps:$4 sm:$0xff]   ;;  %v1843_v25 = vld [vmem:[%s2721_s1 + $0x40] sm:$0xff]   ;;  %v1871_v32 = vld [vmem:[%s2722_s0 + $0xb0] ss:$12 sps:$4 sm:$0xff]  }
   0x9   :  { %v1840_v24 = vld [vmem:[%s2721_s1 + $0x48] sm:$0xff]   ;;  %v1867_v29 = vld [vmem:[%s2722_s0 + $0x98] ss:$12 sps:$4 sm:$0xff]   ;;  %v1852_v31 = vld [vmem:[%s2722_s0 + $0x34] ss:$12 sps:$4 sm:$0xff]  }
   0xa   :  { %715 = vmatpush1.bf16.msra.mxu0 %v1827_v4  ;;  %1723 = vmatmul.mubr.msk.bf16.vlgmr.msra.gmra.mxu1 %vm634_vm1, %v1842_v10  ;;  %v1863_v26 = vld [vmem:[%s2722_s0 + $0x80] ss:$12 sps:$4 sm:$0xff]   ;;  %v1848_v28 = vld [vmem:[%s2722_s0 + $0x1c] ss:$12 sps:$4 sm:$0xff]   ;;  %v1850_v30 = vld [vmem:[%s2722_s0 + $0x18] ss:$12 sps:$4 sm:$0xff]  }
   0xb   :  { %716 = vmatprep.subr.bf16.mxu0 %v1941_v0  ;;  %1726 = vmatprep.mubr.msk.bf16.mxu1 %vm1943_vm0, %v1942_v2  ;;  %v1844_v27 = vld [vmem:[%s2722_s0] ss:$12 sps:$4 sm:$0xff]   ;;  %v1854_v33 = vld [vmem:[%s2722_s0 + $0x30] ss:$12 sps:$4 sm:$0xff]   ;;  %v1875_v35 = vld [vmem:[%s2722_s0 + $0xc8] ss:$12 sps:$4 sm:$0xff]  }
   0xc   :  { %v1856_v34 = vld [vmem:[%s2722_s0 + $0x4c] ss:$12 sps:$4 sm:$0xff]   ;;  %v1858_v36 = vld [vmem:[%s2722_s0 + $0x48] ss:$12 sps:$4 sm:$0xff]   ;;  %v1860_v37 = vld [vmem:[%s2722_s0 + $0x64] ss:$12 sps:$4 sm:$0xff]  }
   0xd   :  { %v1879_v38 = vld [vmem:[%s2722_s0 + $0xe0] ss:$12 sps:$4 sm:$0xff]   ;;  %v1864_v40 = vld [vmem:[%s2722_s0 + $0x7c] ss:$12 sps:$4 sm:$0xff]   ;;  %v1883_v41 = vld [vmem:[%s2722_s0 + $0xf8] ss:$12 sps:$4 sm:$0xff]  }
   0xe   :  { %717 = vmatpush1.bf16.msra.mxu0 %v1828_v5  ;;  %v1862_v39 = vld [vmem:[%s2722_s0 + $0x60] ss:$12 sps:$4 sm:$0xff]   ;;  %v1866_v42 = vld [vmem:[%s2722_s0 + $0x78] ss:$12 sps:$4 sm:$0xff]   ;;  %v1887_v44 = vld [vmem:[%s2722_s0 + $0x110] ss:$12 sps:$4 sm:$0xff]  }
   0xf   :  { %718 = vmatprep.subr.bf16.mxu0 %v1941_v0  ;;  %v1868_v43 = vld [vmem:[%s2722_s0 + $0x94] ss:$12 sps:$4 sm:$0xff]   ;;  %v1870_v45 = vld [vmem:[%s2722_s0 + $0x90] ss:$12 sps:$4 sm:$0xff]   ;;  %v1872_v46 = vld [vmem:[%s2722_s0 + $0xac] ss:$12 sps:$4 sm:$0xff]  }
  0x10   :  { %v1891_v47 = vld [vmem:[%s2722_s0 + $0x128] ss:$12 sps:$4 sm:$0xff]   ;;  %v1876_v49 = vld [vmem:[%s2722_s0 + $0xc4] ss:$12 sps:$4 sm:$0xff]   ;;  %v1895_v50 = vld [vmem:[%s2722_s0 + $0x140] ss:$12 sps:$4 sm:$0xff]  }
  0x11   :  { %v1874_v48 = vld [vmem:[%s2722_s0 + $0xa8] ss:$12 sps:$4 sm:$0xff]   ;;  %v1878_v51 = vld [vmem:[%s2722_s0 + $0xc0] ss:$12 sps:$4 sm:$0xff]   ;;  %v1899_v53 = vld [vmem:[%s2722_s0 + $0x158] ss:$12 sps:$4 sm:$0xff]  }
  0x12   :  { %719 = vmatpush1.bf16.msra.mxu0 %v1829_v6  ;;  %1727 = vmatmul.mubr.msk.bf16.gmra.mxu1 %vm634_vm1, %v1847_v14  ;;  %v1880_v52 = vld [vmem:[%s2722_s0 + $0xdc] ss:$12 sps:$4 sm:$0xff]   ;;  %v1882_v54 = vld [vmem:[%s2722_s0 + $0xd8] ss:$12 sps:$4 sm:$0xff]   ;;  %v1884_v55 = vld [vmem:[%s2722_s0 + $0xf4] ss:$12 sps:$4 sm:$0xff]  }
  0x13   :  { %720 = vmatprep.subr.bf16.mxu0 %v1941_v0  ;;  %1730 = vmatprep.mubr.msk.bf16.mxu1 %vm1943_vm0, %v1942_v2  ;;  %v1903_v56 = vld [vmem:[%s2722_s0 + $0x170] ss:$12 sps:$4 sm:$0xff]   ;;  %v1888_v58 = vld [vmem:[%s2722_s0 + $0x10c] ss:$12 sps:$4 sm:$0xff]   ;;  %v1907_v59 = vld [vmem:[%s2722_s0 + $0x188] ss:$12 sps:$4 sm:$0xff]  }
  0x14   :  { %v1886_v57 = vld [vmem:[%s2722_s0 + $0xf0] ss:$12 sps:$4 sm:$0xff]   ;;  %v1890_v60 = vld [vmem:[%s2722_s0 + $0x108] ss:$12 sps:$4 sm:$0xff]   ;;  %v1911_v62 = vld [vmem:[%s2722_s0 + $0x1a0] ss:$12 sps:$4 sm:$0xff]  }
  0x15   :  { %v1892_v61 = vld [vmem:[%s2722_s0 + $0x124] ss:$12 sps:$4 sm:$0xff]   ;;  %v1894_v63 = vld [vmem:[%s2722_s0 + $0x120] ss:$12 sps:$4 sm:$0xff]   ;;  %v1923_v8 = vld [vmem:[%s2722_s0 + $0x1e8] ss:$12 sps:$4 sm:$0xff]  }
  0x16   :  { %721 = vmatpush1.bf16.msra.mxu0 %v1830_v9  ;;  %v1915_v1 = vld [vmem:[%s2722_s0 + $0x1b8] ss:$12 sps:$4 sm:$0xff]   ;;  %v1900_v4 = vld [vmem:[%s2722_s0 + $0x154] ss:$12 sps:$4 sm:$0xff]   ;;  %v1919_v5 = vld [vmem:[%s2722_s0 + $0x1d0] ss:$12 sps:$4 sm:$0xff]  }
  0x17   :  { %722 = vmatprep.subr.bf16.mxu0 %v1941_v0  ;;  %v1898_v3 = vld [vmem:[%s2722_s0 + $0x138] ss:$12 sps:$4 sm:$0xff]   ;;  %v1902_v6 = vld [vmem:[%s2722_s0 + $0x150] ss:$12 sps:$4 sm:$0xff]   ;;  %v1906_v9 = vld [vmem:[%s2722_s0 + $0x168] ss:$12 sps:$4 sm:$0xff]  }
  0x18   :  { %v1904_v7 = vld [vmem:[%s2722_s0 + $0x16c] ss:$12 sps:$4 sm:$0xff]   ;;  %v1908_v10 = vld [vmem:[%s2722_s0 + $0x184] ss:$12 sps:$4 sm:$0xff]  }
  0x19   :  { %v1927_v11 = vld [vmem:[%s2722_s0 + $0x200] ss:$12 sps:$4 sm:$0xff]   ;;  %v1931_v14 = vld [vmem:[%s2722_s0 + $0x218] ss:$12 sps:$4 sm:$0xff]  }
  0x1a   :  { %723 = vmatpush1.bf16.msra.mxu0 %v1831_v12  ;;  %1731 = vmatmul.mubr.msk.bf16.gmra.mxu1 %vm634_vm1, %v1851_v17  ;;  %v1910_v12 = vld [vmem:[%s2722_s0 + $0x180] ss:$12 sps:$4 sm:$0xff]   ;;  %v1935_v17 = vld [vmem:[%s2722_s0 + $0x230] ss:$12 sps:$4 sm:$0xff]  }
  0x1b   :  { %724 = vmatprep.subr.bf16.mxu0 %v1941_v0  ;;  %1734 = vmatprep.mubr.msk.bf16.mxu1 %vm1943_vm0, %v1942_v2 }
  0x1e   :  { %725 = vmatpush1.bf16.msra.mxu0 %v1832_v13  ;;  %v1912_v13 = vld [vmem:[%s2722_s0 + $0x19c] ss:$12 sps:$4 sm:$0xff]  }
  0x1f   :  { %726 = vmatprep.subr.bf16.mxu0 %v1941_v0 }
  0x22   :  { %727 = vmatpush2.bf16.msra.mxu0 %v1833_v15  ;;  %1735 = vmatmul.mubr.msk.bf16.gmra.mxu1 %vm634_vm1, %v1855_v20  ;;  %v1914_v15 = vld [vmem:[%s2722_s0 + $0x198] ss:$12 sps:$4 sm:$0xff]   ;;  %v1939_v20 = vld [vmem:[%s2722_s0 + $0x248] ss:$0 sps:$4 sm:$0xff]  }
  0x23   :  { %728 = vmatprep.subr.bf16.mxu0 %v1941_v0  ;;  %1738 = vmatprep.mubr.msk.bf16.mxu1 %vm1943_vm0, %v1942_v2 }
  0x26   :  { %729 = vmatpush2.bf16.msra.mxu0 %v1834_v16  ;;  %v1916_v16 = vld [vmem:[%s2722_s0 + $0x1b4] ss:$12 sps:$4 sm:$0xff]  }
  0x27   :  { %730 = vmatprep.subr.bf16.mxu0 %v1941_v0 }
  0x2a   :  { %731 = vmatpush2.bf16.msra.mxu0 %v1835_v18  ;;  %1739 = vmatmul.mubr.msk.bf16.gmra.mxu1 %vm634_vm1, %v1859_v23  ;;  %v1918_v18 = vld [vmem:[%s2722_s0 + $0x1b0] ss:$12 sps:$4 sm:$0xff]  }
  0x2b   :  { %732 = vmatprep.subr.bf16.mxu0 %v1941_v0  ;;  %1742 = vmatprep.mubr.msk.bf16.mxu1 %vm1943_vm0, %v1942_v2 }
  0x2e   :  { %733 = vmatpush2.bf16.msra.mxu0 %v1836_v19  ;;  %v1920_v19 = vld [vmem:[%s2722_s0 + $0x1cc] ss:$12 sps:$4 sm:$0xff]  }
  0x2f   :  { %734 = vmatprep.subr.bf16.mxu0 %v1941_v0 }
  0x32   :  { %735 = vmatpush2.bf16.msra.mxu0 %v1837_v21  ;;  %1743 = vmatmul.mubr.msk.bf16.gmra.mxu1 %vm634_vm1, %v1863_v26  ;;  %v1922_v21 = vld [vmem:[%s2722_s0 + $0x1c8] ss:$12 sps:$4 sm:$0xff]  }
  0x33   :  { %736 = vmatprep.subr.bf16.mxu0 %v1941_v0  ;;  %1746 = vmatprep.mubr.msk.bf16.mxu1 %vm1943_vm0, %v1942_v2 }
  0x36   :  { %737 = vmatpush2.bf16.msra.mxu0 %v1838_v22  ;;  %v1924_v22 = vld [vmem:[%s2722_s0 + $0x1e4] ss:$12 sps:$4 sm:$0xff]  }
  0x37   :  { %738 = vmatprep.subr.bf16.mxu0 %v1941_v0 }
  0x3a   :  { %739 = vmatpush2.bf16.msra.mxu0 %v1840_v24  ;;  %1747 = vmatmul.mubr.msk.bf16.gmra.mxu1 %vm634_vm1, %v1867_v29 }
  0x3b   :  { %740 = vmatprep.subr.bf16.mxu0 %v1941_v0  ;;  %1750 = vmatprep.mubr.msk.bf16.mxu1 %vm1943_vm0, %v1942_v2  ;;  %v1896_v0 = vld [vmem:[%s2722_s0 + $0x13c] ss:$12 sps:$4 sm:$0xff]  }
  0x3e   :  { %741 = vmatpush2.bf16.msra.mxu0 %v1843_v25  ;;  %v1926_v25 = vld [vmem:[%s2722_s0 + $0x1e0] ss:$12 sps:$4 sm:$0xff]  }
  0x41   :  { %743 = vmatmul.mubr.bf16.vlgmr.msra.gmra.mxu0 %v1844_v27  ;;  %v1928_v27 = vld [vmem:[%s2722_s0 + $0x1fc] ss:$12 sps:$4 sm:$0xff]  }
  0x42   :  { %750 = vmatprep.mubr.bf16.mxu0 %v1848_v28  ;;  %1751 = vmatmul.mubr.msk.bf16.gmra.mxu1 %vm634_vm1, %v1871_v32 }
  0x43   :  { %1754 = vmatprep.mubr.msk.bf16.mxu1 %vm1943_vm0, %v1942_v2 }
  0x49   :  { %751 = vmatmul.mubr.bf16.gmra.mxu0 %v1850_v30 }
  0x4a   :  { %758 = vmatprep.mubr.bf16.mxu0 %v1852_v31  ;;  %1755 = vmatmul.mubr.msk.bf16.gmra.mxu1 %vm634_vm1, %v1875_v35  ;;  %v1930_v31 = vld [vmem:[%s2722_s0 + $0x1f8] ss:$12 sps:$4 sm:$0xff]  }
  0x4b   :  { %1758 = vmatprep.mubr.msk.bf16.mxu1 %vm1943_vm0, %v1942_v2 }
  0x51   :  { %759 = vmatmul.mubr.bf16.gmra.mxu0 %v1854_v33  ;;  %v1932_v33 = vld [vmem:[%s2722_s0 + $0x214] ss:$12 sps:$4 sm:$0xff]  }
  0x52   :  { %766 = vmatprep.mubr.bf16.mxu0 %v1856_v34  ;;  %1759 = vmatmul.mubr.msk.bf16.gmra.mxu1 %vm634_vm1, %v1879_v38 }
  0x53   :  { %1762 = vmatprep.mubr.msk.bf16.mxu1 %vm1943_vm0, %v1942_v2 }
  0x59   :  { %767 = vmatmul.mubr.bf16.gmra.mxu0 %v1858_v36 }
  0x5a   :  { %774 = vmatprep.mubr.bf16.mxu0 %v1860_v37  ;;  %1763 = vmatmul.mubr.msk.bf16.gmra.mxu1 %vm634_vm1, %v1883_v41  ;;  %v1934_v37 = vld [vmem:[%s2722_s0 + $0x210] ss:$12 sps:$4 sm:$0xff]  }
  0x5b   :  { %1766 = vmatprep.mubr.msk.bf16.mxu1 %vm1943_vm0, %v1942_v2 }
  0x61   :  { %775 = vmatmul.mubr.bf16.gmra.mxu0 %v1862_v39  ;;  %v1936_v39 = vld [vmem:[%s2722_s0 + $0x22c] ss:$12 sps:$4 sm:$0xff]  }
  0x62   :  { %782 = vmatprep.mubr.bf16.mxu0 %v1864_v40  ;;  %1767 = vmatmul.mubr.msk.bf16.gmra.mxu1 %vm634_vm1, %v1887_v44  ;;  %v1938_v44 = vld [vmem:[%s2722_s0 + $0x228] ss:$12 sps:$4 sm:$0xff]  }
  0x63   :  { %1770 = vmatprep.mubr.msk.bf16.mxu1 %vm1943_vm0, %v1942_v2 }
  0x69   :  { %783 = vmatmul.mubr.bf16.gmra.mxu0 %v1866_v42  ;;  %v111_v42 = vld [vmem:[%s2722_s0 + $0x240] sm:$0xff] }
  0x6a   :  { %790 = vmatprep.mubr.bf16.mxu0 %v1868_v43  ;;  %1771 = vmatmul.mubr.msk.bf16.gmra.mxu1 %vm634_vm1, %v1891_v47 }
  0x6b   :  { %1774 = vmatprep.mubr.msk.bf16.mxu1 %vm1943_vm0, %v1942_v2 }
  0x71   :  { %791 = vmatmul.mubr.bf16.gmra.mxu0 %v1870_v45 }
  0x72   :  { %798 = vmatprep.mubr.bf16.mxu0 %v1872_v46  ;;  %1775 = vmatmul.mubr.msk.bf16.gmra.mxu1 %vm634_vm1, %v1895_v50  ;;  %v1548_v46 = vcombine.high %v111_v42, %v111_v42  ;;  %v1547_v50 = vcombine.low %v111_v42, %v111_v42 }
  0x73   :  { %1778 = vmatprep.mubr.msk.bf16.mxu1 %vm1943_vm0, %v1942_v2 }
  0x79   :  { %799 = vmatmul.mubr.bf16.gmra.mxu0 %v1874_v48 }
  0x7a   :  { %806 = vmatprep.mubr.bf16.mxu0 %v1876_v49  ;;  %1779 = vmatmul.mubr.msk.bf16.gmra.mxu1 %vm634_vm1, %v1899_v53 }
  0x7b   :  { %1782 = vmatprep.mubr.msk.bf16.mxu1 %vm1943_vm0, %v1942_v2 }
  0x81   :  { %807 = vmatmul.mubr.bf16.gmra.mxu0 %v1878_v51 }
  0x82   :  { %814 = vmatprep.mubr.bf16.mxu0 %v1880_v52  ;;  %1783 = vmatmul.mubr.msk.bf16.gmra.mxu1 %vm634_vm1, %v1903_v56  ;;  %v2350_v52 = vld [vmem:[%s2723_s2] ss:$0 sm:$0xff] }
  0x83   :  { %1786 = vmatprep.mubr.msk.bf16.mxu1 %vm1943_vm0, %v1942_v2 }
  0x89   :  { %815 = vmatmul.mubr.bf16.gmra.mxu0 %v1882_v54 }
  0x8a   :  { %822 = vmatprep.mubr.bf16.mxu0 %v1884_v55  ;;  %1787 = vmatmul.mubr.msk.bf16.gmra.mxu1 %vm634_vm1, %v1907_v59 }
  0x8b   :  { %1790 = vmatprep.mubr.msk.bf16.mxu1 %vm1943_vm0, %v1942_v2 }
  0x91   :  { %823 = vmatmul.mubr.bf16.gmra.mxu0 %v1886_v57 }
  0x92   :  { %830 = vmatprep.mubr.bf16.mxu0 %v1888_v58  ;;  %1791 = vmatmul.mubr.msk.bf16.gmra.mxu1 %vm634_vm1, %v1911_v62 }
  0x93   :  { %1794 = vmatprep.mubr.msk.bf16.mxu1 %vm1943_vm0, %v1942_v2 }
  0x99   :  { %831 = vmatmul.mubr.bf16.gmra.mxu0 %v1890_v60 }
  0x9a   :  { %838 = vmatprep.mubr.bf16.mxu0 %v1892_v61  ;;  %1795 = vmatmul.mubr.msk.bf16.gmra.mxu1 %vm634_vm1, %v1915_v1 }
  0x9b   :  { %1798 = vmatprep.mubr.msk.bf16.mxu1 %vm1943_vm0, %v1942_v2 }
  0xa1   :  { %839 = vmatmul.mubr.bf16.gmra.mxu0 %v1894_v63 }
  0xa2   :  { %846 = vmatprep.mubr.bf16.mxu0 %v1896_v0  ;;  %1799 = vmatmul.mubr.msk.bf16.gmra.mxu1 %vm634_vm1, %v1919_v5 }
  0xa3   :  { %1802 = vmatprep.mubr.msk.bf16.mxu1 %vm1943_vm0, %v1942_v2 }
  0xa9   :  { %847 = vmatmul.mubr.bf16.gmra.mxu0 %v1898_v3 }
  0xaa   :  { %854 = vmatprep.mubr.bf16.mxu0 %v1900_v4  ;;  %1803 = vmatmul.mubr.msk.bf16.gmra.mxu1 %vm634_vm1, %v1923_v8 }
  0xab   :  { %1806 = vmatprep.mubr.msk.bf16.mxu1 %vm1943_vm0, %v1942_v2 }
  0xb1   :  { %855 = vmatmul.mubr.bf16.gmra.mxu0 %v1902_v6 }
  0xb2   :  { %862 = vmatprep.mubr.bf16.mxu0 %v1904_v7  ;;  %1807 = vmatmul.mubr.msk.bf16.gmra.mxu1 %vm634_vm1, %v1927_v11 }
  0xb3   :  { %1810 = vmatprep.mubr.msk.bf16.mxu1 %vm1943_vm0, %v1942_v2 }
  0xb9   :  { %863 = vmatmul.mubr.bf16.gmra.mxu0 %v1906_v9 }
  0xba   :  { %870 = vmatprep.mubr.bf16.mxu0 %v1908_v10  ;;  %1811 = vmatmul.mubr.msk.bf16.gmra.mxu1 %vm634_vm1, %v1931_v14 }
  0xbb   :  { %1814 = vmatprep.mubr.msk.bf16.mxu1 %vm1943_vm0, %v1942_v2 }
  0xc1   :  { %871 = vmatmul.mubr.bf16.gmra.mxu0 %v1910_v12 }
  0xc2   :  { %878 = vmatprep.mubr.bf16.mxu0 %v1912_v13  ;;  %1815 = vmatmul.mubr.msk.bf16.gmra.mxu1 %vm634_vm1, %v1935_v17 }
  0xc3   :  { %1818 = vmatprep.mubr.msk.bf16.mxu1 %vm1943_vm0, %v1942_v2 }
  0xc9   :  { %879 = vmatmul.mubr.bf16.gmra.mxu0 %v1914_v15 }
  0xca   :  { %886 = vmatprep.mubr.bf16.mxu0 %v1916_v16  ;;  %v976_v23 = vpop.f32.mrf.mxu1  ;;  %1819 = vmatmul.mubr.msk.bf16.gmra.mxu1 %vm634_vm1, %v1939_v20 }
  0xcc   :  { %v1724_v24 = vpop.f32.mrf.mxu1 }
  0xce   :  { %v979_v2 = vpop.f32.mrf.mxu1 }
  0xd0   :  { %v1725_v26 = vpop.f32.mrf.mxu1 }
  0xd1   :  { %887 = vmatmul.mubr.bf16.gmra.mxu0 %v1918_v18 }
  0xd2   :  { %894 = vmatprep.mubr.bf16.mxu0 %v1920_v19  ;;  %v984_v28 = vpop.f32.mrf.mxu1 }
  0xd4   :  { %v1728_v29 = vpop.f32.mrf.mxu1 }
  0xd6   :  { %v2315_v30 = vpop.f32.mrf.mxu1 }
  0xd8   :  { %v1729_v32 = vpop.f32.mrf.mxu1 }
  0xd9   :  { %895 = vmatmul.mubr.bf16.gmra.mxu0 %v1922_v21 }
  0xda   :  { %902 = vmatprep.mubr.bf16.mxu0 %v1924_v22  ;;  %v2323_v34 = vpop.f32.mrf.mxu1 }
  0xdc   :  { %v1732_v35 = vpop.f32.mrf.mxu1 }
  0xde   :  { %v2325_v36 = vpop.f32.mrf.mxu1 }
  0xe0   :  { %v1733_v38 = vpop.f32.mrf.mxu1 }
  0xe1   :  { %903 = vmatmul.mubr.bf16.gmra.mxu0 %v1926_v25 }
  0xe2   :  { %910 = vmatprep.mubr.bf16.mxu0 %v1928_v27  ;;  %v2333_v40 = vpop.f32.mrf.mxu1 }
  0xe4   :  { %v1736_v41 = vpop.f32.mrf.mxu1 }
  0xe6   :  { %v2338_v43 = vpop.f32.mrf.mxu1 }
  0xe8   :  { %v1737_v45 = vpop.f32.mrf.mxu1 }
  0xe9   :  { %911 = vmatmul.mubr.bf16.gmra.mxu0 %v1930_v31 }
  0xea   :  { %918 = vmatprep.mubr.bf16.mxu0 %v1932_v33  ;;  %v2343_v47 = vpop.f32.mrf.mxu1 }
  0xec   :  { %v1740_v48 = vpop.f32.mrf.mxu1 }
  0xee   :  { %v2345_v49 = vpop.f32.mrf.mxu1 }
  0xf0   :  { %v1741_v51 = vpop.f32.mrf.mxu1 }
  0xf1   :  { %919 = vmatmul.mubr.bf16.gmra.mxu0 %v1934_v37 }
  0xf2   :  { %926 = vmatprep.mubr.bf16.mxu0 %v1936_v39  ;;  %v2352_v53 = vpop.f32.mrf.mxu1 }
  0xf4   :  { %v1744_v55 = vpop.f32.mrf.mxu1 }
  0xf6   :  { %v2355_v58 = vpop.f32.mrf.mxu1 }
  0xf8   :  { %v1745_v61 = vpop.f32.mrf.mxu1 }
  0xf9   :  { %927 = vmatmul.mubr.bf16.gmra.mxu0 %v1938_v44 }
  0xfa   :  { %934 = vmatprep.mubr.bf16.mxu0 %v1548_v46  ;;  %v2358_v1 = vpop.f32.mrf.mxu1 }
  0xfc   :  { %v1748_v6 = vpop.f32.mrf.mxu1 }
  0xfe   :  { %v2365_v10 = vpop.f32.mrf.mxu1 }
 0x100   :  { %v1749_v14 = vpop.f32.mrf.mxu1 }
 0x101   :  { %v744_v54 = vpop.f32.mrf.mxu0  ;;  %935 = vmatmul.mubr.bf16.gmra.mxu0 %v1547_v50 }
 0x102   :  { %v745_v56 = vadd.f32 %v2350_v52, %v744_v54  ;;  %v2372_v18 = vpop.f32.mrf.mxu1 }
 0x103   :  { %v746_v57 = vpop.f32.mrf.mxu0 }
 0x104   :  { %v977_v59 = vadd.f32 %v976_v23, %v745_v56  ;;  %v1752_v22 = vpop.f32.mrf.mxu1 }
 0x105   :  { %v747_v60 = vpop.f32.mrf.mxu0 }
 0x106   :  { %v1174_v62 = vmax.f32 %v977_v59, 0.0  ;;  %v748_v63 = vadd.f32 %v2350_v52, %v747_v60  ;;  %v2380_v25 = vpop.f32.mrf.mxu1 }
 0x107   :  { %v749_v0 = vpop.f32.mrf.mxu0 }
 0x108   :  { %v1642_v3 = vpack.c.bf16 %v1174_v62, %v1174_v62  ;;  %v980_v4 = vadd.f32 %v979_v2, %v748_v63  ;;  %v1753_v29 = vpop.f32.mrf.mxu1 }
 0x109   :  { %v752_v5 = vpop.f32.mrf.mxu0 }
 0x10a   :  { %1421 = vst.msk [vmem:[%s2724_s3] sm:$0xf] %vm1420_vm2, %v1642_v3  ;;  %v1175_v7 = vmax.f32 %v980_v4, 0.0  ;;  %v753_v8 = vadd.f32 %v2350_v52, %v752_v5  ;;  %v2388_v33 = vpop.f32.mrf.mxu1 }
 0x10b   :  { %v754_v9 = vpop.f32.mrf.mxu0 }
 0x10c   :  { %v1643_v11 = vpack.c.bf16 %v1175_v7, %v1175_v7  ;;  %v985_v12 = vadd.f32 %v984_v28, %v753_v8  ;;  %v1756_v39 = vpop.f32.mrf.mxu1 }
 0x10d   :  { %v755_v13 = vpop.f32.mrf.mxu0 }
 0x10e   :  { %1422 = vst.msk [vmem:[%s2724_s3 + $0x4] sm:$0xf] %vm1420_vm2, %v1643_v11  ;;  %v1176_v15 = vmax.f32 %v985_v12, 0.0  ;;  %v756_v16 = vadd.f32 %v2350_v52, %v755_v13  ;;  %v2396_v44 = vpop.f32.mrf.mxu1 }
 0x10f   :  { %v757_v17 = vpop.f32.mrf.mxu0 }
 0x110   :  { %v1644_v19 = vpack.c.bf16 %v1176_v15, %v1176_v15  ;;  %v988_v20 = vadd.f32 %v2315_v30, %v756_v16  ;;  %v1757_v50 = vpop.f32.mrf.mxu1 }
 0x111   :  { %v760_v21 = vpop.f32.mrf.mxu0 }
 0x112   :  { %1423 = vst.msk [vmem:[%s2724_s3 + $0x8] sm:$0xf] %vm1420_vm2, %v1644_v19  ;;  %v1177_v23 = vmax.f32 %v988_v20, 0.0  ;;  %v761_v24 = vadd.f32 %v2350_v52, %v760_v21  ;;  %v2404_v55 = vpop.f32.mrf.mxu1 }
 0x113   :  { %v762_v2 = vpop.f32.mrf.mxu0 }
 0x114   :  { %v1645_v26 = vpack.c.bf16 %v1177_v23, %v1177_v23  ;;  %v993_v27 = vadd.f32 %v2323_v34, %v761_v24  ;;  %v1760_v60 = vpop.f32.mrf.mxu1 }
 0x115   :  { %v763_v28 = vpop.f32.mrf.mxu0 }
 0x116   :  { %1424 = vst.msk [vmem:[%s2724_s3 + $0xc] sm:$0xf] %vm1420_vm2, %v1645_v26  ;;  %v1178_v30 = vmax.f32 %v993_v27, 0.0  ;;  %v764_v31 = vadd.f32 %v2350_v52, %v763_v28  ;;  %v2412_v63 = vpop.f32.mrf.mxu1 }
 0x117   :  { %v765_v32 = vpop.f32.mrf.mxu0 }
 0x118   :  { %v1646_v35 = vpack.c.bf16 %v1178_v30, %v1178_v30  ;;  %v996_v37 = vadd.f32 %v2325_v36, %v764_v31  ;;  %v1761_v5 = vpop.f32.mrf.mxu1 }
 0x119   :  { %v768_v38 = vpop.f32.mrf.mxu0 }
 0x11a   :  { %1425 = vst.msk [vmem:[%s2724_s3 + $0x10] sm:$0xf] %vm1420_vm2, %v1646_v35  ;;  %v1179_v34 = vmax.f32 %v996_v37, 0.0  ;;  %v769_v41 = vadd.f32 %v2350_v52, %v768_v38  ;;  %v2420_v8 = vpop.f32.mrf.mxu1 }
 0x11b   :  { %v770_v42 = vpop.f32.mrf.mxu0 }
 0x11c   :  { %v1647_v45 = vpack.c.bf16 %v1179_v34, %v1179_v34  ;;  %v1001_v46 = vadd.f32 %v2333_v40, %v769_v41  ;;  %v1764_v13 = vpop.f32.mrf.mxu1 }
 0x11d   :  { %v771_v48 = vpop.f32.mrf.mxu0 }
 0x11e   :  { %1426 = vst.msk [vmem:[%s2724_s3 + $0x14] sm:$0xf] %vm1420_vm2, %v1647_v45  ;;  %v1180_v36 = vmax.f32 %v1001_v46, 0.0  ;;  %v772_v51 = vadd.f32 %v2350_v52, %v771_v48  ;;  %v2428_v16 = vpop.f32.mrf.mxu1 }
 0x11f   :  { %v773_v54 = vpop.f32.mrf.mxu0 }
 0x120   :  { %v1648_v56 = vpack.c.bf16 %v1180_v36, %v1180_v36  ;;  %v1004_v57 = vadd.f32 %v2338_v43, %v772_v51  ;;  %v1765_v21 = vpop.f32.mrf.mxu1 }
 0x121   :  { %v776_v59 = vpop.f32.mrf.mxu0 }
 0x122   :  { %1427 = vst.msk [vmem:[%s2724_s3 + $0x18] sm:$0xf] %vm1420_vm2, %v1648_v56  ;;  %v1181_v40 = vmax.f32 %v1004_v57, 0.0  ;;  %v777_v61 = vadd.f32 %v2350_v52, %v776_v59  ;;  %v2436_v24 = vpop.f32.mrf.mxu1 }
 0x123   :  { %v778_v62 = vpop.f32.mrf.mxu0 }
 0x124   :  { %v1649_v0 = vpack.c.bf16 %v1181_v40, %v1181_v40  ;;  %v1009_v3 = vadd.f32 %v2343_v47, %v777_v61  ;;  %v1768_v28 = vpop.f32.mrf.mxu1 }
 0x125   :  { %v779_v4 = vpop.f32.mrf.mxu0 }
 0x126   :  { %1428 = vst.msk [vmem:[%s2724_s3 + $0x1c] sm:$0xf] %vm1420_vm2, %v1649_v0  ;;  %v1182_v43 = vmax.f32 %v1009_v3, 0.0  ;;  %v780_v6 = vadd.f32 %v2350_v52, %v779_v4  ;;  %v2444_v31 = vpop.f32.mrf.mxu1 }
 0x127   :  { %v781_v7 = vpop.f32.mrf.mxu0 }
 0x128   :  { %v1650_v9 = vpack.c.bf16 %v1182_v43, %v1182_v43  ;;  %v1012_v11 = vadd.f32 %v2345_v49, %v780_v6  ;;  %v1769_v38 = vpop.f32.mrf.mxu1 }
 0x129   :  { %v784_v12 = vpop.f32.mrf.mxu0 }
 0x12a   :  { %1429 = vst.msk [vmem:[%s2724_s3 + $0x20] sm:$0xf] %vm1420_vm2, %v1650_v9  ;;  %v1183_v47 = vmax.f32 %v1012_v11, 0.0  ;;  %v785_v14 = vadd.f32 %v2350_v52, %v784_v12  ;;  %v2452_v41 = vpop.f32.mrf.mxu1 }
 0x12b   :  { %v786_v15 = vpop.f32.mrf.mxu0 }
 0x12c   :  { %v1651_v17 = vpack.c.bf16 %v1183_v47, %v1183_v47  ;;  %v1017_v19 = vadd.f32 %v2352_v53, %v785_v14  ;;  %v1772_v48 = vpop.f32.mrf.mxu1 }
 0x12d   :  { %v787_v20 = vpop.f32.mrf.mxu0 }
 0x12e   :  { %1430 = vst.msk [vmem:[%s2724_s3 + $0x24] sm:$0xf] %vm1420_vm2, %v1651_v17  ;;  %v1184_v49 = vmax.f32 %v1017_v19, 0.0  ;;  %v788_v22 = vadd.f32 %v2350_v52, %v787_v20  ;;  %v2460_v51 = vpop.f32.mrf.mxu1 }
 0x12f   :  { %v789_v23 = vpop.f32.mrf.mxu0 }
 0x130   :  { %v1652_v2 = vpack.c.bf16 %v1184_v49, %v1184_v49  ;;  %v1020_v26 = vadd.f32 %v2355_v58, %v788_v22  ;;  %v1773_v59 = vpop.f32.mrf.mxu1 }
 0x131   :  { %v792_v27 = vpop.f32.mrf.mxu0 }
 0x132   :  { %1431 = vst.msk [vmem:[%s2724_s3 + $0x28] sm:$0xf] %vm1420_vm2, %v1652_v2  ;;  %v1185_v53 = vmax.f32 %v1020_v26, 0.0  ;;  %v793_v29 = vadd.f32 %v2350_v52, %v792_v27  ;;  %v2468_v61 = vpop.f32.mrf.mxu1 }
 0x133   :  { %v794_v30 = vpop.f32.mrf.mxu0 }
 0x134   :  { %v1653_v32 = vpack.c.bf16 %v1185_v53, %v1185_v53  ;;  %v1025_v35 = vadd.f32 %v2358_v1, %v793_v29  ;;  %v1776_v4 = vpop.f32.mrf.mxu1 }
 0x135   :  { %v795_v37 = vpop.f32.mrf.mxu0 }
 0x136   :  { %1432 = vst.msk [vmem:[%s2724_s3 + $0x2c] sm:$0xf] %vm1420_vm2, %v1653_v32  ;;  %v1186_v58 = vmax.f32 %v1025_v35, 0.0  ;;  %v796_v39 = vadd.f32 %v2350_v52, %v795_v37  ;;  %v2476_v6 = vpop.f32.mrf.mxu1 }
 0x137   :  { %v797_v34 = vpop.f32.mrf.mxu0 }
 0x138   :  { %v1654_v42 = vpack.c.bf16 %v1186_v58, %v1186_v58  ;;  %v1028_v45 = vadd.f32 %v2365_v10, %v796_v39  ;;  %v1777_v12 = vpop.f32.mrf.mxu1 }
 0x139   :  { %v800_v46 = vpop.f32.mrf.mxu0 }
 0x13a   :  { %1433 = vst.msk [vmem:[%s2724_s3 + $0x30] sm:$0xf] %vm1420_vm2, %v1654_v42  ;;  %v1187_v1 = vmax.f32 %v1028_v45, 0.0  ;;  %v801_v50 = vadd.f32 %v2350_v52, %v800_v46  ;;  %v2484_v14 = vpop.f32.mrf.mxu1 }
 0x13b   :  { %v802_v36 = vpop.f32.mrf.mxu0 }
 0x13c   :  { %v1655_v54 = vpack.c.bf16 %v1187_v1, %v1187_v1  ;;  %v1033_v56 = vadd.f32 %v2372_v18, %v801_v50  ;;  %v1780_v20 = vpop.f32.mrf.mxu1 }
 0x13d   :  { %v803_v57 = vpop.f32.mrf.mxu0 }
 0x13e   :  { %1434 = vst.msk [vmem:[%s2724_s3 + $0x34] sm:$0xf] %vm1420_vm2, %v1655_v54  ;;  %v1188_v10 = vmax.f32 %v1033_v56, 0.0  ;;  %v804_v60 = vadd.f32 %v2350_v52, %v803_v57  ;;  %v2492_v22 = vpop.f32.mrf.mxu1 }
 0x13f   :  { %v805_v40 = vpop.f32.mrf.mxu0 }
 0x140   :  { %v1656_v62 = vpack.c.bf16 %v1188_v10, %v1188_v10  ;;  %v1036_v0 = vadd.f32 %v2380_v25, %v804_v60  ;;  %v1781_v27 = vpop.f32.mrf.mxu1 }
 0x141   :  { %v808_v3 = vpop.f32.mrf.mxu0 }
 0x142   :  { %1435 = vst.msk [vmem:[%s2724_s3 + $0x38] sm:$0xf] %vm1420_vm2, %v1656_v62  ;;  %v1189_v18 = vmax.f32 %v1036_v0, 0.0  ;;  %v809_v5 = vadd.f32 %v2350_v52, %v808_v3  ;;  %v2500_v29 = vpop.f32.mrf.mxu1 }
 0x143   :  { %v810_v43 = vpop.f32.mrf.mxu0 }
 0x144   :  { %v1657_v7 = vpack.c.bf16 %v1189_v18, %v1189_v18  ;;  %v1041_v9 = vadd.f32 %v2388_v33, %v809_v5  ;;  %v1784_v37 = vpop.f32.mrf.mxu1 }
 0x145   :  { %v811_v11 = vpop.f32.mrf.mxu0 }
 0x146   :  { %1436 = vst.msk [vmem:[%s2724_s3 + $0x3c] sm:$0xf] %vm1420_vm2, %v1657_v7  ;;  %v1190_v25 = vmax.f32 %v1041_v9, 0.0  ;;  %v812_v13 = vadd.f32 %v2350_v52, %v811_v11  ;;  %v2508_v39 = vpop.f32.mrf.mxu1 }
 0x147   :  { %v813_v47 = vpop.f32.mrf.mxu0 }
 0x148   :  { %v1658_v15 = vpack.c.bf16 %v1190_v25, %v1190_v25  ;;  %v1044_v17 = vadd.f32 %v2396_v44, %v812_v13  ;;  %v1785_v46 = vpop.f32.mrf.mxu1 }
 0x149   :  { %v816_v19 = vpop.f32.mrf.mxu0 }
 0x14a   :  { %1437 = vst.msk [vmem:[%s2724_s3 + $0x40] sm:$0xf] %vm1420_vm2, %v1658_v15  ;;  %v1191_v33 = vmax.f32 %v1044_v17, 0.0  ;;  %v817_v21 = vadd.f32 %v2350_v52, %v816_v19  ;;  %v2516_v50 = vpop.f32.mrf.mxu1 }
 0x14b   :  { %v818_v49 = vpop.f32.mrf.mxu0 }
 0x14c   :  { %v1659_v23 = vpack.c.bf16 %v1191_v33, %v1191_v33  ;;  %v1049_v2 = vadd.f32 %v2404_v55, %v817_v21  ;;  %v1788_v57 = vpop.f32.mrf.mxu1 }
 0x14d   :  { %v819_v26 = vpop.f32.mrf.mxu0 }
 0x14e   :  { %1438 = vst.msk [vmem:[%s2724_s3 + $0x44] sm:$0xf] %vm1420_vm2, %v1659_v23  ;;  %v1192_v44 = vmax.f32 %v1049_v2, 0.0  ;;  %v820_v28 = vadd.f32 %v2350_v52, %v819_v26  ;;  %v2524_v60 = vpop.f32.mrf.mxu1 }
 0x14f   :  { %v821_v53 = vpop.f32.mrf.mxu0 }
 0x150   :  { %v1660_v30 = vpack.c.bf16 %v1192_v44, %v1192_v44  ;;  %v1052_v32 = vadd.f32 %v2412_v63, %v820_v28  ;;  %v1789_v3 = vpop.f32.mrf.mxu1 }
 0x151   :  { %v824_v35 = vpop.f32.mrf.mxu0 }
 0x152   :  { %1439 = vst.msk [vmem:[%s2724_s3 + $0x48] sm:$0xf] %vm1420_vm2, %v1660_v30  ;;  %v1193_v55 = vmax.f32 %v1052_v32, 0.0  ;;  %v825_v38 = vadd.f32 %v2350_v52, %v824_v35  ;;  %v2532_v5 = vpop.f32.mrf.mxu1 }
 0x153   :  { %v826_v58 = vpop.f32.mrf.mxu0 }
 0x154   :  { %v1661_v34 = vpack.c.bf16 %v1193_v55, %v1193_v55  ;;  %v1057_v42 = vadd.f32 %v2420_v8, %v825_v38  ;;  %v1792_v11 = vpop.f32.mrf.mxu1 }
 0x155   :  { %v827_v45 = vpop.f32.mrf.mxu0 }
 0x156   :  { %1440 = vst.msk [vmem:[%s2724_s3 + $0x4c] sm:$0xf] %vm1420_vm2, %v1661_v34  ;;  %v1194_v63 = vmax.f32 %v1057_v42, 0.0  ;;  %v828_v48 = vadd.f32 %v2350_v52, %v827_v45  ;;  %v2540_v13 = vpop.f32.mrf.mxu1 }
 0x157   :  { %v829_v1 = vpop.f32.mrf.mxu0 }
 0x158   :  { %v1662_v36 = vpack.c.bf16 %v1194_v63, %v1194_v63  ;;  %v1060_v54 = vadd.f32 %v2428_v16, %v828_v48  ;;  %v1793_v19 = vpop.f32.mrf.mxu1 }
 0x159   :  { %v832_v56 = vpop.f32.mrf.mxu0 }
 0x15a   :  { %1441 = vst.msk [vmem:[%s2724_s3 + $0x50] sm:$0xf] %vm1420_vm2, %v1662_v36  ;;  %v1195_v8 = vmax.f32 %v1060_v54, 0.0  ;;  %v833_v59 = vadd.f32 %v2350_v52, %v832_v56  ;;  %v2548_v21 = vpop.f32.mrf.mxu1 }
 0x15b   :  { %v834_v10 = vpop.f32.mrf.mxu0 }
 0x15c   :  { %v1663_v40 = vpack.c.bf16 %v1195_v8, %v1195_v8  ;;  %v1065_v62 = vadd.f32 %v2436_v24, %v833_v59  ;;  %v1796_v26 = vpop.f32.mrf.mxu1 }
 0x15d   :  { %v835_v0 = vpop.f32.mrf.mxu0 }
 0x15e   :  { %1442 = vst.msk [vmem:[%s2724_s3 + $0x54] sm:$0xf] %vm1420_vm2, %v1663_v40  ;;  %v1196_v16 = vmax.f32 %v1065_v62, 0.0  ;;  %v836_v4 = vadd.f32 %v2350_v52, %v835_v0  ;;  %v2556_v28 = vpop.f32.mrf.mxu1 }
 0x15f   :  { %v837_v18 = vpop.f32.mrf.mxu0 }
 0x160   :  { %v1664_v43 = vpack.c.bf16 %v1196_v16, %v1196_v16  ;;  %v1068_v7 = vadd.f32 %v2444_v31, %v836_v4  ;;  %v1797_v35 = vpop.f32.mrf.mxu1 }
 0x161   :  { %v840_v9 = vpop.f32.mrf.mxu0 }
 0x162   :  { %1443 = vst.msk [vmem:[%s2724_s3 + $0x58] sm:$0xf] %vm1420_vm2, %v1664_v43  ;;  %v1197_v24 = vmax.f32 %v1068_v7, 0.0  ;;  %v841_v12 = vadd.f32 %v2350_v52, %v840_v9  ;;  %v2564_v38 = vpop.f32.mrf.mxu1 }
 0x163   :  { %v842_v25 = vpop.f32.mrf.mxu0 }
 0x164   :  { %v1665_v47 = vpack.c.bf16 %v1197_v24, %v1197_v24  ;;  %v1073_v15 = vadd.f32 %v2452_v41, %v841_v12  ;;  %v1800_v45 = vpop.f32.mrf.mxu1 }
 0x165   :  { %v843_v17 = vpop.f32.mrf.mxu0 }
 0x166   :  { %1444 = vst.msk [vmem:[%s2724_s3 + $0x5c] sm:$0xf] %vm1420_vm2, %v1665_v47  ;;  %v1198_v31 = vmax.f32 %v1073_v15, 0.0  ;;  %v844_v20 = vadd.f32 %v2350_v52, %v843_v17  ;;  %v2572_v48 = vpop.f32.mrf.mxu1 }
 0x167   :  { %v845_v33 = vpop.f32.mrf.mxu0 }
 0x168   :  { %v1666_v49 = vpack.c.bf16 %v1198_v31, %v1198_v31  ;;  %v1076_v23 = vadd.f32 %v2460_v51, %v844_v20  ;;  %v1801_v56 = vpop.f32.mrf.mxu1 }
 0x169   :  { %v848_v2 = vpop.f32.mrf.mxu0 }
 0x16a   :  { %1445 = vst.msk [vmem:[%s2724_s3 + $0x60] sm:$0xf] %vm1420_vm2, %v1666_v49  ;;  %v1199_v41 = vmax.f32 %v1076_v23, 0.0  ;;  %v849_v27 = vadd.f32 %v2350_v52, %v848_v2  ;;  %v2580_v59 = vpop.f32.mrf.mxu1 }
 0x16b   :  { %v850_v44 = vpop.f32.mrf.mxu0 }
 0x16c   :  { %v1667_v53 = vpack.c.bf16 %v1199_v41, %v1199_v41  ;;  %v1081_v30 = vadd.f32 %v2468_v61, %v849_v27  ;;  %v1804_v0 = vpop.f32.mrf.mxu1 }
 0x16d   :  { %v851_v32 = vpop.f32.mrf.mxu0 }
 0x16e   :  { %1446 = vst.msk [vmem:[%s2724_s3 + $0x64] sm:$0xf] %vm1420_vm2, %v1667_v53  ;;  %v1200_v51 = vmax.f32 %v1081_v30, 0.0  ;;  %v852_v37 = vadd.f32 %v2350_v52, %v851_v32  ;;  %v2588_v4 = vpop.f32.mrf.mxu1 }
 0x16f   :  { %v853_v55 = vpop.f32.mrf.mxu0 }
 0x170   :  { %v1668_v58 = vpack.c.bf16 %v1200_v51, %v1200_v51  ;;  %v1084_v34 = vadd.f32 %v2476_v6, %v852_v37  ;;  %v1805_v9 = vpop.f32.mrf.mxu1 }
 0x171   :  { %v856_v42 = vpop.f32.mrf.mxu0 }
 0x172   :  { %1447 = vst.msk [vmem:[%s2724_s3 + $0x68] sm:$0xf] %vm1420_vm2, %v1668_v58  ;;  %v1201_v61 = vmax.f32 %v1084_v34, 0.0  ;;  %v857_v46 = vadd.f32 %v2350_v52, %v856_v42  ;;  %v2596_v12 = vpop.f32.mrf.mxu1 }
 0x173   :  { %v858_v63 = vpop.f32.mrf.mxu0 }
 0x174   :  { %v1669_v1 = vpack.c.bf16 %v1201_v61, %v1201_v61  ;;  %v1089_v36 = vadd.f32 %v2484_v14, %v857_v46  ;;  %v1808_v17 = vpop.f32.mrf.mxu1 }
 0x175   :  { %v859_v54 = vpop.f32.mrf.mxu0 }
 0x176   :  { %1448 = vst.msk [vmem:[%s2724_s3 + $0x6c] sm:$0xf] %vm1420_vm2, %v1669_v1  ;;  %v1202_v6 = vmax.f32 %v1089_v36, 0.0  ;;  %v860_v57 = vadd.f32 %v2350_v52, %v859_v54  ;;  %v2604_v20 = vpop.f32.mrf.mxu1 }
 0x177   :  { %v861_v8 = vpop.f32.mrf.mxu0 }
 0x178   :  { %v1670_v10 = vpack.c.bf16 %v1202_v6, %v1202_v6  ;;  %v1092_v40 = vadd.f32 %v2492_v22, %v860_v57  ;;  %v1809_v2 = vpop.f32.mrf.mxu1 }
 0x179   :  { %v864_v62 = vpop.f32.mrf.mxu0 }
 0x17a   :  { %1449 = vst.msk [vmem:[%s2724_s3 + $0x70] sm:$0xf] %vm1420_vm2, %v1670_v10  ;;  %v1203_v14 = vmax.f32 %v1092_v40, 0.0  ;;  %v865_v3 = vadd.f32 %v2350_v52, %v864_v62  ;;  %v2612_v27 = vpop.f32.mrf.mxu1 }
 0x17b   :  { %v866_v16 = vpop.f32.mrf.mxu0 }
 0x17c   :  { %v1671_v18 = vpack.c.bf16 %v1203_v14, %v1203_v14  ;;  %v1097_v43 = vadd.f32 %v2500_v29, %v865_v3  ;;  %v1812_v32 = vpop.f32.mrf.mxu1 }
 0x17d   :  { %v867_v7 = vpop.f32.mrf.mxu0 }
 0x17e   :  { %1450 = vst.msk [vmem:[%s2724_s3 + $0x74] sm:$0xf] %vm1420_vm2, %v1671_v18  ;;  %v1204_v22 = vmax.f32 %v1097_v43, 0.0  ;;  %v868_v11 = vadd.f32 %v2350_v52, %v867_v7  ;;  %v2620_v37 = vpop.f32.mrf.mxu1 }
 0x17f   :  { %v869_v24 = vpop.f32.mrf.mxu0 }
 0x180   :  { %v1672_v25 = vpack.c.bf16 %v1204_v22, %v1204_v22  ;;  %v1100_v47 = vadd.f32 %v2508_v39, %v868_v11  ;;  %v1813_v42 = vpop.f32.mrf.mxu1 }
 0x181   :  { %v872_v15 = vpop.f32.mrf.mxu0 }
 0x182   :  { %1451 = vst.msk [vmem:[%s2724_s3 + $0x78] sm:$0xf] %vm1420_vm2, %v1672_v25  ;;  %v1205_v29 = vmax.f32 %v1100_v47, 0.0  ;;  %v873_v19 = vadd.f32 %v2350_v52, %v872_v15  ;;  %v2628_v46 = vpop.f32.mrf.mxu1 }
 0x183   :  { %v874_v31 = vpop.f32.mrf.mxu0 }
 0x184   :  { %v1673_v33 = vpack.c.bf16 %v1205_v29, %v1205_v29  ;;  %v1105_v49 = vadd.f32 %v2516_v50, %v873_v19  ;;  %v1816_v54 = vpop.f32.mrf.mxu1 }
 0x185   :  { %v875_v23 = vpop.f32.mrf.mxu0 }
 0x186   :  { %1452 = vst.msk [vmem:[%s2724_s3 + $0x7c] sm:$0xf] %vm1420_vm2, %v1673_v33  ;;  %v1206_v39 = vmax.f32 %v1105_v49, 0.0  ;;  %v876_v26 = vadd.f32 %v2350_v52, %v875_v23  ;;  %v2636_v57 = vpop.f32.mrf.mxu1 }
 0x187   :  { %v877_v41 = vpop.f32.mrf.mxu0 }
 0x188   :  { %v1674_v44 = vpack.c.bf16 %v1206_v39, %v1206_v39  ;;  %v1108_v53 = vadd.f32 %v2524_v60, %v876_v26  ;;  %v1817_v62 = vpop.f32.mrf.mxu1 }
 0x189   :  { %v880_v30 = vpop.f32.mrf.mxu0 }
 0x18a   :  { %1453 = vst.msk [vmem:[%s2724_s3 + $0x80] sm:$0xf] %vm1420_vm2, %v1674_v44  ;;  %v1207_v50 = vmax.f32 %v1108_v53, 0.0  ;;  %v881_v35 = vadd.f32 %v2350_v52, %v880_v30  ;;  %v2644_v3 = vpop.f32.mrf.mxu1 }
 0x18b   :  { %v882_v51 = vpop.f32.mrf.mxu0 }
 0x18c   :  { %v1675_v55 = vpack.c.bf16 %v1207_v50, %v1207_v50  ;;  %v1113_v58 = vadd.f32 %v2532_v5, %v881_v35  ;;  %v1820_v7 = vpop.f32.mrf.mxu1 }
 0x18d   :  { %v883_v34 = vpop.f32.mrf.mxu0 }
 0x18e   :  { %1454 = vst.msk [vmem:[%s2724_s3 + $0x84] sm:$0xf] %vm1420_vm2, %v1675_v55  ;;  %v1208_v60 = vmax.f32 %v1113_v58, 0.0  ;;  %v884_v45 = vadd.f32 %v2350_v52, %v883_v34  ;;  %v1171_v11 = vpop.f32.mrf.mxu1 }
 0x18f   :  { %v885_v61 = vpop.f32.mrf.mxu0 }
 0x190   :  { %v1676_v63 = vpack.c.bf16 %v1208_v60, %v1208_v60  ;;  %v1116_v1 = vadd.f32 %v2540_v13, %v884_v45  ;;  %v1821_v15 = vpop.f32.mrf.mxu1 }
 0x191   :  { %v888_v36 = vpop.f32.mrf.mxu0 }
 0x192   :  { %1455 = vst.msk [vmem:[%s2724_s3 + $0x88] sm:$0xf] %vm1420_vm2, %v1676_v63  ;;  %v1209_v5 = vmax.f32 %v1116_v1, 0.0  ;;  %v889_v56 = vadd.f32 %v2350_v52, %v888_v36 }
 0x193   :  { %v890_v6 = vpop.f32.mrf.mxu0 }
 0x194   :  { %v1677_v8 = vpack.c.bf16 %v1209_v5, %v1209_v5  ;;  %v1121_v10 = vadd.f32 %v2548_v21, %v889_v56 }
 0x195   :  { %v891_v40 = vpop.f32.mrf.mxu0 }
 0x196   :  { %1456 = vst.msk [vmem:[%s2724_s3 + $0x8c] sm:$0xf] %vm1420_vm2, %v1677_v8  ;;  %v1210_v13 = vmax.f32 %v1121_v10, 0.0  ;;  %v892_v0 = vadd.f32 %v2350_v52, %v891_v40 }
 0x197   :  { %v893_v14 = vpop.f32.mrf.mxu0 }
 0x198   :  { %v1678_v16 = vpack.c.bf16 %v1210_v13, %v1210_v13  ;;  %v1124_v18 = vadd.f32 %v2556_v28, %v892_v0 }
 0x199   :  { %v896_v43 = vpop.f32.mrf.mxu0 }
 0x19a   :  { %1457 = vst.msk [vmem:[%s2724_s3 + $0x90] sm:$0xf] %vm1420_vm2, %v1678_v16  ;;  %v1211_v21 = vmax.f32 %v1124_v18, 0.0  ;;  %v897_v9 = vadd.f32 %v2350_v52, %v896_v43 }
 0x19b   :  { %v898_v22 = vpop.f32.mrf.mxu0 }
 0x19c   :  { %v1679_v24 = vpack.c.bf16 %v1211_v21, %v1211_v21  ;;  %v1129_v25 = vadd.f32 %v2564_v38, %v897_v9 }
 0x19d   :  { %v899_v47 = vpop.f32.mrf.mxu0 }
 0x19e   :  { %1458 = vst.msk [vmem:[%s2724_s3 + $0x94] sm:$0xf] %vm1420_vm2, %v1679_v24  ;;  %v1212_v28 = vmax.f32 %v1129_v25, 0.0  ;;  %v900_v17 = vadd.f32 %v2350_v52, %v899_v47 }
 0x19f   :  { %v901_v29 = vpop.f32.mrf.mxu0 }
 0x1a0   :  { %v1680_v19 = vpack.c.bf16 %v1212_v28, %v1212_v28  ;;  %v1132_v31 = vadd.f32 %v2572_v48, %v900_v17 }
 0x1a1   :  { %v904_v33 = vpop.f32.mrf.mxu0 }
 0x1a2   :  { %1459 = vst.msk [vmem:[%s2724_s3 + $0x98] sm:$0xf] %vm1420_vm2, %v1680_v19  ;;  %v1213_v38 = vmax.f32 %v1132_v31, 0.0  ;;  %v905_v49 = vadd.f32 %v2350_v52, %v904_v33 }
 0x1a3   :  { %v906_v23 = vpop.f32.mrf.mxu0 }
 0x1a4   :  { %v1681_v2 = vpack.c.bf16 %v1213_v38, %v1213_v38  ;;  %v1137_v39 = vadd.f32 %v2580_v59, %v905_v49 }
 0x1a5   :  { %v907_v26 = vpop.f32.mrf.mxu0 }
 0x1a6   :  { %1460 = vst.msk [vmem:[%s2724_s3 + $0x9c] sm:$0xf] %vm1420_vm2, %v1681_v2  ;;  %v1214_v48 = vmax.f32 %v1137_v39, 0.0  ;;  %v908_v41 = vadd.f32 %v2350_v52, %v907_v26 }
 0x1a7   :  { %v909_v44 = vpop.f32.mrf.mxu0 }
 0x1a8   :  { %v1682_v53 = vpack.c.bf16 %v1214_v48, %v1214_v48  ;;  %v1140_v30 = vadd.f32 %v2588_v4, %v908_v41 }
 0x1a9   :  { %v912_v32 = vpop.f32.mrf.mxu0 }
 0x1aa   :  { %1461 = vst.msk [vmem:[%s2724_s3 + $0xa0] sm:$0xf] %vm1420_vm2, %v1682_v53  ;;  %v1215_v59 = vmax.f32 %v1140_v30, 0.0  ;;  %v913_v50 = vadd.f32 %v2350_v52, %v912_v32 }
 0x1ab   :  { %v914_v35 = vpop.f32.mrf.mxu0 }
 0x1ac   :  { %v1683_v51 = vpack.c.bf16 %v1215_v59, %v1215_v59  ;;  %v1145_v55 = vadd.f32 %v2596_v12, %v913_v50 }
 0x1ad   :  { %v915_v58 = vpop.f32.mrf.mxu0 }
 0x1ae   :  { %1462 = vst.msk [vmem:[%s2724_s3 + $0xa4] sm:$0xf] %vm1420_vm2, %v1683_v51  ;;  %v1216_v4 = vmax.f32 %v1145_v55, 0.0  ;;  %v916_v34 = vadd.f32 %v2350_v52, %v915_v58 }
 0x1af   :  { %v917_v42 = vpop.f32.mrf.mxu0 }
 0x1b0   :  { %v1684_v60 = vpack.c.bf16 %v1216_v4, %v1216_v4  ;;  %v1148_v45 = vadd.f32 %v2604_v20, %v916_v34 }
 0x1b1   :  { %v920_v61 = vpop.f32.mrf.mxu0 }
 0x1b2   :  { %1463 = vst.msk [vmem:[%s2724_s3 + $0xa8] sm:$0xf] %vm1420_vm2, %v1684_v60  ;;  %v1217_v12 = vmax.f32 %v1148_v45, 0.0  ;;  %v921_v63 = vadd.f32 %v2350_v52, %v920_v61 }
 0x1b3   :  { %v922_v1 = vpop.f32.mrf.mxu0 }
 0x1b4   :  { %v1685_v36 = vpack.c.bf16 %v1217_v12, %v1217_v12  ;;  %v1153_v54 = vadd.f32 %v2612_v27, %v921_v63 }
 0x1b5   :  { %v923_v5 = vpop.f32.mrf.mxu0 }
 0x1b6   :  { %1464 = vst.msk [vmem:[%s2724_s3 + $0xac] sm:$0xf] %vm1420_vm2, %v1685_v36  ;;  %v1218_v20 = vmax.f32 %v1153_v54, 0.0  ;;  %v924_v56 = vadd.f32 %v2350_v52, %v923_v5 }
 0x1b7   :  { %v925_v6 = vpop.f32.mrf.mxu0 }
 0x1b8   :  { %v1686_v8 = vpack.c.bf16 %v1218_v20, %v1218_v20  ;;  %v1156_v10 = vadd.f32 %v2620_v37, %v924_v56 }
 0x1b9   :  { %v928_v40 = vpop.f32.mrf.mxu0 }
 0x1ba   :  { %1465 = vst.msk [vmem:[%s2724_s3 + $0xb0] sm:$0xf] %vm1420_vm2, %v1686_v8  ;;  %v1219_v27 = vmax.f32 %v1156_v10, 0.0  ;;  %v929_v62 = vadd.f32 %v2350_v52, %v928_v40 }
 0x1bb   :  { %v930_v13 = vpop.f32.mrf.mxu0 }
 0x1bc   :  { %v1687_v0 = vpack.c.bf16 %v1219_v27, %v1219_v27  ;;  %v1161_v14 = vadd.f32 %v2628_v46, %v929_v62 }
 0x1bd   :  { %v931_v16 = vpop.f32.mrf.mxu0 }
 0x1be   :  { %1466 = vst.msk [vmem:[%s2724_s3 + $0xb4] sm:$0xf] %vm1420_vm2, %v1687_v0  ;;  %v1220_v37 = vmax.f32 %v1161_v14, 0.0  ;;  %v932_v18 = vadd.f32 %v2350_v52, %v931_v16 }
 0x1bf   :  { %v933_v43 = vpop.f32.mrf.mxu0 }
 0x1c0   :  { %v1688_v7 = vpack.c.bf16 %v1220_v37, %v1220_v37  ;;  %v1164_v21 = vadd.f32 %v2636_v57, %v932_v18 }
 0x1c1   :  { %v936_v9 = vpop.f32.mrf.mxu0 }
 0x1c2   :  { %1467 = vst.msk [vmem:[%s2724_s3 + $0xb8] sm:$0xf] %vm1420_vm2, %v1688_v7  ;;  %v1221_v46 = vmax.f32 %v1164_v21, 0.0  ;;  %v937_v22 = vadd.f32 %v2350_v52, %v936_v9 }
 0x1c3   :  { %v938_v11 = vpop.f32.mrf.mxu0 }
 0x1c4   :  { %v1689_v24 = vpack.c.bf16 %v1221_v46, %v1221_v46  ;;  %v1169_v25 = vadd.f32 %v2644_v3, %v937_v22 }
 0x1c5   :  { %v939_v47 = vpop.f32.mrf.mxu0 }
 0x1c6   :  { %1468 = vst.msk [vmem:[%s2724_s3 + $0xbc] sm:$0xf] %vm1420_vm2, %v1689_v24  ;;  %v1222_v57 = vmax.f32 %v1169_v25, 0.0 }
 0x1c7   :  { %v940_v15 = vpop.f32.mrf.mxu0 }
 0x1c8   :  { %v1690_v28 = vpack.c.bf16 %v1222_v57, %v1222_v57 }
 0x1ca   :  { %1469 = vst.msk [vmem:[%s2724_s3 + $0xc0] sm:$0xf] %vm1420_vm2, %v1690_v28 }

// kernel: forward.6
= control target key start
LH: loop header
LB: loop body
LE: loop exit
PB: predicated region body
PF: predicated region fallthrough
CT: control target
= control target key end

     0   :  { %s3983_s29 = smov 0   ;;  %s4688_s0 = inlined_call_operand.vmem [shape: f32[2,8,128], index: 0, kind: input, shape index: {}]   ;;  %s4689_s1 = inlined_call_operand.vmem [shape: f32[2,1,8], index: 1, kind: input, shape index: {}]   ;;  %s4690_s2 = inlined_call_operand.vmem [shape: bf16[2,128,384], index: 2, kind: input, shape index: {}]   ;;  %s4691_s3 = inlined_call_operand.vmem [shape: f32[2,1,384], index: 3, kind: input, shape index: {}]   ;;  %s4692_s4 = inlined_call_operand.vmem [shape: bf16[2,128,128], index: 4, kind: input, shape index: {}]   ;;  %s4693_s5 = inlined_call_operand.vmem [shape: f32[2,1,128], index: 5, kind: input, shape index: {}]   ;;  %s4694_s6 = inlined_call_operand.vmem [shape: f32[2,1,128], index: 6, kind: input, shape index: {}]   ;;  %s4695_s7 = inlined_call_operand.vmem [shape: f32[2,1,128], index: 7, kind: input, shape index: {}]   ;;  %s4696_s8 = inlined_call_operand.vmem [shape: bf16[2,128,256], index: 8, kind: input, shape index: {}]   ;;  %s4697_s9 = inlined_call_operand.vmem [shape: f32[2,1,256], index: 9, kind: input, shape index: {}]   ;;  %s4698_s10 = inlined_call_operand.vmem [shape: bf16[2,256,128], index: 10, kind: input, shape index: {}]   ;;  %s4699_s11 = inlined_call_operand.vmem [shape: f32[2,1,128], index: 11, kind: input, shape index: {}]   ;;  %s4700_s12 = inlined_call_operand.vmem [shape: f32[2,1,128], index: 12, kind: input, shape index: {}]   ;;  %s4701_s13 = inlined_call_operand.vmem [shape: f32[2,1,128], index: 13, kind: input, shape index: {}]   ;;  %s4702_s14 = inlined_call_operand.vmem [shape: f32[2,1,128], index: 14, kind: output, shape index: {}]  }
   0x1 LB: > { %s3105_s30 = sadd.s32 4294967295, %s3900_s29   ;;  %p3109_p0 = scmp.ge.s32.totalorder %s3900_s29, 1  ;;  %s3900_s29 = sphi %s3983_s29, %s24_s29  }
   0x2   : > { %p419_p1 = scmp.lt.s32.totalorder %s3900_s29, 3 }
   0x4   : > { %p420_p2 = pnand %p3109_p0, %p419_p1 }
   0x5   : > { %p465_p3 = scmp.lt.s32.totalorder (!%p420_p2), %s3105_s30, 1  ;;  %s3905_s28 = smov (!%p420_p2), 96  }
   0x6   : > { %423 = sbr.rel (%p420_p2) target bundleno = 5857 (0x16e1), region = 76  ;;  %s3907_s16 = smov (!%p420_p2), 32  }
   0xb   : > { %v3683_v0 = vld [vmem:[%s4690_s2 + $0xac] ss:$12 sps:$4 sm:$0xff]   ;;  %v3685_v1 = vld [vmem:[%s4690_s2 + $0xa8] ss:$12 sps:$4 sm:$0xff]   ;;  %v3902_v2 = vmov 0   ;;  %v3903_v4 = vmov 0.0   ;;  %v514_v28 = vlaneseq }
   0xc   : > { %689 = vmatprep.mubr.bf16.mxu0 %v3902_v2  ;;  %657 = vmatprep.subr.bf16.mxu0 %v3683_v0  ;;  %v3686_v3 = vld [vmem:[%s4690_s2 + $0x94] ss:$12 sps:$4 sm:$0xff]   ;;  %v3688_v5 = vld [vmem:[%s4690_s2 + $0x90] ss:$12 sps:$4 sm:$0xff]   ;;  %v3691_v7 = vld [vmem:[%s4690_s2 + $0x78] ss:$12 sps:$4 sm:$0xff]  }
   0xd   : > { %3488 = vmatprep.subr.bf16.mxu1 %v3903_v4  ;;  %658 = vmatpush1.bf16.msra.mxu0 %v3685_v1  ;;  %v3689_v6 = vld [vmem:[%s4690_s2 + $0x7c] ss:$12 sps:$4 sm:$0xff]   ;;  %v3692_v8 = vld [vmem:[%s4690_s2 + $0x64] ss:$12 sps:$4 sm:$0xff]   ;;  %v3694_v9 = vld [vmem:[%s4690_s2 + $0x60] ss:$12 sps:$4 sm:$0xff]  }
   0xe   : > { %659 = vmatprep.subr.bf16.mxu0 %v3686_v3  ;;  %v3695_v10 = vld [vmem:[%s4690_s2 + $0x4c] ss:$12 sps:$4 sm:$0xff]   ;;  %v3707_v11 = vld [vmem:[%s4690_s2 + $0xb0] ss:$12 sps:$4 sm:$0xff]   ;;  %s4704_s30 = smov (!%p465_p3, %s3105_s30), 1  ;;  %vm3904_vm0 = vmmov 0  }
   0xf   : > { %3489 = vmatpush3.bf16.msra.mxu1 %v3707_v11  ;;  %v3708_v12 = vld [vmem:[%s4690_s2 + $0x98] ss:$12 sps:$4 sm:$0xff]   ;;  %v3697_v13 = vld [vmem:[%s4690_s2 + $0x48] ss:$12 sps:$4 sm:$0xff]   ;;  %s3110_s27 = sshll.u32 %s4704_s30, 3  ;;  %3504 = vmatprep.mubr.msk.bf16.mxu1 %vm3904_vm0, %v3903_v4  ;;  %v4090_v29 = vshrl.u32 %v514_v28, 7  ;;  %s4125_s19 = scalar_lea.vmem %s4689_s1, %s4704_s30 }
  0x10   : > { %3490 = vmatprep.subr.bf16.mxu1 %v3903_v4  ;;  %v3698_v14 = vld [vmem:[%s4690_s2 + $0x34] ss:$12 sps:$4 sm:$0xff]   ;;  %v3700_v16 = vld [vmem:[%s4690_s2 + $0x30] ss:$12 sps:$4 sm:$0xff]   ;;  %v3703_v19 = vld [vmem:[%s4690_s2 + $0x18] ss:$12 sps:$4 sm:$0xff]   ;;  %s468_s15 = scalar_lea.vmem %s4688_s0, %s3110_s27 }
  0x11   : > { %660 = vmatpush1.bf16.msra.mxu0 %v3688_v5  ;;  %v3709_v15 = vld [vmem:[%s4690_s2 + $0x80] ss:$12 sps:$4 sm:$0xff]   ;;  %v3701_v17 = vld [vmem:[%s4690_s2 + $0x1c] ss:$12 sps:$4 sm:$0xff]   ;;  %v3704_v20 = vld [vmem:[%s4690_s2 + $0x4] ss:$12 sps:$4 sm:$0xff]  }
  0x12   : > { %661 = vmatprep.subr.bf16.mxu0 %v3689_v6  ;;  %v3710_v18 = vld [vmem:[%s4690_s2 + $0x68] ss:$12 sps:$4 sm:$0xff]   ;;  %v3711_v21 = vld [vmem:[%s4690_s2 + $0x50] ss:$12 sps:$4 sm:$0xff]   ;;  %v3706_v22 = vld [vmem:[%s4690_s2] ss:$12 sps:$4 sm:$0xff]  }
  0x13   : > { %3491 = vmatpush3.bf16.msra.mxu1 %v3708_v12  ;;  %v4065_v23 = vld [vmem:[%s468_s15] sm:$0xff]  ;;  %v3714_v27 = vld [vmem:[%s4690_s2 + $0x8] ss:$12 sps:$4 sm:$0xff]   ;;  %v4093_v30 = vsub.s32 0, %v4090_v29  ;;  %v4099_v32 = vsub.s32 1, %v4090_v29  ;;  %vm742_vm1 = vcmask 261120  }
  0x14   : > { %3492 = vmatprep.subr.bf16.mxu1 %v3903_v4  ;;  %v3712_v24 = vld [vmem:[%s4690_s2 + $0x38] ss:$12 sps:$4 sm:$0xff]   ;;  %v479_v25 = vpack.c.bf16 %v4065_v23, %v4065_v23  ;;  %v3713_v26 = vld [vmem:[%s4690_s2 + $0x20] ss:$12 sps:$4 sm:$0xff]   ;;  %s3906_s15 = smov 64   ;;  %v524_v45 = vsub.s32 2, %v4090_v29 }
  0x15   : > { %662 = vmatpush1.bf16.msra.mxu0 %v3691_v7  ;;  %v512_v31 = vld [vmem:[%s4691_s3] sm:$0x7]  ;;  %vm812_vm2 = vcmask 1043456   ;;  %vm796_vm3 = vcmask 64512   ;;  %vm1205_vm4 = vcmask 523264   ;;  %vm1207_vm5 = vcmask 785408  }
  0x16   : > { %663 = vmatprep.subr.bf16.mxu0 %v3692_v8  ;;  %v517_v33 = vrot.slane %v512_v31, %v4093_v30  ;;  %v521_v34 = vrot.slane %v512_v31, %v4099_v32  ;;  %v525_v46 = vrot.slane %v512_v31, %v524_v45  ;;  %v477_v54 = vld [vmem:[%s4125_s19] sm:$0x1]  ;;  %vm2968_vm6 = vcmask 57344  }
  0x17   : > { %3493 = vmatpush3.bf16.msra.mxu1 %v3709_v15  ;;  %v478_v55 = vmul.f32 1e+09, %v477_v54 }
  0x18   : > { %3494 = vmatprep.subr.bf16.mxu1 %v3903_v4 }
  0x19   : > { %664 = vmatpush1.bf16.msra.mxu0 %v3694_v9  ;;  %v4129_v56 = vrot.slane %v478_v55, %v4093_v30 }
  0x1a   : > { %665 = vmatprep.subr.bf16.mxu0 %v3695_v10 }
  0x1b   : > { %3495 = vmatpush3.bf16.msra.mxu1 %v3710_v18 }
  0x1c   : > { %3496 = vmatprep.subr.bf16.mxu1 %v3903_v4 }
  0x1d   : > { %666 = vmatpush1.bf16.msra.mxu0 %v3697_v13 }
  0x1e   : > { %667 = vmatprep.subr.bf16.mxu0 %v3698_v14 }
  0x1f   : > { %3497 = vmatpush3.bf16.msra.mxu1 %v3711_v21 }
  0x20   : > { %3498 = vmatprep.subr.bf16.mxu1 %v3903_v4 }
  0x21   : > { %668 = vmatpush1.bf16.msra.mxu0 %v3700_v16 }
  0x22   : > { %669 = vmatprep.subr.bf16.mxu0 %v3701_v17 }
  0x23   : > { %3499 = vmatpush3.bf16.msra.mxu1 %v3712_v24 }
  0x24   : > { %3500 = vmatprep.subr.bf16.mxu1 %v3903_v4 }
  0x25   : > { %670 = vmatpush1.bf16.msra.mxu0 %v3703_v19 }
  0x26   : > { %671 = vmatprep.subr.bf16.mxu0 %v3704_v20 }
  0x27   : > { %3501 = vmatpush3.bf16.msra.mxu1 %v3713_v26 }
  0x28   : > { %3502 = vmatprep.subr.bf16.mxu1 %v3903_v4 }
  0x29   : > { %672 = vmatpush1.bf16.msra.mxu0 %v3706_v22 }
  0x2a   : > { %3532 = vmatprep.subr.bf16.mxu0 %v3903_v4 }
  0x2b   : > { %3503 = vmatpush3.bf16.msra.mxu1 %v3714_v27 }
  0x2c   : > { %690 = vmatmul.mubr.bf16.vlgmr.msra.gmra.mxu0 %v479_v25  ;;  %3508 = vmatprep.subr.bf16.mxu1 %v3903_v4 }
  0x2d   : > { %3534 = vmatprep.mubr.msk.bf16.mxu0 %vm3904_vm0, %v3903_v4 }
  0x2e   : > { %3505 = vmatmul.mubr.bf16.vlgmr.msra.gmra.mxu1 %v479_v25 }
  0x2f   : > { %3510 = vmatprep.mubr.msk.bf16.mxu1 %vm3904_vm0, %v3903_v4 }
  0xec   : > { %v691_v35 = vpop.f32.mrf.mxu0 }
  0xed   : > { %v692_v36 = vadd.f32 %v691_v35, %v517_v33 }
  0xee   : > { %v693_v37 = vpop.f32.mrf.mxu0  ;;  %v732_v47 = vpop.f32.mrf.mxu1 }
  0xef   : > { %v694_v38 = vadd.f32 %v693_v37, %v521_v34  ;;  %v738_v40 = vmul.f32 0.17677669, %v692_v36  ;;  %v733_v48 = vadd.f32 %v732_v47, %v525_v46 }
  0xf0   : > { %v695_v39 = vpop.f32.mrf.mxu0  ;;  %v3506_v49 = vpop.f32.mrf.mxu1 }
  0xf1   : > { %v740_v41 = vpack.c.bf16 %v694_v38, %v694_v38  ;;  %v739_v44 = vpack.c.bf16 %v738_v40, %v738_v40  ;;  %v4116_v50 = vpack.c.bf16 %v733_v48, %v733_v48 }
  0xf2   : > { %v696_v42 = vpop.f32.mrf.mxu0  ;;  %v735_v51 = vpop.f32.mrf.mxu1 }
  0xf3   : > { %860 = vrot.lane.b32.xlu1 %v740_v41, %s3905_s28  ;;  %v747_v43 = vsel %vm742_vm1, %v740_v41, 0  ;;  %v814_v52 = vsel %vm812_vm2, %v4116_v50, 0 }
  0xf4   : > { %3509 = vmatpush3.bf16.xpose.msra.mxu1 %v747_v43  ;;  %v3507_v53 = vpop.f32.mrf.mxu1 }
  0xf5   : > { %3514 = vmatprep.subr.bf16.mxu1 %v3903_v4 }
  0xf7   : > { %857 = vrot.lane.b32.xlu1 %v739_v44, %s3905_s28 }
  0xfb   : > { %970 = vrot.lane.b32.xlu1 %v739_v44, %s3906_s15  ;;  %3511 = vmatmul.mubr.msk.bf16.vlgmr.msra.gmra.mxu1 %vm742_vm1, %v739_v44 }
  0xfc   : > { %3516 = vmatprep.mubr.msk.bf16.mxu1 %vm3904_vm0, %v3903_v4  ;;  %3515 = vmatpush3.bf16.msra.mxu1 %v814_v52 }
  0xfd   : > { %3520 = vmatprep.subr.bf16.mxu1 %v3903_v4 }
  0xff   : > { %1083 = vrot.lane.b32.xlu1 %v740_v41, %s3907_s16 }
 0x103   : > { %1081 = vrot.lane.b32.xlu1 %v739_v44, %s3907_s16 }
 0x165   : > { %v861_v6 = vpop.permute.xlu1 %860 }
 0x166   : > { %v866_v17 = vsel %vm742_vm1, %v861_v6, 0 }
 0x169   : > { %v858_v7 = vpop.permute.xlu1 %857 }
 0x16d   : > { %v971_v9 = vpop.permute.xlu1 %970 }
 0x171   : > { %v1084_v12 = vpop.permute.xlu1 %1083 }
 0x172   : > { %v1089_v13 = vsel %vm742_vm1, %v1084_v12, 0 }
 0x175   : > { %v1082_v18 = vpop.permute.xlu1 %1081 }
 0x1bb   : > { %v783_v57 = vpop.f32.mrf.mxu1 }
 0x1bc   : > { %v795_v58 = vsub.f32 %v783_v57, %v4129_v56 }
 0x1bd   : > { %v3512_v59 = vpop.f32.mrf.mxu1 }
 0x1be   : > { %v797_v60 = vsel %vm796_vm3, %v795_v58, -inf }
 0x1bf   : > { %798 = vmax.xlane.f32.xlu0 %v797_v60  ;;  %v786_v61 = vpop.f32.mrf.mxu1 }
 0x1c1   : > { %v3513_v62 = vpop.f32.mrf.mxu1 }
 0x248   : > { %v799_v63 = vpop.xlane.xlu0 %798 }
 0x249   : > { %v800_v0 = vsub.f32 %v795_v58, %v799_v63 }
 0x24b   : > { %v801_v1 = vmul.f32 1.442695, %v800_v0 }
 0x24d   : > { %3843 = vpow2.f32 %v801_v1 }
 0x25a   : > { %v3844_v3 = vpop.eup %3843 }
 0x25b   : > { %v803_v5 = vsel %vm796_vm3, %v3844_v3, 0.0 }
 0x25c   : > { %804 = vadd.xlane.f32.xlu0 %v803_v5 }
 0x272   : > { %972 = vrot.lane.b32.xlu0 %v740_v41, %s3906_s15 }
 0x2e5   : > { %v805_v8 = vpop.xlane.xlu0 %804 }
 0x2e6   : > { %3845 = vrcp.f32 %v805_v8 }
 0x2e9   : > { %v973_v10 = vpop.permute.xlu0 %972 }
 0x2ea   : > { %v978_v11 = vsel %vm742_vm1, %v973_v10, 0 }
 0x2eb   : > { %3533 = vmatpush3.bf16.xpose.msra.mxu0 %v978_v11 }
 0x2ec   : > { %3544 = vmatprep.subr.bf16.mxu0 %v3903_v4 }
 0x2f2   : > { %3535 = vmatmul.mubr.msk.bf16.vlgmr.msra.gmra.mxu0 %vm742_vm1, %v971_v9 }
 0x2f3   : > { %v3846_v14 = vpop.eup %3845  ;;  %3545 = vmatpush3.bf16.xpose.msra.mxu0 %v1089_v13  ;;  %3546 = vmatprep.mubr.msk.bf16.mxu0 %vm3904_vm0, %v3903_v4 }
 0x2f4   : > { %v807_v15 = vmul.f32 %v3846_v14, %v3844_v3  ;;  %3556 = vmatprep.subr.bf16.mxu0 %v3903_v4 }
 0x2f6   : > { %v808_v16 = vpack.c.bf16 %v807_v15, %v807_v15 }
 0x2f8   : > { %3517 = vmatmul.mubr.msk.bf16.vlgmr.msra.gmra.mxu1 %vm796_vm3, %v808_v16 }
 0x2f9   : > { %3521 = vmatpush3.bf16.xpose.msra.mxu1 %v866_v17  ;;  %3522 = vmatprep.mubr.msk.bf16.mxu1 %vm3904_vm0, %v3903_v4 }
 0x2fa   : > { %3547 = vmatmul.mubr.msk.bf16.vlgmr.msra.gmra.mxu0 %vm742_vm1, %v1082_v18  ;;  %3526 = vmatprep.subr.bf16.mxu1 %v3903_v4  ;;  %v3715_v18 = vld [vmem:[%s4692_s4 + $0x38] sm:$0xff]  }
 0x2fb   : > { %3572 = vmatprep.mubr.msk.bf16.mxu0 %vm3904_vm0, %v3903_v4  ;;  %3557 = vmatpush3.bf16.msra.mxu0 %v3715_v18 }
 0x2fc   : > { %3558 = vmatprep.subr.bf16.mxu0 %v3903_v4 }
 0x300   : > { %3523 = vmatmul.mubr.msk.bf16.vlgmr.msra.gmra.mxu1 %vm742_vm1, %v858_v7 }
 0x301   : > { %3528 = vmatprep.mubr.msk.bf16.mxu1 %vm3904_vm0, %v3903_v4 }
 0x3b2   : > { %v1014_v19 = vpop.f32.mrf.mxu0 }
 0x3b3   : > { %v1020_v20 = vsub.f32 %v1014_v19, %v4129_v56  ;;  %v3716_v19 = vld [vmem:[%s4692_s4 + $0x30] sm:$0xff]  }
 0x3b4   : > { %v3536_v21 = vpop.f32.mrf.mxu0  ;;  %3559 = vmatpush3.bf16.msra.mxu0 %v3716_v19  ;;  %v3152_v19 = vld [vmem:[%s4694_s6] ss:$0 sm:$0xff] }
 0x3b5   : > { %v1021_v22 = vsel %vm796_vm3, %v1020_v20, -inf  ;;  %3560 = vmatprep.subr.bf16.mxu0 %v3903_v4  ;;  %v3718_v21 = vld [vmem:[%s4692_s4 + $0x20] sm:$0xff]  }
 0x3b6   : > { %1022 = vmax.xlane.f32.xlu0 %v1021_v22  ;;  %v1017_v24 = vpop.f32.mrf.mxu0  ;;  %v3719_v22 = vld [vmem:[%s4692_s4 + $0x18] sm:$0xff]  }
 0x3b7   : > { %v3720_v24 = vld [vmem:[%s4692_s4 + $0x10] sm:$0xff]  }
 0x3b8   : > { %v4155_v25 = vpop.f32.mrf.mxu1  ;;  %v3537_v26 = vpop.f32.mrf.mxu0 }
 0x3b9   : > { %v3721_v26 = vld [vmem:[%s4692_s4 + $0x8] sm:$0xff]  }
 0x3ba   : > { %v3518_v27 = vpop.f32.mrf.mxu1  ;;  %v1125_v28 = vpop.f32.mrf.mxu0 }
 0x3bb   : > { %v1131_v40 = vsub.f32 %v1125_v28, %v4129_v56 }
 0x3bc   : > { %v853_v31 = vpop.f32.mrf.mxu1  ;;  %v3548_v33 = vpop.f32.mrf.mxu0 }
 0x3bd   : > { %v1132_v44 = vsel %vm796_vm3, %v1131_v40, -inf  ;;  %v3722_v31 = vld [vmem:[%s4692_s4] sm:$0xff]  }
 0x3be   : > { %v3519_v34 = vpop.f32.mrf.mxu1  ;;  %v1128_v35 = vpop.f32.mrf.mxu0 }
 0x3c0   : > { %v902_v36 = vpop.f32.mrf.mxu1  ;;  %v3549_v37 = vpop.f32.mrf.mxu0 }
 0x3c1   : > { %v908_v38 = vsub.f32 %v902_v36, %v4129_v56 }
 0x3c2   : > { %v3524_v39 = vpop.f32.mrf.mxu1 }
 0x3c3   : > { %v909_v41 = vsel %vm796_vm3, %v908_v38, -inf }
 0x3c4   : > { %910 = vmax.xlane.f32.xlu1 %v909_v41  ;;  %v905_v42 = vpop.f32.mrf.mxu1 }
 0x3c6   : > { %v3525_v43 = vpop.f32.mrf.mxu1 }
 0x3c8   : > { %1133 = vmax.xlane.f32.xlu1 %v1132_v44 }
 0x43f   : > { %v1023_v46 = vpop.xlane.xlu0 %1022 }
 0x440   : > { %v1024_v47 = vsub.f32 %v1020_v20, %v1023_v46  ;;  %v3717_v20 = vld [vmem:[%s4692_s4 + $0x28] sm:$0xff]  }
 0x441   : > { %3561 = vmatpush3.bf16.msra.mxu0 %v3717_v20 }
 0x442   : > { %v1025_v48 = vmul.f32 1.442695, %v1024_v47  ;;  %3562 = vmatprep.subr.bf16.mxu0 %v3903_v4 }
 0x444   : > { %3847 = vpow2.f32 %v1025_v48 }
 0x445   : > { %3563 = vmatpush3.bf16.msra.mxu0 %v3718_v21  ;;  %v3153_v21 = vld [vmem:[%s4695_s7] ss:$0 sm:$0xff] }
 0x446   : > { %3564 = vmatprep.subr.bf16.mxu0 %v3903_v4 }
 0x449   : > { %3565 = vmatpush3.bf16.msra.mxu0 %v3719_v22 }
 0x44a   : > { %3566 = vmatprep.subr.bf16.mxu0 %v3903_v4 }
 0x44d   : > { %v911_v49 = vpop.xlane.xlu1 %910  ;;  %3567 = vmatpush3.bf16.msra.mxu0 %v3720_v24 }
 0x44e   : > { %v912_v51 = vsub.f32 %v908_v38, %v911_v49  ;;  %3568 = vmatprep.subr.bf16.mxu0 %v3903_v4 }
 0x450   : > { %v913_v57 = vmul.f32 1.442695, %v912_v51 }
 0x451   : > { %v3848_v52 = vpop.eup %3847  ;;  %v1134_v53 = vpop.xlane.xlu1 %1133  ;;  %3569 = vmatpush3.bf16.msra.mxu0 %v3721_v26 }
 0x452   : > { %v1135_v54 = vsub.f32 %v1131_v40, %v1134_v53  ;;  %v1027_v55 = vsel %vm796_vm3, %v3848_v52, 0.0  ;;  %3570 = vmatprep.subr.bf16.mxu0 %v3903_v4 }
 0x453   : > { %1028 = vadd.xlane.f32.xlu0 %v1027_v55 }
 0x454   : > { %v1136_v58 = vmul.f32 1.442695, %v1135_v54 }
 0x455   : > { %3571 = vmatpush3.bf16.msra.mxu0 %v3722_v31  ;;  %v3749_v31 = vld [vmem:[%s4698_s10 + $0x70] sm:$0xff]  }
 0x456   : > { %3849 = vpow2.f32 %v1136_v58 }
 0x457   : > { %3851 = vpow2.f32 %v913_v57 }
 0x463   : > { %v3850_v59 = vpop.eup %3849 }
 0x464   : > { %v1138_v60 = vsel %vm796_vm3, %v3850_v59, 0.0  ;;  %v3852_v61 = vpop.eup %3851 }
 0x465   : > { %1139 = vadd.xlane.f32.xlu1 %v1138_v60  ;;  %v915_v62 = vsel %vm796_vm3, %v3852_v61, 0.0  ;;  %v3725_v60 = vld [vmem:[%s4696_s8 + $0x74] ss:$8 sps:$4 sm:$0xff]  }
 0x469   : > { %922 = vrot.lane.b32.xlu0 %v4116_v50, %s3905_s28  ;;  %916 = vadd.xlane.f32.xlu1 %v915_v62 }
 0x47a   : > { %1033 = vrot.lane.b32.xlu1 %v4116_v50, %s3906_s15 }
 0x47e   : > { %1144 = vrot.lane.b32.xlu1 %v4116_v50, %s3907_s16 }
 0x4dc   : > { %v1029_v63 = vpop.xlane.xlu0 %1028 }
 0x4e0   : > { %v923_v0 = vpop.permute.xlu0 %922 }
 0x4e1   : > { %v928_v1 = vsel %vm812_vm2, %v923_v0, 0 }
 0x4e2   : > { %3527 = vmatpush3.bf16.msra.mxu1 %v928_v1 }
 0x4e3   : > { %3538 = vmatprep.subr.bf16.mxu1 %v3903_v4 }
 0x4ee   : > { %v1140_v3 = vpop.xlane.xlu1 %1139 }
 0x4f2   : > { %v917_v5 = vpop.xlane.xlu1 %916 }
 0x4f3   : > { %3853 = vrcp.f32 %v917_v5  ;;  %v3729_v5 = vld [vmem:[%s4696_s8 + $0x50] ss:$8 sps:$4 sm:$0xff]  }
 0x4f4   : > { %3855 = vrcp.f32 %v1029_v63 }
 0x4f5   : > { %3857 = vrcp.f32 %v1140_v3  ;;  %v3731_v3 = vld [vmem:[%s4696_s8 + $0x54] ss:$8 sps:$4 sm:$0xff]  }
 0x4f6   : > { %v1034_v8 = vpop.permute.xlu1 %1033 }
 0x4f7   : > { %v1039_v11 = vsel %vm812_vm2, %v1034_v8, 0  ;;  %v3737_v8 = vld [vmem:[%s4696_s8 + $0x34] ss:$8 sps:$4 sm:$0xff]  }
 0x4fa   : > { %v1145_v12 = vpop.permute.xlu1 %1144 }
 0x4fb   : > { %v1150_v15 = vsel %vm812_vm2, %v1145_v12, 0  ;;  %v3741_v12 = vld [vmem:[%s4696_s8 + $0x10] ss:$8 sps:$4 sm:$0xff]  }
 0x500   : > { %v3854_v6 = vpop.eup %3853 }
 0x501   : > { %v919_v7 = vmul.f32 %v3854_v6, %v3852_v61  ;;  %v3856_v10 = vpop.eup %3855  ;;  %v3728_v61 = vld [vmem:[%s4696_s8 + $0x64] ss:$8 sps:$4 sm:$0xff]   ;;  %v3732_v6 = vld [vmem:[%s4696_s8 + $0x40] ss:$8 sps:$4 sm:$0xff]  }
 0x502   : > { %v1031_v50 = vmul.f32 %v3856_v10, %v3848_v52  ;;  %v3858_v14 = vpop.eup %3857  ;;  %v3143_v52 = vld [vmem:[%s4693_s5] ss:$0 sm:$0xff]  ;;  %v3740_v10 = vld [vmem:[%s4696_s8 + $0x24] ss:$8 sps:$4 sm:$0xff]  }
 0x503   : > { %v920_v9 = vpack.c.bf16 %v919_v7, %v919_v7  ;;  %v1142_v16 = vmul.f32 %v3858_v14, %v3850_v59  ;;  %v3734_v7 = vld [vmem:[%s4696_s8 + $0x44] ss:$8 sps:$4 sm:$0xff]   ;;  %v3744_v14 = vld [vmem:[%s4696_s8] ss:$8 sps:$4 sm:$0xff]  }
 0x504   : > { %v1032_v13 = vpack.c.bf16 %v1031_v50, %v1031_v50  ;;  %v3743_v50 = vld [vmem:[%s4696_s8 + $0x14] ss:$8 sps:$4 sm:$0xff]  }
 0x505   : > { %3529 = vmatmul.mubr.msk.bf16.vlgmr.msra.gmra.mxu1 %vm796_vm3, %v920_v9  ;;  %v1143_v17 = vpack.c.bf16 %v1142_v16, %v1142_v16  ;;  %v3735_v9 = vld [vmem:[%s4696_s8 + $0x30] ss:$8 sps:$4 sm:$0xff]  }
 0x506   : > { %3539 = vmatpush3.bf16.msra.mxu1 %v1039_v11  ;;  %3540 = vmatprep.mubr.msk.bf16.mxu1 %vm3904_vm0, %v3903_v4  ;;  %v3738_v11 = vld [vmem:[%s4696_s8 + $0x20] ss:$8 sps:$4 sm:$0xff]  }
 0x507   : > { %3550 = vmatprep.subr.bf16.mxu1 %v3903_v4 }
 0x50d   : > { %3541 = vmatmul.mubr.msk.bf16.vlgmr.msra.gmra.mxu1 %vm796_vm3, %v1032_v13  ;;  %v3746_v13 = vld [vmem:[%s4696_s8 + $0x4] ss:$8 sps:$4 sm:$0xff]  }
 0x50e   : > { %3551 = vmatpush3.bf16.msra.mxu1 %v1150_v15  ;;  %3552 = vmatprep.mubr.msk.bf16.mxu1 %vm3904_vm0, %v3903_v4 }
 0x50f   : > { %1459 = vmatprep.subr.bf16.mxu1 %v3725_v60 }
 0x515   : > { %3553 = vmatmul.mubr.msk.bf16.vlgmr.msra.gmra.mxu1 %vm796_vm3, %v1143_v17 }
 0x516   : > { %1491 = vmatprep.mubr.bf16.mxu1 %v3902_v2 }
 0x5c5   : > { %v964_v27 = vpop.f32.mrf.mxu1 }
 0x5c6   : > { %1193 = vrot.lane.b32.xlu0 %v964_v27, %s3907_s16  ;;  %v3747_v27 = vld [vmem:[%s4698_s10 + $0x78] sm:$0xff]  }
 0x5c7   : > { %v3530_v28 = vpop.f32.mrf.mxu1  ;;  %3408 = vmatprep.subr.bf16.mxu0 %v3747_v27  ;;  %v3769_v27 = vld [vmem:[%s4690_s2 + $0x154] ss:$12 sps:$4 sm:$0xff]  }
 0x5c8   : > { %v3748_v28 = vld [vmem:[%s4698_s10 + $0x38] sm:$0xff]  }
 0x5c9   : > { %v967_v33 = vpop.f32.mrf.mxu1 }
 0x5ca   : > { %v3750_v33 = vld [vmem:[%s4698_s10 + $0x30] sm:$0xff]  }
 0x5cb   : > { %v3531_v34 = vpop.f32.mrf.mxu1 }
 0x5cc   : > { %v3751_v34 = vld [vmem:[%s4698_s10 + $0x68] sm:$0xff]  }
 0x5cd   : > { %v1075_v35 = vpop.f32.mrf.mxu1 }
 0x5ce   : > { %1197 = vrot.lane.b32.xlu1 %v1075_v35, %s3906_s15  ;;  %v3752_v35 = vld [vmem:[%s4698_s10 + $0x28] sm:$0xff]  }
 0x5cf   : > { %v3542_v36 = vpop.f32.mrf.mxu1 }
 0x5d0   : > { %v3753_v36 = vld [vmem:[%s4698_s10 + $0x60] sm:$0xff]  }
 0x5d1   : > { %v1078_v37 = vpop.f32.mrf.mxu1 }
 0x5d2   : > { %v3754_v37 = vld [vmem:[%s4698_s10 + $0x20] sm:$0xff]  }
 0x5d3   : > { %v3543_v38 = vpop.f32.mrf.mxu1 }
 0x5d4   : > { %v3755_v38 = vld [vmem:[%s4698_s10 + $0x58] sm:$0xff]  }
 0x5d5   : > { %v1186_v39 = vpop.f32.mrf.mxu1 }
 0x5d6   : > { %1201 = vrot.lane.b32.xlu0 %v1186_v39, %s3905_s28  ;;  %v3756_v39 = vld [vmem:[%s4698_s10 + $0x18] sm:$0xff]  }
 0x5d7   : > { %v3554_v40 = vpop.f32.mrf.mxu1 }
 0x5d8   : > { %v3757_v40 = vld [vmem:[%s4698_s10 + $0x50] sm:$0xff]  }
 0x5d9   : > { %v1189_v41 = vpop.f32.mrf.mxu1 }
 0x5da   : > { %v3758_v41 = vld [vmem:[%s4698_s10 + $0x10] sm:$0xff]  }
 0x5db   : > { %v3555_v42 = vpop.f32.mrf.mxu1 }
 0x5dc   : > { %v3759_v42 = vld [vmem:[%s4698_s10 + $0x48] sm:$0xff]  }
 0x638   : > { %v1194_v43 = vpop.permute.xlu0 %1193 }
 0x639   : > { %v1204_v46 = vsel %vm742_vm1, %v4155_v25, %v1194_v43  ;;  %v3723_v25 = vld [vmem:[%s4696_s8 + $0x70] ss:$8 sps:$4 sm:$0xff]   ;;  %v3760_v43 = vld [vmem:[%s4698_s10 + $0x8] sm:$0xff]  }
 0x63a   : > { %1460 = vmatpush1.bf16.msra.mxu1 %v3723_v25 }
 0x63b   : > { %1461 = vmatprep.subr.bf16.mxu1 %v3728_v61 }
 0x640   : > { %v1198_v44 = vpop.permute.xlu1 %1197 }
 0x641   : > { %v1206_v47 = vsel %vm1205_vm4, %v1204_v46, %v1198_v44  ;;  %v3761_v44 = vld [vmem:[%s4698_s10 + $0x40] sm:$0xff]  }
 0x642   : > { %v3762_v46 = vld [vmem:[%s4698_s10] sm:$0xff]  }
 0x648   : > { %v1202_v48 = vpop.permute.xlu0 %1201 }
 0x649   : > { %v1208_v49 = vsel %vm1207_vm5, %v1206_v47, %v1202_v48  ;;  %v1367_v47 = vld [vmem:[%s4697_s9] sm:$0x3] }
 0x64a   : > { %v1209_v51 = vpack.c.bf16 %v1208_v49, %v1208_v49  ;;  %v1372_v48 = vrot.slane %v1367_v47, %v4093_v30  ;;  %v1376_v49 = vrot.slane %v1367_v47, %v4099_v32  ;;  %v3783_v47 = vld [vmem:[%s4690_s2 + $0xf0] ss:$12 sps:$4 sm:$0xff]  }
 0x64c   : > { %3573 = vmatmul.mubr.bf16.vlgmr.msra.gmra.mxu0 %v1209_v51 }
 0x64d   : > { %3409 = vmatpush3.bf16.msra.mxu0 %v3748_v28  ;;  %v3767_v28 = vld [vmem:[%s4690_s2 + $0x150] ss:$12 sps:$4 sm:$0xff]  }
 0x64e   : > { %3410 = vmatprep.subr.bf16.mxu0 %v3749_v31 }
 0x651   : > { %3411 = vmatpush3.bf16.msra.mxu0 %v3750_v33 }
 0x652   : > { %3412 = vmatprep.subr.bf16.mxu0 %v3751_v34 }
 0x655   : > { %3413 = vmatpush3.bf16.msra.mxu0 %v3752_v35 }
 0x656   : > { %3414 = vmatprep.subr.bf16.mxu0 %v3753_v36  ;;  %v3773_v36 = vld [vmem:[%s4690_s2 + $0x13c] ss:$12 sps:$4 sm:$0xff]  }
 0x659   : > { %3415 = vmatpush3.bf16.msra.mxu0 %v3754_v37  ;;  %v3771_v37 = vld [vmem:[%s4690_s2 + $0x138] ss:$12 sps:$4 sm:$0xff]  }
 0x65a   : > { %3416 = vmatprep.subr.bf16.mxu0 %v3755_v38  ;;  %v3774_v38 = vld [vmem:[%s4690_s2 + $0x140] ss:$12 sps:$4 sm:$0xff]  }
 0x65d   : > { %3417 = vmatpush3.bf16.msra.mxu0 %v3756_v39  ;;  %v3775_v39 = vld [vmem:[%s4690_s2 + $0x120] ss:$12 sps:$4 sm:$0xff]  }
 0x65e   : > { %3418 = vmatprep.subr.bf16.mxu0 %v3757_v40  ;;  %v3777_v40 = vld [vmem:[%s4690_s2 + $0x124] ss:$12 sps:$4 sm:$0xff]  }
 0x661   : > { %3419 = vmatpush3.bf16.msra.mxu0 %v3758_v41  ;;  %v3778_v41 = vld [vmem:[%s4690_s2 + $0x128] ss:$12 sps:$4 sm:$0xff]  }
 0x662   : > { %3420 = vmatprep.subr.bf16.mxu0 %v3759_v42  ;;  %v3781_v42 = vld [vmem:[%s4690_s2 + $0x10c] ss:$12 sps:$4 sm:$0xff]  }
 0x665   : > { %3421 = vmatpush3.bf16.msra.mxu0 %v3760_v43  ;;  %v3779_v43 = vld [vmem:[%s4690_s2 + $0x108] ss:$12 sps:$4 sm:$0xff]  }
 0x666   : > { %3422 = vmatprep.subr.bf16.mxu0 %v3761_v44  ;;  %v3782_v44 = vld [vmem:[%s4690_s2 + $0x110] ss:$12 sps:$4 sm:$0xff]  }
 0x669   : > { %3423 = vmatpush3.bf16.msra.mxu0 %v3762_v46  ;;  %v3785_v46 = vld [vmem:[%s4690_s2 + $0xf4] ss:$12 sps:$4 sm:$0xff]  }
 0x66a   : > { %3576 = vmatprep.subr.bf16.mxu0 %v3903_v4 }
 0x70c   : > { %v1315_v53 = vpop.f32.mrf.mxu0 }
 0x70d   : > { %v1316_v54 = vadd.f32 %v3143_v52, %v1315_v53 }
 0x70e   : > { %v3574_v55 = vpop.f32.mrf.mxu0 }
 0x70f   : > { %v1321_v57 = vadd.f32 %v1316_v54, %v4065_v23  ;;  %v3726_v23 = vld [vmem:[%s4696_s8 + $0x60] ss:$8 sps:$4 sm:$0xff]  }
 0x710   : > { %v1318_v58 = vpop.f32.mrf.mxu0  ;;  %1462 = vmatpush1.bf16.msra.mxu1 %v3726_v23 }
 0x711   : > { %1322 = vadd.xlane.f32.xlu1 %v1321_v57  ;;  %1463 = vmatprep.subr.bf16.mxu1 %v3731_v3 }
 0x712   : > { %v3575_v59 = vpop.f32.mrf.mxu0 }
 0x714   : > { %1464 = vmatpush1.bf16.msra.mxu1 %v3729_v5 }
 0x715   : > { %1465 = vmatprep.subr.bf16.mxu1 %v3734_v7 }
 0x718   : > { %1466 = vmatpush1.bf16.msra.mxu1 %v3732_v6 }
 0x719   : > { %1467 = vmatprep.subr.bf16.mxu1 %v3737_v8 }
 0x71c   : > { %1468 = vmatpush1.bf16.msra.mxu1 %v3735_v9 }
 0x71d   : > { %1469 = vmatprep.subr.bf16.mxu1 %v3740_v10 }
 0x720   : > { %1470 = vmatpush1.bf16.msra.mxu1 %v3738_v11 }
 0x721   : > { %1471 = vmatprep.subr.bf16.mxu1 %v3743_v50 }
 0x724   : > { %1472 = vmatpush1.bf16.msra.mxu1 %v3741_v12 }
 0x725   : > { %1473 = vmatprep.subr.bf16.mxu1 %v3746_v13 }
 0x728   : > { %1474 = vmatpush1.bf16.msra.mxu1 %v3744_v14  ;;  %v3170_v14 = vld [vmem:[%s4699_s11] ss:$0 sm:$0xff] }
 0x79a   : > { %v1323_v62 = vpop.xlane.xlu1 %1322 }
 0x79b   : > { %v1325_v63 = vmul.f32 0.0078125, %v1323_v62 }
 0x79d   : > { %v1326_v0 = vsub.f32 %v1321_v57, %v1325_v63 }
 0x79f   : > { %v1327_v1 = vmul.f32 %v1326_v0, %v1326_v0 }
 0x7a1   : > { %1328 = vadd.xlane.f32.xlu0 %v1327_v1 }
 0x82a   : > { %v1329_v15 = vpop.xlane.xlu0 %1328 }
 0x82b   : > { %v1330_v16 = vmul.f32 0.0078125, %v1329_v15 }
 0x82d   : > { %v1331_v17 = vadd.f32 1e-05, %v1330_v16 }
 0x82f   : > { %3859 = vrsqrt.f32 %v1331_v17 }
 0x83c   : > { %v3860_v18 = vpop.eup %3859 }
 0x83d   : > { %v1333_v20 = vmul.f32 %v3860_v18, %v1326_v0 }
 0x83f   : > { %v1341_v22 = vmul.f32 %v3152_v19, %v1333_v20 }
 0x841   : > { %v4279_v24 = vadd.f32 %v3153_v21, %v1341_v22  ;;  %v3763_v21 = vld [vmem:[%s4690_s2 + $0x168] ss:$12 sps:$4 sm:$0xff]   ;;  %v3765_v22 = vld [vmem:[%s4690_s2 + $0x16c] ss:$12 sps:$4 sm:$0xff]  }
 0x842   : > { %1903 = vmatprep.subr.bf16.mxu1 %v3765_v22 }
 0x843   : > { %v1350_v26 = vpack.c.bf16 %v4279_v24, %v4279_v24 }
 0x845   : > { %1492 = vmatmul.mubr.bf16.vlgmr.msra.gmra.mxu1 %v1350_v26  ;;  %v3766_v26 = vld [vmem:[%s4690_s2 + $0x170] ss:$12 sps:$4 sm:$0xff]  }
 0x846   : > { %1935 = vmatprep.mubr.bf16.mxu1 %v3902_v2  ;;  %1904 = vmatpush1.bf16.msra.mxu1 %v3763_v21 }
 0x847   : > { %1905 = vmatprep.subr.bf16.mxu1 %v3769_v27 }
 0x84a   : > { %1906 = vmatpush1.bf16.msra.mxu1 %v3767_v28 }
 0x84b   : > { %1907 = vmatprep.subr.bf16.mxu1 %v3773_v36 }
 0x84e   : > { %1908 = vmatpush1.bf16.msra.mxu1 %v3771_v37 }
 0x84f   : > { %1909 = vmatprep.subr.bf16.mxu1 %v3777_v40 }
 0x852   : > { %1910 = vmatpush1.bf16.msra.mxu1 %v3775_v39 }
 0x853   : > { %1911 = vmatprep.subr.bf16.mxu1 %v3781_v42 }
 0x856   : > { %1912 = vmatpush1.bf16.msra.mxu1 %v3779_v43 }
 0x857   : > { %1913 = vmatprep.subr.bf16.mxu1 %v3785_v46 }
 0x85a   : > { %1914 = vmatpush1.bf16.msra.mxu1 %v3783_v47 }
 0x905   : > { %v1493_v51 = vpop.f32.mrf.mxu1 }
 0x906   : > { %v1494_v52 = vadd.f32 %v1493_v51, %v1372_v48  ;;  %v3786_v48 = vld [vmem:[%s4690_s2 + $0xf8] ss:$12 sps:$4 sm:$0xff]  }
 0x907   : > { %v1495_v53 = vpop.f32.mrf.mxu1  ;;  %v3787_v51 = vld [vmem:[%s4690_s2 + $0xd8] ss:$12 sps:$4 sm:$0xff]  }
 0x908   : > { %v1500_v54 = vmul.f32 %v1494_v52, %v1494_v52  ;;  %v1496_v55 = vadd.f32 %v1495_v53, %v1376_v49  ;;  %v3789_v49 = vld [vmem:[%s4690_s2 + $0xdc] ss:$12 sps:$4 sm:$0xff]   ;;  %v3793_v53 = vld [vmem:[%s4690_s2 + $0xc4] ss:$12 sps:$4 sm:$0xff]  }
 0x909   : > { %v1497_v57 = vpop.f32.mrf.mxu1  ;;  %1915 = vmatprep.subr.bf16.mxu1 %v3789_v49 }
 0x90a   : > { %v1502_v58 = vmul.f32 %v1500_v54, %v1494_v52  ;;  %v1501_v59 = vmul.f32 %v1496_v55, %v1496_v55  ;;  %1916 = vmatpush1.bf16.msra.mxu1 %v3787_v51  ;;  %v3791_v54 = vld [vmem:[%s4690_s2 + $0xc0] ss:$12 sps:$4 sm:$0xff]  }
 0x90b   : > { %v1498_v25 = vpop.f32.mrf.mxu1  ;;  %1917 = vmatprep.subr.bf16.mxu1 %v3793_v53 }
 0x90c   : > { %v1504_v60 = vmul.f32 0.044715, %v1502_v58  ;;  %v1503_v61 = vmul.f32 %v1501_v59, %v1496_v55 }
 0x90e   : > { %v1506_v23 = vadd.f32 %v1504_v60, %v1494_v52  ;;  %v1505_v62 = vmul.f32 0.044715, %v1503_v61  ;;  %1918 = vmatpush1.bf16.msra.mxu1 %v3791_v54  ;;  %v3187_v60 = vld [vmem:[%s4700_s12] ss:$0 sm:$0xff] }
 0x90f   : > { %3596 = vmatprep.subr.bf16.mxu1 %v3903_v4 }
 0x910   : > { %v1508_v63 = vmul.f32 0.7978846, %v1506_v23  ;;  %v1507_v0 = vadd.f32 %v1505_v62, %v1496_v55  ;;  %v3188_v23 = vld [vmem:[%s4701_s13] ss:$0 sm:$0xff] }
 0x912   : > { %3861 = vtanh.f32 %v1508_v63  ;;  %v1509_v1 = vmul.f32 0.7978846, %v1507_v0 }
 0x914   : > { %3863 = vtanh.f32 %v1509_v1  ;;  %v3221_v1 = vld [vmem:[%s4691_s3 + $0x3] sm:$0x7] }
 0x91f   : > { %v3862_v3 = vpop.eup %3861 }
 0x920   : > { %v1512_v5 = vadd.f32 1.0, %v3862_v3  ;;  %v1767_v3 = vrot.slane %v3221_v1, %v4099_v32 }
 0x921   : > { %v3864_v6 = vpop.eup %3863 }
 0x922   : > { %v1513_v7 = vadd.f32 1.0, %v3864_v6  ;;  %v1514_v8 = vmul.f32 0.5, %v1512_v5 }
 0x924   : > { %v1515_v9 = vmul.f32 0.5, %v1513_v7  ;;  %v1516_v10 = vmul.f32 %v1514_v8, %v1494_v52  ;;  %v3790_v52 = vld [vmem:[%s4690_s2 + $0xe0] ss:$12 sps:$4 sm:$0xff]   ;;  %v1763_v7 = vrot.slane %v3221_v1, %v4093_v30 }
 0x926   : > { %v1517_v11 = vmul.f32 %v1515_v9, %v1496_v55  ;;  %v1518_v12 = vpack.c.bf16 %v1516_v10, %v1516_v10  ;;  %v3794_v55 = vld [vmem:[%s4690_s2 + $0xc8] ss:$12 sps:$4 sm:$0xff]   ;;  %v1771_v10 = vrot.slane %v3221_v1, %v524_v45 }
 0x928   : > { %v1519_v50 = vpack.c.bf16 %v1517_v11, %v1517_v11 }
 0x92a   : > { %1687 = vmatprep.mubr.bf16.mxu0 %v1519_v50 }
 0x92b   : > { %1688 = vmatmul.mubr.bf16.vlgmr.msra.gmra.mxu0 %v1518_v12 }
 0x92c   : > { %3592 = vmatprep.mubr.msk.bf16.mxu0 %vm3904_vm0, %v3903_v4  ;;  %3577 = vmatpush3.bf16.msra.mxu0 %v3766_v26 }
 0x92d   : > { %3578 = vmatprep.subr.bf16.mxu0 %v3903_v4 }
 0x9eb   : > { %v3424_v13 = vpop.f32.mrf.mxu0 }
 0x9ed   : > { %v3425_v15 = vpop.f32.mrf.mxu0 }
 0x9ee   : > { %v3426_v16 = vadd.f32 %v3425_v15, %v3424_v13 }
 0x9ef   : > { %v3427_v17 = vpop.f32.mrf.mxu0 }
 0x9f0   : > { %v1690_v18 = vadd.f32 %v3426_v16, %v3170_v14 }
 0x9f1   : > { %v3428_v19 = vpop.f32.mrf.mxu0 }
 0x9f2   : > { %v1695_v20 = vadd.f32 %v1690_v18, %v4279_v24  ;;  %v3770_v24 = vld [vmem:[%s4690_s2 + $0x158] ss:$12 sps:$4 sm:$0xff]  }
 0x9f3   : > { %3579 = vmatpush3.bf16.msra.mxu0 %v3770_v24 }
 0x9f4   : > { %1696 = vadd.xlane.f32.xlu0 %v1695_v20  ;;  %3580 = vmatprep.subr.bf16.mxu0 %v3903_v4 }
 0x9f7   : > { %3581 = vmatpush3.bf16.msra.mxu0 %v3774_v38 }
 0x9f8   : > { %3582 = vmatprep.subr.bf16.mxu0 %v3903_v4 }
 0x9fb   : > { %3583 = vmatpush3.bf16.msra.mxu0 %v3778_v41 }
 0x9fc   : > { %3584 = vmatprep.subr.bf16.mxu0 %v3903_v4 }
 0x9ff   : > { %3585 = vmatpush3.bf16.msra.mxu0 %v3782_v44 }
 0xa00   : > { %3586 = vmatprep.subr.bf16.mxu0 %v3903_v4 }
 0xa03   : > { %3587 = vmatpush3.bf16.msra.mxu0 %v3786_v48 }
 0xa04   : > { %3588 = vmatprep.subr.bf16.mxu0 %v3903_v4 }
 0xa07   : > { %3589 = vmatpush3.bf16.msra.mxu0 %v3790_v52 }
 0xa08   : > { %3590 = vmatprep.subr.bf16.mxu0 %v3903_v4 }
 0xa0b   : > { %3591 = vmatpush3.bf16.msra.mxu0 %v3794_v55 }
 0xa0c   : > { %3620 = vmatprep.subr.bf16.mxu0 %v3903_v4 }
 0xa7d   : > { %v1697_v31 = vpop.xlane.xlu0 %1696 }
 0xa7e   : > { %v1698_v33 = vmul.f32 0.0078125, %v1697_v31 }
 0xa80   : > { %v1699_v34 = vsub.f32 %v1695_v20, %v1698_v33 }
 0xa82   : > { %v1700_v35 = vmul.f32 %v1699_v34, %v1699_v34 }
 0xa84   : > { %1701 = vadd.xlane.f32.xlu1 %v1700_v35 }
 0xb0d   : > { %v1702_v57 = vpop.xlane.xlu1 %1701 }
 0xb0e   : > { %v1703_v58 = vmul.f32 0.0078125, %v1702_v57 }
 0xb10   : > { %v1704_v59 = vadd.f32 1e-05, %v1703_v58 }
 0xb12   : > { %3865 = vrsqrt.f32 %v1704_v59 }
 0xb1f   : > { %v3866_v25 = vpop.eup %3865 }
 0xb20   : > { %v1706_v61 = vmul.f32 %v3866_v25, %v1699_v34 }
 0xb22   : > { %v1714_v62 = vmul.f32 %v3187_v60, %v1706_v61 }
 0xb24   : > { %v4431_v63 = vadd.f32 %v3188_v23, %v1714_v62 }
 0xb26   : > { %v1723_v0 = vpack.c.bf16 %v4431_v63, %v4431_v63 }
 0xb28   : > { %1936 = vmatmul.mubr.bf16.vlgmr.msra.gmra.mxu1 %v1723_v0  ;;  %3593 = vmatmul.mubr.bf16.vlgmr.msra.gmra.mxu0 %v1723_v0 }
 0xb29   : > { %3598 = vmatprep.mubr.msk.bf16.mxu1 %vm3904_vm0, %v3903_v4  ;;  %3622 = vmatprep.mubr.msk.bf16.mxu0 %vm3904_vm0, %v3903_v4 }
 0xbe8   : > { %v1937_v5 = vpop.f32.mrf.mxu1  ;;  %v1978_v6 = vpop.f32.mrf.mxu0 }
 0xbe9   : > { %v1938_v13 = vadd.f32 %v1937_v5, %v1763_v7  ;;  %v1979_v17 = vadd.f32 %v1978_v6, %v1771_v10 }
 0xbea   : > { %v1939_v8 = vpop.f32.mrf.mxu1  ;;  %v3594_v9 = vpop.f32.mrf.mxu0 }
 0xbeb   : > { %v1940_v11 = vadd.f32 %v1939_v8, %v1767_v3  ;;  %v1984_v19 = vmul.f32 0.17677669, %v1938_v13  ;;  %v4448_v20 = vpack.c.bf16 %v1979_v17, %v1979_v17 }
 0xbec   : > { %v1941_v50 = vpop.f32.mrf.mxu1  ;;  %v1981_v12 = vpop.f32.mrf.mxu0 }
 0xbed   : > { %v1986_v14 = vpack.c.bf16 %v1940_v11, %v1940_v11  ;;  %v1985_v21 = vpack.c.bf16 %v1984_v19, %v1984_v19  ;;  %v2051_v29 = vsel %vm812_vm2, %v4448_v20, 0 }
 0xbee   : > { %v1942_v15 = vpop.f32.mrf.mxu1  ;;  %v3595_v16 = vpop.f32.mrf.mxu0 }
 0xbef   : > { %v1992_v18 = vsel %vm742_vm1, %v1986_v14, 0 }
 0xbf0   : > { %3597 = vmatpush3.bf16.xpose.msra.mxu1 %v1992_v18 }
 0xbf1   : > { %3602 = vmatprep.subr.bf16.mxu1 %v3903_v4 }
 0xbf7   : > { %3599 = vmatmul.mubr.msk.bf16.vlgmr.msra.gmra.mxu1 %vm742_vm1, %v1985_v21 }
 0xbf8   : > { %3603 = vmatpush3.bf16.msra.mxu1 %v2051_v29  ;;  %3604 = vmatprep.mubr.msk.bf16.mxu1 %vm3904_vm0, %v3903_v4 }
 0xbf9   : > { %3608 = vmatprep.subr.bf16.mxu1 %v3903_v4 }
 0xcb7   : > { %v2028_v45 = vpop.f32.mrf.mxu1 }
 0xcb8   : > { %v2034_v22 = vsub.f32 %v2028_v45, %v4129_v56 }
 0xcb9   : > { %v3600_v26 = vpop.f32.mrf.mxu1 }
 0xcba   : > { %v2035_v27 = vsel %vm796_vm3, %v2034_v22, -inf }
 0xcbb   : > { %2036 = vmax.xlane.f32.xlu0 %v2035_v27  ;;  %v2031_v24 = vpop.f32.mrf.mxu1 }
 0xcbd   : > { %v3601_v28 = vpop.f32.mrf.mxu1 }
 0xcd1   : > { %2097 = vrot.lane.b32.xlu0 %v1986_v14, %s3905_s28 }
 0xcd5   : > { %2207 = vrot.lane.b32.xlu0 %v1985_v21, %s3906_s15 }
 0xcd9   : > { %2318 = vrot.lane.b32.xlu0 %v1985_v21, %s3907_s16 }
 0xd44   : > { %v2037_v31 = vpop.xlane.xlu0 %2036 }
 0xd45   : > { %v2038_v33 = vsub.f32 %v2034_v22, %v2037_v31 }
 0xd47   : > { %v2039_v34 = vmul.f32 1.442695, %v2038_v33 }
 0xd48   : > { %v2098_v41 = vpop.permute.xlu0 %2097 }
 0xd49   : > { %3867 = vpow2.f32 %v2039_v34  ;;  %v2103_v49 = vsel %vm742_vm1, %v2098_v41, 0 }
 0xd4c   : > { %v2208_v46 = vpop.permute.xlu0 %2207 }
 0xd50   : > { %v2319_v51 = vpop.permute.xlu0 %2318 }
 0xd56   : > { %v3868_v35 = vpop.eup %3867 }
 0xd57   : > { %v2041_v36 = vsel %vm796_vm3, %v3868_v35, 0.0 }
 0xd58   : > { %2042 = vadd.xlane.f32.xlu1 %v2041_v36 }
 0xd69   : > { %2094 = vrot.lane.b32.xlu1 %v1985_v21, %s3905_s28 }
 0xd6d   : > { %2209 = vrot.lane.b32.xlu1 %v1986_v14, %s3906_s15 }
 0xd71   : > { %2320 = vrot.lane.b32.xlu1 %v1986_v14, %s3907_s16 }
 0xde1   : > { %v2043_v37 = vpop.xlane.xlu1 %2042 }
 0xde2   : > { %3869 = vrcp.f32 %v2043_v37 }
 0xde5   : > { %v2095_v38 = vpop.permute.xlu1 %2094 }
 0xde9   : > { %v2210_v39 = vpop.permute.xlu1 %2209 }
 0xdea   : > { %v2215_v40 = vsel %vm742_vm1, %v2210_v39, 0 }
 0xdeb   : > { %3621 = vmatpush3.bf16.xpose.msra.mxu0 %v2215_v40 }
 0xdec   : > { %3632 = vmatprep.subr.bf16.mxu0 %v3903_v4 }
 0xded   : > { %v2321_v43 = vpop.permute.xlu1 %2320 }
 0xdee   : > { %v2326_v47 = vsel %vm742_vm1, %v2321_v43, 0 }
 0xdef   : > { %v3870_v42 = vpop.eup %3869 }
 0xdf0   : > { %v2045_v44 = vmul.f32 %v3870_v42, %v3868_v35 }
 0xdf2   : > { %3623 = vmatmul.mubr.msk.bf16.vlgmr.msra.gmra.mxu0 %vm742_vm1, %v2208_v46  ;;  %v2046_v48 = vpack.c.bf16 %v2045_v44, %v2045_v44 }
 0xdf3   : > { %3633 = vmatpush3.bf16.xpose.msra.mxu0 %v2326_v47  ;;  %3634 = vmatprep.mubr.msk.bf16.mxu0 %vm3904_vm0, %v3903_v4  ;;  %v3795_v47 = vld [vmem:[%s4692_s4 + $0x78] sm:$0xff]  }
 0xdf4   : > { %3605 = vmatmul.mubr.msk.bf16.vlgmr.msra.gmra.mxu1 %vm796_vm3, %v2046_v48  ;;  %3644 = vmatprep.subr.bf16.mxu0 %v3903_v4  ;;  %v3796_v48 = vld [vmem:[%s4692_s4 + $0x70] sm:$0xff]  }
 0xdf5   : > { %3609 = vmatpush3.bf16.xpose.msra.mxu1 %v2103_v49  ;;  %3610 = vmatprep.mubr.msk.bf16.mxu1 %vm3904_vm0, %v3903_v4  ;;  %v3797_v49 = vld [vmem:[%s4692_s4 + $0x68] sm:$0xff]  }
 0xdf6   : > { %3614 = vmatprep.subr.bf16.mxu1 %v3903_v4 }
 0xdfa   : > { %3635 = vmatmul.mubr.msk.bf16.vlgmr.msra.gmra.mxu0 %vm742_vm1, %v2319_v51  ;;  %v3799_v51 = vld [vmem:[%s4692_s4 + $0x58] sm:$0xff]  }
 0xdfb   : > { %3660 = vmatprep.mubr.msk.bf16.mxu0 %vm3904_vm0, %v3903_v4  ;;  %3645 = vmatpush3.bf16.msra.mxu0 %v3795_v47 }
 0xdfc   : > { %3611 = vmatmul.mubr.msk.bf16.vlgmr.msra.gmra.mxu1 %vm742_vm1, %v2095_v38  ;;  %3646 = vmatprep.subr.bf16.mxu0 %v3903_v4 }
 0xdfd   : > { %3616 = vmatprep.mubr.msk.bf16.mxu1 %vm3904_vm0, %v3903_v4 }
 0xdff   : > { %3647 = vmatpush3.bf16.msra.mxu0 %v3796_v48 }
 0xe00   : > { %3648 = vmatprep.subr.bf16.mxu0 %v3903_v4 }
 0xe03   : > { %3649 = vmatpush3.bf16.msra.mxu0 %v3797_v49 }
 0xe04   : > { %3650 = vmatprep.subr.bf16.mxu0 %v3903_v4 }
 0xeb2   : > { %v2251_v52 = vpop.f32.mrf.mxu0 }
 0xeb3   : > { %v2257_v53 = vsub.f32 %v2251_v52, %v4129_v56  ;;  %v3800_v52 = vld [vmem:[%s4692_s4 + $0x50] sm:$0xff]  }
 0xeb4   : > { %v4484_v54 = vpop.f32.mrf.mxu1  ;;  %v3624_v55 = vpop.f32.mrf.mxu0 }
 0xeb5   : > { %v2258_v57 = vsel %vm796_vm3, %v2257_v53, -inf }
 0xeb6   : > { %2259 = vmax.xlane.f32.xlu0 %v2258_v57  ;;  %v3606_v58 = vpop.f32.mrf.mxu1  ;;  %v2254_v59 = vpop.f32.mrf.mxu0 }
 0xeb7   : > { %v3802_v58 = vld [vmem:[%s4692_s4 + $0x40] sm:$0xff]  }
 0xeb8   : > { %v2090_v25 = vpop.f32.mrf.mxu1  ;;  %v3625_v60 = vpop.f32.mrf.mxu0 }
 0xeba   : > { %v3607_v61 = vpop.f32.mrf.mxu1  ;;  %v2362_v23 = vpop.f32.mrf.mxu0 }
 0xebb   : > { %v2368_v62 = vsub.f32 %v2362_v23, %v4129_v56 }
 0xebc   : > { %v2139_v0 = vpop.f32.mrf.mxu1  ;;  %v3636_v1 = vpop.f32.mrf.mxu0 }
 0xebd   : > { %v2145_v3 = vsub.f32 %v2139_v0, %v4129_v56  ;;  %v2369_v5 = vsel %vm796_vm3, %v2368_v62, -inf }
 0xebe   : > { %2370 = vmax.xlane.f32.xlu0 %v2369_v5  ;;  %v3612_v6 = vpop.f32.mrf.mxu1  ;;  %v2365_v7 = vpop.f32.mrf.mxu0 }
 0xebf   : > { %v2146_v8 = vsel %vm796_vm3, %v2145_v3, -inf }
 0xec0   : > { %v3637_v9 = vpop.f32.mrf.mxu0  ;;  %2147 = vmax.xlane.f32.xlu1 %v2146_v8  ;;  %v2142_v10 = vpop.f32.mrf.mxu1 }
 0xec2   : > { %v3613_v11 = vpop.f32.mrf.mxu1 }
 0xf3f   : > { %v2260_v50 = vpop.xlane.xlu0 %2259 }
 0xf40   : > { %v2261_v12 = vsub.f32 %v2257_v53, %v2260_v50  ;;  %v3801_v53 = vld [vmem:[%s4692_s4 + $0x48] sm:$0xff]  }
 0xf42   : > { %v2262_v13 = vmul.f32 1.442695, %v2261_v12  ;;  %v3271_v12 = vld [vmem:[%s4693_s5 + $0x1] ss:$0 sm:$0xff] }
 0xf44   : > { %3871 = vpow2.f32 %v2262_v13 }
 0xf47   : > { %v2371_v14 = vpop.xlane.xlu0 %2370 }
 0xf48   : > { %v2372_v15 = vsub.f32 %v2368_v62, %v2371_v14 }
 0xf49   : > { %v2148_v16 = vpop.xlane.xlu1 %2147 }
 0xf4a   : > { %v2373_v17 = vmul.f32 1.442695, %v2372_v15  ;;  %v2149_v56 = vsub.f32 %v2145_v3, %v2148_v16 }
 0xf4c   : > { %3873 = vpow2.f32 %v2373_v17  ;;  %v2150_v18 = vmul.f32 1.442695, %v2149_v56 }
 0xf4e   : > { %3875 = vpow2.f32 %v2150_v18  ;;  %v3805_v18 = vld [vmem:[%s4696_s8 + $0xf4] ss:$8 sps:$4 sm:$0xff]  }
 0xf51   : > { %v3872_v19 = vpop.eup %3871 }
 0xf52   : > { %v2264_v21 = vsel %vm796_vm3, %v3872_v19, 0.0 }
 0xf53   : > { %2265 = vadd.xlane.f32.xlu0 %v2264_v21 }
 0xf59   : > { %v3874_v29 = vpop.eup %3873 }
 0xf5a   : > { %v2375_v45 = vsel %vm796_vm3, %v3874_v29, 0.0 }
 0xf5b   : > { %v3876_v22 = vpop.eup %3875  ;;  %2376 = vadd.xlane.f32.xlu1 %v2375_v45 }
 0xf5c   : > { %v2152_v26 = vsel %vm796_vm3, %v3876_v22, 0.0 }
 0xf5f   : > { %2153 = vadd.xlane.f32.xlu1 %v2152_v26  ;;  %v3811_v26 = vld [vmem:[%s4696_s8 + $0xd4] ss:$8 sps:$4 sm:$0xff]  }
 0xf69   : > { %2159 = vrot.lane.b32.xlu0 %v4448_v20, %s3905_s28 }
 0xf70   : > { %2270 = vrot.lane.b32.xlu1 %v4448_v20, %s3906_s15 }
 0xf74   : > { %2381 = vrot.lane.b32.xlu1 %v4448_v20, %s3907_s16 }
 0xfdc   : > { %v2266_v27 = vpop.xlane.xlu0 %2265 }
 0xfe0   : > { %v2160_v24 = vpop.permute.xlu0 %2159 }
 0xfe1   : > { %v2165_v28 = vsel %vm812_vm2, %v2160_v24, 0  ;;  %v3812_v24 = vld [vmem:[%s4696_s8 + $0xc0] ss:$8 sps:$4 sm:$0xff]  }
 0xfe2   : > { %3615 = vmatpush3.bf16.msra.mxu1 %v2165_v28  ;;  %v3814_v28 = vld [vmem:[%s4696_s8 + $0xc4] ss:$8 sps:$4 sm:$0xff]  }
 0xfe3   : > { %3626 = vmatprep.subr.bf16.mxu1 %v3903_v4 }
 0xfe4   : > { %v2377_v31 = vpop.xlane.xlu1 %2376 }
 0xfe8   : > { %v2154_v33 = vpop.xlane.xlu1 %2153 }
 0xfe9   : > { %3877 = vrcp.f32 %v2154_v33  ;;  %v3815_v33 = vld [vmem:[%s4696_s8 + $0xb0] ss:$8 sps:$4 sm:$0xff]  }
 0xfea   : > { %3879 = vrcp.f32 %v2266_v27  ;;  %v3809_v27 = vld [vmem:[%s4696_s8 + $0xd0] ss:$8 sps:$4 sm:$0xff]  }
 0xfeb   : > { %3881 = vrcp.f32 %v2377_v31  ;;  %v3817_v31 = vld [vmem:[%s4696_s8 + $0xb4] ss:$8 sps:$4 sm:$0xff]  }
 0xfec   : > { %v2271_v36 = vpop.permute.xlu1 %2270 }
 0xfed   : > { %v2276_v39 = vsel %vm812_vm2, %v2271_v36, 0  ;;  %v3823_v36 = vld [vmem:[%s4696_s8 + $0x94] ss:$8 sps:$4 sm:$0xff]  }
 0xff0   : > { %v2382_v40 = vpop.permute.xlu1 %2381 }
 0xff1   : > { %v2387_v43 = vsel %vm812_vm2, %v2382_v40, 0 }
 0xff6   : > { %v3878_v34 = vpop.eup %3877 }
 0xff7   : > { %v2156_v35 = vmul.f32 %v3878_v34, %v3876_v22  ;;  %v3880_v38 = vpop.eup %3879  ;;  %v3820_v34 = vld [vmem:[%s4696_s8 + $0xa4] ss:$8 sps:$4 sm:$0xff]  }
 0xff8   : > { %v2268_v20 = vmul.f32 %v3880_v38, %v3872_v19  ;;  %v3882_v42 = vpop.eup %3881  ;;  %v3808_v19 = vld [vmem:[%s4696_s8 + $0xe4] ss:$8 sps:$4 sm:$0xff]  }
 0xff9   : > { %v2157_v37 = vpack.c.bf16 %v2156_v35, %v2156_v35  ;;  %v2379_v44 = vmul.f32 %v3882_v42, %v3874_v29  ;;  %v3818_v35 = vld [vmem:[%s4696_s8 + $0xa0] ss:$8 sps:$4 sm:$0xff]   ;;  %v3826_v38 = vld [vmem:[%s4696_s8 + $0x84] ss:$8 sps:$4 sm:$0xff]  }
 0xffa   : > { %v2269_v41 = vpack.c.bf16 %v2268_v20, %v2268_v20 }
 0xffb   : > { %3617 = vmatmul.mubr.msk.bf16.vlgmr.msra.gmra.mxu1 %vm796_vm3, %v2157_v37  ;;  %v2380_v46 = vpack.c.bf16 %v2379_v44, %v2379_v44  ;;  %v3821_v37 = vld [vmem:[%s4696_s8 + $0x90] ss:$8 sps:$4 sm:$0xff]  }
 0xffc   : > { %3627 = vmatpush3.bf16.msra.mxu1 %v2276_v39  ;;  %3628 = vmatprep.mubr.msk.bf16.mxu1 %vm3904_vm0, %v3903_v4  ;;  %v3824_v39 = vld [vmem:[%s4696_s8 + $0x80] ss:$8 sps:$4 sm:$0xff]  }
 0xffd   : > { %3638 = vmatprep.subr.bf16.mxu1 %v3903_v4 }
0x1003   : > { %3629 = vmatmul.mubr.msk.bf16.vlgmr.msra.gmra.mxu1 %vm796_vm3, %v2269_v41 }
0x1004   : > { %3639 = vmatpush3.bf16.msra.mxu1 %v2387_v43  ;;  %3640 = vmatprep.mubr.msk.bf16.mxu1 %vm3904_vm0, %v3903_v4  ;;  %v3281_v43 = vld [vmem:[%s4694_s6 + $0x1] ss:$0 sm:$0xff] }
0x1005   : > { %2699 = vmatprep.subr.bf16.mxu1 %v3805_v18 }
0x100b   : > { %3641 = vmatmul.mubr.msk.bf16.vlgmr.msra.gmra.mxu1 %vm796_vm3, %v2380_v46  ;;  %v3283_v46 = vld [vmem:[%s4695_s7 + $0x1] ss:$0 sm:$0xff] }
0x100c   : > { %2731 = vmatprep.mubr.bf16.mxu1 %v3902_v2  ;;  %v3798_v2 = vld [vmem:[%s4692_s4 + $0x60] sm:$0xff]  }
0x100d   : > { %3651 = vmatpush3.bf16.msra.mxu0 %v3798_v2  ;;  %v3827_v2 = vld [vmem:[%s4698_s10 + $0xf8] sm:$0xff]  }
0x100e   : > { %3652 = vmatprep.subr.bf16.mxu0 %v3903_v4 }
0x1011   : > { %3653 = vmatpush3.bf16.msra.mxu0 %v3799_v51  ;;  %v3828_v51 = vld [vmem:[%s4698_s10 + $0xb8] sm:$0xff]  }
0x1012   : > { %3654 = vmatprep.subr.bf16.mxu0 %v3903_v4 }
0x1015   : > { %3655 = vmatpush3.bf16.msra.mxu0 %v3800_v52  ;;  %v3829_v52 = vld [vmem:[%s4698_s10 + $0xf0] sm:$0xff]  }
0x1016   : > { %3656 = vmatprep.subr.bf16.mxu0 %v3903_v4 }
0x1019   : > { %3657 = vmatpush3.bf16.msra.mxu0 %v3801_v53  ;;  %v3830_v53 = vld [vmem:[%s4698_s10 + $0xb0] sm:$0xff]  }
0x101a   : > { %3658 = vmatprep.subr.bf16.mxu0 %v3903_v4 }
0x101d   : > { %3659 = vmatpush3.bf16.msra.mxu0 %v3802_v58  ;;  %v3834_v58 = vld [vmem:[%s4698_s10 + $0xa0] sm:$0xff]  }
0x101e   : > { %3464 = vmatprep.subr.bf16.mxu0 %v3827_v2 }
0x10bb   : > { %v2201_v55 = vpop.f32.mrf.mxu1 }
0x10bc   : > { %2430 = vrot.lane.b32.xlu0 %v2201_v55, %s3907_s16  ;;  %v3832_v55 = vld [vmem:[%s4698_s10 + $0xa8] sm:$0xff]   ;;  %s474_s16 = scalar_lea.vmem %s4702_s14, %s4704_s30 }
0x10bd   : > { %v3618_v57 = vpop.f32.mrf.mxu1 }
0x10be   : > { %v3833_v57 = vld [vmem:[%s4698_s10 + $0xe0] sm:$0xff]  }
0x10bf   : > { %v2204_v59 = vpop.f32.mrf.mxu1 }
0x10c0   : > { %v3835_v59 = vld [vmem:[%s4698_s10 + $0xd8] sm:$0xff]  }
0x10c1   : > { %v3619_v25 = vpop.f32.mrf.mxu1 }
0x10c2   : > { %v3836_v25 = vld [vmem:[%s4698_s10 + $0x98] sm:$0xff]  }
0x10c3   : > { %v2312_v60 = vpop.f32.mrf.mxu1 }
0x10c4   : > { %2434 = vrot.lane.b32.xlu1 %v2312_v60, %s3906_s15  ;;  %v3837_v60 = vld [vmem:[%s4698_s10 + $0xd0] sm:$0xff]  }
0x10c5   : > { %v3630_v61 = vpop.f32.mrf.mxu1 }
0x10c6   : > { %v3838_v61 = vld [vmem:[%s4698_s10 + $0x90] sm:$0xff]  }
0x10c7   : > { %v2315_v23 = vpop.f32.mrf.mxu1 }
0x10c8   : > { %v3839_v23 = vld [vmem:[%s4698_s10 + $0xc8] sm:$0xff]  }
0x10c9   : > { %v3631_v62 = vpop.f32.mrf.mxu1 }
0x10ca   : > { %v3840_v62 = vld [vmem:[%s4698_s10 + $0x88] sm:$0xff]  }
0x10cb   : > { %v2423_v0 = vpop.f32.mrf.mxu1 }
0x10cc   : > { %2438 = vrot.lane.b32.xlu0 %v2423_v0, %s3905_s28  ;;  %v3841_v0 = vld [vmem:[%s4698_s10 + $0xc0] sm:$0xff]  }
0x10cd   : > { %v3642_v1 = vpop.f32.mrf.mxu1 }
0x10ce   : > { %v3842_v1 = vld [vmem:[%s4698_s10 + $0x80] sm:$0xff]  }
0x10cf   : > { %v2426_v3 = vpop.f32.mrf.mxu1 }
0x10d0   : > { %v3300_v3 = vld [vmem:[%s4697_s9 + $0x2] sm:$0x3] }
0x10d1   : > { %v3643_v5 = vpop.f32.mrf.mxu1 }
0x10d2   : > { %v2612_v5 = vrot.slane %v3300_v3, %v4093_v30 }
0x112e   : > { %v2431_v6 = vpop.permute.xlu0 %2430 }
0x112f   : > { %v2441_v8 = vsel %vm742_vm1, %v4484_v54, %v2431_v6  ;;  %v3803_v54 = vld [vmem:[%s4696_s8 + $0xf0] ss:$8 sps:$4 sm:$0xff]   ;;  %v2616_v6 = vrot.slane %v3300_v3, %v4099_v32 }
0x1130   : > { %2700 = vmatpush1.bf16.msra.mxu1 %v3803_v54 }
0x1131   : > { %2701 = vmatprep.subr.bf16.mxu1 %v3808_v19 }
0x1136   : > { %v2435_v7 = vpop.permute.xlu1 %2434 }
0x1137   : > { %v2442_v9 = vsel %vm1205_vm4, %v2441_v8, %v2435_v7 }
0x113e   : > { %v2439_v10 = vpop.permute.xlu0 %2438 }
0x113f   : > { %v2443_v11 = vsel %vm1207_vm5, %v2442_v9, %v2439_v10 }
0x1140   : > { %v2444_v50 = vpack.c.bf16 %v2443_v11, %v2443_v11 }
0x1142   : > { %3661 = vmatmul.mubr.bf16.vlgmr.msra.gmra.mxu0 %v2444_v50 }
0x1143   : > { %3465 = vmatpush3.bf16.msra.mxu0 %v3828_v51 }
0x1144   : > { %3466 = vmatprep.subr.bf16.mxu0 %v3829_v52  ;;  %v3370_v52 = vld [vmem:[%s4701_s13 + $0x1] ss:$0 sm:$0xff] }
0x1147   : > { %3467 = vmatpush3.bf16.msra.mxu0 %v3830_v53 }
0x1202   : > { %v2552_v13 = vpop.f32.mrf.mxu0 }
0x1203   : > { %v2553_v14 = vadd.f32 %v3271_v12, %v2552_v13 }
0x1204   : > { %v3662_v15 = vpop.f32.mrf.mxu0 }
0x1205   : > { %v2558_v16 = vadd.f32 %v2553_v14, %v4431_v63  ;;  %v3806_v63 = vld [vmem:[%s4696_s8 + $0xe0] ss:$8 sps:$4 sm:$0xff]  }
0x1206   : > { %v2555_v17 = vpop.f32.mrf.mxu0  ;;  %2702 = vmatpush1.bf16.msra.mxu1 %v3806_v63 }
0x1207   : > { %2559 = vadd.xlane.f32.xlu1 %v2558_v16  ;;  %2703 = vmatprep.subr.bf16.mxu1 %v3811_v26 }
0x1208   : > { %v3663_v56 = vpop.f32.mrf.mxu0 }
0x120a   : > { %2704 = vmatpush1.bf16.msra.mxu1 %v3809_v27 }
0x120b   : > { %2705 = vmatprep.subr.bf16.mxu1 %v3814_v28 }
0x120e   : > { %2706 = vmatpush1.bf16.msra.mxu1 %v3812_v24 }
0x120f   : > { %2707 = vmatprep.subr.bf16.mxu1 %v3817_v31  ;;  %v3350_v31 = vld [vmem:[%s4699_s11 + $0x1] ss:$0 sm:$0xff] }
0x1212   : > { %2708 = vmatpush1.bf16.msra.mxu1 %v3815_v33 }
0x1213   : > { %2709 = vmatprep.subr.bf16.mxu1 %v3820_v34 }
0x1216   : > { %2710 = vmatpush1.bf16.msra.mxu1 %v3818_v35 }
0x1217   : > { %2711 = vmatprep.subr.bf16.mxu1 %v3823_v36 }
0x121a   : > { %2712 = vmatpush1.bf16.msra.mxu1 %v3821_v37 }
0x121b   : > { %2713 = vmatprep.subr.bf16.mxu1 %v3826_v38 }
0x121e   : > { %2714 = vmatpush1.bf16.msra.mxu1 %v3824_v39 }
0x121f   : > { %3664 = vmatprep.subr.mxu1 %v3903_v4 }
0x1290   : > { %v2560_v21 = vpop.xlane.xlu1 %2559 }
0x1291   : > { %v2561_v29 = vmul.f32 0.0078125, %v2560_v21 }
0x1293   : > { %v2562_v45 = vsub.f32 %v2558_v16, %v2561_v29 }
0x1295   : > { %v2563_v22 = vmul.f32 %v2562_v45, %v2562_v45 }
0x1297   : > { %2564 = vadd.xlane.f32.xlu0 %v2563_v22 }
0x1320   : > { %v2565_v20 = vpop.xlane.xlu0 %2564 }
0x1321   : > { %v2566_v40 = vmul.f32 0.0078125, %v2565_v20 }
0x1323   : > { %v2567_v41 = vadd.f32 1e-05, %v2566_v40 }
0x1325   : > { %3883 = vrsqrt.f32 %v2567_v41 }
0x1332   : > { %v3884_v42 = vpop.eup %3883 }
0x1333   : > { %v2569_v44 = vmul.f32 %v3884_v42, %v2562_v45  ;;  %v3893_v42 = vld [vmem:[%s4125_s19] sm:$0x1] }
0x1335   : > { %v2578_v47 = vmul.f32 %v3281_v43, %v2569_v44  ;;  %v2967_v43 = vsub.f32 1.0, %v3893_v42 }
0x1337   : > { %v4610_v48 = vadd.f32 %v3283_v46, %v2578_v47  ;;  %v2969_v44 = vsel %vm2968_vm6, %v2967_v43, 0.0 }
0x1339   : > { %v2588_v49 = vpack.c.bf16 %v4610_v48, %v4610_v48 }
0x133b   : > { %2732 = vmatmul.mubr.bf16.vlgmr.msra.gmra.mxu1 %v2588_v49 }
0x133c   : > { %3666 = vmatprep.mubr.msk.f32.mxu1 %vm3904_vm0, %v3903_v4  ;;  %v3831_v4 = vld [vmem:[%s4698_s10 + $0xe8] sm:$0xff]  }
0x133d   : > { %3468 = vmatprep.subr.bf16.mxu0 %v3831_v4 }
0x133e   : > { %3469 = vmatpush3.bf16.msra.mxu0 %v3832_v55 }
0x133f   : > { %3470 = vmatprep.subr.bf16.mxu0 %v3833_v57 }
0x1342   : > { %3471 = vmatpush3.bf16.msra.mxu0 %v3834_v58 }
0x1343   : > { %3472 = vmatprep.subr.bf16.mxu0 %v3835_v59 }
0x1346   : > { %3473 = vmatpush3.bf16.msra.mxu0 %v3836_v25 }
0x1347   : > { %3474 = vmatprep.subr.bf16.mxu0 %v3837_v60 }
0x134a   : > { %3475 = vmatpush3.bf16.msra.mxu0 %v3838_v61 }
0x134b   : > { %3476 = vmatprep.subr.bf16.mxu0 %v3839_v23 }
0x134e   : > { %3477 = vmatpush3.bf16.msra.mxu0 %v3840_v62 }
0x134f   : > { %3478 = vmatprep.subr.bf16.mxu0 %v3841_v0 }
0x1352   : > { %3479 = vmatpush3.bf16.msra.mxu0 %v3842_v1 }
0x13fb   : > { %v2733_v7 = vpop.f32.mrf.mxu1 }
0x13fc   : > { %v2734_v8 = vadd.f32 %v2733_v7, %v2612_v5 }
0x13fd   : > { %v2735_v9 = vpop.f32.mrf.mxu1 }
0x13fe   : > { %v2740_v10 = vmul.f32 %v2734_v8, %v2734_v8  ;;  %v2736_v11 = vadd.f32 %v2735_v9, %v2616_v6 }
0x13ff   : > { %v2737_v50 = vpop.f32.mrf.mxu1 }
0x1400   : > { %v2742_v12 = vmul.f32 %v2740_v10, %v2734_v8  ;;  %v2741_v13 = vmul.f32 %v2736_v11, %v2736_v11 }
0x1401   : > { %v2738_v14 = vpop.f32.mrf.mxu1 }
0x1402   : > { %v2744_v15 = vmul.f32 0.044715, %v2742_v12  ;;  %v2743_v16 = vmul.f32 %v2741_v13, %v2736_v11 }
0x1404   : > { %v2746_v17 = vadd.f32 %v2744_v15, %v2734_v8  ;;  %v2745_v56 = vmul.f32 0.044715, %v2743_v16 }
0x1406   : > { %v2748_v54 = vmul.f32 0.7978846, %v2746_v17  ;;  %v2747_v18 = vadd.f32 %v2745_v56, %v2736_v11 }
0x1408   : > { %3885 = vtanh.f32 %v2748_v54  ;;  %v2749_v19 = vmul.f32 0.7978846, %v2747_v18 }
0x140a   : > { %3887 = vtanh.f32 %v2749_v19 }
0x1415   : > { %v3886_v30 = vpop.eup %3885 }
0x1416   : > { %v2752_v32 = vadd.f32 1.0, %v3886_v30 }
0x1417   : > { %v3888_v63 = vpop.eup %3887 }
0x1418   : > { %v2753_v21 = vadd.f32 1.0, %v3888_v63  ;;  %v2754_v29 = vmul.f32 0.5, %v2752_v32 }
0x141a   : > { %v2755_v45 = vmul.f32 0.5, %v2753_v21  ;;  %v2756_v22 = vmul.f32 %v2754_v29, %v2734_v8 }
0x141c   : > { %v2757_v26 = vmul.f32 %v2755_v45, %v2736_v11  ;;  %v2758_v24 = vpack.c.bf16 %v2756_v22, %v2756_v22 }
0x141e   : > { %v2759_v27 = vpack.c.bf16 %v2757_v26, %v2757_v26 }
0x1420   : > { %2929 = vmatprep.mubr.bf16.mxu0 %v2759_v27 }
0x1421   : > { %2930 = vmatmul.mubr.bf16.vlgmr.msra.gmra.mxu0 %v2758_v24 }
0x14e1   : > { %v3480_v28 = vpop.f32.mrf.mxu0 }
0x14e3   : > { %v3481_v33 = vpop.f32.mrf.mxu0 }
0x14e4   : > { %v3482_v34 = vadd.f32 %v3481_v33, %v3480_v28 }
0x14e5   : > { %v3483_v35 = vpop.f32.mrf.mxu0 }
0x14e6   : > { %v2932_v36 = vadd.f32 %v3482_v34, %v3350_v31 }
0x14e7   : > { %v3484_v37 = vpop.f32.mrf.mxu0 }
0x14e8   : > { %v2937_v38 = vadd.f32 %v2932_v36, %v4610_v48  ;;  %v3368_v48 = vld [vmem:[%s4700_s12 + $0x1] ss:$0 sm:$0xff] }
0x14ea   : > { %2938 = vadd.xlane.f32.xlu0 %v2937_v38 }
0x14ee   : > { %2970 = vadd.xlane.f32.xlu0 %v2969_v44 }
0x1573   : > { %v2939_v39 = vpop.xlane.xlu0 %2938 }
0x1574   : > { %v2940_v20 = vmul.f32 0.0078125, %v2939_v39 }
0x1576   : > { %v2941_v40 = vsub.f32 %v2937_v38, %v2940_v20 }
0x1577   : > { %v2971_v55 = vpop.xlane.xlu0 %2970 }
0x1578   : > { %v2942_v41 = vmul.f32 %v2941_v40, %v2941_v40  ;;  %v2972_v57 = vmax.f32 %v2971_v55, 1.0 }
0x157a   : > { %2943 = vadd.xlane.f32.xlu1 %v2942_v41 }
0x1603   : > { %v2944_v46 = vpop.xlane.xlu1 %2943 }
0x1604   : > { %v2945_v47 = vmul.f32 0.0078125, %v2944_v46 }
0x1606   : > { %v2946_v49 = vadd.f32 1e-05, %v2945_v47 }
0x1608   : > { %3889 = vrsqrt.f32 %v2946_v49 }
0x1609   : > { %3891 = vrcp.f32 %v2972_v57 }
0x1615   : > { %v3890_v2 = vpop.eup %3889 }
0x1616   : > { %v2948_v51 = vmul.f32 %v3890_v2, %v2941_v40  ;;  %v3892_v58 = vpop.eup %3891 }
0x1618   : > { %v2957_v53 = vmul.f32 %v3368_v48, %v2948_v51 }
0x161a   : > { %v2966_v4 = vadd.f32 %v3370_v52, %v2957_v53 }
0x161c   : > { %3665 = vmatpush3.msra.mxu1 %v2966_v4 }
0x161d   : > { %3667 = vmatmul.mubr.msk.f32.vlgmr.msra.gmra.mxu1 %vm796_vm3, %v2967_v43 }
0x16dd   : > { %v3042_v59 = vpop.f32.mrf.mxu1 }
0x16de   : > { %v3047_v25 = vmul.f32 %v3892_v58, %v3042_v59 }
0x16df   : > { %v3668_v60 = vpop.f32.mrf.mxu1 }
0x16e0   : > { %3048 = vst [vmem:[%s474_s16] sm:$0x1] %v3047_v25 }
0x16e1 PF: > { %s24_s29 = sadd.s32 1, %s3900_s29  }
0x16e2   : > { %p21_p4 = scmp.ge.s32.totalorder %s24_s29, 4  }
0x16e4   :  { %23 = sbr.rel (!%p21_p4) target bundleno = 1 (0x1), region = 121 }

// kernel: forward.7
= control target key start
LH: loop header
LB: loop body
LE: loop exit
PB: predicated region body
PF: predicated region fallthrough
CT: control target
= control target key end

     0   :  { %s8190_s0 = inlined_call_operand.vmem [shape: bf16[2,3136], index: 0, kind: input, shape index: {}]   ;;  %s8191_s1 = inlined_call_operand.vmem [shape: f32[2,128], index: 1, kind: input, shape index: {}]   ;;  %s8192_s2 = inlined_call_operand.vmem [shape: bf16[3136,256], index: 2, kind: input, shape index: {}]   ;;  %s8193_s3 = inlined_call_operand.vmem [shape: f32[1,256], index: 3, kind: input, shape index: {}]   ;;  %s8194_s4 = inlined_call_operand.vmem [shape: bf16[128,256], index: 4, kind: input, shape index: {}]   ;;  %s8195_s5 = inlined_call_operand.vmem [shape: f32[1,256], index: 5, kind: input, shape index: {}]   ;;  %s8196_s6 = inlined_call_operand.vmem [shape: bf16[256,256], index: 6, kind: input, shape index: {}]   ;;  %s8197_s7 = inlined_call_operand.vmem [shape: bf16[256,256], index: 7, kind: input, shape index: {}]   ;;  %s8198_s8 = inlined_call_operand.vmem [shape: f32[1,256], index: 8, kind: input, shape index: {}]   ;;  %s8199_s9 = inlined_call_operand.vmem [shape: bf16[256,256], index: 9, kind: input, shape index: {}]   ;;  %s8200_s10 = inlined_call_operand.vmem [shape: f32[1,256], index: 10, kind: input, shape index: {}]   ;;  %s8201_s11 = inlined_call_operand.vmem [shape: bf16[256,128], index: 11, kind: input, shape index: {}]   ;;  %s8202_s12 = inlined_call_operand.vmem [shape: f32[1,128], index: 12, kind: input, shape index: {}]   ;;  %s8203_s13 = inlined_call_operand.vmem [shape: bf16[128,10], index: 13, kind: input, shape index: {}]   ;;  %s8204_s14 = inlined_call_operand.vmem [shape: f32[1,10], index: 14, kind: input, shape index: {}]   ;;  %s8205_s15 = inlined_call_operand.vmem [shape: bf16[256,128], index: 15, kind: input, shape index: {}]   ;;  %s8206_s16 = inlined_call_operand.vmem [shape: f32[1,128], index: 16, kind: input, shape index: {}]   ;;  %s8207_s17 = inlined_call_operand.vmem [shape: bf16[128,10], index: 17, kind: input, shape index: {}]   ;;  %s8208_s18 = inlined_call_operand.vmem [shape: f32[1,10], index: 18, kind: input, shape index: {}]   ;;  %s8209_s19 = inlined_call_operand.<no memory space> [shape: f32[1,1], index: 19, kind: input, shape index: {}]   ;;  %s8210_s20 = inlined_call_operand.hbm [shape: f32[2,10], index: 20, kind: output, shape index: {}]  }
   0x1   :  { %8214 = sst [smem:[#allocation6_spill]] %s8190_s0 }
   0x2   :  { %8215 = sst [smem:[#allocation7_spill]] %s8191_s1 }
   0x3   :  { %8216 = sst [smem:[#allocation8_spill]] %s8192_s2 }
   0x4   :  { %8217 = sst [smem:[#allocation9_spill]] %s8193_s3 }
   0x5   :  { %8218 = sst [smem:[#allocation10_spill]] %s8194_s4 }
   0x6   :  { %s8219_s23 = sld [smem:[#allocation8_spill]]  ;;  %v468_v36 = vlaneseq  ;;  %v6242_v37 = vmov 1966171168  }
   0x7   :  { %v484_v38 = vunpack.c.l.s4 %v6242_v37  ;;  %s8220_s29 = sld [smem:[#allocation6_spill]] }
   0x8   :  { %v6469_v42 = vshrl.u32 %v468_v36, 7  ;;  %s8221_s27 = sld [smem:[#allocation9_spill]] }
   0x9   :  { %v485_v43 = vunpack.c.0.s8 %v484_v38 }
   0xb   :  { %v6487_v49 = vsub.s32 %v485_v43, %v6469_v42 }
   0xc   :  { %v5393_v0 = vld [vmem:[%s8219_s23 + $0x74] ss:$8 sps:$4 sm:$0xff]   ;;  %v5397_v2 = vld [vmem:[%s8219_s23 + $0x70] ss:$8 sps:$4 sm:$0xff]   ;;  %v5399_v4 = vld [vmem:[%s8219_s23 + $0x64] ss:$8 sps:$4 sm:$0xff]  }
   0xd   :  { %v5395_v1 = vld [vmem:[%s8219_s23 + $0x174] ss:$8 sps:$4 sm:$0xff]   ;;  %2631 = vmatprep.subr.bf16.mxu0 %v5393_v0  ;;  %v5398_v3 = vld [vmem:[%s8219_s23 + $0x170] ss:$8 sps:$4 sm:$0xff]   ;;  %v5401_v5 = vld [vmem:[%s8219_s23 + $0x164] ss:$8 sps:$4 sm:$0xff]  }
   0xe   :  { %2672 = vmatprep.subr.bf16.mxu1 %v5395_v1  ;;  %2632 = vmatpush1.bf16.msra.mxu0 %v5397_v2  ;;  %v5403_v6 = vld [vmem:[%s8219_s23 + $0x60] ss:$8 sps:$4 sm:$0xff]   ;;  %v5405_v8 = vld [vmem:[%s8219_s23 + $0x54] ss:$8 sps:$4 sm:$0xff]   ;;  %v5409_v10 = vld [vmem:[%s8219_s23 + $0x50] ss:$8 sps:$4 sm:$0xff]  }
   0xf   :  { %2673 = vmatpush1.bf16.msra.mxu1 %v5398_v3  ;;  %2633 = vmatprep.subr.bf16.mxu0 %v5399_v4  ;;  %v5404_v7 = vld [vmem:[%s8219_s23 + $0x160] ss:$8 sps:$4 sm:$0xff]   ;;  %v5407_v9 = vld [vmem:[%s8219_s23 + $0x154] ss:$8 sps:$4 sm:$0xff]   ;;  %v5410_v11 = vld [vmem:[%s8219_s23 + $0x150] ss:$8 sps:$4 sm:$0xff]  }
  0x10   :  { %2674 = vmatprep.subr.bf16.mxu1 %v5401_v5  ;;  %v5411_v12 = vld [vmem:[%s8219_s23 + $0x44] ss:$8 sps:$4 sm:$0xff]   ;;  %v5415_v14 = vld [vmem:[%s8219_s23 + $0x40] ss:$8 sps:$4 sm:$0xff]   ;;  %v5417_v16 = vld [vmem:[%s8219_s23 + $0x34] ss:$8 sps:$4 sm:$0xff]  }
  0x11   :  { %v5413_v13 = vld [vmem:[%s8219_s23 + $0x144] ss:$8 sps:$4 sm:$0xff]   ;;  %v5416_v15 = vld [vmem:[%s8219_s23 + $0x140] ss:$8 sps:$4 sm:$0xff]   ;;  %v5419_v17 = vld [vmem:[%s8219_s23 + $0x134] ss:$8 sps:$4 sm:$0xff]  }
  0x12   :  { %2634 = vmatpush1.bf16.msra.mxu0 %v5403_v6  ;;  %v5421_v18 = vld [vmem:[%s8219_s23 + $0x30] ss:$8 sps:$4 sm:$0xff]   ;;  %v5423_v20 = vld [vmem:[%s8219_s23 + $0x24] ss:$8 sps:$4 sm:$0xff]   ;;  %v5427_v22 = vld [vmem:[%s8219_s23 + $0x20] ss:$8 sps:$4 sm:$0xff]  }
  0x13   :  { %2675 = vmatpush1.bf16.msra.mxu1 %v5404_v7  ;;  %2635 = vmatprep.subr.bf16.mxu0 %v5405_v8  ;;  %v5422_v19 = vld [vmem:[%s8219_s23 + $0x130] ss:$8 sps:$4 sm:$0xff]   ;;  %v5425_v21 = vld [vmem:[%s8219_s23 + $0x124] ss:$8 sps:$4 sm:$0xff]   ;;  %v5428_v23 = vld [vmem:[%s8219_s23 + $0x120] ss:$8 sps:$4 sm:$0xff]  }
  0x14   :  { %2676 = vmatprep.subr.bf16.mxu1 %v5407_v9  ;;  %v5429_v24 = vld [vmem:[%s8219_s23 + $0x14] ss:$8 sps:$4 sm:$0xff]   ;;  %v5433_v26 = vld [vmem:[%s8219_s23 + $0x10] ss:$8 sps:$4 sm:$0xff]   ;;  %v5435_v28 = vld [vmem:[%s8219_s23 + $0x4] ss:$8 sps:$4 sm:$0xff]  }
  0x15   :  { %v5431_v25 = vld [vmem:[%s8219_s23 + $0x114] ss:$8 sps:$4 sm:$0xff]   ;;  %v5434_v27 = vld [vmem:[%s8219_s23 + $0x110] ss:$8 sps:$4 sm:$0xff]   ;;  %v5437_v29 = vld [vmem:[%s8219_s23 + $0x104] ss:$8 sps:$4 sm:$0xff]  }
  0x16   :  { %2636 = vmatpush1.bf16.msra.mxu0 %v5409_v10  ;;  %v5439_v30 = vld [vmem:[%s8219_s23] ss:$8 sps:$4 sm:$0xff]   ;;  %v5441_v32 = vld [vmem:[%s8219_s23 + $0xf4] ss:$8 sps:$4 sm:$0xff]   ;;  %v5445_v34 = vld [vmem:[%s8219_s23 + $0xf0] ss:$8 sps:$4 sm:$0xff]  }
  0x17   :  { %2677 = vmatpush1.bf16.msra.mxu1 %v5410_v11  ;;  %2637 = vmatprep.subr.bf16.mxu0 %v5411_v12  ;;  %v5440_v31 = vld [vmem:[%s8219_s23 + $0x100] ss:$8 sps:$4 sm:$0xff]   ;;  %v5443_v33 = vld [vmem:[%s8219_s23 + $0x1f4] ss:$8 sps:$4 sm:$0xff]   ;;  %v5446_v35 = vld [vmem:[%s8219_s23 + $0x1f0] ss:$8 sps:$4 sm:$0xff]  }
  0x18   :  { %2678 = vmatprep.subr.bf16.mxu1 %v5413_v13  ;;  %v5447_v39 = vld [vmem:[%s8219_s23 + $0xe4] ss:$8 sps:$4 sm:$0xff]   ;;  %v5451_v41 = vld [vmem:[%s8219_s23 + $0xe0] ss:$8 sps:$4 sm:$0xff]   ;;  %v5453_v45 = vld [vmem:[%s8219_s23 + $0xd4] ss:$8 sps:$4 sm:$0xff]  }
  0x19   :  { %v5449_v40 = vld [vmem:[%s8219_s23 + $0x1e4] ss:$8 sps:$4 sm:$0xff]   ;;  %v5452_v44 = vld [vmem:[%s8219_s23 + $0x1e0] ss:$8 sps:$4 sm:$0xff]   ;;  %v5455_v46 = vld [vmem:[%s8219_s23 + $0x1d4] ss:$8 sps:$4 sm:$0xff]  }
  0x1a   :  { %2638 = vmatpush1.bf16.msra.mxu0 %v5415_v14  ;;  %v5457_v47 = vld [vmem:[%s8219_s23 + $0xd0] ss:$8 sps:$4 sm:$0xff]   ;;  %v5459_v50 = vld [vmem:[%s8219_s23 + $0xc4] ss:$8 sps:$4 sm:$0xff]   ;;  %v5463_v53 = vld [vmem:[%s8219_s23 + $0xc0] ss:$8 sps:$4 sm:$0xff]  }
  0x1b   :  { %2679 = vmatpush1.bf16.msra.mxu1 %v5416_v15  ;;  %2639 = vmatprep.subr.bf16.mxu0 %v5417_v16  ;;  %v5458_v48 = vld [vmem:[%s8219_s23 + $0x1d0] ss:$8 sps:$4 sm:$0xff]   ;;  %v5461_v51 = vld [vmem:[%s8219_s23 + $0x1c4] ss:$8 sps:$4 sm:$0xff]   ;;  %v5464_v55 = vld [vmem:[%s8219_s23 + $0x1c0] ss:$8 sps:$4 sm:$0xff]  }
  0x1c   :  { %2680 = vmatprep.subr.bf16.mxu1 %v5419_v17  ;;  %v68_v52 = vld [vmem:[%s8220_s29] sm:$0xff]  ;;  %v5465_v56 = vld [vmem:[%s8219_s23 + $0xb4] ss:$8 sps:$4 sm:$0xff]   ;;  %v5469_v59 = vld [vmem:[%s8219_s23 + $0xb0] ss:$8 sps:$4 sm:$0xff]  }
  0x1d   :  { %v489_v54 = vrot.slane %v68_v52, %v6487_v49  ;;  %v5467_v57 = vld [vmem:[%s8219_s23 + $0x1b4] ss:$8 sps:$4 sm:$0xff]   ;;  %v5470_v61 = vld [vmem:[%s8219_s23 + $0x1b0] ss:$8 sps:$4 sm:$0xff]   ;;  %v5471_v62 = vld [vmem:[%s8219_s23 + $0xa4] ss:$8 sps:$4 sm:$0xff]   ;;  %v482_v1 = vcombine.high %v68_v52, %v68_v52 }
  0x1e   :  { %2640 = vmatpush1.bf16.msra.mxu0 %v5421_v18  ;;  %v5473_v63 = vld [vmem:[%s8219_s23 + $0x1a4] ss:$8 sps:$4 sm:$0xff]   ;;  %v5475_v2 = vld [vmem:[%s8219_s23 + $0xa0] ss:$8 sps:$4 sm:$0xff]   ;;  %v5477_v4 = vld [vmem:[%s8219_s23 + $0x94] ss:$8 sps:$4 sm:$0xff]  }
  0x1f   :  { %2681 = vmatpush1.bf16.msra.mxu1 %v5422_v19  ;;  %2641 = vmatprep.subr.bf16.mxu0 %v5423_v20  ;;  %v497_v58 = vcombine.high %v489_v54, %v489_v54  ;;  %v5476_v3 = vld [vmem:[%s8219_s23 + $0x1a0] ss:$8 sps:$4 sm:$0xff]   ;;  %v5479_v5 = vld [vmem:[%s8219_s23 + $0x194] ss:$8 sps:$4 sm:$0xff]   ;;  %v6537_v6 = vrot.slane %v482_v1, %v6487_v49  ;;  %v5481_v7 = vld [vmem:[%s8219_s23 + $0x90] ss:$8 sps:$4 sm:$0xff]   ;;  %v505_v13 = vrot.slane %v489_v54, %v6487_v49 }
  0x20   :  { %2682 = vmatprep.subr.bf16.mxu1 %v5425_v21  ;;  %v5482_v8 = vld [vmem:[%s8219_s23 + $0x190] ss:$8 sps:$4 sm:$0xff]   ;;  %v5483_v9 = vld [vmem:[%s8219_s23 + $0x84] ss:$8 sps:$4 sm:$0xff]   ;;  %v5487_v12 = vld [vmem:[%s8219_s23 + $0x80] ss:$8 sps:$4 sm:$0xff]  }
  0x21   :  { %v519_v60 = vrot.slane %v497_v58, %v6487_v49  ;;  %v5485_v10 = vld [vmem:[%s8219_s23 + $0x184] ss:$8 sps:$4 sm:$0xff]   ;;  %v498_v11 = vcombine.high %v6537_v6, %v6537_v6  ;;  %v5488_v14 = vld [vmem:[%s8219_s23 + $0x180] ss:$8 sps:$4 sm:$0xff]   ;;  %v5492_v15 = vld [vmem:[%s8219_s23 + $0x274] ss:$8 sps:$4 sm:$0xff]   ;;  %v527_v18 = vcombine.high %v505_v13, %v505_v13 }
  0x22   :  { %2642 = vmatpush1.bf16.msra.mxu0 %v5427_v22  ;;  %v5495_v16 = vld [vmem:[%s8219_s23 + $0x374] ss:$8 sps:$4 sm:$0xff]   ;;  %v5490_v19 = vld [vmem:[%s8219_s23 + $0x270] ss:$8 sps:$4 sm:$0xff]   ;;  %v5498_v21 = vld [vmem:[%s8219_s23 + $0x264] ss:$8 sps:$4 sm:$0xff]  }
  0x23   :  { %2683 = vmatpush1.bf16.msra.mxu1 %v5428_v23  ;;  %2643 = vmatprep.subr.bf16.mxu0 %v5429_v24  ;;  %v529_v0 = vcombine.high %v519_v60, %v519_v60  ;;  %v526_v17 = vrot.slane %v498_v11, %v6487_v49  ;;  %v5493_v20 = vld [vmem:[%s8219_s23 + $0x370] ss:$8 sps:$4 sm:$0xff]   ;;  %v5501_v22 = vld [vmem:[%s8219_s23 + $0x364] ss:$8 sps:$4 sm:$0xff]   ;;  %v5496_v24 = vld [vmem:[%s8219_s23 + $0x260] ss:$8 sps:$4 sm:$0xff]  }
  0x24   :  { %2684 = vmatprep.subr.bf16.mxu1 %v5431_v25  ;;  %2663 = vmatprep.mubr.bf16.mxu0 %v519_v60  ;;  %v5499_v25 = vld [vmem:[%s8219_s23 + $0x360] ss:$8 sps:$4 sm:$0xff]   ;;  %v5514_v36 = vld [vmem:[%s8219_s23 + $0x230] ss:$8 sps:$4 sm:$0xff]   ;;  %v5522_v38 = vld [vmem:[%s8219_s23 + $0x224] ss:$8 sps:$4 sm:$0xff]  }
  0x25   :  { %2704 = vmatprep.mubr.bf16.mxu1 %v529_v0  ;;  %v530_v23 = vcombine.high %v526_v17, %v526_v17  ;;  %v5517_v37 = vld [vmem:[%s8219_s23 + $0x330] ss:$8 sps:$4 sm:$0xff]   ;;  %v5528_v43 = vld [vmem:[%s8219_s23 + $0x214] ss:$8 sps:$4 sm:$0xff]   ;;  %v5544_v58 = vld [vmem:[%s8219_s23 + $0x2e0] ss:$8 sps:$4 sm:$0xff]  }
  0x26   :  { %2644 = vmatpush1.bf16.msra.mxu0 %v5433_v26  ;;  %v5504_v26 = vld [vmem:[%s8219_s23 + $0x254] ss:$8 sps:$4 sm:$0xff]   ;;  %v5538_v54 = vld [vmem:[%s8219_s23 + $0x2f0] ss:$8 sps:$4 sm:$0xff]   ;;  %v5558_v0 = vld [vmem:[%s8219_s23 + $0x2c4] ss:$8 sps:$4 sm:$0xff]  }
  0x27   :  { %2685 = vmatpush1.bf16.msra.mxu1 %v5434_v27  ;;  %2645 = vmatprep.subr.bf16.mxu0 %v5435_v28  ;;  %v5507_v27 = vld [vmem:[%s8219_s23 + $0x354] ss:$8 sps:$4 sm:$0xff]   ;;  %v5502_v28 = vld [vmem:[%s8219_s23 + $0x250] ss:$8 sps:$4 sm:$0xff]   ;;  %v5561_v1 = vld [vmem:[%s8219_s23 + $0x3c4] ss:$8 sps:$4 sm:$0xff]  }
  0x28   :  { %2686 = vmatprep.subr.bf16.mxu1 %v5437_v29  ;;  %v5505_v29 = vld [vmem:[%s8219_s23 + $0x350] ss:$8 sps:$4 sm:$0xff]   ;;  %v5540_v52 = vld [vmem:[%s8219_s23 + $0x2f4] ss:$8 sps:$4 sm:$0xff]   ;;  %v5568_v11 = vld [vmem:[%s8219_s23 + $0x2a0] ss:$8 sps:$4 sm:$0xff]  }
  0x29   :  { %v5552_v60 = vld [vmem:[%s8219_s23 + $0x2d4] ss:$8 sps:$4 sm:$0xff]  }
  0x2a   :  { %2646 = vmatpush1.bf16.msra.mxu0 %v5439_v30  ;;  %v5510_v30 = vld [vmem:[%s8219_s23 + $0x244] ss:$8 sps:$4 sm:$0xff]  }
  0x2b   :  { %2687 = vmatpush1.bf16.msra.mxu1 %v5440_v31  ;;  %2647 = vmatprep.subr.bf16.mxu0 %v5441_v32  ;;  %v5513_v31 = vld [vmem:[%s8219_s23 + $0x344] ss:$8 sps:$4 sm:$0xff]   ;;  %v5508_v32 = vld [vmem:[%s8219_s23 + $0x240] ss:$8 sps:$4 sm:$0xff]  }
  0x2c   :  { %2688 = vmatprep.subr.bf16.mxu1 %v5443_v33  ;;  %v5511_v33 = vld [vmem:[%s8219_s23 + $0x340] ss:$8 sps:$4 sm:$0xff]  }
  0x2e   :  { %2648 = vmatpush2.bf16.msra.mxu0 %v5445_v34  ;;  %v5516_v34 = vld [vmem:[%s8219_s23 + $0x234] ss:$8 sps:$4 sm:$0xff]  }
  0x2f   :  { %2689 = vmatpush2.bf16.msra.mxu1 %v5446_v35  ;;  %2649 = vmatprep.subr.bf16.mxu0 %v5447_v39  ;;  %v5519_v35 = vld [vmem:[%s8219_s23 + $0x334] ss:$8 sps:$4 sm:$0xff]   ;;  %v5525_v39 = vld [vmem:[%s8219_s23 + $0x324] ss:$8 sps:$4 sm:$0xff]  }
  0x30   :  { %2690 = vmatprep.subr.bf16.mxu1 %v5449_v40  ;;  %v5520_v40 = vld [vmem:[%s8219_s23 + $0x220] ss:$8 sps:$4 sm:$0xff]  }
  0x32   :  { %2650 = vmatpush2.bf16.msra.mxu0 %v5451_v41  ;;  %v5523_v41 = vld [vmem:[%s8219_s23 + $0x320] ss:$8 sps:$4 sm:$0xff]  }
  0x33   :  { %2691 = vmatpush2.bf16.msra.mxu1 %v5452_v44  ;;  %2651 = vmatprep.subr.bf16.mxu0 %v5453_v45  ;;  %v5531_v44 = vld [vmem:[%s8219_s23 + $0x314] ss:$8 sps:$4 sm:$0xff]   ;;  %v5526_v45 = vld [vmem:[%s8219_s23 + $0x210] ss:$8 sps:$4 sm:$0xff]  }
  0x34   :  { %2692 = vmatprep.subr.bf16.mxu1 %v5455_v46  ;;  %v5529_v46 = vld [vmem:[%s8219_s23 + $0x310] ss:$8 sps:$4 sm:$0xff]  }
  0x36   :  { %2652 = vmatpush2.bf16.msra.mxu0 %v5457_v47  ;;  %v5534_v47 = vld [vmem:[%s8219_s23 + $0x204] ss:$8 sps:$4 sm:$0xff]  }
  0x37   :  { %2693 = vmatpush2.bf16.msra.mxu1 %v5458_v48  ;;  %2653 = vmatprep.subr.bf16.mxu0 %v5459_v50  ;;  %v5537_v48 = vld [vmem:[%s8219_s23 + $0x304] ss:$8 sps:$4 sm:$0xff]   ;;  %v5532_v50 = vld [vmem:[%s8219_s23 + $0x200] ss:$8 sps:$4 sm:$0xff]  }
  0x38   :  { %2694 = vmatprep.subr.bf16.mxu1 %v5461_v51  ;;  %v5535_v51 = vld [vmem:[%s8219_s23 + $0x300] ss:$8 sps:$4 sm:$0xff]  }
  0x3a   :  { %2654 = vmatpush2.bf16.msra.mxu0 %v5463_v53  ;;  %v5543_v53 = vld [vmem:[%s8219_s23 + $0x3f4] ss:$8 sps:$4 sm:$0xff]  }
  0x3b   :  { %2695 = vmatpush2.bf16.msra.mxu1 %v5464_v55  ;;  %2655 = vmatprep.subr.bf16.mxu0 %v5465_v56  ;;  %v5541_v55 = vld [vmem:[%s8219_s23 + $0x3f0] ss:$8 sps:$4 sm:$0xff]   ;;  %v5546_v56 = vld [vmem:[%s8219_s23 + $0x2e4] ss:$8 sps:$4 sm:$0xff]  }
  0x3c   :  { %2696 = vmatprep.subr.bf16.mxu1 %v5467_v57  ;;  %v5549_v57 = vld [vmem:[%s8219_s23 + $0x3e4] ss:$8 sps:$4 sm:$0xff]  }
  0x3e   :  { %2656 = vmatpush2.bf16.msra.mxu0 %v5469_v59  ;;  %v5547_v59 = vld [vmem:[%s8219_s23 + $0x3e0] ss:$8 sps:$4 sm:$0xff]  }
  0x3f   :  { %2697 = vmatpush2.bf16.msra.mxu1 %v5470_v61  ;;  %2657 = vmatprep.subr.bf16.mxu0 %v5471_v62  ;;  %v5555_v61 = vld [vmem:[%s8219_s23 + $0x3d4] ss:$8 sps:$4 sm:$0xff]   ;;  %v5550_v62 = vld [vmem:[%s8219_s23 + $0x2d0] ss:$8 sps:$4 sm:$0xff]  }
  0x40   :  { %2698 = vmatprep.subr.bf16.mxu1 %v5473_v63  ;;  %v5553_v63 = vld [vmem:[%s8219_s23 + $0x3d0] ss:$8 sps:$4 sm:$0xff]  }
  0x42   :  { %2658 = vmatpush2.bf16.msra.mxu0 %v5475_v2  ;;  %v5556_v2 = vld [vmem:[%s8219_s23 + $0x2c0] ss:$8 sps:$4 sm:$0xff]  }
  0x43   :  { %2699 = vmatpush2.bf16.msra.mxu1 %v5476_v3  ;;  %2659 = vmatprep.subr.bf16.mxu0 %v5477_v4  ;;  %v5559_v3 = vld [vmem:[%s8219_s23 + $0x3c0] ss:$8 sps:$4 sm:$0xff]   ;;  %v5564_v4 = vld [vmem:[%s8219_s23 + $0x2b4] ss:$8 sps:$4 sm:$0xff]  }
  0x44   :  { %2700 = vmatprep.subr.bf16.mxu1 %v5479_v5  ;;  %v5567_v5 = vld [vmem:[%s8219_s23 + $0x3b4] ss:$8 sps:$4 sm:$0xff]  }
  0x46   :  { %2660 = vmatpush2.bf16.msra.mxu0 %v5481_v7  ;;  %v5562_v7 = vld [vmem:[%s8219_s23 + $0x2b0] ss:$8 sps:$4 sm:$0xff]  }
  0x47   :  { %2701 = vmatpush2.bf16.msra.mxu1 %v5482_v8  ;;  %2661 = vmatprep.subr.bf16.mxu0 %v5483_v9  ;;  %v5565_v8 = vld [vmem:[%s8219_s23 + $0x3b0] ss:$8 sps:$4 sm:$0xff]   ;;  %v5570_v9 = vld [vmem:[%s8219_s23 + $0x2a4] ss:$8 sps:$4 sm:$0xff]  }
  0x48   :  { %2702 = vmatprep.subr.bf16.mxu1 %v5485_v10  ;;  %v5573_v10 = vld [vmem:[%s8219_s23 + $0x3a4] ss:$8 sps:$4 sm:$0xff]  }
  0x4a   :  { %2662 = vmatpush2.bf16.msra.mxu0 %v5487_v12  ;;  %v5571_v12 = vld [vmem:[%s8219_s23 + $0x3a0] ss:$8 sps:$4 sm:$0xff]  }
  0x4b   :  { %2703 = vmatpush2.bf16.msra.mxu1 %v5488_v14  ;;  %2713 = vmatprep.subr.bf16.mxu0 %v5492_v15  ;;  %v5579_v14 = vld [vmem:[%s8219_s23 + $0x394] ss:$8 sps:$4 sm:$0xff]   ;;  %v5574_v15 = vld [vmem:[%s8219_s23 + $0x290] ss:$8 sps:$4 sm:$0xff]  }
  0x4c   :  { %2754 = vmatprep.subr.bf16.mxu1 %v5495_v16  ;;  %v5577_v16 = vld [vmem:[%s8219_s23 + $0x390] ss:$8 sps:$4 sm:$0xff]  }
  0x4d   :  { %2664 = vmatmul.mubr.bf16.vlgmr.msra.gmra.mxu0 %v505_v13  ;;  %v5576_v13 = vld [vmem:[%s8219_s23 + $0x294] ss:$8 sps:$4 sm:$0xff]  }
  0x4e   :  { %2705 = vmatmul.mubr.bf16.vlgmr.msra.gmra.mxu1 %v527_v18  ;;  %2714 = vmatpush1.bf16.msra.mxu0 %v5490_v19  ;;  %v5585_v18 = vld [vmem:[%s8219_s23 + $0x384] ss:$8 sps:$4 sm:$0xff]   ;;  %v5580_v19 = vld [vmem:[%s8219_s23 + $0x280] ss:$8 sps:$4 sm:$0xff]  }
  0x4f   :  { %2755 = vmatpush1.bf16.msra.mxu1 %v5493_v20  ;;  %2715 = vmatprep.subr.bf16.mxu0 %v5498_v21  ;;  %v512_v20 = vrot.slane %v6537_v6, %v6487_v49  ;;  %v5583_v21 = vld [vmem:[%s8219_s23 + $0x380] ss:$8 sps:$4 sm:$0xff]   ;;  %v5586_v6 = vld [vmem:[%s8219_s23 + $0x470] ss:$8 sps:$4 sm:$0xff]  }
  0x50   :  { %2756 = vmatprep.subr.bf16.mxu1 %v5501_v22  ;;  %2745 = vmatprep.mubr.bf16.mxu0 %v526_v17  ;;  %v5582_v17 = vld [vmem:[%s8219_s23 + $0x284] ss:$8 sps:$4 sm:$0xff]   ;;  %v5588_v22 = vld [vmem:[%s8219_s23 + $0x474] ss:$8 sps:$4 sm:$0xff]  }
  0x51   :  { %2786 = vmatprep.mubr.bf16.mxu1 %v530_v23  ;;  %v5591_v23 = vld [vmem:[%s8219_s23 + $0x574] ss:$8 sps:$4 sm:$0xff]  }
  0x52   :  { %2716 = vmatpush1.bf16.msra.mxu0 %v5496_v24  ;;  %v528_v24 = vcombine.high %v512_v20, %v512_v20 }
  0x53   :  { %2757 = vmatpush1.bf16.msra.mxu1 %v5499_v25  ;;  %2717 = vmatprep.subr.bf16.mxu0 %v5504_v26  ;;  %v5589_v25 = vld [vmem:[%s8219_s23 + $0x570] ss:$8 sps:$4 sm:$0xff]   ;;  %v6770_v26 = vld [vmem:[%s8220_s29 + $0x8] sm:$0xff] }
  0x54   :  { %2758 = vmatprep.subr.bf16.mxu1 %v5507_v27  ;;  %v5594_v27 = vld [vmem:[%s8219_s23 + $0x464] ss:$8 sps:$4 sm:$0xff]  }
  0x56   :  { %2718 = vmatpush1.bf16.msra.mxu0 %v5502_v28  ;;  %v5597_v28 = vld [vmem:[%s8219_s23 + $0x564] ss:$8 sps:$4 sm:$0xff]  }
  0x57   :  { %2759 = vmatpush1.bf16.msra.mxu1 %v5505_v29  ;;  %2719 = vmatprep.subr.bf16.mxu0 %v5510_v30  ;;  %v6780_v29 = vrot.slane %v6770_v26, %v6487_v49 }
  0x58   :  { %2760 = vmatprep.subr.bf16.mxu1 %v5513_v31  ;;  %v5592_v31 = vld [vmem:[%s8219_s23 + $0x460] ss:$8 sps:$4 sm:$0xff]  }
  0x59   :  { %v546_v30 = vcombine.high %v6780_v29, %v6780_v29 }
  0x5a   :  { %2720 = vmatpush1.bf16.msra.mxu0 %v5508_v32  ;;  %v5595_v32 = vld [vmem:[%s8219_s23 + $0x560] ss:$8 sps:$4 sm:$0xff]  }
  0x5b   :  { %2761 = vmatpush1.bf16.msra.mxu1 %v5511_v33  ;;  %2721 = vmatprep.subr.bf16.mxu0 %v5516_v34  ;;  %v5600_v33 = vld [vmem:[%s8219_s23 + $0x454] ss:$8 sps:$4 sm:$0xff]  }
  0x5c   :  { %2762 = vmatprep.subr.bf16.mxu1 %v5519_v35  ;;  %v5603_v34 = vld [vmem:[%s8219_s23 + $0x554] ss:$8 sps:$4 sm:$0xff]   ;;  %v568_v35 = vrot.slane %v546_v30, %v6487_v49 }
  0x5e   :  { %2722 = vmatpush1.bf16.msra.mxu0 %v5514_v36  ;;  %v578_v36 = vcombine.high %v568_v35, %v568_v35 }
  0x5f   :  { %2763 = vmatpush1.bf16.msra.mxu1 %v5517_v37  ;;  %2723 = vmatprep.subr.bf16.mxu0 %v5522_v38  ;;  %v5598_v37 = vld [vmem:[%s8219_s23 + $0x450] ss:$8 sps:$4 sm:$0xff]  }
  0x60   :  { %2764 = vmatprep.subr.bf16.mxu1 %v5525_v39  ;;  %v5601_v38 = vld [vmem:[%s8219_s23 + $0x550] ss:$8 sps:$4 sm:$0xff]   ;;  %v5606_v39 = vld [vmem:[%s8219_s23 + $0x444] ss:$8 sps:$4 sm:$0xff]  }
  0x62   :  { %2724 = vmatpush1.bf16.msra.mxu0 %v5520_v40  ;;  %v5609_v40 = vld [vmem:[%s8219_s23 + $0x544] ss:$8 sps:$4 sm:$0xff]  }
  0x63   :  { %2765 = vmatpush1.bf16.msra.mxu1 %v5523_v41  ;;  %2725 = vmatprep.subr.bf16.mxu0 %v5528_v43  ;;  %v5604_v41 = vld [vmem:[%s8219_s23 + $0x440] ss:$8 sps:$4 sm:$0xff]  }
  0x64   :  { %2766 = vmatprep.subr.bf16.mxu1 %v5531_v44  ;;  %v5607_v43 = vld [vmem:[%s8219_s23 + $0x540] ss:$8 sps:$4 sm:$0xff]   ;;  %v5612_v44 = vld [vmem:[%s8219_s23 + $0x434] ss:$8 sps:$4 sm:$0xff]  }
  0x66   :  { %2726 = vmatpush1.bf16.msra.mxu0 %v5526_v45  ;;  %v5615_v45 = vld [vmem:[%s8219_s23 + $0x534] ss:$8 sps:$4 sm:$0xff]  }
  0x67   :  { %2767 = vmatpush1.bf16.msra.mxu1 %v5529_v46  ;;  %2727 = vmatprep.subr.bf16.mxu0 %v5534_v47  ;;  %v5610_v46 = vld [vmem:[%s8219_s23 + $0x430] ss:$8 sps:$4 sm:$0xff]  }
  0x68   :  { %2768 = vmatprep.subr.bf16.mxu1 %v5537_v48  ;;  %v5613_v47 = vld [vmem:[%s8219_s23 + $0x530] ss:$8 sps:$4 sm:$0xff]   ;;  %v5618_v48 = vld [vmem:[%s8219_s23 + $0x424] ss:$8 sps:$4 sm:$0xff]  }
  0x6a   :  { %2728 = vmatpush1.bf16.msra.mxu0 %v5532_v50  ;;  %v5621_v50 = vld [vmem:[%s8219_s23 + $0x524] ss:$8 sps:$4 sm:$0xff]  }
  0x6b   :  { %2769 = vmatpush1.bf16.msra.mxu1 %v5535_v51  ;;  %2729 = vmatprep.subr.bf16.mxu0 %v5540_v52  ;;  %v5616_v51 = vld [vmem:[%s8219_s23 + $0x420] ss:$8 sps:$4 sm:$0xff]  }
  0x6c   :  { %2770 = vmatprep.subr.bf16.mxu1 %v5543_v53  ;;  %v5619_v52 = vld [vmem:[%s8219_s23 + $0x520] ss:$8 sps:$4 sm:$0xff]   ;;  %v5624_v53 = vld [vmem:[%s8219_s23 + $0x414] ss:$8 sps:$4 sm:$0xff]  }
  0x6e   :  { %2730 = vmatpush2.bf16.msra.mxu0 %v5538_v54  ;;  %v5627_v54 = vld [vmem:[%s8219_s23 + $0x514] ss:$8 sps:$4 sm:$0xff]  }
  0x6f   :  { %2771 = vmatpush2.bf16.msra.mxu1 %v5541_v55  ;;  %2731 = vmatprep.subr.bf16.mxu0 %v5546_v56  ;;  %v5622_v55 = vld [vmem:[%s8219_s23 + $0x410] ss:$8 sps:$4 sm:$0xff]  }
  0x70   :  { %2772 = vmatprep.subr.bf16.mxu1 %v5549_v57  ;;  %v5625_v56 = vld [vmem:[%s8219_s23 + $0x510] ss:$8 sps:$4 sm:$0xff]   ;;  %v5630_v57 = vld [vmem:[%s8219_s23 + $0x404] ss:$8 sps:$4 sm:$0xff]  }
  0x72   :  { %2732 = vmatpush2.bf16.msra.mxu0 %v5544_v58  ;;  %v5633_v58 = vld [vmem:[%s8219_s23 + $0x504] ss:$8 sps:$4 sm:$0xff]  }
  0x73   :  { %2773 = vmatpush2.bf16.msra.mxu1 %v5547_v59  ;;  %2733 = vmatprep.subr.bf16.mxu0 %v5552_v60  ;;  %v5628_v59 = vld [vmem:[%s8219_s23 + $0x400] ss:$8 sps:$4 sm:$0xff]  }
  0x74   :  { %2774 = vmatprep.subr.bf16.mxu1 %v5555_v61  ;;  %v5631_v60 = vld [vmem:[%s8219_s23 + $0x500] ss:$8 sps:$4 sm:$0xff]   ;;  %v5636_v61 = vld [vmem:[%s8219_s23 + $0x4f4] ss:$8 sps:$4 sm:$0xff]  }
  0x76   :  { %2734 = vmatpush2.bf16.msra.mxu0 %v5550_v62  ;;  %v5639_v62 = vld [vmem:[%s8219_s23 + $0x5f4] ss:$8 sps:$4 sm:$0xff]  }
  0x77   :  { %2775 = vmatpush2.bf16.msra.mxu1 %v5553_v63  ;;  %2735 = vmatprep.subr.bf16.mxu0 %v5558_v0  ;;  %v5634_v63 = vld [vmem:[%s8219_s23 + $0x4f0] ss:$8 sps:$4 sm:$0xff]  }
  0x78   :  { %2776 = vmatprep.subr.bf16.mxu1 %v5561_v1  ;;  %v5637_v0 = vld [vmem:[%s8219_s23 + $0x5f0] ss:$8 sps:$4 sm:$0xff]   ;;  %v5642_v1 = vld [vmem:[%s8219_s23 + $0x4e4] ss:$8 sps:$4 sm:$0xff]  }
  0x7a   :  { %2736 = vmatpush2.bf16.msra.mxu0 %v5556_v2  ;;  %v5645_v2 = vld [vmem:[%s8219_s23 + $0x5e4] ss:$8 sps:$4 sm:$0xff]  }
  0x7b   :  { %2777 = vmatpush2.bf16.msra.mxu1 %v5559_v3  ;;  %2737 = vmatprep.subr.bf16.mxu0 %v5564_v4  ;;  %v5640_v3 = vld [vmem:[%s8219_s23 + $0x4e0] ss:$8 sps:$4 sm:$0xff]  }
  0x7c   :  { %2778 = vmatprep.subr.bf16.mxu1 %v5567_v5  ;;  %v5643_v4 = vld [vmem:[%s8219_s23 + $0x5e0] ss:$8 sps:$4 sm:$0xff]   ;;  %v5648_v5 = vld [vmem:[%s8219_s23 + $0x4d4] ss:$8 sps:$4 sm:$0xff]  }
  0x7e   :  { %2738 = vmatpush2.bf16.msra.mxu0 %v5562_v7  ;;  %v5651_v7 = vld [vmem:[%s8219_s23 + $0x5d4] ss:$8 sps:$4 sm:$0xff]  }
  0x7f   :  { %2779 = vmatpush2.bf16.msra.mxu1 %v5565_v8  ;;  %2739 = vmatprep.subr.bf16.mxu0 %v5570_v9  ;;  %v5646_v8 = vld [vmem:[%s8219_s23 + $0x4d0] ss:$8 sps:$4 sm:$0xff]  }
  0x80   :  { %2780 = vmatprep.subr.bf16.mxu1 %v5573_v10  ;;  %v5649_v9 = vld [vmem:[%s8219_s23 + $0x5d0] ss:$8 sps:$4 sm:$0xff]   ;;  %v5654_v10 = vld [vmem:[%s8219_s23 + $0x4c4] ss:$8 sps:$4 sm:$0xff]  }
  0x82   :  { %2740 = vmatpush2.bf16.msra.mxu0 %v5568_v11  ;;  %v5657_v11 = vld [vmem:[%s8219_s23 + $0x5c4] ss:$8 sps:$4 sm:$0xff]  }
  0x83   :  { %2781 = vmatpush2.bf16.msra.mxu1 %v5571_v12  ;;  %2741 = vmatprep.subr.bf16.mxu0 %v5576_v13  ;;  %v5652_v12 = vld [vmem:[%s8219_s23 + $0x4c0] ss:$8 sps:$4 sm:$0xff]  }
  0x84   :  { %2782 = vmatprep.subr.bf16.mxu1 %v5579_v14  ;;  %v5655_v13 = vld [vmem:[%s8219_s23 + $0x5c0] ss:$8 sps:$4 sm:$0xff]   ;;  %v5660_v14 = vld [vmem:[%s8219_s23 + $0x4b4] ss:$8 sps:$4 sm:$0xff]  }
  0x86   :  { %2742 = vmatpush2.bf16.msra.mxu0 %v5574_v15  ;;  %v5663_v15 = vld [vmem:[%s8219_s23 + $0x5b4] ss:$8 sps:$4 sm:$0xff]  }
  0x87   :  { %2783 = vmatpush2.bf16.msra.mxu1 %v5577_v16  ;;  %2743 = vmatprep.subr.bf16.mxu0 %v5582_v17  ;;  %v5658_v16 = vld [vmem:[%s8219_s23 + $0x4b0] ss:$8 sps:$4 sm:$0xff]  }
  0x88   :  { %2784 = vmatprep.subr.bf16.mxu1 %v5585_v18  ;;  %v5661_v17 = vld [vmem:[%s8219_s23 + $0x5b0] ss:$8 sps:$4 sm:$0xff]   ;;  %v5666_v18 = vld [vmem:[%s8219_s23 + $0x4a4] ss:$8 sps:$4 sm:$0xff]  }
  0x8a   :  { %2744 = vmatpush2.bf16.msra.mxu0 %v5580_v19  ;;  %v5669_v19 = vld [vmem:[%s8219_s23 + $0x5a4] ss:$8 sps:$4 sm:$0xff]  }
  0x8b   :  { %2785 = vmatpush2.bf16.msra.mxu1 %v5583_v21  ;;  %2795 = vmatprep.subr.bf16.mxu0 %v5588_v22  ;;  %v5664_v21 = vld [vmem:[%s8219_s23 + $0x4a0] ss:$8 sps:$4 sm:$0xff]  }
  0x8c   :  { %2836 = vmatprep.subr.bf16.mxu1 %v5591_v23  ;;  %v5667_v22 = vld [vmem:[%s8219_s23 + $0x5a0] ss:$8 sps:$4 sm:$0xff]   ;;  %v5672_v23 = vld [vmem:[%s8219_s23 + $0x494] ss:$8 sps:$4 sm:$0xff]  }
  0x8d   :  { %2746 = vmatmul.mubr.bf16.vlgmr.msra.gmra.mxu0 %v512_v20  ;;  %v531_v20 = vcombine.high %v6770_v26, %v6770_v26  ;;  %v5673_v26 = vld [vmem:[%s8219_s23 + $0x590] ss:$8 sps:$4 sm:$0xff]  }
  0x8e   :  { %2787 = vmatmul.mubr.bf16.vlgmr.msra.gmra.mxu1 %v528_v24  ;;  %2796 = vmatpush1.bf16.msra.mxu0 %v5586_v6  ;;  %v5675_v24 = vld [vmem:[%s8219_s23 + $0x594] ss:$8 sps:$4 sm:$0xff]  }
  0x8f   :  { %2837 = vmatpush1.bf16.msra.mxu1 %v5589_v25  ;;  %2797 = vmatprep.subr.bf16.mxu0 %v5594_v27  ;;  %v6944_v6 = vrot.slane %v531_v20, %v6487_v49  ;;  %v5670_v25 = vld [vmem:[%s8219_s23 + $0x490] ss:$8 sps:$4 sm:$0xff]   ;;  %v5678_v27 = vld [vmem:[%s8219_s23 + $0x484] ss:$8 sps:$4 sm:$0xff]  }
  0x90   :  { %2838 = vmatprep.subr.bf16.mxu1 %v5597_v28  ;;  %2827 = vmatprep.mubr.bf16.mxu0 %v568_v35  ;;  %v5681_v28 = vld [vmem:[%s8219_s23 + $0x584] ss:$8 sps:$4 sm:$0xff]   ;;  %v5687_v35 = vld [vmem:[%s8219_s23 + $0x774] ss:$8 sps:$4 sm:$0xff]  }
  0x91   :  { %2868 = vmatprep.mubr.bf16.mxu1 %v578_v36  ;;  %v547_v30 = vcombine.high %v6944_v6, %v6944_v6  ;;  %v5753_v20 = vld [vmem:[%s8219_s23 + $0x7c4] ss:$8 sps:$4 sm:$0xff]  }
  0x92   :  { %2798 = vmatpush1.bf16.msra.mxu0 %v5592_v31  ;;  %v5676_v31 = vld [vmem:[%s8219_s23 + $0x480] ss:$8 sps:$4 sm:$0xff]  }
  0x93   :  { %2839 = vmatpush1.bf16.msra.mxu1 %v5595_v32  ;;  %2799 = vmatprep.subr.bf16.mxu0 %v5600_v33  ;;  %v554_v32 = vrot.slane %v6780_v29, %v6487_v49  ;;  %v5679_v33 = vld [vmem:[%s8219_s23 + $0x580] ss:$8 sps:$4 sm:$0xff]   ;;  %v575_v36 = vrot.slane %v547_v30, %v6487_v49  ;;  %v5682_v29 = vld [vmem:[%s8219_s23 + $0x670] ss:$8 sps:$4 sm:$0xff]  }
  0x94   :  { %2840 = vmatprep.subr.bf16.mxu1 %v5603_v34  ;;  %v5684_v34 = vld [vmem:[%s8219_s23 + $0x674] ss:$8 sps:$4 sm:$0xff]   ;;  %v5760_v30 = vld [vmem:[%s8219_s23 + $0x6a0] ss:$8 sps:$4 sm:$0xff]  }
  0x96   :  { %2800 = vmatpush1.bf16.msra.mxu0 %v5598_v37  ;;  %v576_v37 = vcombine.high %v554_v32, %v554_v32 }
  0x97   :  { %2841 = vmatpush1.bf16.msra.mxu1 %v5601_v38  ;;  %2801 = vmatprep.subr.bf16.mxu0 %v5606_v39  ;;  %v5685_v38 = vld [vmem:[%s8219_s23 + $0x770] ss:$8 sps:$4 sm:$0xff]   ;;  %v5690_v39 = vld [vmem:[%s8219_s23 + $0x664] ss:$8 sps:$4 sm:$0xff]  }
  0x98   :  { %2842 = vmatprep.subr.bf16.mxu1 %v5609_v40  ;;  %v5693_v40 = vld [vmem:[%s8219_s23 + $0x764] ss:$8 sps:$4 sm:$0xff]  }
  0x9a   :  { %2802 = vmatpush1.bf16.msra.mxu0 %v5604_v41  ;;  %v579_v41 = vcombine.high %v575_v36, %v575_v36 }
  0x9b   :  { %2843 = vmatpush1.bf16.msra.mxu1 %v5607_v43  ;;  %2803 = vmatprep.subr.bf16.mxu0 %v5612_v44  ;;  %v5688_v43 = vld [vmem:[%s8219_s23 + $0x660] ss:$8 sps:$4 sm:$0xff]  }
  0x9c   :  { %2844 = vmatprep.subr.bf16.mxu1 %v5615_v45  ;;  %v5691_v44 = vld [vmem:[%s8219_s23 + $0x760] ss:$8 sps:$4 sm:$0xff]   ;;  %v5696_v45 = vld [vmem:[%s8219_s23 + $0x654] ss:$8 sps:$4 sm:$0xff]  }
  0x9e   :  { %2804 = vmatpush1.bf16.msra.mxu0 %v5610_v46  ;;  %v5699_v46 = vld [vmem:[%s8219_s23 + $0x754] ss:$8 sps:$4 sm:$0xff]  }
  0x9f   :  { %2845 = vmatpush1.bf16.msra.mxu1 %v5613_v47  ;;  %2805 = vmatprep.subr.bf16.mxu0 %v5618_v48  ;;  %v5694_v47 = vld [vmem:[%s8219_s23 + $0x650] ss:$8 sps:$4 sm:$0xff]  }
  0xa0   :  { %2846 = vmatprep.subr.bf16.mxu1 %v5621_v50  ;;  %v5697_v48 = vld [vmem:[%s8219_s23 + $0x750] ss:$8 sps:$4 sm:$0xff]   ;;  %v5702_v50 = vld [vmem:[%s8219_s23 + $0x644] ss:$8 sps:$4 sm:$0xff]  }
  0xa2   :  { %2806 = vmatpush1.bf16.msra.mxu0 %v5616_v51  ;;  %v5705_v51 = vld [vmem:[%s8219_s23 + $0x744] ss:$8 sps:$4 sm:$0xff]  }
  0xa3   :  { %2847 = vmatpush1.bf16.msra.mxu1 %v5619_v52  ;;  %2807 = vmatprep.subr.bf16.mxu0 %v5624_v53  ;;  %v5700_v52 = vld [vmem:[%s8219_s23 + $0x640] ss:$8 sps:$4 sm:$0xff]  }
  0xa4   :  { %2848 = vmatprep.subr.bf16.mxu1 %v5627_v54  ;;  %v5703_v53 = vld [vmem:[%s8219_s23 + $0x740] ss:$8 sps:$4 sm:$0xff]   ;;  %v5708_v54 = vld [vmem:[%s8219_s23 + $0x634] ss:$8 sps:$4 sm:$0xff]  }
  0xa6   :  { %2808 = vmatpush1.bf16.msra.mxu0 %v5622_v55  ;;  %v5711_v55 = vld [vmem:[%s8219_s23 + $0x734] ss:$8 sps:$4 sm:$0xff]  }
  0xa7   :  { %2849 = vmatpush1.bf16.msra.mxu1 %v5625_v56  ;;  %2809 = vmatprep.subr.bf16.mxu0 %v5630_v57  ;;  %v5706_v56 = vld [vmem:[%s8219_s23 + $0x630] ss:$8 sps:$4 sm:$0xff]  }
  0xa8   :  { %2850 = vmatprep.subr.bf16.mxu1 %v5633_v58  ;;  %v5709_v57 = vld [vmem:[%s8219_s23 + $0x730] ss:$8 sps:$4 sm:$0xff]   ;;  %v5714_v58 = vld [vmem:[%s8219_s23 + $0x624] ss:$8 sps:$4 sm:$0xff]  }
  0xaa   :  { %2810 = vmatpush1.bf16.msra.mxu0 %v5628_v59  ;;  %v5717_v59 = vld [vmem:[%s8219_s23 + $0x724] ss:$8 sps:$4 sm:$0xff]  }
  0xab   :  { %2851 = vmatpush1.bf16.msra.mxu1 %v5631_v60  ;;  %2811 = vmatprep.subr.bf16.mxu0 %v5636_v61  ;;  %v5712_v60 = vld [vmem:[%s8219_s23 + $0x620] ss:$8 sps:$4 sm:$0xff]  }
  0xac   :  { %2852 = vmatprep.subr.bf16.mxu1 %v5639_v62  ;;  %v5715_v61 = vld [vmem:[%s8219_s23 + $0x720] ss:$8 sps:$4 sm:$0xff]   ;;  %v5720_v62 = vld [vmem:[%s8219_s23 + $0x614] ss:$8 sps:$4 sm:$0xff]  }
  0xae   :  { %2812 = vmatpush2.bf16.msra.mxu0 %v5634_v63  ;;  %v5723_v63 = vld [vmem:[%s8219_s23 + $0x714] ss:$8 sps:$4 sm:$0xff]  }
  0xaf   :  { %2853 = vmatpush2.bf16.msra.mxu1 %v5637_v0  ;;  %2813 = vmatprep.subr.bf16.mxu0 %v5642_v1  ;;  %v5718_v0 = vld [vmem:[%s8219_s23 + $0x610] ss:$8 sps:$4 sm:$0xff]  }
  0xb0   :  { %2854 = vmatprep.subr.bf16.mxu1 %v5645_v2  ;;  %v5721_v1 = vld [vmem:[%s8219_s23 + $0x710] ss:$8 sps:$4 sm:$0xff]   ;;  %v5726_v2 = vld [vmem:[%s8219_s23 + $0x604] ss:$8 sps:$4 sm:$0xff]  }
  0xb2   :  { %2814 = vmatpush2.bf16.msra.mxu0 %v5640_v3  ;;  %v5729_v3 = vld [vmem:[%s8219_s23 + $0x704] ss:$8 sps:$4 sm:$0xff]  }
  0xb3   :  { %2855 = vmatpush2.bf16.msra.mxu1 %v5643_v4  ;;  %2815 = vmatprep.subr.bf16.mxu0 %v5648_v5  ;;  %v5724_v4 = vld [vmem:[%s8219_s23 + $0x600] ss:$8 sps:$4 sm:$0xff]  }
  0xb4   :  { %2856 = vmatprep.subr.bf16.mxu1 %v5651_v7  ;;  %v5727_v5 = vld [vmem:[%s8219_s23 + $0x700] ss:$8 sps:$4 sm:$0xff]   ;;  %v5732_v7 = vld [vmem:[%s8219_s23 + $0x6f4] ss:$8 sps:$4 sm:$0xff]  }
  0xb6   :  { %2816 = vmatpush2.bf16.msra.mxu0 %v5646_v8  ;;  %v5735_v8 = vld [vmem:[%s8219_s23 + $0x7f4] ss:$8 sps:$4 sm:$0xff]  }
  0xb7   :  { %2857 = vmatpush2.bf16.msra.mxu1 %v5649_v9  ;;  %2817 = vmatprep.subr.bf16.mxu0 %v5654_v10  ;;  %v5730_v9 = vld [vmem:[%s8219_s23 + $0x6f0] ss:$8 sps:$4 sm:$0xff]  }
  0xb8   :  { %2858 = vmatprep.subr.bf16.mxu1 %v5657_v11  ;;  %v5733_v10 = vld [vmem:[%s8219_s23 + $0x7f0] ss:$8 sps:$4 sm:$0xff]   ;;  %v5738_v11 = vld [vmem:[%s8219_s23 + $0x6e4] ss:$8 sps:$4 sm:$0xff]  }
  0xba   :  { %2818 = vmatpush2.bf16.msra.mxu0 %v5652_v12  ;;  %v5741_v12 = vld [vmem:[%s8219_s23 + $0x7e4] ss:$8 sps:$4 sm:$0xff]  }
  0xbb   :  { %2859 = vmatpush2.bf16.msra.mxu1 %v5655_v13  ;;  %2819 = vmatprep.subr.bf16.mxu0 %v5660_v14  ;;  %v5736_v13 = vld [vmem:[%s8219_s23 + $0x6e0] ss:$8 sps:$4 sm:$0xff]  }
  0xbc   :  { %2860 = vmatprep.subr.bf16.mxu1 %v5663_v15  ;;  %v5739_v14 = vld [vmem:[%s8219_s23 + $0x7e0] ss:$8 sps:$4 sm:$0xff]   ;;  %v5744_v15 = vld [vmem:[%s8219_s23 + $0x6d4] ss:$8 sps:$4 sm:$0xff]  }
  0xbe   :  { %2820 = vmatpush2.bf16.msra.mxu0 %v5658_v16  ;;  %v5747_v16 = vld [vmem:[%s8219_s23 + $0x7d4] ss:$8 sps:$4 sm:$0xff]  }
  0xbf   :  { %2861 = vmatpush2.bf16.msra.mxu1 %v5661_v17  ;;  %2821 = vmatprep.subr.bf16.mxu0 %v5666_v18  ;;  %v5742_v17 = vld [vmem:[%s8219_s23 + $0x6d0] ss:$8 sps:$4 sm:$0xff]  }
  0xc0   :  { %2862 = vmatprep.subr.bf16.mxu1 %v5669_v19  ;;  %v5745_v18 = vld [vmem:[%s8219_s23 + $0x7d0] ss:$8 sps:$4 sm:$0xff]   ;;  %v5750_v19 = vld [vmem:[%s8219_s23 + $0x6c4] ss:$8 sps:$4 sm:$0xff]  }
  0xc2   :  { %2822 = vmatpush2.bf16.msra.mxu0 %v5664_v21  ;;  %v5748_v21 = vld [vmem:[%s8219_s23 + $0x6c0] ss:$8 sps:$4 sm:$0xff]  }
  0xc3   :  { %2863 = vmatpush2.bf16.msra.mxu1 %v5667_v22  ;;  %2823 = vmatprep.subr.bf16.mxu0 %v5672_v23  ;;  %v5751_v22 = vld [vmem:[%s8219_s23 + $0x7c0] ss:$8 sps:$4 sm:$0xff]   ;;  %v5756_v23 = vld [vmem:[%s8219_s23 + $0x6b4] ss:$8 sps:$4 sm:$0xff]  }
  0xc4   :  { %2864 = vmatprep.subr.bf16.mxu1 %v5675_v24  ;;  %v5759_v24 = vld [vmem:[%s8219_s23 + $0x7b4] ss:$8 sps:$4 sm:$0xff]  }
  0xc6   :  { %2824 = vmatpush2.bf16.msra.mxu0 %v5670_v25  ;;  %v5754_v25 = vld [vmem:[%s8219_s23 + $0x6b0] ss:$8 sps:$4 sm:$0xff]  }
  0xc7   :  { %2865 = vmatpush2.bf16.msra.mxu1 %v5673_v26  ;;  %2825 = vmatprep.subr.bf16.mxu0 %v5678_v27  ;;  %v5757_v26 = vld [vmem:[%s8219_s23 + $0x7b0] ss:$8 sps:$4 sm:$0xff]   ;;  %v5762_v27 = vld [vmem:[%s8219_s23 + $0x6a4] ss:$8 sps:$4 sm:$0xff]  }
  0xc8   :  { %2866 = vmatprep.subr.bf16.mxu1 %v5681_v28  ;;  %v5765_v28 = vld [vmem:[%s8219_s23 + $0x7a4] ss:$8 sps:$4 sm:$0xff]  }
  0xca   :  { %2826 = vmatpush2.bf16.msra.mxu0 %v5676_v31  ;;  %v5763_v31 = vld [vmem:[%s8219_s23 + $0x7a0] ss:$8 sps:$4 sm:$0xff]  }
  0xcb   :  { %2867 = vmatpush2.bf16.msra.mxu1 %v5679_v33  ;;  %2877 = vmatprep.subr.bf16.mxu0 %v5684_v34  ;;  %v5768_v33 = vld [vmem:[%s8219_s23 + $0x694] ss:$8 sps:$4 sm:$0xff]  }
  0xcc   :  { %2918 = vmatprep.subr.bf16.mxu1 %v5687_v35  ;;  %v5771_v34 = vld [vmem:[%s8219_s23 + $0x794] ss:$8 sps:$4 sm:$0xff]  }
  0xcd   :  { %2828 = vmatmul.mubr.bf16.vlgmr.msra.gmra.mxu0 %v554_v32  ;;  %v7140_v32 = vld [vmem:[%s8220_s29 + $0x10] sm:$0xff] }
  0xce   :  { %2869 = vmatmul.mubr.bf16.vlgmr.msra.gmra.mxu1 %v576_v37  ;;  %2878 = vmatpush1.bf16.msra.mxu0 %v5682_v29  ;;  %v7150_v35 = vrot.slane %v7140_v32, %v6487_v49  ;;  %v5769_v37 = vld [vmem:[%s8219_s23 + $0x790] ss:$8 sps:$4 sm:$0xff]   ;;  %v5774_v29 = vld [vmem:[%s8219_s23 + $0x684] ss:$8 sps:$4 sm:$0xff]  }
  0xcf   :  { %2919 = vmatpush1.bf16.msra.mxu1 %v5685_v38  ;;  %2879 = vmatprep.subr.bf16.mxu0 %v5690_v39  ;;  %v5777_v38 = vld [vmem:[%s8219_s23 + $0x784] ss:$8 sps:$4 sm:$0xff]   ;;  %v5772_v39 = vld [vmem:[%s8219_s23 + $0x680] ss:$8 sps:$4 sm:$0xff]  }
  0xd0   :  { %2920 = vmatprep.subr.bf16.mxu1 %v5693_v40  ;;  %2909 = vmatprep.mubr.bf16.mxu0 %v575_v36  ;;  %v5766_v36 = vld [vmem:[%s8219_s23 + $0x690] ss:$8 sps:$4 sm:$0xff]   ;;  %v595_v40 = vcombine.high %v7150_v35, %v7150_v35 }
  0xd1   :  { %2950 = vmatprep.mubr.bf16.mxu1 %v579_v41  ;;  %v5775_v41 = vld [vmem:[%s8219_s23 + $0x780] ss:$8 sps:$4 sm:$0xff]  }
  0xd2   :  { %2880 = vmatpush1.bf16.msra.mxu0 %v5688_v43  ;;  %v466_v43 = vld [vmem:[%s8221_s27] sm:$0x3] }
  0xd3   :  { %2921 = vmatpush1.bf16.msra.mxu1 %v5691_v44  ;;  %2881 = vmatprep.subr.bf16.mxu0 %v5696_v45  ;;  %v561_v44 = vrot.slane %v6944_v6, %v6487_v49  ;;  %v7178_v45 = vsub.s32 0, %v6469_v42  ;;  %v617_v6 = vrot.slane %v595_v40, %v6487_v49  ;;  %v5833_v40 = vld [vmem:[%s8219_s23 + $0x8e0] ss:$8 sps:$4 sm:$0xff]  }
  0xd4   :  { %2922 = vmatprep.subr.bf16.mxu1 %v5699_v46  ;;  %v5781_v46 = vld [vmem:[%s8219_s23 + $0x874] ss:$8 sps:$4 sm:$0xff]  }
  0xd6   :  { %2882 = vmatpush1.bf16.msra.mxu0 %v5694_v47  ;;  %v5784_v47 = vld [vmem:[%s8219_s23 + $0x974] ss:$8 sps:$4 sm:$0xff]  }
  0xd7   :  { %2923 = vmatpush1.bf16.msra.mxu1 %v5697_v48  ;;  %2883 = vmatprep.subr.bf16.mxu0 %v5702_v50  ;;  %v7187_v48 = vsub.s32 1, %v6469_v42  ;;  %v577_v50 = vcombine.high %v561_v44, %v561_v44  ;;  %v5787_v42 = vld [vmem:[%s8219_s23 + $0x864] ss:$8 sps:$4 sm:$0xff]  }
  0xd8   :  { %2924 = vmatprep.subr.bf16.mxu1 %v5705_v51  ;;  %v5779_v51 = vld [vmem:[%s8219_s23 + $0x870] ss:$8 sps:$4 sm:$0xff]  }
  0xda   :  { %2884 = vmatpush1.bf16.msra.mxu0 %v5700_v52  ;;  %v5782_v52 = vld [vmem:[%s8219_s23 + $0x970] ss:$8 sps:$4 sm:$0xff]  }
  0xdb   :  { %2925 = vmatpush1.bf16.msra.mxu1 %v5703_v53  ;;  %2885 = vmatprep.subr.bf16.mxu0 %v5708_v54  ;;  %v471_v53 = vrot.slane %v466_v43, %v7178_v45  ;;  %v5790_v54 = vld [vmem:[%s8219_s23 + $0x964] ss:$8 sps:$4 sm:$0xff]  }
  0xdc   :  { %2926 = vmatprep.subr.bf16.mxu1 %v5711_v55  ;;  %v475_v55 = vrot.slane %v466_v43, %v7187_v48  ;;  %v5841_v43 = vld [vmem:[%s8219_s23 + $0x8d4] ss:$8 sps:$4 sm:$0xff]  }
  0xde   :  { %2886 = vmatpush1.bf16.msra.mxu0 %v5706_v56  ;;  %v627_v56 = vcombine.high %v617_v6, %v617_v6 }
  0xdf   :  { %2927 = vmatpush1.bf16.msra.mxu1 %v5709_v57  ;;  %2887 = vmatprep.subr.bf16.mxu0 %v5714_v58 }
  0xe0   :  { %2928 = vmatprep.subr.bf16.mxu1 %v5717_v59  ;;  %v5785_v59 = vld [vmem:[%s8219_s23 + $0x860] ss:$8 sps:$4 sm:$0xff]  }
  0xe2   :  { %2888 = vmatpush1.bf16.msra.mxu0 %v5712_v60  ;;  %v5788_v60 = vld [vmem:[%s8219_s23 + $0x960] ss:$8 sps:$4 sm:$0xff]  }
  0xe3   :  { %2929 = vmatpush1.bf16.msra.mxu1 %v5715_v61  ;;  %2889 = vmatprep.subr.bf16.mxu0 %v5720_v62 }
  0xe4   :  { %2930 = vmatprep.subr.bf16.mxu1 %v5723_v63 }
  0xe6   :  { %2890 = vmatpush1.bf16.msra.mxu0 %v5718_v0  ;;  %v5793_v0 = vld [vmem:[%s8219_s23 + $0x854] ss:$8 sps:$4 sm:$0xff]  }
  0xe7   :  { %2931 = vmatpush1.bf16.msra.mxu1 %v5721_v1  ;;  %2891 = vmatprep.subr.bf16.mxu0 %v5726_v2  ;;  %v5796_v1 = vld [vmem:[%s8219_s23 + $0x954] ss:$8 sps:$4 sm:$0xff]  }
  0xe8   :  { %2932 = vmatprep.subr.bf16.mxu1 %v5729_v3 }
  0xea   :  { %2892 = vmatpush1.bf16.msra.mxu0 %v5724_v4  ;;  %v5791_v4 = vld [vmem:[%s8219_s23 + $0x850] ss:$8 sps:$4 sm:$0xff]  }
  0xeb   :  { %2933 = vmatpush1.bf16.msra.mxu1 %v5727_v5  ;;  %2893 = vmatprep.subr.bf16.mxu0 %v5732_v7  ;;  %v5794_v5 = vld [vmem:[%s8219_s23 + $0x950] ss:$8 sps:$4 sm:$0xff]  }
  0xec   :  { %2934 = vmatprep.subr.bf16.mxu1 %v5735_v8 }
  0xee   :  { %2894 = vmatpush2.bf16.msra.mxu0 %v5730_v9 }
  0xef   :  { %2935 = vmatpush2.bf16.msra.mxu1 %v5733_v10  ;;  %2895 = vmatprep.subr.bf16.mxu0 %v5738_v11  ;;  %v5799_v11 = vld [vmem:[%s8219_s23 + $0x844] ss:$8 sps:$4 sm:$0xff]  }
  0xf0   :  { %2936 = vmatprep.subr.bf16.mxu1 %v5741_v12  ;;  %v5802_v12 = vld [vmem:[%s8219_s23 + $0x944] ss:$8 sps:$4 sm:$0xff]  }
  0xf2   :  { %2896 = vmatpush2.bf16.msra.mxu0 %v5736_v13 }
  0xf3   :  { %2937 = vmatpush2.bf16.msra.mxu1 %v5739_v14  ;;  %2897 = vmatprep.subr.bf16.mxu0 %v5744_v15  ;;  %v5797_v14 = vld [vmem:[%s8219_s23 + $0x840] ss:$8 sps:$4 sm:$0xff]  }
  0xf4   :  { %2938 = vmatprep.subr.bf16.mxu1 %v5747_v16  ;;  %v5800_v15 = vld [vmem:[%s8219_s23 + $0x940] ss:$8 sps:$4 sm:$0xff]   ;;  %v5805_v16 = vld [vmem:[%s8219_s23 + $0x834] ss:$8 sps:$4 sm:$0xff]  }
  0xf6   :  { %2898 = vmatpush2.bf16.msra.mxu0 %v5742_v17  ;;  %v5808_v17 = vld [vmem:[%s8219_s23 + $0x934] ss:$8 sps:$4 sm:$0xff]  }
  0xf7   :  { %2939 = vmatpush2.bf16.msra.mxu1 %v5745_v18  ;;  %2899 = vmatprep.subr.bf16.mxu0 %v5750_v19  ;;  %v5803_v18 = vld [vmem:[%s8219_s23 + $0x830] ss:$8 sps:$4 sm:$0xff]  }
  0xf8   :  { %2940 = vmatprep.subr.bf16.mxu1 %v5753_v20  ;;  %v5806_v19 = vld [vmem:[%s8219_s23 + $0x930] ss:$8 sps:$4 sm:$0xff]   ;;  %v5811_v20 = vld [vmem:[%s8219_s23 + $0x824] ss:$8 sps:$4 sm:$0xff]  }
  0xfa   :  { %2900 = vmatpush2.bf16.msra.mxu0 %v5748_v21  ;;  %v5814_v21 = vld [vmem:[%s8219_s23 + $0x924] ss:$8 sps:$4 sm:$0xff]  }
  0xfb   :  { %2941 = vmatpush2.bf16.msra.mxu1 %v5751_v22  ;;  %2901 = vmatprep.subr.bf16.mxu0 %v5756_v23  ;;  %v5809_v22 = vld [vmem:[%s8219_s23 + $0x820] ss:$8 sps:$4 sm:$0xff]  }
  0xfc   :  { %2942 = vmatprep.subr.bf16.mxu1 %v5759_v24  ;;  %v5812_v23 = vld [vmem:[%s8219_s23 + $0x920] ss:$8 sps:$4 sm:$0xff]   ;;  %v5817_v24 = vld [vmem:[%s8219_s23 + $0x814] ss:$8 sps:$4 sm:$0xff]  }
  0xfe   :  { %2902 = vmatpush2.bf16.msra.mxu0 %v5754_v25  ;;  %v5820_v25 = vld [vmem:[%s8219_s23 + $0x914] ss:$8 sps:$4 sm:$0xff]  }
  0xff   :  { %2943 = vmatpush2.bf16.msra.mxu1 %v5757_v26  ;;  %2903 = vmatprep.subr.bf16.mxu0 %v5762_v27  ;;  %v5815_v26 = vld [vmem:[%s8219_s23 + $0x810] ss:$8 sps:$4 sm:$0xff]  }
 0x100   :  { %2944 = vmatprep.subr.bf16.mxu1 %v5765_v28  ;;  %v5818_v27 = vld [vmem:[%s8219_s23 + $0x910] ss:$8 sps:$4 sm:$0xff]   ;;  %v5823_v28 = vld [vmem:[%s8219_s23 + $0x804] ss:$8 sps:$4 sm:$0xff]  }
 0x102   :  { %2904 = vmatpush2.bf16.msra.mxu0 %v5760_v30  ;;  %v5826_v30 = vld [vmem:[%s8219_s23 + $0x904] ss:$8 sps:$4 sm:$0xff]  }
 0x103   :  { %2945 = vmatpush2.bf16.msra.mxu1 %v5763_v31  ;;  %2905 = vmatprep.subr.bf16.mxu0 %v5768_v33  ;;  %v5821_v31 = vld [vmem:[%s8219_s23 + $0x800] ss:$8 sps:$4 sm:$0xff]  }
 0x104   :  { %2946 = vmatprep.subr.bf16.mxu1 %v5771_v34  ;;  %v5824_v33 = vld [vmem:[%s8219_s23 + $0x900] ss:$8 sps:$4 sm:$0xff]   ;;  %v5829_v34 = vld [vmem:[%s8219_s23 + $0x8f4] ss:$8 sps:$4 sm:$0xff]  }
 0x106   :  { %2906 = vmatpush2.bf16.msra.mxu0 %v5766_v36  ;;  %v5832_v36 = vld [vmem:[%s8219_s23 + $0x9f4] ss:$8 sps:$4 sm:$0xff]  }
 0x107   :  { %2947 = vmatpush2.bf16.msra.mxu1 %v5769_v37  ;;  %2907 = vmatprep.subr.bf16.mxu0 %v5774_v29  ;;  %v5827_v37 = vld [vmem:[%s8219_s23 + $0x8f0] ss:$8 sps:$4 sm:$0xff]  }
 0x108   :  { %2948 = vmatprep.subr.bf16.mxu1 %v5777_v38  ;;  %v5830_v29 = vld [vmem:[%s8219_s23 + $0x9f0] ss:$8 sps:$4 sm:$0xff]   ;;  %v5835_v38 = vld [vmem:[%s8219_s23 + $0x8e4] ss:$8 sps:$4 sm:$0xff]  }
 0x10a   :  { %2908 = vmatpush2.bf16.msra.mxu0 %v5772_v39  ;;  %v5838_v39 = vld [vmem:[%s8219_s23 + $0x9e4] ss:$8 sps:$4 sm:$0xff]  }
 0x10b   :  { %2949 = vmatpush2.bf16.msra.mxu1 %v5775_v41  ;;  %2959 = vmatprep.subr.bf16.mxu0 %v5781_v46  ;;  %v5836_v41 = vld [vmem:[%s8219_s23 + $0x9e0] ss:$8 sps:$4 sm:$0xff]   ;;  %v5839_v46 = vld [vmem:[%s8219_s23 + $0x8d0] ss:$8 sps:$4 sm:$0xff]  }
 0x10c   :  { %3000 = vmatprep.subr.bf16.mxu1 %v5784_v47  ;;  %v5842_v47 = vld [vmem:[%s8219_s23 + $0x9d0] ss:$8 sps:$4 sm:$0xff]  }
 0x10d   :  { %v2665_v57 = vpop.f32.mrf.mxu0  ;;  %2910 = vmatmul.mubr.bf16.vlgmr.msra.gmra.mxu0 %v561_v44  ;;  %v5844_v44 = vld [vmem:[%s8219_s23 + $0x9d4] ss:$8 sps:$4 sm:$0xff]  }
 0x10e   :  { %v2706_v58 = vpop.f32.mrf.mxu1  ;;  %2951 = vmatmul.mubr.bf16.vlgmr.msra.gmra.mxu1 %v577_v50  ;;  %v2666_v61 = vadd.f32 %v2665_v57, %v471_v53  ;;  %2960 = vmatpush1.bf16.msra.mxu0 %v5779_v51  ;;  %v5850_v50 = vld [vmem:[%s8219_s23 + $0x9c4] ss:$8 sps:$4 sm:$0xff]   ;;  %v5845_v51 = vld [vmem:[%s8219_s23 + $0x8c0] ss:$8 sps:$4 sm:$0xff]   ;;  %v5853_v53 = vld [vmem:[%s8219_s23 + $0x8b4] ss:$8 sps:$4 sm:$0xff]  }
 0x10f   :  { %3001 = vmatpush1.bf16.msra.mxu1 %v5782_v52  ;;  %v2667_v62 = vpop.f32.mrf.mxu0  ;;  %2961 = vmatprep.subr.bf16.mxu0 %v5787_v42  ;;  %v5848_v52 = vld [vmem:[%s8219_s23 + $0x9c0] ss:$8 sps:$4 sm:$0xff]   ;;  %v5856_v42 = vld [vmem:[%s8219_s23 + $0x9b4] ss:$8 sps:$4 sm:$0xff]   ;;  %v5862_v57 = vld [vmem:[%s8219_s23 + $0x9a4] ss:$8 sps:$4 sm:$0xff]  }
 0x110   :  { %v2708_v63 = vpop.f32.mrf.mxu1  ;;  %3002 = vmatprep.subr.bf16.mxu1 %v5790_v54  ;;  %v7216_v2 = vadd.f32 %v2706_v58, %v2666_v61  ;;  %v2668_v3 = vadd.f32 %v2667_v62, %v475_v55  ;;  %2991 = vmatprep.mubr.bf16.mxu0 %v617_v6  ;;  %v5847_v6 = vld [vmem:[%s8219_s23 + $0x8c4] ss:$8 sps:$4 sm:$0xff]   ;;  %v5851_v54 = vld [vmem:[%s8219_s23 + $0x8b0] ss:$8 sps:$4 sm:$0xff]   ;;  %v5857_v58 = vld [vmem:[%s8219_s23 + $0x8a0] ss:$8 sps:$4 sm:$0xff]  }
 0x111   :  { %3032 = vmatprep.mubr.bf16.mxu1 %v627_v56  ;;  %v2669_v8 = vpop.f32.mrf.mxu0  ;;  %v5854_v55 = vld [vmem:[%s8219_s23 + $0x9b0] ss:$8 sps:$4 sm:$0xff]   ;;  %v5859_v56 = vld [vmem:[%s8219_s23 + $0x8a4] ss:$8 sps:$4 sm:$0xff]   ;;  %v5865_v61 = vld [vmem:[%s8219_s23 + $0x894] ss:$8 sps:$4 sm:$0xff]  }
 0x112   :  { %v2710_v7 = vpop.f32.mrf.mxu1  ;;  %v7224_v9 = vadd.f32 %v2708_v63, %v2668_v3  ;;  %2962 = vmatpush1.bf16.msra.mxu0 %v5785_v59  ;;  %v5860_v59 = vld [vmem:[%s8219_s23 + $0x9a0] ss:$8 sps:$4 sm:$0xff]   ;;  %v5868_v62 = vld [vmem:[%s8219_s23 + $0x994] ss:$8 sps:$4 sm:$0xff]   ;;  %v5863_v63 = vld [vmem:[%s8219_s23 + $0x890] ss:$8 sps:$4 sm:$0xff]   ;;  %v603_v8 = vrot.slane %v7150_v35, %v6487_v49 }
 0x113   :  { %3003 = vmatpush1.bf16.msra.mxu1 %v5788_v60  ;;  %2963 = vmatprep.subr.bf16.mxu0 %v5793_v0  ;;  %v2670_v13 = vpop.f32.mrf.mxu0  ;;  %v580_v60 = vcombine.high %v7140_v32, %v7140_v32  ;;  %v5866_v32 = vld [vmem:[%s8219_s23 + $0x990] ss:$8 sps:$4 sm:$0xff]   ;;  %v5874_v3 = vld [vmem:[%s8219_s23 + $0x984] ss:$8 sps:$4 sm:$0xff]  }
 0x114   :  { %v2711_v10 = vpop.f32.mrf.mxu1  ;;  %3004 = vmatprep.subr.bf16.mxu1 %v5796_v1  ;;  %v5871_v1 = vld [vmem:[%s8219_s23 + $0x884] ss:$8 sps:$4 sm:$0xff]   ;;  %v5878_v35 = vld [vmem:[%s8219_s23 + $0xb70] ss:$8 sps:$4 sm:$0xff]  }
 0x115   :  { %v7373_v0 = vrot.slane %v580_v60, %v6487_v49  ;;  %v5877_v10 = vld [vmem:[%s8219_s23 + $0xa74] ss:$8 sps:$4 sm:$0xff]  }
 0x116   :  { %2964 = vmatpush1.bf16.msra.mxu0 %v5791_v4  ;;  %v5869_v4 = vld [vmem:[%s8219_s23 + $0x880] ss:$8 sps:$4 sm:$0xff]  }
 0x117   :  { %3005 = vmatpush1.bf16.msra.mxu1 %v5794_v5  ;;  %2965 = vmatprep.subr.bf16.mxu0 %v5799_v11  ;;  %v5872_v5 = vld [vmem:[%s8219_s23 + $0x980] ss:$8 sps:$4 sm:$0xff]   ;;  %v596_v7 = vcombine.high %v7373_v0, %v7373_v0  ;;  %v5880_v11 = vld [vmem:[%s8219_s23 + $0xb74] ss:$8 sps:$4 sm:$0xff]  }
 0x118   :  { %3006 = vmatprep.subr.bf16.mxu1 %v5802_v12  ;;  %v5875_v12 = vld [vmem:[%s8219_s23 + $0xa70] ss:$8 sps:$4 sm:$0xff]  }
 0x119   :  { %v624_v13 = vrot.slane %v596_v7, %v6487_v49 }
 0x11a   :  { %2966 = vmatpush1.bf16.msra.mxu0 %v5797_v14  ;;  %v625_v14 = vcombine.high %v603_v8, %v603_v8 }
 0x11b   :  { %3007 = vmatpush1.bf16.msra.mxu1 %v5800_v15  ;;  %2967 = vmatprep.subr.bf16.mxu0 %v5805_v16  ;;  %v5883_v15 = vld [vmem:[%s8219_s23 + $0xa64] ss:$8 sps:$4 sm:$0xff]  }
 0x11c   :  { %3008 = vmatprep.subr.bf16.mxu1 %v5808_v17  ;;  %v5886_v16 = vld [vmem:[%s8219_s23 + $0xb64] ss:$8 sps:$4 sm:$0xff]   ;;  %v5881_v17 = vld [vmem:[%s8219_s23 + $0xa60] ss:$8 sps:$4 sm:$0xff]  }
 0x11e   :  { %2968 = vmatpush1.bf16.msra.mxu0 %v5803_v18  ;;  %v5884_v18 = vld [vmem:[%s8219_s23 + $0xb60] ss:$8 sps:$4 sm:$0xff]  }
 0x11f   :  { %3009 = vmatpush1.bf16.msra.mxu1 %v5806_v19  ;;  %2969 = vmatprep.subr.bf16.mxu0 %v5811_v20  ;;  %v628_v19 = vcombine.high %v624_v13, %v624_v13 }
 0x120   :  { %3010 = vmatprep.subr.bf16.mxu1 %v5814_v21 }
 0x122   :  { %2970 = vmatpush1.bf16.msra.mxu0 %v5809_v22  ;;  %v5889_v22 = vld [vmem:[%s8219_s23 + $0xa54] ss:$8 sps:$4 sm:$0xff]  }
 0x123   :  { %3011 = vmatpush1.bf16.msra.mxu1 %v5812_v23  ;;  %2971 = vmatprep.subr.bf16.mxu0 %v5817_v24  ;;  %v5892_v23 = vld [vmem:[%s8219_s23 + $0xb54] ss:$8 sps:$4 sm:$0xff]  }
 0x124   :  { %3012 = vmatprep.subr.bf16.mxu1 %v5820_v25 }
 0x126   :  { %2972 = vmatpush1.bf16.msra.mxu0 %v5815_v26 }
 0x127   :  { %3013 = vmatpush1.bf16.msra.mxu1 %v5818_v27  ;;  %2973 = vmatprep.subr.bf16.mxu0 %v5823_v28 }
 0x128   :  { %3014 = vmatprep.subr.bf16.mxu1 %v5826_v30  ;;  %v5887_v30 = vld [vmem:[%s8219_s23 + $0xa50] ss:$8 sps:$4 sm:$0xff]  }
 0x12a   :  { %2974 = vmatpush1.bf16.msra.mxu0 %v5821_v31  ;;  %v5890_v31 = vld [vmem:[%s8219_s23 + $0xb50] ss:$8 sps:$4 sm:$0xff]  }
 0x12b   :  { %3015 = vmatpush1.bf16.msra.mxu1 %v5824_v33  ;;  %2975 = vmatprep.subr.bf16.mxu0 %v5829_v34  ;;  %v5895_v33 = vld [vmem:[%s8219_s23 + $0xa44] ss:$8 sps:$4 sm:$0xff]  }
 0x12c   :  { %3016 = vmatprep.subr.bf16.mxu1 %v5832_v36  ;;  %v5898_v34 = vld [vmem:[%s8219_s23 + $0xb44] ss:$8 sps:$4 sm:$0xff]  }
 0x12e   :  { %2976 = vmatpush2.bf16.msra.mxu0 %v5827_v37 }
 0x12f   :  { %3017 = vmatpush2.bf16.msra.mxu1 %v5830_v29  ;;  %2977 = vmatprep.subr.bf16.mxu0 %v5835_v38  ;;  %v5893_v38 = vld [vmem:[%s8219_s23 + $0xa40] ss:$8 sps:$4 sm:$0xff]  }
 0x130   :  { %3018 = vmatprep.subr.bf16.mxu1 %v5838_v39  ;;  %v5896_v39 = vld [vmem:[%s8219_s23 + $0xb40] ss:$8 sps:$4 sm:$0xff]  }
 0x132   :  { %2978 = vmatpush2.bf16.msra.mxu0 %v5833_v40  ;;  %v5901_v40 = vld [vmem:[%s8219_s23 + $0xa34] ss:$8 sps:$4 sm:$0xff]  }
 0x133   :  { %3019 = vmatpush2.bf16.msra.mxu1 %v5836_v41  ;;  %2979 = vmatprep.subr.bf16.mxu0 %v5841_v43  ;;  %v5904_v41 = vld [vmem:[%s8219_s23 + $0xb34] ss:$8 sps:$4 sm:$0xff]   ;;  %v5899_v43 = vld [vmem:[%s8219_s23 + $0xa30] ss:$8 sps:$4 sm:$0xff]  }
 0x134   :  { %3020 = vmatprep.subr.bf16.mxu1 %v5844_v44  ;;  %v5902_v44 = vld [vmem:[%s8219_s23 + $0xb30] ss:$8 sps:$4 sm:$0xff]  }
 0x136   :  { %2980 = vmatpush2.bf16.msra.mxu0 %v5839_v46  ;;  %v5907_v46 = vld [vmem:[%s8219_s23 + $0xa24] ss:$8 sps:$4 sm:$0xff]  }
 0x137   :  { %3021 = vmatpush2.bf16.msra.mxu1 %v5842_v47  ;;  %2981 = vmatprep.subr.bf16.mxu0 %v5847_v6  ;;  %v5910_v47 = vld [vmem:[%s8219_s23 + $0xb24] ss:$8 sps:$4 sm:$0xff]  }
 0x138   :  { %3022 = vmatprep.subr.bf16.mxu1 %v5850_v50 }
 0x13a   :  { %2982 = vmatpush2.bf16.msra.mxu0 %v5845_v51 }
 0x13b   :  { %3023 = vmatpush2.bf16.msra.mxu1 %v5848_v52  ;;  %2983 = vmatprep.subr.bf16.mxu0 %v5853_v53 }
 0x13c   :  { %3024 = vmatprep.subr.bf16.mxu1 %v5856_v42 }
 0x13e   :  { %2984 = vmatpush2.bf16.msra.mxu0 %v5851_v54 }
 0x13f   :  { %3025 = vmatpush2.bf16.msra.mxu1 %v5854_v55  ;;  %2985 = vmatprep.subr.bf16.mxu0 %v5859_v56 }
 0x140   :  { %3026 = vmatprep.subr.bf16.mxu1 %v5862_v57 }
 0x142   :  { %2986 = vmatpush2.bf16.msra.mxu0 %v5857_v58 }
 0x143   :  { %3027 = vmatpush2.bf16.msra.mxu1 %v5860_v59  ;;  %2987 = vmatprep.subr.bf16.mxu0 %v5865_v61 }
 0x144   :  { %3028 = vmatprep.subr.bf16.mxu1 %v5868_v62 }
 0x146   :  { %2988 = vmatpush2.bf16.msra.mxu0 %v5863_v63 }
 0x147   :  { %3029 = vmatpush2.bf16.msra.mxu1 %v5866_v32  ;;  %2989 = vmatprep.subr.bf16.mxu0 %v5871_v1 }
 0x148   :  { %3030 = vmatprep.subr.bf16.mxu1 %v5874_v3 }
 0x14a   :  { %2990 = vmatpush2.bf16.msra.mxu0 %v5869_v4 }
 0x14b   :  { %3031 = vmatpush2.bf16.msra.mxu1 %v5872_v5  ;;  %3041 = vmatprep.subr.bf16.mxu0 %v5877_v10 }
 0x14c   :  { %3082 = vmatprep.subr.bf16.mxu1 %v5880_v11 }
 0x14d   :  { %v2747_v20 = vpop.f32.mrf.mxu0  ;;  %2992 = vmatmul.mubr.bf16.vlgmr.msra.gmra.mxu0 %v603_v8 }
 0x14e   :  { %v2788_v21 = vpop.f32.mrf.mxu1  ;;  %3033 = vmatmul.mubr.bf16.vlgmr.msra.gmra.mxu1 %v625_v14  ;;  %v2748_v24 = vadd.f32 %v2747_v20, %v7216_v2  ;;  %3042 = vmatpush1.bf16.msra.mxu0 %v5875_v12 }
 0x14f   :  { %3083 = vmatpush1.bf16.msra.mxu1 %v5878_v35  ;;  %v2749_v25 = vpop.f32.mrf.mxu0  ;;  %3043 = vmatprep.subr.bf16.mxu0 %v5883_v15 }
 0x150   :  { %v2790_v26 = vpop.f32.mrf.mxu1  ;;  %3084 = vmatprep.subr.bf16.mxu1 %v5886_v16  ;;  %v7423_v27 = vadd.f32 %v2788_v21, %v2748_v24  ;;  %v2750_v28 = vadd.f32 %v2749_v25, %v7224_v9  ;;  %3073 = vmatprep.mubr.bf16.mxu0 %v624_v13 }
 0x151   :  { %3114 = vmatprep.mubr.bf16.mxu1 %v628_v19  ;;  %v2751_v9 = vpop.f32.mrf.mxu0 }
 0x152   :  { %v2792_v2 = vpop.f32.mrf.mxu1  ;;  %v7438_v36 = vadd.f32 %v2790_v26, %v2750_v28  ;;  %3044 = vmatpush1.bf16.msra.mxu0 %v5881_v17 }
 0x153   :  { %3085 = vmatpush1.bf16.msra.mxu1 %v5884_v18  ;;  %3045 = vmatprep.subr.bf16.mxu0 %v5889_v22  ;;  %v2752_v29 = vpop.f32.mrf.mxu0 }
 0x154   :  { %v2793_v37 = vpop.f32.mrf.mxu1  ;;  %3086 = vmatprep.subr.bf16.mxu1 %v5892_v23 }
 0x156   :  { %3046 = vmatpush1.bf16.msra.mxu0 %v5887_v30 }
 0x157   :  { %3087 = vmatpush1.bf16.msra.mxu1 %v5890_v31  ;;  %3047 = vmatprep.subr.bf16.mxu0 %v5895_v33 }
 0x158   :  { %3088 = vmatprep.subr.bf16.mxu1 %v5898_v34 }
 0x15a   :  { %3048 = vmatpush1.bf16.msra.mxu0 %v5893_v38 }
 0x15b   :  { %3089 = vmatpush1.bf16.msra.mxu1 %v5896_v39  ;;  %3049 = vmatprep.subr.bf16.mxu0 %v5901_v40 }
 0x15c   :  { %3090 = vmatprep.subr.bf16.mxu1 %v5904_v41 }
 0x15d   :  { %26 = vsyncpa [#allocation4], 0  ;;  %v5905_v6 = vld [vmem:[%s8219_s23 + $0xa20] ss:$8 sps:$4 sm:$0xff]   ;;  %v5913_v51 = vld [vmem:[%s8219_s23 + $0xa14] ss:$8 sps:$4 sm:$0xff]   ;;  %v610_v26 = vrot.slane %v7373_v0, %v6487_v49 }
 0x15e   :  { %3050 = vmatpush1.bf16.msra.mxu0 %v5899_v43  ;;  %v5908_v50 = vld [vmem:[%s8219_s23 + $0xb20] ss:$8 sps:$4 sm:$0xff]   ;;  %v5916_v52 = vld [vmem:[%s8219_s23 + $0xb14] ss:$8 sps:$4 sm:$0xff]   ;;  %v5911_v53 = vld [vmem:[%s8219_s23 + $0xa10] ss:$8 sps:$4 sm:$0xff]  }
 0x15f   :  { %3091 = vmatpush1.bf16.msra.mxu1 %v5902_v44  ;;  %3051 = vmatprep.subr.bf16.mxu0 %v5907_v46  ;;  %v5914_v42 = vld [vmem:[%s8219_s23 + $0xb10] ss:$8 sps:$4 sm:$0xff]   ;;  %v5919_v54 = vld [vmem:[%s8219_s23 + $0xa04] ss:$8 sps:$4 sm:$0xff]   ;;  %v5917_v56 = vld [vmem:[%s8219_s23 + $0xa00] ss:$8 sps:$4 sm:$0xff]   ;;  %v626_v2 = vcombine.high %v610_v26, %v610_v26 }
 0x160   :  { %3092 = vmatprep.subr.bf16.mxu1 %v5910_v47  ;;  %v5922_v55 = vld [vmem:[%s8219_s23 + $0xb04] ss:$8 sps:$4 sm:$0xff]   ;;  %v5920_v57 = vld [vmem:[%s8219_s23 + $0xb00] ss:$8 sps:$4 sm:$0xff]   ;;  %v5925_v58 = vld [vmem:[%s8219_s23 + $0xaf4] ss:$8 sps:$4 sm:$0xff]  }
 0x161   :  { %v5928_v59 = vld [vmem:[%s8219_s23 + $0xbf4] ss:$8 sps:$4 sm:$0xff]   ;;  %v5923_v60 = vld [vmem:[%s8219_s23 + $0xaf0] ss:$8 sps:$4 sm:$0xff]   ;;  %v5931_v62 = vld [vmem:[%s8219_s23 + $0xae4] ss:$8 sps:$4 sm:$0xff]  }
 0x162   :  { %3052 = vmatpush1.bf16.msra.mxu0 %v5905_v6  ;;  %v5926_v61 = vld [vmem:[%s8219_s23 + $0xbf0] ss:$8 sps:$4 sm:$0xff]   ;;  %v5934_v63 = vld [vmem:[%s8219_s23 + $0xbe4] ss:$8 sps:$4 sm:$0xff]   ;;  %v5929_v32 = vld [vmem:[%s8219_s23 + $0xae0] ss:$8 sps:$4 sm:$0xff]  }
 0x163   :  { %3093 = vmatpush1.bf16.msra.mxu1 %v5908_v50  ;;  %3053 = vmatprep.subr.bf16.mxu0 %v5913_v51  ;;  %v5932_v1 = vld [vmem:[%s8219_s23 + $0xbe0] ss:$8 sps:$4 sm:$0xff]   ;;  %v5937_v3 = vld [vmem:[%s8219_s23 + $0xad4] ss:$8 sps:$4 sm:$0xff]   ;;  %v5935_v5 = vld [vmem:[%s8219_s23 + $0xad0] ss:$8 sps:$4 sm:$0xff]  }
 0x164   :  { %3094 = vmatprep.subr.bf16.mxu1 %v5916_v52  ;;  %v5940_v4 = vld [vmem:[%s8219_s23 + $0xbd4] ss:$8 sps:$4 sm:$0xff]   ;;  %v5938_v7 = vld [vmem:[%s8219_s23 + $0xbd0] ss:$8 sps:$4 sm:$0xff]   ;;  %v5943_v8 = vld [vmem:[%s8219_s23 + $0xac4] ss:$8 sps:$4 sm:$0xff]  }
 0x165   :  { %v5946_v10 = vld [vmem:[%s8219_s23 + $0xbc4] ss:$8 sps:$4 sm:$0xff]   ;;  %v5941_v11 = vld [vmem:[%s8219_s23 + $0xac0] ss:$8 sps:$4 sm:$0xff]   ;;  %v5949_v35 = vld [vmem:[%s8219_s23 + $0xab4] ss:$8 sps:$4 sm:$0xff]  }
 0x166   :  { %3054 = vmatpush1.bf16.msra.mxu0 %v5911_v53  ;;  %v5944_v12 = vld [vmem:[%s8219_s23 + $0xbc0] ss:$8 sps:$4 sm:$0xff]   ;;  %v5952_v13 = vld [vmem:[%s8219_s23 + $0xbb4] ss:$8 sps:$4 sm:$0xff]   ;;  %v5947_v14 = vld [vmem:[%s8219_s23 + $0xab0] ss:$8 sps:$4 sm:$0xff]  }
 0x167   :  { %3095 = vmatpush1.bf16.msra.mxu1 %v5914_v42  ;;  %3055 = vmatprep.subr.bf16.mxu0 %v5919_v54  ;;  %v5950_v15 = vld [vmem:[%s8219_s23 + $0xbb0] ss:$8 sps:$4 sm:$0xff]   ;;  %v5955_v16 = vld [vmem:[%s8219_s23 + $0xaa4] ss:$8 sps:$4 sm:$0xff]   ;;  %v5953_v18 = vld [vmem:[%s8219_s23 + $0xaa0] ss:$8 sps:$4 sm:$0xff]  }
 0x168   :  { %3096 = vmatprep.subr.bf16.mxu1 %v5922_v55  ;;  %v5958_v17 = vld [vmem:[%s8219_s23 + $0xba4] ss:$8 sps:$4 sm:$0xff]   ;;  %v5956_v19 = vld [vmem:[%s8219_s23 + $0xba0] ss:$8 sps:$4 sm:$0xff]   ;;  %v5961_v20 = vld [vmem:[%s8219_s23 + $0xa94] ss:$8 sps:$4 sm:$0xff]  }
 0x169   :  { %v5964_v21 = vld [vmem:[%s8219_s23 + $0xb94] ss:$8 sps:$4 sm:$0xff]   ;;  %v5959_v22 = vld [vmem:[%s8219_s23 + $0xa90] ss:$8 sps:$4 sm:$0xff]   ;;  %v5967_v24 = vld [vmem:[%s8219_s23 + $0xa84] ss:$8 sps:$4 sm:$0xff]  }
 0x16a   :  { %3056 = vmatpush1.bf16.msra.mxu0 %v5917_v56  ;;  %v5962_v23 = vld [vmem:[%s8219_s23 + $0xb90] ss:$8 sps:$4 sm:$0xff]   ;;  %v5970_v25 = vld [vmem:[%s8219_s23 + $0xb84] ss:$8 sps:$4 sm:$0xff]   ;;  %v5965_v28 = vld [vmem:[%s8219_s23 + $0xa80] ss:$8 sps:$4 sm:$0xff]  }
 0x16b   :  { %3097 = vmatpush1.bf16.msra.mxu1 %v5920_v57  ;;  %3057 = vmatprep.subr.bf16.mxu0 %v5925_v58  ;;  %v5968_v30 = vld [vmem:[%s8219_s23 + $0xb80] ss:$8 sps:$4 sm:$0xff]   ;;  %v5974_v31 = vld [vmem:[%s8219_s23 + $0xc34] ss:$8 sps:$4 sm:$0xff]   ;;  %s8222_s28 = sld [smem:[#allocation10_spill]]  ;;  %v6243_v50 = vmov 0  }
 0x16c   :  { %3098 = vmatprep.subr.bf16.mxu1 %v5928_v59  ;;  %v5972_v33 = vld [vmem:[%s8219_s23 + $0xc30] ss:$8 sps:$4 sm:$0xff]   ;;  %v5980_v9 = vld [vmem:[%s8219_s23 + $0xc24] ss:$8 sps:$4 sm:$0xff]   ;;  %v5978_v40 = vld [vmem:[%s8219_s23 + $0xc20] ss:$8 sps:$4 sm:$0xff]  }
 0x16d   :  { %v5986_v46 = vld [vmem:[%s8219_s23 + $0xc14] ss:$8 sps:$4 sm:$0xff]   ;;  %v5984_v42 = vld [vmem:[%s8219_s23 + $0xc10] ss:$8 sps:$4 sm:$0xff]   ;;  %v5990_v58 = vld [vmem:[%s8219_s23 + $0xc00] ss:$8 sps:$4 sm:$0xff]  }
 0x16e   :  { %3058 = vmatpush2.bf16.msra.mxu0 %v5923_v60  ;;  %v4716_v60 = vld.sshfl [vmem:[%s8220_s29 + $0x18] sm:$0x1 pattern:$0x75316420]  ;;  %vm2627_vm0 = vcmask 523264   ;;  %vm6245_vm5 = vmmov 0  }
 0x16f   :  { %3099 = vmatpush2.bf16.msra.mxu1 %v5926_v61  ;;  %3059 = vmatprep.subr.bf16.mxu0 %v5931_v62  ;;  %v6022_v62 = vld [vmem:[%s8197_s7 + $0x74] ss:$8 sps:$4 sm:$0xff]   ;;  %vm4700_vm6 = vcmask 74752  }
 0x170   :  { %3100 = vmatprep.subr.bf16.mxu1 %v5934_v63  ;;  %v642_v63 = vrot.slane %v4716_v60, %v6487_v49  ;;  %v6028_v49 = vld [vmem:[%s8197_s7 + $0x64] ss:$8 sps:$4 sm:$0xff]  }
 0x171   :  { %v5977_v0 = vld [vmem:[%s8222_s28 + $0x74] ss:$8 sps:$4 sm:$0xff]   ;;  %v5975_v34 = vld [vmem:[%s8222_s28 + $0x70] ss:$8 sps:$4 sm:$0xff]   ;;  %v5983_v37 = vld [vmem:[%s8222_s28 + $0x64] ss:$8 sps:$4 sm:$0xff]  }
 0x172   :  { %3060 = vmatpush2.bf16.msra.mxu0 %v5929_v32  ;;  %v5981_v41 = vld [vmem:[%s8222_s28 + $0x60] ss:$8 sps:$4 sm:$0xff]   ;;  %v5987_v54 = vld [vmem:[%s8222_s28 + $0x50] ss:$8 sps:$4 sm:$0xff]   ;;  %v5995_v56 = vld [vmem:[%s8222_s28 + $0x44] ss:$8 sps:$4 sm:$0xff]  }
 0x173   :  { %3101 = vmatpush2.bf16.msra.mxu1 %v5932_v1  ;;  %3061 = vmatprep.subr.bf16.mxu0 %v5937_v3  ;;  %v5993_v59 = vld [vmem:[%s8222_s28 + $0x40] ss:$8 sps:$4 sm:$0xff]   ;;  %v5998_v61 = vld [vmem:[%s8222_s28 + $0x34] ss:$8 sps:$4 sm:$0xff]   ;;  %v5996_v32 = vld [vmem:[%s8222_s28 + $0x30] ss:$8 sps:$4 sm:$0xff]  }
 0x174   :  { %3102 = vmatprep.subr.bf16.mxu1 %v5940_v4  ;;  %v6020_v1 = vld [vmem:[%s8197_s7 + $0x70] ss:$8 sps:$4 sm:$0xff]   ;;  %v6001_v3 = vld [vmem:[%s8222_s28 + $0x24] ss:$8 sps:$4 sm:$0xff]   ;;  %v5999_v4 = vld [vmem:[%s8222_s28 + $0x20] ss:$8 sps:$4 sm:$0xff]  }
 0x176   :  { %3062 = vmatpush2.bf16.msra.mxu0 %v5935_v5  ;;  %v6026_v5 = vld [vmem:[%s8197_s7 + $0x60] ss:$8 sps:$4 sm:$0xff]  }
 0x177   :  { %3103 = vmatpush2.bf16.msra.mxu1 %v5938_v7  ;;  %3063 = vmatprep.subr.bf16.mxu0 %v5943_v8  ;;  %v6004_v7 = vld [vmem:[%s8222_s28 + $0x14] ss:$8 sps:$4 sm:$0xff]  }
 0x178   :  { %3104 = vmatprep.subr.bf16.mxu1 %v5946_v10  ;;  %v6034_v8 = vld [vmem:[%s8197_s7 + $0x54] ss:$8 sps:$4 sm:$0xff]   ;;  %v6002_v10 = vld [vmem:[%s8222_s28 + $0x10] ss:$8 sps:$4 sm:$0xff]  }
 0x17a   :  { %3064 = vmatpush2.bf16.msra.mxu0 %v5941_v11  ;;  %v6032_v11 = vld [vmem:[%s8197_s7 + $0x50] ss:$8 sps:$4 sm:$0xff]  }
 0x17b   :  { %3105 = vmatpush2.bf16.msra.mxu1 %v5944_v12  ;;  %3065 = vmatprep.subr.bf16.mxu0 %v5949_v35  ;;  %v6007_v12 = vld [vmem:[%s8222_s28 + $0x4] ss:$8 sps:$4 sm:$0xff]  }
 0x17c   :  { %3106 = vmatprep.subr.bf16.mxu1 %v5952_v13  ;;  %v6040_v35 = vld [vmem:[%s8197_s7 + $0x44] ss:$8 sps:$4 sm:$0xff]   ;;  %v6005_v13 = vld [vmem:[%s8222_s28] ss:$8 sps:$4 sm:$0xff]  }
 0x17e   :  { %3066 = vmatpush2.bf16.msra.mxu0 %v5947_v14 }
 0x17f   :  { %3107 = vmatpush2.bf16.msra.mxu1 %v5950_v15  ;;  %3067 = vmatprep.subr.bf16.mxu0 %v5955_v16  ;;  %v6038_v15 = vld [vmem:[%s8197_s7 + $0x40] ss:$8 sps:$4 sm:$0xff]   ;;  %v6010_v16 = vld [vmem:[%s8196_s6 + $0x74] ss:$8 sps:$4 sm:$0xff]  }
 0x180   :  { %3108 = vmatprep.subr.bf16.mxu1 %v5958_v17  ;;  %v6046_v17 = vld [vmem:[%s8197_s7 + $0x34] ss:$8 sps:$4 sm:$0xff]  }
 0x182   :  { %3068 = vmatpush2.bf16.msra.mxu0 %v5953_v18 }
 0x183   :  { %3109 = vmatpush2.bf16.msra.mxu1 %v5956_v19  ;;  %3069 = vmatprep.subr.bf16.mxu0 %v5961_v20  ;;  %v6008_v19 = vld [vmem:[%s8196_s6 + $0x70] ss:$8 sps:$4 sm:$0xff]  }
 0x184   :  { %3110 = vmatprep.subr.bf16.mxu1 %v5964_v21  ;;  %v6044_v20 = vld [vmem:[%s8197_s7 + $0x30] ss:$8 sps:$4 sm:$0xff]   ;;  %v6013_v21 = vld [vmem:[%s8196_s6 + $0x64] ss:$8 sps:$4 sm:$0xff]  }
 0x186   :  { %3070 = vmatpush2.bf16.msra.mxu0 %v5959_v22  ;;  %v6052_v22 = vld [vmem:[%s8197_s7 + $0x24] ss:$8 sps:$4 sm:$0xff]  }
 0x187   :  { %3111 = vmatpush2.bf16.msra.mxu1 %v5962_v23  ;;  %3071 = vmatprep.subr.bf16.mxu0 %v5967_v24  ;;  %v6011_v23 = vld [vmem:[%s8196_s6 + $0x60] ss:$8 sps:$4 sm:$0xff]  }
 0x188   :  { %3112 = vmatprep.subr.bf16.mxu1 %v5970_v25  ;;  %v6050_v24 = vld [vmem:[%s8197_s7 + $0x20] ss:$8 sps:$4 sm:$0xff]   ;;  %v6016_v25 = vld [vmem:[%s8196_s6 + $0x54] ss:$8 sps:$4 sm:$0xff]  }
 0x18a   :  { %3072 = vmatpush2.bf16.msra.mxu0 %v5965_v28  ;;  %v6019_v28 = vld [vmem:[%s8196_s6 + $0x44] ss:$8 sps:$4 sm:$0xff]  }
 0x18b   :  { %3113 = vmatpush2.bf16.msra.mxu1 %v5968_v30  ;;  %3131 = vmatprep.subr.bf16.mxu0 %v5974_v31  ;;  %v6017_v30 = vld [vmem:[%s8196_s6 + $0x40] ss:$8 sps:$4 sm:$0xff]   ;;  %v6025_v31 = vld [vmem:[%s8196_s6 + $0x34] ss:$8 sps:$4 sm:$0xff]  }
 0x18c   :  { %3272 = vmatprep.subr.bf16.mxu1 %v5977_v0  ;;  %v6023_v0 = vld [vmem:[%s8196_s6 + $0x30] ss:$8 sps:$4 sm:$0xff]  }
 0x18d   :  { %v2829_v29 = vpop.f32.mrf.mxu0  ;;  %3074 = vmatmul.mubr.bf16.vlgmr.msra.gmra.mxu0 %v610_v26  ;;  %v6014_v26 = vld [vmem:[%s8196_s6 + $0x50] ss:$8 sps:$4 sm:$0xff]  }
 0x18e   :  { %v2870_v38 = vpop.f32.mrf.mxu1  ;;  %3115 = vmatmul.mubr.bf16.vlgmr.msra.gmra.mxu1 %v626_v2  ;;  %v2830_v39 = vadd.f32 %v2829_v29, %v7423_v27  ;;  %3132 = vmatpush1.bf16.msra.mxu0 %v5972_v33  ;;  %v5989_v27 = vld [vmem:[%s8222_s28 + $0x54] ss:$8 sps:$4 sm:$0xff]   ;;  %v6031_v2 = vld [vmem:[%s8196_s6 + $0x24] ss:$8 sps:$4 sm:$0xff]   ;;  %v6029_v33 = vld [vmem:[%s8196_s6 + $0x20] ss:$8 sps:$4 sm:$0xff]  }
 0x18f   :  { %3273 = vmatpush1.bf16.msra.mxu1 %v5975_v34  ;;  %v2831_v43 = vpop.f32.mrf.mxu0  ;;  %3133 = vmatprep.subr.bf16.mxu0 %v5980_v9  ;;  %v6037_v34 = vld [vmem:[%s8196_s6 + $0x14] ss:$8 sps:$4 sm:$0xff]   ;;  %v6035_v9 = vld [vmem:[%s8196_s6 + $0x10] ss:$8 sps:$4 sm:$0xff]   ;;  %v6041_v29 = vld [vmem:[%s8196_s6] ss:$8 sps:$4 sm:$0xff]  }
 0x190   :  { %v2872_v44 = vpop.f32.mrf.mxu1  ;;  %3274 = vmatprep.subr.bf16.mxu1 %v5983_v37  ;;  %v7623_v47 = vadd.f32 %v2870_v38, %v2830_v39  ;;  %v2832_v6 = vadd.f32 %v2831_v43, %v7438_v36  ;;  %3155 = vmatprep.mubr.bf16.mxu0 %v6243_v50  ;;  %v5992_v36 = vld [vmem:[%s8219_s23 + $0xc04] ss:$8 sps:$4 sm:$0xff]   ;;  %s8223_s23 = sld [smem:[#allocation7_spill]]  ;;  %v6049_v38 = vld [vmem:[%s8196_s6 + $0xf4] ss:$8 sps:$4 sm:$0xff]  }
 0x191   :  { %3304 = vmatprep.mubr.bf16.mxu1 %v6243_v50  ;;  %v2833_v52 = vpop.f32.mrf.mxu0  ;;  %v6043_v37 = vld [vmem:[%s8196_s6 + $0x4] ss:$8 sps:$4 sm:$0xff]   ;;  %v6047_v39 = vld [vmem:[%s8196_s6 + $0xf0] ss:$8 sps:$4 sm:$0xff]  }
 0x192   :  { %v2874_v51 = vpop.f32.mrf.mxu1  ;;  %v7626_v53 = vadd.f32 %v2872_v44, %v2832_v6  ;;  %3134 = vmatpush1.bf16.msra.mxu0 %v5978_v40  ;;  %v6055_v40 = vld [vmem:[%s8196_s6 + $0xe4] ss:$8 sps:$4 sm:$0xff]   ;;  %v6056_v43 = vld [vmem:[%s8197_s7 + $0x10] ss:$8 sps:$4 sm:$0xff]   ;;  %v6053_v6 = vld [vmem:[%s8196_s6 + $0xe0] ss:$8 sps:$4 sm:$0xff]  }
 0x193   :  { %3275 = vmatpush1.bf16.msra.mxu1 %v5981_v41  ;;  %3135 = vmatprep.subr.bf16.mxu0 %v5986_v46  ;;  %v2834_v57 = vpop.f32.mrf.mxu0  ;;  %v6058_v41 = vld [vmem:[%s8197_s7 + $0x14] ss:$8 sps:$4 sm:$0xff]  }
 0x194   :  { %v2875_v55 = vpop.f32.mrf.mxu1  ;;  %3276 = vmatprep.subr.bf16.mxu1 %v5989_v27  ;;  %v6061_v52 = vld [vmem:[%s8196_s6 + $0xd4] ss:$8 sps:$4 sm:$0xff]  }
 0x195   :  { %v6062_v55 = vld [vmem:[%s8197_s7] ss:$8 sps:$4 sm:$0xff]  }
 0x196   :  { %3136 = vmatpush1.bf16.msra.mxu0 %v5984_v42  ;;  %v72_v14 = vld [vmem:[%s8223_s23] sm:$0x3]  ;;  %v6064_v42 = vld [vmem:[%s8197_s7 + $0x4] ss:$8 sps:$4 sm:$0xff]  }
 0x197   :  { %3277 = vmatpush1.bf16.msra.mxu1 %v5987_v54  ;;  %3137 = vmatprep.subr.bf16.mxu0 %v5992_v36  ;;  %v73_v18 = vpack.c.bf16 %v72_v14, %v72_v14  ;;  %v6094_v14 = vld [vmem:[%s8197_s7 + $0xb4] ss:$8 sps:$4 sm:$0xff]  }
 0x198   :  { %3278 = vmatprep.subr.bf16.mxu1 %v5995_v56 }
 0x19a   :  { %3138 = vmatpush1.bf16.msra.mxu0 %v5990_v58  ;;  %v6059_v58 = vld [vmem:[%s8196_s6 + $0xd0] ss:$8 sps:$4 sm:$0xff]  }
 0x19b   :  { %3279 = vmatpush1.bf16.msra.mxu1 %v5993_v59  ;;  %3541 = vmatprep.subr.bf16.mxu0 %v6022_v62  ;;  %v6070_v62 = vld [vmem:[%s8197_s7 + $0xf4] ss:$8 sps:$4 sm:$0xff]  }
 0x19c   :  { %3280 = vmatprep.subr.bf16.mxu1 %v5998_v61  ;;  %v6068_v61 = vld [vmem:[%s8197_s7 + $0xf0] ss:$8 sps:$4 sm:$0xff]  }
 0x19d   :  { %5109 = vmatmul.mubr.msk.bf16.vlgmr.msra.gmra.mxu0 %vm2627_vm0, %v642_v63  ;;  %v6076_v63 = vld [vmem:[%s8197_s7 + $0xe4] ss:$8 sps:$4 sm:$0xff]  }
 0x19e   :  { %3542 = vmatpush1.bf16.msra.mxu0 %v6020_v1  ;;  %v6074_v1 = vld [vmem:[%s8197_s7 + $0xe0] ss:$8 sps:$4 sm:$0xff]  }
 0x19f   :  { %3281 = vmatpush1.bf16.msra.mxu1 %v5996_v32  ;;  %3543 = vmatprep.subr.bf16.mxu0 %v6028_v49  ;;  %v6065_v32 = vld [vmem:[%s8196_s6 + $0xc0] ss:$8 sps:$4 sm:$0xff]   ;;  %v6071_v49 = vld [vmem:[%s8196_s6 + $0xb0] ss:$8 sps:$4 sm:$0xff]  }
 0x1a0   :  { %3282 = vmatprep.subr.bf16.mxu1 %v6001_v3  ;;  %v6073_v3 = vld [vmem:[%s8196_s6 + $0xb4] ss:$8 sps:$4 sm:$0xff]  }
 0x1a2   :  { %3544 = vmatpush1.bf16.msra.mxu0 %v6026_v5  ;;  %v6082_v5 = vld [vmem:[%s8197_s7 + $0xd4] ss:$8 sps:$4 sm:$0xff]  }
 0x1a3   :  { %3283 = vmatpush1.bf16.msra.mxu1 %v5999_v4  ;;  %3545 = vmatprep.subr.bf16.mxu0 %v6034_v8  ;;  %v6079_v4 = vld [vmem:[%s8196_s6 + $0xa4] ss:$8 sps:$4 sm:$0xff]   ;;  %v6077_v8 = vld [vmem:[%s8196_s6 + $0xa0] ss:$8 sps:$4 sm:$0xff]  }
 0x1a4   :  { %3284 = vmatprep.subr.bf16.mxu1 %v6004_v7  ;;  %v6080_v7 = vld [vmem:[%s8197_s7 + $0xd0] ss:$8 sps:$4 sm:$0xff]  }
 0x1a6   :  { %3546 = vmatpush1.bf16.msra.mxu0 %v6032_v11  ;;  %v6088_v11 = vld [vmem:[%s8197_s7 + $0xc4] ss:$8 sps:$4 sm:$0xff]  }
 0x1a7   :  { %3285 = vmatpush1.bf16.msra.mxu1 %v6002_v10  ;;  %3547 = vmatprep.subr.bf16.mxu0 %v6040_v35  ;;  %v6085_v10 = vld [vmem:[%s8196_s6 + $0x94] ss:$8 sps:$4 sm:$0xff]   ;;  %v6083_v35 = vld [vmem:[%s8196_s6 + $0x90] ss:$8 sps:$4 sm:$0xff]  }
 0x1a8   :  { %3286 = vmatprep.subr.bf16.mxu1 %v6007_v12  ;;  %v6086_v12 = vld [vmem:[%s8197_s7 + $0xc0] ss:$8 sps:$4 sm:$0xff]  }
 0x1aa   :  { %3548 = vmatpush1.bf16.msra.mxu0 %v6038_v15  ;;  %v6092_v15 = vld [vmem:[%s8197_s7 + $0xb0] ss:$8 sps:$4 sm:$0xff]  }
 0x1ab   :  { %3287 = vmatpush1.bf16.msra.mxu1 %v6005_v13  ;;  %3549 = vmatprep.subr.bf16.mxu0 %v6046_v17  ;;  %v6091_v13 = vld [vmem:[%s8196_s6 + $0x84] ss:$8 sps:$4 sm:$0xff]   ;;  %v6089_v17 = vld [vmem:[%s8196_s6 + $0x80] ss:$8 sps:$4 sm:$0xff]  }
 0x1ac   :  { %3742 = vmatprep.subr.bf16.mxu1 %v6010_v16  ;;  %v6097_v16 = vld [vmem:[%s8197_s7 + $0xa4] ss:$8 sps:$4 sm:$0xff]  }
 0x1ae   :  { %3305 = vmatmul.mubr.bf16.vlgmr.msra.gmra.mxu1 %v73_v18  ;;  %3550 = vmatpush1.bf16.msra.mxu0 %v6044_v20  ;;  %v6095_v18 = vld [vmem:[%s8197_s7 + $0xa0] ss:$8 sps:$4 sm:$0xff]   ;;  %v6098_v20 = vld [vmem:[%s8197_s7 + $0x90] ss:$8 sps:$4 sm:$0xff]  }
 0x1af   :  { %3743 = vmatpush1.bf16.msra.mxu1 %v6008_v19  ;;  %3551 = vmatprep.subr.bf16.mxu0 %v6052_v22  ;;  %v6100_v19 = vld [vmem:[%s8197_s7 + $0x94] ss:$8 sps:$4 sm:$0xff]   ;;  %v6101_v22 = vld [vmem:[%s8197_s7 + $0x80] ss:$8 sps:$4 sm:$0xff]  }
 0x1b0   :  { %3744 = vmatprep.subr.bf16.mxu1 %v6013_v21  ;;  %v6103_v21 = vld [vmem:[%s8197_s7 + $0x84] ss:$8 sps:$4 sm:$0xff]  }
 0x1b2   :  { %3552 = vmatpush1.bf16.msra.mxu0 %v6050_v24 }
 0x1b3   :  { %3745 = vmatpush1.bf16.msra.mxu1 %v6011_v23  ;;  %3553 = vmatprep.subr.bf16.mxu0 %v6058_v41 }
 0x1b4   :  { %3746 = vmatprep.subr.bf16.mxu1 %v6016_v25 }
 0x1b6   :  { %3554 = vmatpush1.bf16.msra.mxu0 %v6056_v43 }
 0x1b7   :  { %3747 = vmatpush1.bf16.msra.mxu1 %v6014_v26  ;;  %3555 = vmatprep.subr.bf16.mxu0 %v6064_v42 }
 0x1b8   :  { %3748 = vmatprep.subr.bf16.mxu1 %v6019_v28 }
 0x1ba   :  { %3556 = vmatpush1.bf16.msra.mxu0 %v6062_v55 }
 0x1bb   :  { %3749 = vmatpush1.bf16.msra.mxu1 %v6017_v30  ;;  %3557 = vmatprep.subr.bf16.mxu0 %v6070_v62 }
 0x1bc   :  { %3750 = vmatprep.subr.bf16.mxu1 %v6025_v31 }
 0x1be   :  { %3558 = vmatpush2.bf16.msra.mxu0 %v6068_v61 }
 0x1bf   :  { %3751 = vmatpush1.bf16.msra.mxu1 %v6023_v0  ;;  %3559 = vmatprep.subr.bf16.mxu0 %v6076_v63 }
 0x1c0   :  { %3752 = vmatprep.subr.bf16.mxu1 %v6031_v2 }
 0x1c2   :  { %3560 = vmatpush2.bf16.msra.mxu0 %v6074_v1 }
 0x1c3   :  { %3753 = vmatpush1.bf16.msra.mxu1 %v6029_v33  ;;  %3561 = vmatprep.subr.bf16.mxu0 %v6082_v5  ;;  %v6109_v5 = vld [vmem:[%s8199_s9 + $0x64] ss:$8 sps:$4 sm:$0xff]  }
 0x1c4   :  { %3754 = vmatprep.subr.bf16.mxu1 %v6037_v34 }
 0x1c6   :  { %3562 = vmatpush2.bf16.msra.mxu0 %v6080_v7  ;;  %v6107_v7 = vld [vmem:[%s8199_s9 + $0x60] ss:$8 sps:$4 sm:$0xff]  }
 0x1c7   :  { %3755 = vmatpush1.bf16.msra.mxu1 %v6035_v9  ;;  %3563 = vmatprep.subr.bf16.mxu0 %v6088_v11  ;;  %v6115_v11 = vld [vmem:[%s8199_s9 + $0x44] ss:$8 sps:$4 sm:$0xff]  }
 0x1c8   :  { %3756 = vmatprep.subr.bf16.mxu1 %v6043_v37 }
 0x1ca   :  { %3564 = vmatpush2.bf16.msra.mxu0 %v6086_v12  ;;  %v6113_v12 = vld [vmem:[%s8199_s9 + $0x40] ss:$8 sps:$4 sm:$0xff]  }
 0x1cb   :  { %3757 = vmatpush1.bf16.msra.mxu1 %v6041_v29  ;;  %3565 = vmatprep.subr.bf16.mxu0 %v6094_v14  ;;  %v6121_v14 = vld [vmem:[%s8199_s9 + $0x24] ss:$8 sps:$4 sm:$0xff]  }
 0x1cc   :  { %3758 = vmatprep.subr.bf16.mxu1 %v6049_v38 }
 0x1cd   :  { %v2911_v44 = vpop.f32.mrf.mxu0 }
 0x1ce   :  { %v2952_v46 = vpop.f32.mrf.mxu1  ;;  %v2912_v27 = vadd.f32 %v2911_v44, %v7623_v47  ;;  %3566 = vmatpush2.bf16.msra.mxu0 %v6092_v15  ;;  %v6119_v15 = vld [vmem:[%s8199_s9 + $0x20] ss:$8 sps:$4 sm:$0xff]  }
 0x1cf   :  { %3759 = vmatpush2.bf16.msra.mxu1 %v6047_v39  ;;  %v2913_v50 = vpop.f32.mrf.mxu0  ;;  %3567 = vmatprep.subr.bf16.mxu0 %v6097_v16  ;;  %v6124_v16 = vld [vmem:[%s8199_s9 + $0x14] ss:$8 sps:$4 sm:$0xff]  }
 0x1d0   :  { %v2954_v51 = vpop.f32.mrf.mxu1  ;;  %3760 = vmatprep.subr.bf16.mxu1 %v6055_v40  ;;  %v7786_v54 = vadd.f32 %v2952_v46, %v2912_v27  ;;  %v2914_v47 = vadd.f32 %v2913_v50, %v7626_v53  ;;  %v6067_v53 = vld [vmem:[%s8196_s6 + $0xc4] ss:$8 sps:$4 sm:$0xff]  }
 0x1d1   :  { %v2915_v56 = vpop.f32.mrf.mxu0 }
 0x1d2   :  { %v2956_v36 = vpop.f32.mrf.mxu1  ;;  %v7792_v57 = vadd.f32 %v2954_v51, %v2914_v47  ;;  %3568 = vmatpush2.bf16.msra.mxu0 %v6095_v18  ;;  %v6127_v18 = vld [vmem:[%s8199_s9 + $0x4] ss:$8 sps:$4 sm:$0xff]  }
 0x1d3   :  { %3761 = vmatpush2.bf16.msra.mxu1 %v6053_v6  ;;  %v2916_v60 = vpop.f32.mrf.mxu0  ;;  %3569 = vmatprep.subr.bf16.mxu0 %v6100_v19  ;;  %v6125_v19 = vld [vmem:[%s8199_s9] ss:$8 sps:$4 sm:$0xff]  }
 0x1d4   :  { %v2957_v59 = vpop.f32.mrf.mxu1  ;;  %3762 = vmatprep.subr.bf16.mxu1 %v6061_v52 }
 0x1d6   :  { %3570 = vmatpush2.bf16.msra.mxu0 %v6098_v20  ;;  %v6130_v20 = vld [vmem:[%s8199_s9 + $0xf4] ss:$8 sps:$4 sm:$0xff]  }
 0x1d7   :  { %3763 = vmatpush2.bf16.msra.mxu1 %v6059_v58  ;;  %3571 = vmatprep.subr.bf16.mxu0 %v6103_v21  ;;  %v6128_v21 = vld [vmem:[%s8199_s9 + $0xf0] ss:$8 sps:$4 sm:$0xff]  }
 0x1d8   :  { %3764 = vmatprep.subr.bf16.mxu1 %v6067_v53 }
 0x1da   :  { %3572 = vmatpush2.bf16.msra.mxu0 %v6101_v22  ;;  %v6133_v22 = vld [vmem:[%s8199_s9 + $0xe4] ss:$8 sps:$4 sm:$0xff]  }
 0x1db   :  { %3765 = vmatpush2.bf16.msra.mxu1 %v6065_v32 }
 0x1dc   :  { %3766 = vmatprep.subr.bf16.mxu1 %v6073_v3 }
 0x1df   :  { %3767 = vmatpush2.bf16.msra.mxu1 %v6071_v49  ;;  %v6106_v49 = vld [vmem:[%s8199_s9 + $0x74] ss:$8 sps:$4 sm:$0xff]  }
 0x1e0   :  { %3768 = vmatprep.subr.bf16.mxu1 %v6079_v4  ;;  %v6104_v4 = vld [vmem:[%s8199_s9 + $0x70] ss:$8 sps:$4 sm:$0xff]   ;;  %4023 = vmatprep.subr.bf16.mxu0 %v6106_v49 }
 0x1e3   :  { %3769 = vmatpush2.bf16.msra.mxu1 %v6077_v8  ;;  %v6110_v8 = vld [vmem:[%s8199_s9 + $0x50] ss:$8 sps:$4 sm:$0xff]  }
 0x1e4   :  { %3770 = vmatprep.subr.bf16.mxu1 %v6085_v10  ;;  %v6112_v10 = vld [vmem:[%s8199_s9 + $0x54] ss:$8 sps:$4 sm:$0xff]  }
 0x1e7   :  { %3771 = vmatpush2.bf16.msra.mxu1 %v6083_v35  ;;  %v6118_v35 = vld [vmem:[%s8199_s9 + $0x34] ss:$8 sps:$4 sm:$0xff]  }
 0x1e8   :  { %3772 = vmatprep.subr.bf16.mxu1 %v6091_v13  ;;  %v6116_v13 = vld [vmem:[%s8199_s9 + $0x30] ss:$8 sps:$4 sm:$0xff]  }
 0x1eb   :  { %3773 = vmatpush2.bf16.msra.mxu1 %v6089_v17  ;;  %v6122_v17 = vld [vmem:[%s8199_s9 + $0x10] ss:$8 sps:$4 sm:$0xff]  }
 0x20d   :  { %v2993_v23 = vpop.f32.mrf.mxu0 }
 0x20e   :  { %v3034_v24 = vpop.f32.mrf.mxu1  ;;  %v2994_v25 = vadd.f32 %v2993_v23, %v7786_v54  ;;  %v6131_v23 = vld [vmem:[%s8199_s9 + $0xe0] ss:$8 sps:$4 sm:$0xff]  }
 0x20f   :  { %v2995_v26 = vpop.f32.mrf.mxu0 }
 0x210   :  { %v3036_v28 = vpop.f32.mrf.mxu1  ;;  %v3035_v30 = vadd.f32 %v3034_v24, %v2994_v25  ;;  %v2996_v31 = vadd.f32 %v2995_v26, %v7792_v57  ;;  %v3180_v57 = vld [vmem:[%s8195_s5] sm:$0x3]  ;;  %v6136_v24 = vld [vmem:[%s8199_s9 + $0xd4] ss:$8 sps:$4 sm:$0xff]   ;;  %v6134_v25 = vld [vmem:[%s8199_s9 + $0xd0] ss:$8 sps:$4 sm:$0xff]  }
 0x211   :  { %v2997_v2 = vpop.f32.mrf.mxu0  ;;  %v3185_v58 = vrot.slane %v3180_v57, %v7178_v45  ;;  %v3189_v59 = vrot.slane %v3180_v57, %v7187_v48  ;;  %v6137_v26 = vld [vmem:[%s8199_s9 + $0xc0] ss:$8 sps:$4 sm:$0xff]  }
 0x212   :  { %v3038_v0 = vpop.f32.mrf.mxu1  ;;  %v3037_v33 = vadd.f32 %v3036_v28, %v2996_v31  ;;  %v6139_v28 = vld [vmem:[%s8199_s9 + $0xc4] ss:$8 sps:$4 sm:$0xff]   ;;  %v6140_v31 = vld [vmem:[%s8199_s9 + $0xb0] ss:$8 sps:$4 sm:$0xff]   ;;  %v6143_v2 = vld [vmem:[%s8199_s9 + $0xa0] ss:$8 sps:$4 sm:$0xff]  }
 0x213   :  { %v2998_v9 = vpop.f32.mrf.mxu0  ;;  %v6145_v0 = vld [vmem:[%s8199_s9 + $0xa4] ss:$8 sps:$4 sm:$0xff]  }
 0x214   :  { %v3039_v34 = vpop.f32.mrf.mxu1  ;;  %v6151_v9 = vld [vmem:[%s8199_s9 + $0x84] ss:$8 sps:$4 sm:$0xff]  }
 0x215   :  { %v6146_v34 = vld [vmem:[%s8199_s9 + $0x90] ss:$8 sps:$4 sm:$0xff]  }
 0x24d   :  { %v3075_v37 = vpop.f32.mrf.mxu0 }
 0x24e   :  { %v3116_v29 = vpop.f32.mrf.mxu1  ;;  %v3076_v46 = vadd.f32 %v3075_v37, %v3035_v30  ;;  %v6142_v30 = vld [vmem:[%s8199_s9 + $0xb4] ss:$8 sps:$4 sm:$0xff]   ;;  %v6149_v37 = vld [vmem:[%s8199_s9 + $0x80] ss:$8 sps:$4 sm:$0xff]  }
 0x24f   :  { %v3077_v38 = vpop.f32.mrf.mxu0 }
 0x250   :  { %v3118_v39 = vpop.f32.mrf.mxu1  ;;  %v3078_v27 = vadd.f32 %v3077_v38, %v3037_v33  ;;  %v3117_v6 = vadd.f32 %v3116_v29, %v3076_v46  ;;  %v6148_v33 = vld [vmem:[%s8199_s9 + $0x94] ss:$8 sps:$4 sm:$0xff]   ;;  %s4685_s9 = sxor.u32 2147483648, %s8209_s19 }
 0x251   :  { %v3079_v41 = vpop.f32.mrf.mxu0 }
 0x252   :  { %v3120_v40 = vpop.f32.mrf.mxu1  ;;  %v3119_v51 = vadd.f32 %v3118_v39, %v3078_v27  ;;  %v3783_v41 = vld [vmem:[%s8198_s8] sm:$0x3] }
 0x253   :  { %v3080_v44 = vpop.f32.mrf.mxu0  ;;  %v3792_v27 = vrot.slane %v3783_v41, %v7187_v48 }
 0x254   :  { %v3121_v43 = vpop.f32.mrf.mxu1 }
 0x255   :  { %v3788_v43 = vrot.slane %v3783_v41, %v7178_v45 }
 0x25d   :  { %v3157_v50 = vpop.f32.mrf.mxu0 }
 0x25e   :  { %v7877_v52 = vadd.f32 %v3157_v50, %v3117_v6 }
 0x25f   :  { %v3159_v42 = vpop.f32.mrf.mxu0 }
 0x260   :  { %v7879_v54 = vadd.f32 %v3159_v42, %v3119_v51  ;;  %v3313_v36 = vpack.c.bf16 %v7877_v52, %v7877_v52 }
 0x261   :  { %v3161_v47 = vpop.f32.mrf.mxu0 }
 0x262   :  { %v3314_v55 = vpack.c.bf16 %v7879_v54, %v7879_v54 }
 0x263   :  { %v3162_v56 = vpop.f32.mrf.mxu0 }
 0x264   :  { %3774 = vmatprep.mubr.bf16.mxu1 %v3314_v55 }
 0x265   :  { %3775 = vmatmul.mubr.bf16.vlgmr.msra.gmra.mxu1 %v3313_v36 }
 0x26e   :  { %v3306_v60 = vpop.f32.mrf.mxu1 }
 0x26f   :  { %v7890_v53 = vadd.f32 %v3306_v60, %v3185_v58 }
 0x270   :  { %v3308_v61 = vpop.f32.mrf.mxu1 }
 0x271   :  { %v7892_v62 = vadd.f32 %v3308_v61, %v3189_v59  ;;  %v3347_v1 = vpack.c.bf16 %v7890_v53, %v7890_v53 }
 0x272   :  { %v3310_v63 = vpop.f32.mrf.mxu1 }
 0x273   :  { %v3348_v32 = vpack.c.bf16 %v7892_v62, %v7892_v62 }
 0x274   :  { %v3311_v3 = vpop.f32.mrf.mxu1 }
 0x275   :  { %3573 = vmatprep.mubr.bf16.mxu0 %v3348_v32 }
 0x276   :  { %3574 = vmatmul.mubr.bf16.vlgmr.msra.gmra.mxu0 %v3347_v1 }
 0x277   :  { %4024 = vmatpush1.bf16.msra.mxu0 %v6104_v4 }
 0x278   :  { %4025 = vmatprep.subr.bf16.mxu0 %v6109_v5 }
 0x27b   :  { %4026 = vmatpush1.bf16.msra.mxu0 %v6107_v7 }
 0x27c   :  { %4027 = vmatprep.subr.bf16.mxu0 %v6112_v10 }
 0x27f   :  { %4028 = vmatpush1.bf16.msra.mxu0 %v6110_v8 }
 0x280   :  { %4029 = vmatprep.subr.bf16.mxu0 %v6115_v11 }
 0x283   :  { %4030 = vmatpush1.bf16.msra.mxu0 %v6113_v12  ;;  %v6152_v12 = vld [vmem:[%s8205_s15 + $0x78] sm:$0xff]  }
 0x284   :  { %4031 = vmatprep.subr.bf16.mxu0 %v6118_v35  ;;  %v6157_v35 = vld [vmem:[%s8205_s15 + $0x30] sm:$0xff]  }
 0x287   :  { %4032 = vmatpush1.bf16.msra.mxu0 %v6116_v13  ;;  %v6158_v13 = vld [vmem:[%s8201_s11 + $0x70] sm:$0xff]  }
 0x288   :  { %4033 = vmatprep.subr.bf16.mxu0 %v6121_v14  ;;  %v6159_v14 = vld [vmem:[%s8201_s11 + $0x30] sm:$0xff]  }
 0x28b   :  { %4034 = vmatpush1.bf16.msra.mxu0 %v6119_v15  ;;  %v6160_v15 = vld [vmem:[%s8205_s15 + $0x68] sm:$0xff]  }
 0x28c   :  { %4035 = vmatprep.subr.bf16.mxu0 %v6124_v16  ;;  %v6161_v16 = vld [vmem:[%s8205_s15 + $0x28] sm:$0xff]  }
 0x28f   :  { %4036 = vmatpush1.bf16.msra.mxu0 %v6122_v17  ;;  %v6162_v17 = vld [vmem:[%s8201_s11 + $0x68] sm:$0xff]  }
 0x290   :  { %4037 = vmatprep.subr.bf16.mxu0 %v6127_v18  ;;  %v6163_v18 = vld [vmem:[%s8201_s11 + $0x28] sm:$0xff]  }
 0x293   :  { %4038 = vmatpush1.bf16.msra.mxu0 %v6125_v19  ;;  %v6164_v19 = vld [vmem:[%s8205_s15 + $0x60] sm:$0xff]  }
 0x294   :  { %4039 = vmatprep.subr.bf16.mxu0 %v6130_v20  ;;  %v6165_v20 = vld [vmem:[%s8205_s15 + $0x20] sm:$0xff]  }
 0x297   :  { %4040 = vmatpush2.bf16.msra.mxu0 %v6128_v21  ;;  %v6166_v21 = vld [vmem:[%s8201_s11 + $0x60] sm:$0xff]  }
 0x298   :  { %4041 = vmatprep.subr.bf16.mxu0 %v6133_v22  ;;  %v6167_v22 = vld [vmem:[%s8201_s11 + $0x20] sm:$0xff]  }
 0x29b   :  { %4042 = vmatpush2.bf16.msra.mxu0 %v6131_v23  ;;  %v6168_v23 = vld [vmem:[%s8205_s15 + $0x58] sm:$0xff]  }
 0x29c   :  { %4043 = vmatprep.subr.bf16.mxu0 %v6136_v24  ;;  %v6169_v24 = vld [vmem:[%s8205_s15 + $0x18] sm:$0xff]  }
 0x29f   :  { %4044 = vmatpush2.bf16.msra.mxu0 %v6134_v25  ;;  %v6170_v25 = vld [vmem:[%s8201_s11 + $0x58] sm:$0xff]  }
 0x2a0   :  { %4045 = vmatprep.subr.bf16.mxu0 %v6139_v28  ;;  %v6172_v28 = vld [vmem:[%s8205_s15 + $0x50] sm:$0xff]  }
 0x2a3   :  { %4046 = vmatpush2.bf16.msra.mxu0 %v6137_v26  ;;  %v6171_v26 = vld [vmem:[%s8201_s11 + $0x18] sm:$0xff]  }
 0x2a4   :  { %4047 = vmatprep.subr.bf16.mxu0 %v6142_v30  ;;  %v6173_v30 = vld [vmem:[%s8205_s15 + $0x10] sm:$0xff]  }
 0x2a7   :  { %4048 = vmatpush2.bf16.msra.mxu0 %v6140_v31  ;;  %v6174_v31 = vld [vmem:[%s8201_s11 + $0x50] sm:$0xff]  }
 0x2a8   :  { %4049 = vmatprep.subr.bf16.mxu0 %v6145_v0  ;;  %v6175_v0 = vld [vmem:[%s8201_s11 + $0x10] sm:$0xff]  }
 0x2ab   :  { %4050 = vmatpush2.bf16.msra.mxu0 %v6143_v2  ;;  %v6176_v2 = vld [vmem:[%s8205_s15 + $0x48] sm:$0xff]  }
 0x2ac   :  { %4051 = vmatprep.subr.bf16.mxu0 %v6148_v33  ;;  %v6177_v33 = vld [vmem:[%s8205_s15 + $0x8] sm:$0xff]  }
 0x2af   :  { %4052 = vmatpush2.bf16.msra.mxu0 %v6146_v34  ;;  %v6178_v34 = vld [vmem:[%s8201_s11 + $0x48] sm:$0xff]  }
 0x2b0   :  { %4053 = vmatprep.subr.bf16.mxu0 %v6151_v9  ;;  %v6179_v9 = vld [vmem:[%s8201_s11 + $0x8] sm:$0xff]  }
 0x2b3   :  { %4054 = vmatpush2.bf16.msra.mxu0 %v6149_v37  ;;  %v6180_v37 = vld [vmem:[%s8205_s15 + $0x40] sm:$0xff]  }
 0x2b4   :  { %5313 = vmatprep.subr.bf16.mxu0 %v6152_v12  ;;  %v6244_v12 = vmov 0.0  }
 0x325   :  { %v3776_v29 = vpop.f32.mrf.mxu1 }
 0x327   :  { %v3778_v38 = vpop.f32.mrf.mxu1 }
 0x329   :  { %v3780_v39 = vpop.f32.mrf.mxu1 }
 0x32a   :  { %v6183_v39 = vld [vmem:[%s8201_s11] sm:$0xff]  }
 0x32b   :  { %v3781_v40 = vpop.f32.mrf.mxu1 }
 0x32c   :  { %v3851_v40 = vld [vmem:[%s8200_s10] sm:$0x3] }
 0x32d   :  { %v3856_v41 = vrot.slane %v3851_v40, %v7178_v45 }
 0x336   :  { %v3575_v44 = vpop.f32.mrf.mxu0 }
 0x337   :  { %v3777_v46 = vadd.f32 %v3776_v29, %v3575_v44  ;;  %v6181_v29 = vld [vmem:[%s8205_s15] sm:$0xff]  }
 0x338   :  { %v3577_v6 = vpop.f32.mrf.mxu0 }
 0x339   :  { %v3795_v50 = vadd.f32 %v3788_v43, %v3777_v46  ;;  %v3779_v51 = vadd.f32 %v3778_v38, %v3577_v6  ;;  %v6182_v38 = vld [vmem:[%s8201_s11 + $0x40] sm:$0xff]   ;;  %v3860_v43 = vrot.slane %v3851_v40, %v7187_v48 }
 0x33a   :  { %v3579_v42 = vpop.f32.mrf.mxu0 }
 0x33b   :  { %v5190_v47 = vmul.f32 -1.442695, %v3795_v50  ;;  %v3796_v55 = vadd.f32 %v3792_v27, %v3779_v51 }
 0x33c   :  { %v3580_v36 = vpop.f32.mrf.mxu0 }
 0x33d   :  { %6200 = vpow2.f32 %v5190_v47  ;;  %v5191_v56 = vmul.f32 -1.442695, %v3796_v55 }
 0x33f   :  { %6202 = vpow2.f32 %v5191_v56 }
 0x34a   :  { %v6201_v57 = vpop.eup %6200 }
 0x34b   :  { %v3803_v58 = vadd.f32 1.0, %v6201_v57 }
 0x34c   :  { %v6203_v59 = vpop.eup %6202 }
 0x34d   :  { %6204 = vrcp.f32 %v3803_v58  ;;  %v3804_v60 = vadd.f32 1.0, %v6203_v59 }
 0x34f   :  { %6206 = vrcp.f32 %v3804_v60 }
 0x35a   :  { %v6205_v61 = vpop.eup %6204 }
 0x35b   :  { %v3811_v63 = vsub.f32 1.0, %v6205_v61  ;;  %v3809_v49 = vmul.f32 %v6205_v61, %v7877_v52  ;;  %v6154_v52 = vld [vmem:[%s8201_s11 + $0x78] sm:$0xff]  }
 0x35c   :  { %v6207_v32 = vpop.eup %6206  ;;  %5282 = vmatprep.subr.bf16.mxu1 %v6154_v52  ;;  %v6186_v52 = vld [vmem:[%s8203_s13 + $0x28] sm:$0xff]  }
 0x35d   :  { %v3812_v1 = vsub.f32 1.0, %v6207_v32  ;;  %v3813_v3 = vmul.f32 %v3811_v63, %v7890_v53  ;;  %v3810_v4 = vmul.f32 %v6207_v32, %v7879_v54  ;;  %v6153_v53 = vld [vmem:[%s8205_s15 + $0x38] sm:$0xff]  }
 0x35e   :  { %v6155_v54 = vld [vmem:[%s8201_s11 + $0x38] sm:$0xff]  }
 0x35f   :  { %v3814_v5 = vmul.f32 %v3812_v1, %v7892_v62  ;;  %v3815_v7 = vadd.f32 %v3813_v3, %v3809_v49  ;;  %v6156_v62 = vld [vmem:[%s8205_s15 + $0x70] sm:$0xff]   ;;  %5283 = vmatpush3.bf16.msra.mxu1 %v6155_v54  ;;  %v6187_v54 = vld [vmem:[%s8203_s13 + $0x20] sm:$0xff]  }
 0x360   :  { %5284 = vmatprep.subr.bf16.mxu1 %v6158_v13  ;;  %v6190_v13 = vld [vmem:[%s8203_s13 + $0x8] sm:$0xff]  }
 0x361   :  { %v3816_v8 = vadd.f32 %v3814_v5, %v3810_v4  ;;  %v3817_v11 = vpack.c.bf16 %v3815_v7, %v3815_v7 }
 0x363   :  { %v3818_v10 = vpack.c.bf16 %v3816_v8, %v3816_v8  ;;  %5285 = vmatpush3.bf16.msra.mxu1 %v6159_v14  ;;  %v6191_v14 = vld [vmem:[%s8203_s13] sm:$0xff]  }
 0x364   :  { %5286 = vmatprep.subr.bf16.mxu1 %v6162_v17 }
 0x365   :  { %4055 = vmatprep.mubr.bf16.mxu0 %v3818_v10 }
 0x366   :  { %4056 = vmatmul.mubr.bf16.vlgmr.msra.gmra.mxu0 %v3817_v11  ;;  %v6184_v11 = vld [vmem:[%s8203_s13 + $0x38] sm:$0xff]  }
 0x367   :  { %5314 = vmatpush3.bf16.msra.mxu0 %v6153_v53  ;;  %5287 = vmatpush3.bf16.msra.mxu1 %v6163_v18  ;;  %v6185_v53 = vld [vmem:[%s8203_s13 + $0x30] sm:$0xff]  }
 0x368   :  { %5315 = vmatprep.subr.bf16.mxu0 %v6156_v62  ;;  %5288 = vmatprep.subr.bf16.mxu1 %v6166_v21  ;;  %v6188_v62 = vld [vmem:[%s8203_s13 + $0x18] sm:$0xff]   ;;  %v5224_v21 = vld [vmem:[%s8202_s12] ss:$0 sm:$0xff] }
 0x36b   :  { %5316 = vmatpush3.bf16.msra.mxu0 %v6157_v35  ;;  %5289 = vmatpush3.bf16.msra.mxu1 %v6167_v22  ;;  %v6189_v35 = vld [vmem:[%s8203_s13 + $0x10] sm:$0xff]  }
 0x36c   :  { %5317 = vmatprep.subr.bf16.mxu0 %v6160_v15  ;;  %5290 = vmatprep.subr.bf16.mxu1 %v6170_v25  ;;  %v4686_v15 = vstv %s4685_s9 }
 0x36f   :  { %5318 = vmatpush3.bf16.msra.mxu0 %v6161_v16  ;;  %5291 = vmatpush3.bf16.msra.mxu1 %v6171_v26  ;;  %v4687_v16 = vmul.f32 1.442695, %v4686_v15 }
 0x370   :  { %5319 = vmatprep.subr.bf16.mxu0 %v6164_v19  ;;  %5292 = vmatprep.subr.bf16.mxu1 %v6174_v31 }
 0x373   :  { %5320 = vmatpush3.bf16.msra.mxu0 %v6165_v20  ;;  %5293 = vmatpush3.bf16.msra.mxu1 %v6175_v0 }
 0x374   :  { %5321 = vmatprep.subr.bf16.mxu0 %v6168_v23  ;;  %5294 = vmatprep.subr.bf16.mxu1 %v6178_v34 }
 0x377   :  { %5322 = vmatpush3.bf16.msra.mxu0 %v6169_v24  ;;  %5295 = vmatpush3.bf16.msra.mxu1 %v6179_v9 }
 0x378   :  { %5323 = vmatprep.subr.bf16.mxu0 %v6172_v28  ;;  %5296 = vmatprep.subr.bf16.mxu1 %v6182_v38 }
 0x37b   :  { %5324 = vmatpush3.bf16.msra.mxu0 %v6173_v30  ;;  %5297 = vmatpush3.bf16.msra.mxu1 %v6183_v39 }
 0x37c   :  { %5325 = vmatprep.subr.bf16.mxu0 %v6176_v2  ;;  %5344 = vmatprep.subr.bf16.mxu1 %v6244_v12 }
 0x37f   :  { %5326 = vmatpush3.bf16.msra.mxu0 %v6177_v33 }
 0x380   :  { %5327 = vmatprep.subr.bf16.mxu0 %v6180_v37  ;;  %v5256_v37 = vld [vmem:[%s8206_s16] ss:$0 sm:$0xff] }
 0x383   :  { %5328 = vmatpush3.bf16.msra.mxu0 %v6181_v29 }
 0x426   :  { %v4057_v44 = vpop.f32.mrf.mxu0 }
 0x427   :  { %v4058_v46 = vadd.f32 %v4057_v44, %v3856_v41 }
 0x428   :  { %v4059_v27 = vpop.f32.mrf.mxu0 }
 0x429   :  { %v4064_v6 = vmul.f32 %v4058_v46, %v4058_v46  ;;  %v4060_v50 = vadd.f32 %v4059_v27, %v3860_v43 }
 0x42a   :  { %v4061_v51 = vpop.f32.mrf.mxu0 }
 0x42b   :  { %v4066_v42 = vmul.f32 %v4064_v6, %v4058_v46  ;;  %v4065_v47 = vmul.f32 %v4060_v50, %v4060_v50  ;;  %v6192_v51 = vld [vmem:[%s8207_s17 + $0x38] sm:$0xff]  }
 0x42c   :  { %v4062_v55 = vpop.f32.mrf.mxu0 }
 0x42d   :  { %v4068_v36 = vmul.f32 0.044715, %v4066_v42  ;;  %v4067_v56 = vmul.f32 %v4065_v47, %v4060_v50  ;;  %v6193_v55 = vld [vmem:[%s8207_s17 + $0x30] sm:$0xff]  }
 0x42f   :  { %v4070_v57 = vadd.f32 %v4068_v36, %v4058_v46  ;;  %v4069_v58 = vmul.f32 0.044715, %v4067_v56  ;;  %v6194_v36 = vld [vmem:[%s8207_s17 + $0x28] sm:$0xff]   ;;  %v6195_v56 = vld [vmem:[%s8207_s17 + $0x20] sm:$0xff]  }
 0x431   :  { %v4072_v59 = vmul.f32 0.7978846, %v4070_v57  ;;  %v4071_v60 = vadd.f32 %v4069_v58, %v4060_v50  ;;  %v6196_v57 = vld [vmem:[%s8207_s17 + $0x18] sm:$0xff]  }
 0x433   :  { %6208 = vtanh.f32 %v4072_v59  ;;  %v4073_v61 = vmul.f32 0.7978846, %v4071_v60  ;;  %v6197_v59 = vld [vmem:[%s8207_s17 + $0x10] sm:$0xff]  }
 0x435   :  { %6210 = vtanh.f32 %v4073_v61  ;;  %v6198_v61 = vld [vmem:[%s8207_s17 + $0x8] sm:$0xff]  }
 0x436   :  { %6212 = vpow2.f32 %v4687_v16 }
 0x440   :  { %v6209_v45 = vpop.eup %6208 }
 0x441   :  { %v4076_v48 = vadd.f32 1.0, %v6209_v45 }
 0x442   :  { %v6211_v63 = vpop.eup %6210 }
 0x443   :  { %v4078_v32 = vmul.f32 0.5, %v4076_v48  ;;  %v4077_v1 = vadd.f32 1.0, %v6211_v63  ;;  %v6213_v17 = vpop.eup %6212  ;;  %v6199_v48 = vld [vmem:[%s8207_s17] sm:$0xff]   ;;  %s6246_s17 = smov [#allocation3]  }
 0x444   :  { %5384 = vpush %v6213_v17  ;;  %s4708_s0 = sshll.u32 %s6246_s17, 4  ;;  %s4709_s0 = int_to_ptr.vmem [resolvable:$true] %s4708_s0 }
 0x445   :  { %v4080_v3 = vmul.f32 %v4078_v32, %v4058_v46  ;;  %v4079_v49 = vmul.f32 0.5, %v4077_v1  ;;  %p6225_p1 = scmp.lt.s32.totalorder %s4709_s0, %s4709_s0 }
 0x447   :  { %v4081_v4 = vmul.f32 %v4079_v49, %v4060_v50  ;;  %v4082_v5 = vand.u32 2147483647, %v4080_v3  ;;  %v5245_v10 = vpack.c.bf16 %v4080_v3, %v4080_v3 }
 0x449   :  { %v5242_v7 = vpack.c.bf16 %v4081_v4, %v4081_v4  ;;  %v4083_v8 = vand.u32 2147483647, %v4081_v4  ;;  %vm4084_vm1 = vcmp.gt.f32.partialorder %v4082_v5, 0.01  ;;  %v5247_v5 = vld [vmem:[%s8204_s14] ss:$0 sm:$0xff] }
 0x44a   :  { %vm5244_vm4 = vmpackc.low %vm4084_vm1, %vm4084_vm1  ;;  %s6220_s14 = scalar_lea.vmem %s4709_s0, 32 }
 0x44b   :  { %4555 = vmatprep.mubr.bf16.mxu0 %v5242_v7  ;;  %vm4085_vm2 = vcmp.gt.f32.partialorder %v4083_v8, 0.01  ;;  %p6221_p0 = scmp.ne.s32.totalorder %s4709_s0, %s6220_s14  ;;  %p6226_p2 = scmp.lt.s32.totalorder %s6220_s14, %s6220_s14 }
 0x44c   :  { %4556 = vmatmul.mubr.bf16.vlgmr.msra.gmra.mxu0 %v5245_v10  ;;  %vm5241_vm3 = vmpackc.low %vm4085_vm2, %vm4085_vm2 }
 0x44d   :  { %5243 = vmatprep.mubr.msk.bf16.mxu1 %vm5241_vm3, %v5242_v7  ;;  %v5273_v7 = vld [vmem:[%s8208_s18] ss:$0 sm:$0xff]  ;;  %p6227_p3 = por %p6226_p2, %p6225_p1 }
 0x44e   :  { %5246 = vmatmul.mubr.msk.bf16.vlgmr.msra.gmra.mxu1 %vm5244_vm4, %v5245_v10 }
 0x44f   :  { %5345 = vmatpush3.bf16.msra.mxu1 %v6184_v11  ;;  %5360 = vmatprep.mubr.msk.bf16.mxu1 %vm6245_vm5, %v6244_v12  ;;  %p6228_p4 = pnand %p6227_p3, %p6221_p0 }
 0x450   :  { %5346 = vmatprep.subr.bf16.mxu1 %v6244_v12 }
 0x453   :  { %5347 = vmatpush3.bf16.msra.mxu1 %v6185_v53 }
 0x454   :  { %5348 = vmatprep.subr.bf16.mxu1 %v6244_v12 }
 0x457   :  { %5349 = vmatpush3.bf16.msra.mxu1 %v6186_v52 }
 0x458   :  { %5350 = vmatprep.subr.bf16.mxu1 %v6244_v12 }
 0x45b   :  { %5351 = vmatpush3.bf16.msra.mxu1 %v6187_v54 }
 0x45c   :  { %5352 = vmatprep.subr.bf16.mxu1 %v6244_v12 }
 0x45f   :  { %5353 = vmatpush3.bf16.msra.mxu1 %v6188_v62 }
 0x460   :  { %5354 = vmatprep.subr.bf16.mxu1 %v6244_v12 }
 0x463   :  { %5355 = vmatpush3.bf16.msra.mxu1 %v6189_v35 }
 0x464   :  { %5356 = vmatprep.subr.bf16.mxu1 %v6244_v12 }
 0x467   :  { %5357 = vmatpush3.bf16.msra.mxu1 %v6190_v13 }
 0x468   :  { %5358 = vmatprep.subr.bf16.mxu1 %v6244_v12 }
 0x46b   :  { %5359 = vmatpush3.bf16.msra.mxu1 %v6191_v14 }
 0x46c   :  { %5364 = vmatprep.subr.bf16.mxu1 %v6244_v12 }
 0x475   :  { %s5385_s13 = spop %5384 }
 0x476   :  { %s4690_s19 = sadd.f32 1.0, %s5385_s13 }
 0x478   :  { %v4691_v9 = vstv %s4690_s19 }
 0x479   :  { %6214 = vrcp.f32 %v4691_v9 }
 0x486   :  { %v6215_v41 = vpop.eup %6214 }
 0x487   :  { %5386 = vpush %v6215_v41 }
 0x4b8   :  { %s5387_s27 = spop %5386 }
 0x4b9   :  { %s4696_s8 = ssub.f32 1.0, %s5387_s27  ;;  %v4694_v10 = vstv %s5387_s27 }
 0x4bb   :  { %v4697_v11 = vstv %s4696_s8 }
 0x50c   :  { %v5329_v18 = vpop.f32.mrf.mxu0 }
 0x50e   :  { %v5298_v19 = vpop.f32.mrf.mxu1  ;;  %v5330_v20 = vpop.f32.mrf.mxu0 }
 0x50f   :  { %v5331_v33 = vadd.f32 %v5330_v20, %v5329_v18 }
 0x510   :  { %v5299_v22 = vpop.f32.mrf.mxu1  ;;  %v5332_v23 = vpop.f32.mrf.mxu0 }
 0x511   :  { %v5300_v24 = vadd.f32 %v5299_v22, %v5298_v19  ;;  %v4558_v38 = vadd.f32 %v5331_v33, %v5256_v37 }
 0x512   :  { %v5301_v25 = vpop.f32.mrf.mxu1  ;;  %v5333_v26 = vpop.f32.mrf.mxu0 }
 0x513   :  { %v4260_v28 = vadd.f32 %v5300_v24, %v5224_v21  ;;  %v4563_v39 = vmul.f32 %v4558_v38, %v4558_v38 }
 0x514   :  { %v5302_v30 = vpop.f32.mrf.mxu1 }
 0x515   :  { %v4265_v31 = vmul.f32 %v4260_v28, %v4260_v28  ;;  %v4564_v40 = vmul.f32 %v4563_v39, %v4558_v38 }
 0x517   :  { %v4266_v0 = vmul.f32 %v4265_v31, %v4260_v28  ;;  %v4565_v43 = vmul.f32 0.044715, %v4564_v40 }
 0x519   :  { %v4267_v2 = vmul.f32 0.044715, %v4266_v0  ;;  %v4566_v27 = vadd.f32 %v4565_v43, %v4558_v38 }
 0x51b   :  { %v4268_v34 = vadd.f32 %v4267_v2, %v4260_v28  ;;  %v4567_v42 = vmul.f32 0.7978846, %v4566_v27 }
 0x51d   :  { %v4269_v29 = vmul.f32 0.7978846, %v4268_v34 }
 0x51f   :  { %6216 = vtanh.f32 %v4269_v29 }
 0x520   :  { %6218 = vtanh.f32 %v4567_v42 }
 0x52c   :  { %v6217_v44 = vpop.eup %6216 }
 0x52d   :  { %v4271_v46 = vadd.f32 1.0, %v6217_v44  ;;  %v6219_v58 = vpop.eup %6218 }
 0x52e   :  { %v4569_v60 = vadd.f32 1.0, %v6219_v58 }
 0x52f   :  { %v4272_v6 = vmul.f32 0.5, %v4271_v46 }
 0x530   :  { %v4570_v45 = vmul.f32 0.5, %v4569_v60 }
 0x531   :  { %v4273_v50 = vmul.f32 %v4272_v6, %v4260_v28 }
 0x532   :  { %v4571_v63 = vmul.f32 %v4570_v45, %v4558_v38 }
 0x533   :  { %v4274_v47 = vpack.c.bf16 %v4273_v50, %v4273_v50 }
 0x534   :  { %v4572_v32 = vpack.c.bf16 %v4571_v63, %v4571_v63 }
 0x535   :  { %5361 = vmatmul.mubr.bf16.vlgmr.msra.gmra.mxu1 %v4274_v47 }
 0x536   :  { %5365 = vmatpush3.bf16.msra.mxu1 %v6192_v51  ;;  %5380 = vmatprep.mubr.msk.bf16.mxu1 %vm6245_vm5, %v6244_v12 }
 0x537   :  { %5366 = vmatprep.subr.bf16.mxu1 %v6244_v12 }
 0x53a   :  { %5367 = vmatpush3.bf16.msra.mxu1 %v6193_v55 }
 0x53b   :  { %5368 = vmatprep.subr.bf16.mxu1 %v6244_v12 }
 0x53e   :  { %5369 = vmatpush3.bf16.msra.mxu1 %v6194_v36 }
 0x53f   :  { %5370 = vmatprep.subr.bf16.mxu1 %v6244_v12 }
 0x542   :  { %5371 = vmatpush3.bf16.msra.mxu1 %v6195_v56 }
 0x543   :  { %5372 = vmatprep.subr.bf16.mxu1 %v6244_v12 }
 0x546   :  { %5373 = vmatpush3.bf16.msra.mxu1 %v6196_v57 }
 0x547   :  { %5374 = vmatprep.subr.bf16.mxu1 %v6244_v12 }
 0x54a   :  { %5375 = vmatpush3.bf16.msra.mxu1 %v6197_v59 }
 0x54b   :  { %5376 = vmatprep.subr.bf16.mxu1 %v6244_v12 }
 0x54e   :  { %5377 = vmatpush3.bf16.msra.mxu1 %v6198_v61 }
 0x54f   :  { %5378 = vmatprep.subr.bf16.mxu1 %v6244_v12 }
 0x552   :  { %5379 = vmatpush3.bf16.msra.mxu1 %v6199_v48 }
 0x555   :  { %5381 = vmatmul.mubr.bf16.vlgmr.msra.gmra.mxu1 %v4572_v32 }
 0x5f5   :  { %v4380_v1 = vpop.f32.mrf.mxu1 }
 0x5f6   :  { %v4381_v8 = vadd.f32 %v5247_v5, %v4380_v1 }
 0x5f7   :  { %v5362_v3 = vpop.f32.mrf.mxu1 }
 0x5f8   :  { %v4695_v54 = vmul.f32 %v4694_v10, %v4381_v8 }
 0x5f9   :  { %v4383_v49 = vpop.f32.mrf.mxu1 }
 0x5fb   :  { %v5363_v4 = vpop.f32.mrf.mxu1 }
 0x615   :  { %v4678_v12 = vpop.f32.mrf.mxu1 }
 0x616   :  { %v4679_v53 = vadd.f32 %v5273_v7, %v4678_v12 }
 0x617   :  { %v5382_v52 = vpop.f32.mrf.mxu1 }
 0x618   :  { %v4698_v62 = vmul.f32 %v4697_v11, %v4679_v53 }
 0x619   :  { %v4681_v35 = vpop.f32.mrf.mxu1 }
 0x61a   :  { %v4699_v13 = vadd.f32 %v4698_v62, %v4695_v54 }
 0x61b   :  { %v5383_v14 = vpop.f32.mrf.mxu1 }
 0x61c   :  { %4701 = vst.msk [vmem:[#allocation3] sm:$0x3] %vm4700_vm6, %v4699_v13 }
 0x61d   :  { %6231 = shalt.err (!%p6228_p4)
}
 0x61e   :  { %4711 = dma.vmem_to_hbm [thread:$0]  %s4709_s0, 32, %s8210_s20, [#allocation4]  }
 0x61f   :  { %6240 = dma.done.wait [#allocation4], 32  }
 0x620   :  { %6241 = vsyncadd [#allocation4], 4294967264 }
 0x621   :  { %4715 = vsyncpa [#allocation4], 1 }

</bundles_post_ra>
